<compile_context>
chip_gen: v6e
topology: v6e:2x2x1
jax: 0.10.0
libtpu: 0.0.40
codegen_flags: <defaults>
</compile_context>

<pallas_src>
import jax
import jax.numpy as jnp
import numpy as np
from jax import lax
from jax.experimental import pallas as pl
from jax.experimental.pallas import tpu as pltpu


# -----------------------------------------------------------------------------
# Generation-aware VMEM sizing
# -----------------------------------------------------------------------------
_DEFAULT_VMEM_CAPACITY = 64 * 1024 * 1024      # conservative: v7x per-core VMEM
_VMEM_LIMIT_CACHE = None


def _vmem_limit_bytes():
    """Scoped-VMEM limit: ~48 MiB on v7x (64 MiB physical), ~96-100 MiB on
    v5e/v6e (128 MiB physical)."""
    global _VMEM_LIMIT_CACHE
    if _VMEM_LIMIT_CACHE is None:
        try:
            cap = int(getattr(pltpu.get_tpu_info(), "vmem_capacity_bytes", 0))
        except Exception:                       # API unavailable / not on TPU
            cap = 0
        cap = cap or _DEFAULT_VMEM_CAPACITY
        _VMEM_LIMIT_CACHE = min((cap * 3) // 4, 100 * 1024 * 1024)
    return _VMEM_LIMIT_CACHE


def _pick_row_tile(H, W, Cin, Cout, vmem_limit, n_batch):
    """Largest even row tile that divides H, fits the VMEM budget and leaves at
    least 2 grid steps for v7x's two TensorCores."""
    # Rough per-output-row working set (bytes): f32 conv results, bf16 staging
    # slab + conv2 im2col patches, double-buffered bf16 output blocks.
    per_row = W * (40 * Cout + 20 * Cin) + 8 * Cout
    # TH-independent residents: full-H conv1 patch block (double-buffered),
    # weight matrices and biases.
    fixed = 2 * (H + 2) * W * 9 * Cin * 2 + 4 * (9 * Cin + 9 * Cout + 2) * Cout
    budget = vmem_limit // 2                    # headroom for compiler temps
    cap = max(2, (budget - fixed) // max(per_row, 1))

    cands = [d for d in range(H, 1, -1) if H % d == 0 and d % 2 == 0]
    fit = [d for d in cands if d <= cap] or [cands[-1]]
    th = fit[0]
    if n_batch * (H // th) < 2:                 # keep both v7x cores busy
        better = [d for d in fit if n_batch * (H // d) >= 2]
        if better:
            th = better[0]
    return th


# -----------------------------------------------------------------------------
# Fused kernel: conv1+bn1+relu -> conv2+bn2+relu -> 2x2 maxpool, per row tile
# -----------------------------------------------------------------------------
def _fused_downsample_kernel(p_ref, w1_ref, b1_ref, w2_ref, b2_ref,
                             y_ref, pool_ref, x1s_ref):
    """One (batch, row-tile) grid step.

    p_ref   : (H+2, W, 9*Cin)      bf16  conv1 im2col patches (built in wrapper),
                                         H zero-padded by 1 row on each side.
    w1_ref  : (9*Cin, Cout)        bf16  conv1 weights with BN1 scale folded in.
    b1_ref  : (1, Cout)            f32   conv1+BN1 folded bias.
    w2_ref  : (9*Cout, Cout)       bf16  conv2 weights with BN2 scale folded in.
    b2_ref  : (1, Cout)            f32   conv2+BN2 folded bias.
    y_ref   : (TH, W, Cout)        bf16  pre-pool activation tile (output).
    pool_ref: (TH//2, W//2, Cout)  bf16  pooled tile (output).
    x1s_ref : (TH+2, W+2, Cout)    bf16  VMEM staging slab for x1 (zero borders).
    """
    TH, W, Cout = y_ref.shape
    t = pl.program_id(1)
    r1 = pl.multiple_of(t * TH, TH)          # patch row of x1 row (t*TH - 1)

    # ---- conv1 (+folded BN1) + ReLU: ONE im2col matmul -----------------------
    slab = p_ref[pl.ds(r1, TH + 2), :, :]                  # (TH+2, W, 9*Cin)
    k1 = slab.shape[-1]
    x1 = jnp.dot(slab.reshape((TH + 2) * W, k1), w1_ref[...],
                 preferred_element_type=jnp.float32)
    x1 = jnp.maximum(x1 + b1_ref[...], 0.0)
    x1 = x1.reshape(TH + 2, W, Cout)

    # ---- stage x1 in a zero-bordered VMEM slab (SAME padding for conv2 with
    #      no concat-based padding materialization) ----------------------------
    zcol = jnp.zeros((TH + 2, 1, Cout), x1s_ref.dtype)
    x1s_ref[:, 0:1, :] = zcol                              # left  W border
    x1s_ref[:, W + 1:W + 2, :] = zcol                      # right W border
    x1s_ref[:, 1:W + 1, :] = x1.astype(x1s_ref.dtype)      # interior

    # Halo rows outside the image must be exactly zero (relu(bn1(conv1(0))) != 0).
    zrow = jnp.zeros((1, W + 2, Cout), x1s_ref.dtype)

    @pl.when(t == 0)
    def _():
        x1s_ref[0:1, :, :] = zrow

    @pl.when(t == pl.num_programs(1) - 1)
    def _():
        x1s_ref[TH + 1:TH + 2, :, :] = zrow

    # ---- conv2 (+folded BN2) + ReLU: im2col from the staged slab, one matmul -
    pieces = [x1s_ref[dy:dy + TH, dx:dx + W, :].reshape(TH * W, Cout)
              for dy in range(3) for dx in range(3)]
    patches = jnp.concatenate(pieces, axis=-1)             # (TH*W, 9*Cout)
    y = jnp.dot(patches, w2_ref[...], preferred_element_type=jnp.float32)
    y = jnp.maximum(y + b2_ref[...], 0.0).reshape(TH, W, Cout)

    # ---- fused 2x2 / stride-2 max pool (channels stay on the lane axis) ------
    yr = y.reshape(TH // 2, 2, W // 2, 2, Cout)
    pooled = jnp.max(jnp.max(yr, axis=3), axis=1)

    y_ref[...] = y.astype(y_ref.dtype)
    pool_ref[...] = pooled.astype(pool_ref.dtype)


# -----------------------------------------------------------------------------
# Parameter prep (one-time): fold eval-mode BN into im2col weight matrices
# -----------------------------------------------------------------------------
def prepare_params(params, eps=1e-5):
    def fold(w_oihw, b, gamma, beta, rm, rv):
        cout, cin = w_oihw.shape[0], w_oihw.shape[1]
        s = gamma / jnp.sqrt(rv + eps)                       # (Cout,)
        w = jnp.transpose(w_oihw, (2, 3, 1, 0)) * s          # (3,3,Cin,Cout)*scale
        w = w.reshape(9 * cin, cout).astype(jnp.bfloat16)    # (dy,dx,cin)-major
        bias = ((b - rm) * s + beta).astype(jnp.float32)
        return w, bias.reshape(1, cout)

    w1m, b1 = fold(params["w1"], params["b1"], params["g1"], params["beta1"],
                   params["rm1"], params["rv1"])
    w2m, b2 = fold(params["w2"], params["b2"], params["g2"], params["beta2"],
                   params["rm2"], params["rv2"])
    return {"w1m": w1m, "b1": b1, "w2m": w2m, "b2": b2}


# -----------------------------------------------------------------------------
# Forward (NHWC core + NCHW adapter)
# -----------------------------------------------------------------------------
@jax.jit
def downsample_block_nhwc(x_nhwc, prep):
    """Fused conv1+bn1+relu -> conv2+bn2+relu -> maxpool(2,2). NHWC in/out.
    Returns (pooled, y) in bf16.  BatchNorm is eval-mode (running stats)."""
    N, H, W, Cin = x_nhwc.shape
    Cout = prep["w1m"].shape[1]
    assert H % 2 == 0 and W % 2 == 0, "maxpool(2,2) path assumes even H, W"

    # Wrapper-side im2col of the small Cin-channel network input: removes all
    # in-kernel shift/concat/pad work for conv1.  H gets one extra padded row
    # on each side so each row tile can recompute the x1 halo rows for conv2.
    xb = x_nhwc.astype(jnp.bfloat16)
    xp = jnp.pad(xb, ((0, 0), (2, 2), (1, 1), (0, 0)))       # (N, H+4, W+2, Cin)
    cols = [xp[:, dy:dy + H + 2, dx:dx + W, :]
            for dy in range(3) for dx in range(3)]
    p1 = jnp.concatenate(cols, axis=-1)                      # (N, H+2, W, 9*Cin)

    vmem_limit = _vmem_limit_bytes()
    TH = _pick_row_tile(H, W, Cin, Cout, vmem_limit, N)
    grid = (N, H // TH)

    y, pooled = pl.pallas_call(
        _fused_downsample_kernel,
        out_shape=(
            jax.ShapeDtypeStruct((N, H, W, Cout), jnp.bfloat16),
            jax.ShapeDtypeStruct((N, H // 2, W // 2, Cout), jnp.bfloat16),
        ),
        grid=grid,
        in_specs=[
            # Full padded-H patch tensor per batch element; its block index
            # depends only on n, so it stays resident across the row-tile axis.
            pl.BlockSpec((None, H + 2, W, 9 * Cin), lambda n, t: (n, 0, 0, 0)),
            pl.BlockSpec((9 * Cin, Cout), lambda n, t: (0, 0)),
            pl.BlockSpec((1, Cout), lambda n, t: (0, 0)),
            pl.BlockSpec((9 * Cout, Cout), lambda n, t: (0, 0)),
            pl.BlockSpec((1, Cout), lambda n, t: (0, 0)),
        ],
        out_specs=(
            pl.BlockSpec((None, TH, W, Cout), lambda n, t: (n, t, 0, 0)),
            pl.BlockSpec((None, TH // 2, W // 2, Cout), lambda n, t: (n, t, 0, 0)),
        ),
        scratch_shapes=[pltpu.VMEM((TH + 2, W + 2, Cout), jnp.bfloat16)],
        compiler_params=pltpu.CompilerParams(
            dimension_semantics=("parallel", "parallel"),
            vmem_limit_bytes=vmem_limit,
        ),
    )(p1, prep["w1m"], prep["b1"], prep["w2m"], prep["b2"])

    return pooled, y


def downsample_block(x_nchw, prep):
    """NCHW adapter matching the PyTorch module: returns (maxpool(y), y)."""
    x_nhwc = jnp.transpose(x_nchw, (0, 2, 3, 1))
    pooled, y = downsample_block_nhwc(x_nhwc, prep)
    # TODO(synk): keep NHWC end-to-end through the UNet to skip these output
    # transposes entirely; they now at least run on bf16 (half the HBM traffic).
    return jnp.transpose(pooled, (0, 3, 1, 2)), jnp.transpose(y, (0, 3, 1, 2))


# -----------------------------------------------------------------------------
# Pure-JAX reference (same semantics) for a sanity check
# -----------------------------------------------------------------------------
def _reference(x, p, eps=1e-5):
    def conv(x, w, b):
        y = lax.conv_general_dilated(
            x, w, (1, 1), ((1, 1), (1, 1)),
            dimension_numbers=("NCHW", "OIHW", "NCHW"),
            precision=lax.Precision.HIGHEST)
        return y + b[None, :, None, None]

    def bn(x, g, be, rm, rv):
        s = g / jnp.sqrt(rv + eps)
        return x * s[None, :, None, None] + (be - rm * s)[None, :, None, None]

    x1 = jax.nn.relu(bn(conv(x, p["w1"], p["b1"]), p["g1"], p["beta1"],
                        p["rm1"], p["rv1"]))
    y = jax.nn.relu(bn(conv(x1, p["w2"], p["b2"]), p["g2"], p["beta2"],
                       p["rm2"], p["rv2"]))
    pooled = lax.reduce_window(y, -jnp.inf, lax.max,
                               (1, 1, 2, 2), (1, 1, 2, 2), "VALID")
    return pooled, y


# -----------------------------------------------------------------------------
if __name__ == "__main__":
    N, Cin, Cout, H, W = 2, 4, 8, 16, 16

    key = jax.random.PRNGKey(0)
    ks = jax.random.split(key, 13)
    params = {
        "w1": 0.1 * jax.random.normal(ks[0], (Cout, Cin, 3, 3), jnp.float32),
        "b1": 0.1 * jax.random.normal(ks[1], (Cout,), jnp.float32),
        "g1": 1.0 + 0.1 * jax.random.normal(ks[2], (Cout,), jnp.float32),
        "beta1": 0.1 * jax.random.normal(ks[3], (Cout,), jnp.float32),
        "rm1": 0.1 * jax.random.normal(ks[4], (Cout,), jnp.float32),
        "rv1": 1.0 + 0.1 * jax.random.uniform(ks[5], (Cout,), jnp.float32),
        "w2": 0.1 * jax.random.normal(ks[6], (Cout, Cout, 3, 3), jnp.float32),
        "b2": 0.1 * jax.random.normal(ks[7], (Cout,), jnp.float32),
        "g2": 1.0 + 0.1 * jax.random.normal(ks[8], (Cout,), jnp.float32),
        "beta2": 0.1 * jax.random.normal(ks[9], (Cout,), jnp.float32),
        "rm2": 0.1 * jax.random.normal(ks[10], (Cout,), jnp.float32),
        "rv2": 1.0 + 0.1 * jax.random.uniform(ks[11], (Cout,), jnp.float32),
    }
    x = jax.random.normal(ks[12], (N, Cin, H, W), jnp.float32)

    prep = prepare_params(params)
    pooled, y = downsample_block(x, prep)
    pooled = jax.block_until_ready(pooled)
    y = jax.block_until_ready(y)

    assert pooled.shape == (N, Cout, H // 2, W // 2), pooled.shape
    assert y.shape == (N, Cout, H, W), y.shape

    pooled_ref, y_ref = _reference(x, params)
    np.testing.assert_allclose(np.asarray(y.astype(jnp.float32)),
                               np.asarray(y_ref), rtol=5e-2, atol=5e-2)
    np.testing.assert_allclose(np.asarray(pooled.astype(jnp.float32)),
                               np.asarray(pooled_ref), rtol=5e-2, atol=5e-2)

    print("KERNEL_OK")
</pallas_src>

<mosaic_0001>
module attributes {stable_mosaic.version = 11 : i64} {
  func.func @_fused_downsample_kernel(%arg0: i32, %arg1: i32, %arg2: memref<1x18x16x36xbf16, #tpu.memory_space<vmem>>, %arg3: memref<36x8xbf16, #tpu.memory_space<vmem>>, %arg4: memref<1x8xf32, #tpu.memory_space<vmem>>, %arg5: memref<72x8xbf16, #tpu.memory_space<vmem>>, %arg6: memref<1x8xf32, #tpu.memory_space<vmem>>, %arg7: memref<1x16x16x8xbf16, #tpu.memory_space<vmem>>, %arg8: memref<1x8x8x8xbf16, #tpu.memory_space<vmem>>, %arg9: memref<18x18x8xbf16, #tpu.memory_space<vmem>>) attributes {dimension_semantics = [#tpu.dimension_semantics<parallel>, #tpu.dimension_semantics<parallel>], iteration_bounds = array<i64: 2, 1>, scalar_prefetch = 0 : i64, scratch_operands = 1 : i64, tpu.core_type = #tpu.core_type<tc>, window_params = [{transform_indices = @transform_0, window_bounds = array<i64: 1, 18, 16, 36>}, {pipeline_mode = #tpu.pipeline_mode<synchronous>, transform_indices = @transform_1, window_bounds = array<i64: 36, 8>}, {pipeline_mode = #tpu.pipeline_mode<synchronous>, transform_indices = @transform_2, window_bounds = array<i64: 1, 8>}, {pipeline_mode = #tpu.pipeline_mode<synchronous>, transform_indices = @transform_3, window_bounds = array<i64: 72, 8>}, {pipeline_mode = #tpu.pipeline_mode<synchronous>, transform_indices = @transform_4, window_bounds = array<i64: 1, 8>}, {transform_indices = @transform_5, window_bounds = array<i64: 1, 16, 16, 8>}, {transform_indices = @transform_6, window_bounds = array<i64: 1, 8, 8, 8>}]} {
    %c16_i32 = arith.constant 16 : i32
    %0 = arith.muli %arg1, %c16_i32 : i32
    %1 = tpu.assume_multiple %0, 16 : i32
    %c0 = arith.constant 0 : index
    %2 = arith.index_cast %1 : i32 to index
    %c0_0 = arith.constant 0 : index
    %c0_1 = arith.constant 0 : index
    %3 = vector.load %arg2[%c0, %2, %c0_0, %c0_1] : memref<1x18x16x36xbf16, #tpu.memory_space<vmem>>, vector<1x18x16x36xbf16>
    %4 = vector.shape_cast %3 : vector<1x18x16x36xbf16> to vector<18x16x36xbf16>
    %5 = vector.shape_cast %4 : vector<18x16x36xbf16> to vector<288x36xbf16>
    %c0_2 = arith.constant 0 : index
    %c0_3 = arith.constant 0 : index
    %6 = vector.load %arg3[%c0_2, %c0_3] : memref<36x8xbf16, #tpu.memory_space<vmem>>, vector<36x8xbf16>
    %cst = arith.constant dense<0.000000e+00> : vector<288x8xf32>
    %7 = tpu.matmul %5, %6, %cst {dimension_numbers = #tpu.dot_dimension_numbers<[1], [0], [0], [1], [0, 0, 1, 1], [], []>} : vector<288x36xbf16>, vector<36x8xbf16>, vector<288x8xf32> -> vector<288x8xf32>
    %c0_4 = arith.constant 0 : index
    %c0_5 = arith.constant 0 : index
    %8 = vector.load %arg4[%c0_4, %c0_5] : memref<1x8xf32, #tpu.memory_space<vmem>>, vector<1x8xf32>
    %9 = vector.broadcast %8 : vector<1x8xf32> to vector<288x8xf32>
    %10 = arith.addf %7, %9 : vector<288x8xf32>
    %cst_6 = arith.constant 0.000000e+00 : f32
    %11 = vector.broadcast %cst_6 : f32 to vector<288x8xf32>
    %12 = arith.maximumf %10, %11 : vector<288x8xf32>
    %13 = vector.shape_cast %12 : vector<288x8xf32> to vector<18x16x8xf32>
    %cst_7 = arith.constant 0.000000e+00 : bf16
    %14 = vector.broadcast %cst_7 : bf16 to vector<18x1x8xbf16>
    %c0_8 = arith.constant 0 : index
    %c0_9 = arith.constant 0 : index
    %c0_10 = arith.constant 0 : index
    %15 = vector.load %arg9[%c0_8, %c0_9, %c0_10] : memref<18x18x8xbf16, #tpu.memory_space<vmem>>, vector<18x1x8xbf16>
    tpu.vector_store %arg9[%c0_8, %c0_9, %c0_10], %14 {strides = array<i32>} : memref<18x18x8xbf16, #tpu.memory_space<vmem>>, vector<18x1x8xbf16>,
    %c0_11 = arith.constant 0 : index
    %c17 = arith.constant 17 : index
    %c0_12 = arith.constant 0 : index
    %16 = vector.load %arg9[%c0_11, %c17, %c0_12] : memref<18x18x8xbf16, #tpu.memory_space<vmem>>, vector<18x1x8xbf16>
    tpu.vector_store %arg9[%c0_11, %c17, %c0_12], %14 {strides = array<i32>} : memref<18x18x8xbf16, #tpu.memory_space<vmem>>, vector<18x1x8xbf16>,
    %17 = arith.truncf %13 : vector<18x16x8xf32> to vector<18x16x8xbf16>
    %c0_13 = arith.constant 0 : index
    %c1 = arith.constant 1 : index
    %c0_14 = arith.constant 0 : index
    %18 = vector.load %arg9[%c0_13, %c1, %c0_14] : memref<18x18x8xbf16, #tpu.memory_space<vmem>>, vector<18x16x8xbf16>
    tpu.vector_store %arg9[%c0_13, %c1, %c0_14], %17 {strides = array<i32>} : memref<18x18x8xbf16, #tpu.memory_space<vmem>>, vector<18x16x8xbf16>,
    %cst_15 = arith.constant 0.000000e+00 : bf16
    %19 = vector.broadcast %cst_15 : bf16 to vector<1x18x8xbf16>
    %c0_i32 = arith.constant 0 : i32
    %20 = arith.cmpi eq, %arg1, %c0_i32 : i32
    %21 = arith.extui %20 : i1 to i32
    %c0_i32_16 = arith.constant 0 : i32
    %22 = arith.cmpi ne, %21, %c0_i32_16 : i32
    scf.if %22 {
      %c0_61 = arith.constant 0 : index
      %c0_62 = arith.constant 0 : index
      %c0_63 = arith.constant 0 : index
      %64 = vector.load %arg9[%c0_61, %c0_62, %c0_63] : memref<18x18x8xbf16, #tpu.memory_space<vmem>>, vector<1x18x8xbf16>
      tpu.vector_store %arg9[%c0_61, %c0_62, %c0_63], %19 {strides = array<i32>} : memref<18x18x8xbf16, #tpu.memory_space<vmem>>, vector<1x18x8xbf16>,
    } else {
    }
    %c0_i32_17 = arith.constant 0 : i32
    %23 = arith.cmpi eq, %arg1, %c0_i32_17 : i32
    %24 = arith.extui %23 : i1 to i32
    %c0_i32_18 = arith.constant 0 : i32
    %25 = arith.cmpi ne, %24, %c0_i32_18 : i32
    scf.if %25 {
      %c17_61 = arith.constant 17 : index
      %c0_62 = arith.constant 0 : index
      %c0_63 = arith.constant 0 : index
      %64 = vector.load %arg9[%c17_61, %c0_62, %c0_63] : memref<18x18x8xbf16, #tpu.memory_space<vmem>>, vector<1x18x8xbf16>
      tpu.vector_store %arg9[%c17_61, %c0_62, %c0_63], %19 {strides = array<i32>} : memref<18x18x8xbf16, #tpu.memory_space<vmem>>, vector<1x18x8xbf16>,
    } else {
    }
    %c0_19 = arith.constant 0 : index
    %c0_20 = arith.constant 0 : index
    %c0_21 = arith.constant 0 : index
    %26 = vector.load %arg9[%c0_19, %c0_20, %c0_21] : memref<18x18x8xbf16, #tpu.memory_space<vmem>>, vector<16x16x8xbf16>
    %27 = vector.shape_cast %26 : vector<16x16x8xbf16> to vector<256x8xbf16>
    %c0_22 = arith.constant 0 : index
    %c1_23 = arith.constant 1 : index
    %c0_24 = arith.constant 0 : index
    %28 = vector.load %arg9[%c0_22, %c1_23, %c0_24] : memref<18x18x8xbf16, #tpu.memory_space<vmem>>, vector<16x16x8xbf16>
    %29 = vector.shape_cast %28 : vector<16x16x8xbf16> to vector<256x8xbf16>
    %c0_25 = arith.constant 0 : index
    %c2 = arith.constant 2 : index
    %c0_26 = arith.constant 0 : index
    %30 = vector.load %arg9[%c0_25, %c2, %c0_26] : memref<18x18x8xbf16, #tpu.memory_space<vmem>>, vector<16x16x8xbf16>
    %31 = vector.shape_cast %30 : vector<16x16x8xbf16> to vector<256x8xbf16>
    %c1_27 = arith.constant 1 : index
    %c0_28 = arith.constant 0 : index
    %c0_29 = arith.constant 0 : index
    %32 = vector.load %arg9[%c1_27, %c0_28, %c0_29] : memref<18x18x8xbf16, #tpu.memory_space<vmem>>, vector<16x16x8xbf16>
    %33 = vector.shape_cast %32 : vector<16x16x8xbf16> to vector<256x8xbf16>
    %c1_30 = arith.constant 1 : index
    %c1_31 = arith.constant 1 : index
    %c0_32 = arith.constant 0 : index
    %34 = vector.load %arg9[%c1_30, %c1_31, %c0_32] : memref<18x18x8xbf16, #tpu.memory_space<vmem>>, vector<16x16x8xbf16>
    %35 = vector.shape_cast %34 : vector<16x16x8xbf16> to vector<256x8xbf16>
    %c1_33 = arith.constant 1 : index
    %c2_34 = arith.constant 2 : index
    %c0_35 = arith.constant 0 : index
    %36 = vector.load %arg9[%c1_33, %c2_34, %c0_35] : memref<18x18x8xbf16, #tpu.memory_space<vmem>>, vector<16x16x8xbf16>
    %37 = vector.shape_cast %36 : vector<16x16x8xbf16> to vector<256x8xbf16>
    %c2_36 = arith.constant 2 : index
    %c0_37 = arith.constant 0 : index
    %c0_38 = arith.constant 0 : index
    %38 = vector.load %arg9[%c2_36, %c0_37, %c0_38] : memref<18x18x8xbf16, #tpu.memory_space<vmem>>, vector<16x16x8xbf16>
    %39 = vector.shape_cast %38 : vector<16x16x8xbf16> to vector<256x8xbf16>
    %c2_39 = arith.constant 2 : index
    %c1_40 = arith.constant 1 : index
    %c0_41 = arith.constant 0 : index
    %40 = vector.load %arg9[%c2_39, %c1_40, %c0_41] : memref<18x18x8xbf16, #tpu.memory_space<vmem>>, vector<16x16x8xbf16>
    %41 = vector.shape_cast %40 : vector<16x16x8xbf16> to vector<256x8xbf16>
    %c2_42 = arith.constant 2 : index
    %c2_43 = arith.constant 2 : index
    %c0_44 = arith.constant 0 : index
    %42 = vector.load %arg9[%c2_42, %c2_43, %c0_44] : memref<18x18x8xbf16, #tpu.memory_space<vmem>>, vector<16x16x8xbf16>
    %43 = vector.shape_cast %42 : vector<16x16x8xbf16> to vector<256x8xbf16>
    %44 = tpu.concatenate %27, %29, %31, %33, %35, %37, %39, %41, %43 in 1 : vector<256x8xbf16>, vector<256x8xbf16>, vector<256x8xbf16>, vector<256x8xbf16>, vector<256x8xbf16>, vector<256x8xbf16>, vector<256x8xbf16>, vector<256x8xbf16>, vector<256x8xbf16> -> vector<256x72xbf16>
    %c0_45 = arith.constant 0 : index
    %c0_46 = arith.constant 0 : index
    %45 = vector.load %arg5[%c0_45, %c0_46] : memref<72x8xbf16, #tpu.memory_space<vmem>>, vector<72x8xbf16>
    %cst_47 = arith.constant dense<0.000000e+00> : vector<256x8xf32>
    %46 = tpu.matmul %44, %45, %cst_47 {dimension_numbers = #tpu.dot_dimension_numbers<[1], [0], [0], [1], [0, 0, 1, 1], [], []>} : vector<256x72xbf16>, vector<72x8xbf16>, vector<256x8xf32> -> vector<256x8xf32>
    %c0_48 = arith.constant 0 : index
    %c0_49 = arith.constant 0 : index
    %47 = vector.load %arg6[%c0_48, %c0_49] : memref<1x8xf32, #tpu.memory_space<vmem>>, vector<1x8xf32>
    %48 = vector.broadcast %47 : vector<1x8xf32> to vector<256x8xf32>
    %49 = arith.addf %46, %48 : vector<256x8xf32>
    %cst_50 = arith.constant 0.000000e+00 : f32
    %50 = vector.broadcast %cst_50 : f32 to vector<256x8xf32>
    %51 = arith.maximumf %49, %50 : vector<256x8xf32>
    %52 = vector.shape_cast %51 : vector<256x8xf32> to vector<16x16x8xf32>
    %53 = vector.shape_cast %52 : vector<16x16x8xf32> to vector<8x2x8x2x8xf32>
    %cst_51 = arith.constant dense<0xFF800000> : vector<8x2x8x8xf32>
    %54 = vector.multi_reduction <maximumf>, %53, %cst_51 [3] : vector<8x2x8x2x8xf32> to vector<8x2x8x8xf32>
    %cst_52 = arith.constant dense<0xFF800000> : vector<8x8x8xf32>
    %55 = vector.multi_reduction <maximumf>, %54, %cst_52 [1] : vector<8x2x8x8xf32> to vector<8x8x8xf32>
    %56 = arith.truncf %52 : vector<16x16x8xf32> to vector<16x16x8xbf16>
    %c0_53 = arith.constant 0 : index
    %c0_54 = arith.constant 0 : index
    %c0_55 = arith.constant 0 : index
    %c0_56 = arith.constant 0 : index
    %57 = vector.load %arg7[%c0_53, %c0_54, %c0_55, %c0_56] : memref<1x16x16x8xbf16, #tpu.memory_space<vmem>>, vector<1x16x16x8xbf16>
    %58 = vector.shape_cast %57 : vector<1x16x16x8xbf16> to vector<16x16x8xbf16>
    %59 = vector.shape_cast %56 : vector<16x16x8xbf16> to vector<1x16x16x8xbf16>
    tpu.vector_store %arg7[%c0_53, %c0_54, %c0_55, %c0_56], %59 {strides = array<i32>} : memref<1x16x16x8xbf16, #tpu.memory_space<vmem>>, vector<1x16x16x8xbf16>,
    %60 = arith.truncf %55 : vector<8x8x8xf32> to vector<8x8x8xbf16>
    %c0_57 = arith.constant 0 : index
    %c0_58 = arith.constant 0 : index
    %c0_59 = arith.constant 0 : index
    %c0_60 = arith.constant 0 : index
    %61 = vector.load %arg8[%c0_57, %c0_58, %c0_59, %c0_60] : memref<1x8x8x8xbf16, #tpu.memory_space<vmem>>, vector<1x8x8x8xbf16>
    %62 = vector.shape_cast %61 : vector<1x8x8x8xbf16> to vector<8x8x8xbf16>
    %63 = vector.shape_cast %60 : vector<8x8x8xbf16> to vector<1x8x8x8xbf16>
    tpu.vector_store %arg8[%c0_57, %c0_58, %c0_59, %c0_60], %63 {strides = array<i32>} : memref<1x8x8x8xbf16, #tpu.memory_space<vmem>>, vector<1x8x8x8xbf16>,
    return
  }
  func.func @transform_0(%arg0: i32, %arg1: i32) -> (i32, i32, i32, i32) {
    %c0_i32 = arith.constant 0 : i32
    %c0_i32_0 = arith.constant 0 : i32
    %c0_i32_1 = arith.constant 0 : i32
    %c0_i32_2 = arith.constant 0 : i32
    return %arg0, %c0_i32, %c0_i32_0, %c0_i32_1 : i32, i32, i32, i32
  }
  func.func @transform_1(%arg0: i32, %arg1: i32) -> (i32, i32) {
    %c0_i32 = arith.constant 0 : i32
    %c0_i32_0 = arith.constant 0 : i32
    %c0_i32_1 = arith.constant 0 : i32
    return %c0_i32, %c0_i32_0 : i32, i32
  }
  func.func @transform_2(%arg0: i32, %arg1: i32) -> (i32, i32) {
    %c0_i32 = arith.constant 0 : i32
    %c0_i32_0 = arith.constant 0 : i32
    %c0_i32_1 = arith.constant 0 : i32
    return %c0_i32, %c0_i32_0 : i32, i32
  }
  func.func @transform_3(%arg0: i32, %arg1: i32) -> (i32, i32) {
    %c0_i32 = arith.constant 0 : i32
    %c0_i32_0 = arith.constant 0 : i32
    %c0_i32_1 = arith.constant 0 : i32
    return %c0_i32, %c0_i32_0 : i32, i32
  }
  func.func @transform_4(%arg0: i32, %arg1: i32) -> (i32, i32) {
    %c0_i32 = arith.constant 0 : i32
    %c0_i32_0 = arith.constant 0 : i32
    %c0_i32_1 = arith.constant 0 : i32
    return %c0_i32, %c0_i32_0 : i32, i32
  }
  func.func @transform_5(%arg0: i32, %arg1: i32) -> (i32, i32, i32, i32) {
    %c0_i32 = arith.constant 0 : i32
    %c0_i32_0 = arith.constant 0 : i32
    %c0_i32_1 = arith.constant 0 : i32
    return %arg0, %arg1, %c0_i32, %c0_i32_0 : i32, i32, i32, i32
  }
  func.func @transform_6(%arg0: i32, %arg1: i32) -> (i32, i32, i32, i32) {
    %c0_i32 = arith.constant 0 : i32
    %c0_i32_0 = arith.constant 0 : i32
    %c0_i32_1 = arith.constant 0 : i32
    return %arg0, %arg1, %c0_i32, %c0_i32_0 : i32, i32, i32, i32
  }
}

</mosaic_0001>

<bundles_post_ra>
// kernel: downsample_block_nhwc.1
= control target key start
LH: loop header
LB: loop body
LE: loop exit
PB: predicated region body
PF: predicated region fallthrough
CT: control target
= control target key end

     0   :  { %12 = vsyncpa [#allocation4], 0  ;;  %s11093_s0 = inlined_call_operand.vmem [shape: bf16[2,18,16,36], index: 0, kind: input, shape index: {}]   ;;  %s11094_s1 = inlined_call_operand.vmem [shape: bf16[36,8], index: 1, kind: input, shape index: {}]   ;;  %s11095_s2 = inlined_call_operand.vmem [shape: f32[1,8], index: 2, kind: input, shape index: {}]   ;;  %s11096_s3 = inlined_call_operand.vmem [shape: bf16[72,8], index: 3, kind: input, shape index: {}]   ;;  %s11097_s4 = inlined_call_operand.vmem [shape: f32[1,8], index: 4, kind: input, shape index: {}]   ;;  %s11098_s5 = inlined_call_operand.vmem [shape: bf16[2,16,16,8], index: 5, kind: output, shape index: {0}]   ;;  %s11099_s6 = inlined_call_operand.hbm [shape: bf16[2,8,8,8], index: 6, kind: output, shape index: {1}]  }
   0x1   :  { %14 = vsyncpa [#allocation4 + $0x1], 0  ;;  %s8019_s21 = smov 0   ;;  %s8021_s22 = smov 0  }
   0x2   :  { %s8023_s23 = smov 0   ;;  %s8025_s24 = smov 0  }
   0x3   :  { %s8027_s25 = smov 0   ;;  %s8029_s26 = smov 0  }
   0x4 LB: > { %s7073_s27 = sadd.s32 4294967295, %s7970_s26   ;;  %s7074_s28 = sadd.s32 4294967294, %s7970_s26   ;;  %s7970_s26 = sphi %s8029_s26, %s20_s26   ;;  %s7966_s25 = sphi %s8027_s25, %s11213_s25   ;;  %s7962_s24 = sphi %s8025_s24, %s11212_s24   ;;  %s7958_s23 = sphi %s8023_s23, %s11211_s23   ;;  %s7954_s22 = sphi %s8021_s22, %s11210_s22   ;;  %s7950_s21 = sphi %s8019_s21, %s11209_s21  }
   0x5   : > { %s32_s29 = sadd.s32 1, %s7966_s25  ;;  %s179_s30 = sadd.s32 1, %s7958_s23 }
   0x6   : > { %p34_p0 = scmp.ge.s32.totalorder %s32_s29, 2  ;;  %p189_p1 = scmp.ne.s32.totalorder %s7958_s23, %s7954_s22 }
   0x7   : > { %p190_p2 = scmp.eq.s32.totalorder %s7073_s27, 1  ;;  %p195_p3 = scmp.ne.s32.totalorder %s7954_s22, %s7950_s21 }
   0x8   : > { %s11215_s29 = smov (%p34_p0, %s32_s29), 0  ;;  %p196_p5 = scmp.eq.s32.totalorder %s7074_s28, 1 }
   0x9   : > { %p8059_p4 = por %p190_p2, %p189_p1  ;;  %s174_s8 = ssub.s32 %s7966_s25, %s11215_s29 }
   0xa   : > { %p7077_p6 = scmp.ge.s32.totalorder %s7970_s26, 1  ;;  %p177_p7 = scmp.eq.s32.totalorder %s174_s8, 0 }
   0xb   : > { %p8066_p8 = por %p196_p5, %p195_p3  ;;  %p234_p9 = scmp.lt.s32.totalorder %s7970_s26, 3 }
   0xc   : > { %s8072_s10 = scalar_select %p177_p7, %s7958_s23, %s179_s30  }
   0xd   : > { %p235_p10 = pnand %p7077_p6, %p234_p9 }
   0xf   : > { %238 = sbr.rel (%p235_p10) target bundleno = 1131 (0x46b), region = 40 }
  0x14   : > { %v7802_v0 = vld [vmem:[%s11094_s1 + $0x10] ss:$0 sps:$4 sm:$0x33]   ;;  %vm504_vm0 = vcmask 1041408   ;;  %v7803_v1 = vld [vmem:[%s11094_s1 + $0x8] sm:$0xff]   ;;  %p274_p11 = scmp.lt.s32.totalorder %s7962_s24, 1 }
  0x15   : > { %7733 = vmatprep.subr.msk.bf16.mxu0 %vm504_vm0, %v7802_v0  ;;  %v506_v2 = vsel %vm504_vm0, %v7802_v0, 0  ;;  %v7804_v3 = vld [vmem:[%s11094_s1] sm:$0xff]   ;;  %vm449_vm1 = vcmask 293888   ;;  %vm721_vm2 = vcmask 57344   ;;  %vm722_vm3 = vsmask.f32 256 }
  0x16   : > { %7650 = vmatpush3.bf16.msra.mxu0 %v506_v2  ;;  %s8085_s17 = scalar_select %p274_p11, %s7962_s24, 1  ;;  %vm8127_vm4 = vmand %vm721_vm2, %vm722_vm3  ;;  %v727_v21 = vld [vmem:[#allocation2 + $0xc] sm:$0x1]  ;;  %vm778_vm5 = vsmask.f32 7938  ;;  %v11111_v25 = vmov 0 }
  0x17   : > { %7651 = vmatprep.subr.bf16.mxu0 %v7803_v1  ;;  %v728_v22 = vsel %vm8127_vm4, 0, %v727_v21  ;;  %v724_v23 = vld [vmem:[#allocation2] sm:$0x1]  ;;  %vm8137_vm6 = vmand %vm721_vm2, %vm778_vm5  ;;  %v783_v26 = vld [vmem:[#allocation2 + $0x14] sm:$0x1]  ;;  %vm1304_vm7 = vcmask 60416  }
  0x18   : > { %s7735_s18 = smul.u32 144, %s8085_s17  ;;  %729 = vst [vmem:[#allocation2 + $0xc] sm:$0x1] %v728_v22  ;;  %v725_v24 = vsel %vm8127_vm4, 0, %v724_v23  ;;  %v11112_v25 = vsel %vm8137_vm6, 4294967295, %v11111_v25  ;;  %v784_v27 = vsel %vm8137_vm6, 0, %v783_v26  ;;  %vm8192_vm9 = vmand %vm1304_vm7, %vm778_vm5 }
  0x19   : > { %726 = vst [vmem:[#allocation2] sm:$0x1] %v725_v24  ;;  %11113 = vst [vmem:[#allocation6_spill] sm:$0xff] %v11112_v25  ;;  %v780_v28 = vld [vmem:[#allocation2 + $0x8] sm:$0x1]  ;;  %vm1944_vm11 = vcmask 1042432  }
  0x1a   : > { %7652 = vmatpush3.bf16.msra.mxu0 %v7803_v1  ;;  %s8091_s27 = scalar_lea.vmem %s11093_s0, %s7735_s18  ;;  %785 = vst [vmem:[#allocation2 + $0x14] sm:$0x1] %v784_v27  ;;  %v781_v29 = vsel %vm8137_vm6, 0, %v780_v28  ;;  %v733_v30 = vld [vmem:[#allocation2 + $0x24] sm:$0x1]  ;;  %vm1945_vm12 = vcmask 1046532  }
  0x1b   : > { %7653 = vmatprep.subr.bf16.mxu0 %v7804_v3  ;;  %v7805_v4 = vld [vmem:[%s8091_s27] sm:$0xff]   ;;  %v7806_v5 = vld [vmem:[%s8091_s27 + $0x8] sm:$0xff]   ;;  %v7807_v6 = vld [vmem:[%s8091_s27 + $0x10] sm:$0xff]   ;;  %782 = vst [vmem:[#allocation2 + $0x8] sm:$0x1] %v781_v29  ;;  %v734_v31 = vsel %vm8127_vm4, 0, %v733_v30 }
  0x1c   : > { %7655 = vmatprep.mubr.msk.bf16.mxu0 %vm449_vm1, %v7805_v4  ;;  %v7808_v7 = vld [vmem:[%s8091_s27 + $0x18] sm:$0xff]   ;;  %v7809_v8 = vld [vmem:[%s8091_s27 + $0x20] sm:$0xff]   ;;  %v7810_v9 = vld [vmem:[%s8091_s27 + $0x28] sm:$0xff]   ;;  %735 = vst [vmem:[#allocation2 + $0x24] sm:$0x1] %v734_v31  ;;  %s7973_s8 = smov 24  }
  0x1d   : > { %v7811_v10 = vld [vmem:[%s8091_s27 + $0x30] sm:$0xff]   ;;  %v7812_v11 = vld [vmem:[%s8091_s27 + $0x38] sm:$0xff]   ;;  %v7813_v12 = vld [vmem:[%s8091_s27 + $0x40] sm:$0xff]   ;;  %vm942_vm8 = vsmask.f32 4368  ;;  %s7974_s11 = smov 40  }
  0x1e   : > { %7654 = vmatpush3.bf16.msra.mxu0 %v7804_v3  ;;  %v7814_v13 = vld [vmem:[%s8091_s27 + $0x48] sm:$0xff]   ;;  %v7815_v14 = vld [vmem:[%s8091_s27 + $0x50] sm:$0xff]   ;;  %v7816_v15 = vld [vmem:[%s8091_s27 + $0x58] sm:$0xff]   ;;  %vm1493_vm14 = vsmask.f32 3328  ;;  %s7975_s12 = smov 16  }
  0x1f   : > { %v7817_v16 = vld [vmem:[%s8091_s27 + $0x60] sm:$0xff]   ;;  %v7818_v17 = vld [vmem:[%s8091_s27 + $0x68] sm:$0xff]   ;;  %v7819_v18 = vld [vmem:[%s8091_s27 + $0x70] sm:$0xff]   ;;  %vm1494_vm15 = vsmask.f32 7440  ;;  %s7976_s13 = smov 48  }
  0x20   : > { %v7820_v19 = vld [vmem:[%s8091_s27 + $0x78] sm:$0xff]   ;;  %v789_v34 = vld [vmem:[#allocation2 + $0x2c] sm:$0x1]  ;;  %v786_v36 = vld [vmem:[#allocation2 + $0x20] sm:$0x1]  ;;  %s7977_s14 = smov 8  }
  0x21   : > { %7656 = vmatmul.mubr.msk.bf16.vlgmr.msra.gmra.mxu0 %vm449_vm1, %v7806_v5  ;;  %v730_v32 = vld [vmem:[#allocation2 + $0x18] sm:$0x1]  ;;  %v790_v35 = vsel %vm8137_vm6, 0, %v789_v34  ;;  %v787_v37 = vsel %vm8137_vm6, 0, %v786_v36  ;;  %v7821_v38 = vld [vmem:[%s8091_s27 + $0x80] sm:$0xff]   ;;  %v7822_v39 = vld [vmem:[%s8091_s27 + $0x88] sm:$0xff]  }
  0x22   : > { %7659 = vmatprep.mubr.msk.bf16.mxu0 %vm449_vm1, %v7807_v6  ;;  %v731_v33 = vsel %vm8127_vm4, 0, %v730_v32  ;;  %791 = vst [vmem:[#allocation2 + $0x2c] sm:$0x1] %v790_v35  ;;  %788 = vst [vmem:[#allocation2 + $0x20] sm:$0x1] %v787_v37  ;;  %s7978_s15 = smov 32  }
  0x23   : > { %732 = vst [vmem:[#allocation2 + $0x18] sm:$0x1] %v731_v33  ;;  %v739_v40 = vld [vmem:[#allocation2 + $0x3c] sm:$0x1]  ;;  %v736_v41 = vld [vmem:[#allocation2 + $0x30] sm:$0x1]  ;;  %vm8202_vm10 = vmor %vm722_vm3, %vm942_vm8 }
  0x24   : > { %v740_v42 = vsel %vm8127_vm4, 0, %v739_v40  ;;  %v737_v43 = vsel %vm8127_vm4, 0, %v736_v41  ;;  %v795_v44 = vld [vmem:[#allocation2 + $0x44] sm:$0x1]  ;;  %v792_v46 = vld [vmem:[#allocation2 + $0x38] sm:$0x1]  ;;  %vm8266_vm13 = vmor %vm1944_vm11, %vm1945_vm12 }
  0x25   : > { %741 = vst [vmem:[#allocation2 + $0x3c] sm:$0x1] %v740_v42  ;;  %738 = vst [vmem:[#allocation2 + $0x30] sm:$0x1] %v737_v43  ;;  %v796_v45 = vsel %vm8137_vm6, 0, %v795_v44  ;;  %v793_v47 = vsel %vm8137_vm6, 0, %v792_v46 }
  0x26   : > { %797 = vst [vmem:[#allocation2 + $0x44] sm:$0x1] %v796_v45  ;;  %794 = vst [vmem:[#allocation2 + $0x38] sm:$0x1] %v793_v47  ;;  %v745_v48 = vld [vmem:[#allocation2 + $0x54] sm:$0x1] }
  0x27   : > { %v746_v49 = vsel %vm8127_vm4, 0, %v745_v48  ;;  %v742_v50 = vld [vmem:[#allocation2 + $0x48] sm:$0x1]  ;;  %v801_v52 = vld [vmem:[#allocation2 + $0x5c] sm:$0x1]  ;;  %vm8325_vm0 = vmor %vm1493_vm14, %vm1494_vm15  ;;  %s7979_s16 = smov 64  }
  0x28   : > { %747 = vst [vmem:[#allocation2 + $0x54] sm:$0x1] %v746_v49  ;;  %v743_v51 = vsel %vm8127_vm4, 0, %v742_v50  ;;  %v802_v53 = vsel %vm8137_vm6, 0, %v801_v52  ;;  %v798_v54 = vld [vmem:[#allocation2 + $0x50] sm:$0x1] }
  0x29   : > { %7660 = vmatmul.mubr.msk.bf16.gmra.mxu0 %vm449_vm1, %v7808_v7  ;;  %744 = vst [vmem:[#allocation2 + $0x48] sm:$0x1] %v743_v51  ;;  %803 = vst [vmem:[#allocation2 + $0x5c] sm:$0x1] %v802_v53  ;;  %v799_v55 = vsel %vm8137_vm6, 0, %v798_v54  ;;  %s7980_s18 = smov 56  }
  0x2a   : > { %7663 = vmatprep.mubr.msk.bf16.mxu0 %vm449_vm1, %v7809_v8  ;;  %800 = vst [vmem:[#allocation2 + $0x50] sm:$0x1] %v799_v55  ;;  %v751_v56 = vld [vmem:[#allocation2 + $0x6c] sm:$0x1]  ;;  %v748_v58 = vld [vmem:[#allocation2 + $0x60] sm:$0x1] }
  0x2b   : > { %v752_v57 = vsel %vm8127_vm4, 0, %v751_v56  ;;  %v749_v59 = vsel %vm8127_vm4, 0, %v748_v58  ;;  %v807_v60 = vld [vmem:[#allocation2 + $0x74] sm:$0x1]  ;;  %v804_v62 = vld [vmem:[#allocation2 + $0x68] sm:$0x1] }
  0x2c   : > { %753 = vst [vmem:[#allocation2 + $0x6c] sm:$0x1] %v752_v57  ;;  %750 = vst [vmem:[#allocation2 + $0x60] sm:$0x1] %v749_v59  ;;  %v808_v61 = vsel %vm8137_vm6, 0, %v807_v60  ;;  %v805_v63 = vsel %vm8137_vm6, 0, %v804_v62 }
  0x2d   : > { %809 = vst [vmem:[#allocation2 + $0x74] sm:$0x1] %v808_v61  ;;  %806 = vst [vmem:[#allocation2 + $0x68] sm:$0x1] %v805_v63  ;;  %v8184_v0 = vld [vmem:[%s11095_s2] ss:$0 sm:$0xff] }
  0x2e   : > { %v1314_v22 = vld [vmem:[#allocation2 + $0xc] sm:$0xf]  ;;  %v1306_v32 = vld [vmem:[#allocation2] sm:$0xf]  ;;  %v1318_v43 = vld [vmem:[#allocation2 + $0x14] sm:$0x1] }
  0x2f   : > { %v11100_v58 = vmov 0   ;;  %v1311_v61 = vld [vmem:[#allocation2 + $0x8] sm:$0x1]  ;;  %vm4062_vm3 = vcmask 130048   ;;  %vm4095_vm5 = vcmask 195584   ;;  %vm4369_vm8 = vcmask 1043456  }
  0x30   : > { %vm4128_vm11 = vcmask 261120   ;;  %vm4161_vm12 = vcmask 326656   ;;  %vm11104_vm14 = vcmask 392192   ;;  %vm4227_vm15 = vcmask 457728  }
  0x31   : > { %7664 = vmatmul.mubr.msk.bf16.gmra.mxu0 %vm449_vm1, %v7810_v9 }
  0x32   : > { %7667 = vmatprep.mubr.msk.bf16.mxu0 %vm449_vm1, %v7811_v10 }
  0x39   : > { %7668 = vmatmul.mubr.msk.bf16.gmra.mxu0 %vm449_vm1, %v7812_v11 }
  0x3a   : > { %7671 = vmatprep.mubr.msk.bf16.mxu0 %vm449_vm1, %v7813_v12 }
  0x41   : > { %7672 = vmatmul.mubr.msk.bf16.gmra.mxu0 %vm449_vm1, %v7814_v13 }
  0x42   : > { %7675 = vmatprep.mubr.msk.bf16.mxu0 %vm449_vm1, %v7815_v14 }
  0x49   : > { %7676 = vmatmul.mubr.msk.bf16.gmra.mxu0 %vm449_vm1, %v7816_v15 }
  0x4a   : > { %7679 = vmatprep.mubr.msk.bf16.mxu0 %vm449_vm1, %v7817_v16 }
  0x51   : > { %7680 = vmatmul.mubr.msk.bf16.gmra.mxu0 %vm449_vm1, %v7818_v17 }
  0x52   : > { %7683 = vmatprep.mubr.msk.bf16.mxu0 %vm449_vm1, %v7819_v18 }
  0x59   : > { %7684 = vmatmul.mubr.msk.bf16.gmra.mxu0 %vm449_vm1, %v7820_v19 }
  0x5a   : > { %7687 = vmatprep.mubr.msk.bf16.mxu0 %vm449_vm1, %v7821_v38 }
  0x61   : > { %7688 = vmatmul.mubr.msk.bf16.gmra.mxu0 %vm449_vm1, %v7822_v39  ;;  %vm4013_vm1 = vcmask 64512  }
  0xe1   : > { %v7657_v1 = vpop.f32.mrf.mxu0 }
  0xe2   : > { %v551_v2 = vadd.f32 %v7657_v1, %v8184_v0 }
  0xe3   : > { %v542_v3 = vpop.f32.mrf.mxu0 }
  0xe4   : > { %v687_v4 = vmax.f32 %v551_v2, 0.0  ;;  %v543_v5 = vadd.f32 %v8184_v0, %v542_v3 }
  0xe5   : > { %v7658_v6 = vpop.f32.mrf.mxu0 }
  0xe6   : > { %v7476_v7 = vpack.c.bf16 %v687_v4, %v687_v4  ;;  %v685_v8 = vmax.f32 %v543_v5, 0.0  ;;  %v554_v9 = vadd.f32 %v7658_v6, %v8184_v0  ;;  %v1328_v6 = vld [vmem:[#allocation2 + $0x24] sm:$0xf] }
  0xe7   : > { %v545_v10 = vpop.f32.mrf.mxu0 }
  0xe8   : > { %v962_v11 = vshrl.u32 %v7476_v7, 16  ;;  %v7474_v12 = vpack.c.bf16 %v685_v8, %v685_v8  ;;  %v688_v13 = vmax.f32 %v554_v9, 0.0  ;;  %v546_v14 = vadd.f32 %v8184_v0, %v545_v10 }
  0xe9   : > { %v7661_v15 = vpop.f32.mrf.mxu0  ;;  %v965_v17 = vshll.u32 %v7476_v7, 16 }
  0xea   : > { %v964_v16 = vrot.slane %v962_v11, 7  ;;  %v945_v18 = vshrl.u32 %v7474_v12, 16  ;;  %v7477_v19 = vpack.c.bf16 %v688_v13, %v688_v13  ;;  %v948_v23 = vshll.u32 %v7474_v12, 16 }
  0xeb   : > { %v686_v24 = vmax.f32 %v546_v14, 0.0  ;;  %v567_v26 = vadd.f32 %v7661_v15, %v8184_v0  ;;  %v558_v27 = vpop.f32.mrf.mxu0 }
  0xec   : > { %v967_v28 = vor.u32 %v965_v17, %v964_v16  ;;  %v968_v29 = vrot.slane %v964_v16, 4  ;;  %v947_v30 = vrot.slane %v945_v18, 7  ;;  %v970_v31 = vshrl.u32 %v7477_v19, 16 }
  0xed   : > { %v973_v33 = vshll.u32 %v7477_v19, 16  ;;  %v7475_v34 = vpack.c.bf16 %v686_v24, %v686_v24  ;;  %v691_v35 = vmax.f32 %v567_v26, 0.0  ;;  %v559_v36 = vadd.f32 %v8184_v0, %v558_v27  ;;  %v7662_v37 = vpop.f32.mrf.mxu0 }
  0xee   : > { %v1315_v38 = vsel %vm8192_vm9, %v967_v28, %v1314_v22  ;;  %v950_v39 = vor.u32 %v948_v23, %v947_v30  ;;  %v951_v40 = vrot.slane %v947_v30, 4  ;;  %v972_v41 = vrot.slane %v970_v31, 7  ;;  %v1321_v23 = vld [vmem:[#allocation2 + $0x18] sm:$0xf] }
  0xef   : > { %1316 = vst [vmem:[#allocation2 + $0xc] sm:$0xf] %v1315_v38  ;;  %v953_v44 = vshrl.u32 %v7475_v34, 16  ;;  %v956_v45 = vshll.u32 %v7475_v34, 16  ;;  %v7480_v46 = vpack.c.bf16 %v691_v35, %v691_v35  ;;  %v689_v47 = vmax.f32 %v559_v36, 0.0  ;;  %v561_v48 = vpop.f32.mrf.mxu0 }
  0xf0   : > { %v1307_v49 = vsel %vm8192_vm9, %v950_v39, %v1306_v32  ;;  %v975_v50 = vor.u32 %v973_v33, %v972_v41  ;;  %v977_v51 = vrot.slane %v972_v41, 4  ;;  %v570_v52 = vadd.f32 %v7662_v37, %v8184_v0  ;;  %v1332_v32 = vld [vmem:[#allocation2 + $0x2c] sm:$0x1]  ;;  %v1325_v41 = vld [vmem:[#allocation2 + $0x20] sm:$0x1] }
  0xf1   : > { %1308 = vst [vmem:[#allocation2] sm:$0xf] %v1307_v49  ;;  %v955_v53 = vrot.slane %v953_v44, 7  ;;  %v996_v54 = vshrl.u32 %v7480_v46, 16  ;;  %v999_v55 = vshll.u32 %v7480_v46, 16  ;;  %v7478_v56 = vpack.c.bf16 %v689_v47, %v689_v47  ;;  %v7665_v57 = vpop.f32.mrf.mxu0 }
  0xf2   : > { %1437 = vst.msk [vmem:[#allocation2] sm:$0xf] %vm1304_vm7, %v11100_v58  ;;  %v976_v59 = vsel %vm8202_vm10, %v968_v29, %v975_v50  ;;  %v1319_v60 = vsel %vm8127_vm4, %v977_v51, %v1318_v43  ;;  %v692_v62 = vmax.f32 %v570_v52, 0.0  ;;  %v562_v63 = vadd.f32 %v8184_v0, %v561_v48 }
  0xf3   : > { %1317 = vst.msk [vmem:[#allocation2 + $0x10] sm:$0xf] %vm1304_vm7, %v976_v59  ;;  %1320 = vst [vmem:[#allocation2 + $0x14] sm:$0x1] %v1319_v60  ;;  %v958_v1 = vor.u32 %v956_v45, %v955_v53  ;;  %v960_v2 = vrot.slane %v955_v53, 4  ;;  %v998_v3 = vrot.slane %v996_v54, 7  ;;  %v574_v5 = vpop.f32.mrf.mxu0  ;;  %v583_v10 = vadd.f32 %v7665_v57, %v8184_v0 }
  0xf4   : > { %v979_v4 = vshrl.u32 %v7478_v56, 16  ;;  %v982_v7 = vshll.u32 %v7478_v56, 16  ;;  %v7481_v8 = vpack.c.bf16 %v692_v62, %v692_v62  ;;  %v690_v9 = vmax.f32 %v562_v63, 0.0 }
  0xf5   : > { %v959_v11 = vsel %vm8202_vm10, %v951_v40, %v958_v1  ;;  %v1312_v12 = vsel %vm8127_vm4, %v960_v2, %v1311_v61  ;;  %v1001_v13 = vor.u32 %v999_v55, %v998_v3  ;;  %v1002_v14 = vrot.slane %v998_v3, 4  ;;  %v7666_v19 = vpop.f32.mrf.mxu0  ;;  %v1342_v61 = vld [vmem:[#allocation2 + $0x3c] sm:$0xf] }
  0xf6   : > { %1310 = vst.msk [vmem:[#allocation2 + $0x4] sm:$0xf] %vm1304_vm7, %v959_v11  ;;  %1313 = vst [vmem:[#allocation2 + $0x8] sm:$0x1] %v1312_v12  ;;  %v981_v15 = vrot.slane %v979_v4, 7  ;;  %v1004_v16 = vshrl.u32 %v7481_v8, 16  ;;  %v7479_v18 = vpack.c.bf16 %v690_v9, %v690_v9  ;;  %v575_v26 = vadd.f32 %v8184_v0, %v574_v5 }
  0xf7   : > { %v1007_v17 = vshll.u32 %v7481_v8, 16  ;;  %1438 = vst.msk [vmem:[#allocation2 + $0x4] sm:$0xf] %vm1304_vm7, %v11100_v58  ;;  %v1329_v22 = vsel %vm8192_vm9, %v1001_v13, %v1328_v6  ;;  %v695_v24 = vmax.f32 %v583_v10, 0.0  ;;  %v586_v27 = vadd.f32 %v7666_v19, %v8184_v0  ;;  %v577_v47 = vpop.f32.mrf.mxu0  ;;  %v2060_v52 = vld [vmem:[#allocation2 + $0xc] sm:$0xf] }
  0xf8   : > { %1440 = vst.msk [vmem:[#allocation2 + $0x8] sm:$0x1] %vm721_vm2, %v11100_v58  ;;  %1330 = vst [vmem:[#allocation2 + $0x24] sm:$0xf] %v1329_v22  ;;  %v984_v28 = vor.u32 %v982_v7, %v981_v15  ;;  %v985_v29 = vrot.slane %v981_v15, 4  ;;  %v1006_v30 = vrot.slane %v1004_v16, 7  ;;  %v578_v63 = vadd.f32 %v8184_v0, %v577_v47 }
  0xf9   : > { %v987_v31 = vshrl.u32 %v7479_v18, 16  ;;  %v990_v33 = vshll.u32 %v7479_v18, 16  ;;  %v7484_v34 = vpack.c.bf16 %v695_v24, %v695_v24  ;;  %v693_v35 = vmax.f32 %v575_v26, 0.0  ;;  %v1335_v5 = vld [vmem:[#allocation2 + $0x30] sm:$0xf] }
  0xfa   : > { %v696_v36 = vmax.f32 %v586_v27, 0.0  ;;  %v1322_v37 = vsel %vm8192_vm9, %v984_v28, %v1321_v23  ;;  %v1009_v38 = vor.u32 %v1007_v17, %v1006_v30  ;;  %v1011_v39 = vrot.slane %v1006_v30, 4  ;;  %v8238_v57 = vld [vmem:[#allocation2 + $0x10] sm:$0xf]  ;;  %v1346_v13 = vld [vmem:[#allocation2 + $0x44] sm:$0x1] }
  0xfb   : > { %v989_v40 = vrot.slane %v987_v31, 7  ;;  %1323 = vst [vmem:[#allocation2 + $0x18] sm:$0xf] %v1322_v37  ;;  %v1030_v43 = vshrl.u32 %v7484_v34, 16  ;;  %v1033_v44 = vshll.u32 %v7484_v34, 16  ;;  %v7482_v45 = vpack.c.bf16 %v693_v35, %v693_v35 }
  0xfc   : > { %v7485_v46 = vpack.c.bf16 %v696_v36, %v696_v36  ;;  %v1010_v48 = vsel %vm8202_vm10, %v1002_v14, %v1009_v38  ;;  %v1333_v49 = vsel %vm8127_vm4, %v1011_v39, %v1332_v32  ;;  %v694_v6 = vmax.f32 %v578_v63, 0.0  ;;  %v2492_v23 = vld [vmem:[#allocation2 + $0xc] sm:$0xe]  ;;  %v1448_v30 = vld [vmem:[#allocation2 + $0x10] sm:$0xf] }
  0xfd   : > { %v992_v50 = vor.u32 %v990_v33, %v989_v40  ;;  %v994_v51 = vrot.slane %v989_v40, 4  ;;  %1331 = vst.msk [vmem:[#allocation2 + $0x28] sm:$0xf] %vm1304_vm7, %v1010_v48  ;;  %1334 = vst [vmem:[#allocation2 + $0x2c] sm:$0x1] %v1333_v49  ;;  %v1032_v53 = vrot.slane %v1030_v43, 7  ;;  %v7254_v9 = vcombine.low %v2060_v52, %v8238_v57 }
  0xfe   : > { %v1013_v54 = vshrl.u32 %v7482_v45, 16  ;;  %v1016_v55 = vshll.u32 %v7482_v45, 16  ;;  %v1038_v56 = vshrl.u32 %v7485_v46, 16  ;;  %v1041_v62 = vshll.u32 %v7485_v46, 16  ;;  %v1339_v32 = vld [vmem:[#allocation2 + $0x38] sm:$0x1] }
  0xff   : > { %v993_v59 = vsel %vm8202_vm10, %v985_v29, %v992_v50  ;;  %v1326_v60 = vsel %vm8127_vm4, %v994_v51, %v1325_v41  ;;  %v1035_v1 = vor.u32 %v1033_v44, %v1032_v53  ;;  %v1036_v2 = vrot.slane %v1032_v53, 4  ;;  %3565 = vrot.lane.b32.xlu0 %v7254_v9, %s7973_s8  ;;  %v8261_v29 = vld [vmem:[#allocation2 + $0x14] sm:$0x1]  ;;  %v1881_v36 = vld [vmem:[#allocation2 + $0xc] sm:$0xe] }
 0x100   : > { %1324 = vst.msk [vmem:[#allocation2 + $0x1c] sm:$0xf] %vm1304_vm7, %v993_v59  ;;  %1327 = vst [vmem:[#allocation2 + $0x20] sm:$0x1] %v1326_v60  ;;  %v8246_v3 = vrot.slane %v1013_v54, 7  ;;  %v1040_v4 = vrot.slane %v1038_v56, 7  ;;  %v7483_v15 = vpack.c.bf16 %v694_v6, %v694_v6 }
 0x101   : > { %v2109_v7 = vshrl.u32 %v2060_v52, 16  ;;  %v2112_v8 = vshll.u32 %v2060_v52, 16  ;;  %v1343_v10 = vsel %vm8192_vm9, %v1035_v1, %v1342_v61  ;;  %v2122_v22 = vshrl.u32 %v8238_v57, 16  ;;  %v8271_v35 = vld [vmem:[#allocation2 + $0x14] sm:$0x1] }
 0x102   : > { %v1018_v11 = vor.u32 %v1016_v55, %v8246_v3  ;;  %v1043_v12 = vor.u32 %v1041_v62, %v1040_v4  ;;  %1344 = vst [vmem:[#allocation2 + $0x3c] sm:$0xf] %v1343_v10  ;;  %v1045_v14 = vrot.slane %v1040_v4, 4  ;;  %v1021_v26 = vshrl.u32 %v7483_v15, 16  ;;  %v2064_v41 = vld [vmem:[#allocation2 + $0x24] sm:$0xf] }
 0x103   : > { %v2111_v16 = vrot.slane %v2109_v7, 4  ;;  %v2114_v17 = vrot.slane %v2112_v8, 5  ;;  %v1024_v27 = vshll.u32 %v7483_v15, 16  ;;  %v1019_v31 = vrot.slane %v8246_v3, 4  ;;  %v1880_v47 = vld [vmem:[#allocation2] sm:$0xe] }
 0x104   : > { %v1336_v18 = vsel %vm8192_vm9, %v1018_v11, %v1335_v5  ;;  %v1044_v19 = vsel %vm8202_vm10, %v1036_v2, %v1043_v12  ;;  %v1347_v24 = vsel %vm8127_vm4, %v1045_v14, %v1346_v13  ;;  %v2558_v34 = vrot.slane %v8238_v57, 5  ;;  %v1447_v48 = vld [vmem:[#allocation2 + $0xc] sm:$0xf]  ;;  %v8281_v53 = vld [vmem:[#allocation2 + $0x28] sm:$0xf] }
 0x105   : > { %1337 = vst [vmem:[#allocation2 + $0x30] sm:$0xf] %v1336_v18  ;;  %1345 = vst.msk [vmem:[#allocation2 + $0x40] sm:$0xf] %vm1304_vm7, %v1044_v19  ;;  %v2115_v28 = vor.u32 %v2114_v17, %v2111_v16  ;;  %v1023_v37 = vrot.slane %v1021_v26, 7  ;;  %v2118_v38 = vshll.u32 %v8238_v57, 16  ;;  %v7256_v5 = vcombine.low %v2064_v41, %v8281_v53 }
 0x106   : > { %1348 = vst [vmem:[#allocation2 + $0x44] sm:$0x1] %v1347_v24  ;;  %v8274_v39 = vrot.slane %v2122_v22, 4  ;;  %v7174_v40 = vrot.slane %v2492_v23, 9  ;;  %v2560_v44 = vrot.slane %v2558_v34, 4  ;;  %v2561_v45 = vrot.slane %v8261_v29, 5 }
 0x107   : > { %v8276_v43 = vrot.slane %v2115_v28, 4  ;;  %v1956_v46 = vrot.slane %v1448_v30, 5  ;;  %v1026_v49 = vor.u32 %v1024_v27, %v1023_v37  ;;  %v1028_v50 = vrot.slane %v1023_v37, 4  ;;  %v8283_v54 = vld [vmem:[#allocation2 + $0x4] sm:$0xf] }
 0x108   : > { %v2559_v51 = vsel %vm8266_vm13, %v7174_v40, %v2558_v34  ;;  %v7159_v52 = vrot.slane %v1881_v36, 9  ;;  %v2562_v55 = vsel %vm8266_vm13, %v2560_v44, %v2561_v45  ;;  %v1959_v59 = vrot.slane %v8271_v35, 5  ;;  %v8288_v61 = vld [vmem:[#allocation2 + $0x8] sm:$0x1]  ;;  %v8300_v7 = vld [vmem:[#allocation2 + $0x24] sm:$0xf]  ;;  %v7669_v44 = vpop.f32.mrf.mxu0 }
 0x109   : > { %v1958_v56 = vrot.slane %v1956_v46, 4  ;;  %v2157_v60 = vshrl.u32 %v2064_v41, 16  ;;  %v1027_v62 = vsel %vm8202_vm10, %v1019_v31, %v1026_v49  ;;  %v1340_v63 = vsel %vm8127_vm4, %v1028_v50, %v1339_v32  ;;  %v8312_v27 = vld [vmem:[#allocation2 + $0x28] sm:$0xf]  ;;  %v2062_v34 = vld [vmem:[#allocation2 + $0x18] sm:$0xf] }
 0x10a   : > { %v7286_v1 = vcombine.low %v2559_v51, %v2562_v55  ;;  %v2160_v2 = vshll.u32 %v2064_v41, 16  ;;  %1338 = vst.msk [vmem:[#allocation2 + $0x34] sm:$0xf] %vm1304_vm7, %v1027_v62  ;;  %1341 = vst [vmem:[#allocation2 + $0x38] sm:$0x1] %v1340_v63  ;;  %v1957_v3 = vsel %vm8266_vm13, %v7159_v52, %v1956_v46  ;;  %v7158_v6 = vrot.slane %v1880_v47, 9 }
 0x10b   : > { %v1960_v4 = vsel %vm8266_vm13, %v1958_v56, %v1959_v59  ;;  %v1949_v9 = vrot.slane %v8283_v54, 5  ;;  %v1952_v10 = vrot.slane %v8288_v61, 5  ;;  %v1521_v11 = vshrl.u32 %v1447_v48, 16  ;;  %v8321_v41 = vld [vmem:[#allocation2 + $0x1c] sm:$0xf] }
 0x10c   : > { %3725 = vrot.lane.b32.xlu0 %v7286_v1, %s7974_s11  ;;  %v7239_v8 = vcombine.low %v1957_v3, %v1960_v4  ;;  %v1540_v12 = vshll.u32 %v8271_v35, 16  ;;  %v1524_v13 = vshll.u32 %v1447_v48, 16  ;;  %v1530_v14 = vshll.u32 %v1448_v30, 16  ;;  %v8342_v63 = vld [vmem:[#allocation2 + $0x1c] sm:$0xf]  ;;  %v590_v4 = vpop.f32.mrf.mxu0 }
 0x10d   : > { %v1534_v15 = vshrl.u32 %v1448_v30, 16  ;;  %v1950_v16 = vsel %vm8266_vm13, %v7158_v6, %v1949_v9  ;;  %v1951_v17 = vrot.slane %v1949_v9, 4  ;;  %v1523_v18 = vrot.slane %v1521_v11, 4  ;;  %v8352_v3 = vld [vmem:[#allocation2 + $0x28] sm:$0xf] }
 0x10e   : > { %3471 = vrot.lane.b32.xlu1 %v7239_v8, %s7975_s12  ;;  %v2742_v19 = vshrl.u32 %v8300_v7, 16  ;;  %v8310_v22 = vrot.slane %v2157_v60, 4  ;;  %v1526_v23 = vrot.slane %v1524_v13, 5  ;;  %v1532_v24 = vrot.slane %v1530_v14, 5  ;;  %v8357_v8 = vld [vmem:[#allocation2 + $0x2c] sm:$0x1] }
 0x10f   : > { %v1536_v26 = vrot.slane %v1534_v15, 4  ;;  %v8314_v28 = vrot.slane %v2160_v2, 5  ;;  %v2170_v30 = vshrl.u32 %v8281_v53, 16  ;;  %v1953_v31 = vsel %vm8266_vm13, %v1951_v17, %v1952_v10  ;;  %v8350_v2 = vld [vmem:[#allocation2 + $0x18] sm:$0xf] }
 0x110   : > { %3569 = vrot.lane.b32.xlu0 %v7256_v5, %s7973_s8  ;;  %v2745_v32 = vshll.u32 %v8300_v7, 16  ;;  %v7238_v35 = vcombine.low %v1950_v16, %v1953_v31  ;;  %v1527_v36 = vor.u32 %v1526_v23, %v1523_v18  ;;  %v1542_v40 = vrot.slane %v1540_v12, 5  ;;  %v1883_v9 = vld [vmem:[#allocation2 + $0x24] sm:$0xe] }
 0x111   : > { %v1537_v37 = vor.u32 %v1536_v26, %v1532_v24  ;;  %v8329_v46 = vrot.slane %v2742_v19, 4  ;;  %v2755_v47 = vshrl.u32 %v8312_v27, 16  ;;  %v2120_v48 = vrot.slane %v2118_v38, 5  ;;  %v2493_v26 = vld [vmem:[#allocation2 + $0x18] sm:$0xe] }
 0x112   : > { %v2128_v49 = vshll.u32 %v8261_v29, 16  ;;  %3469 = vrot.lane.b32.xlu1 %v7238_v35, %s7975_s12  ;;  %v1528_v50 = vrot.slane %v1527_v36, 4  ;;  %v2133_v52 = vshrl.u32 %v2062_v34, 16  ;;  %v2136_v55 = vshll.u32 %v2062_v34, 16  ;;  %v8375_v36 = vld [vmem:[#allocation2 + $0x20] sm:$0x1] }
 0x113   : > { %v1538_v51 = vrot.slane %v1537_v37, 4  ;;  %v8336_v56 = vrot.slane %v2745_v32, 5  ;;  %v7303_v59 = vcombine.low %v8300_v7, %v8312_v27  ;;  %v2125_v60 = vor.u32 %v8274_v39, %v2120_v48 }
 0x114   : > { %v2146_v62 = vshrl.u32 %v8321_v41, 16  ;;  %v1533_v57 = vsel %vm8325_vm0, %v1528_v50, %v1532_v24  ;;  %v7255_v38 = vcombine.low %v2062_v34, %v8321_v41  ;;  %v599_v1 = vadd.f32 %v7669_v44, %v8184_v0  ;;  %v7670_v24 = vpop.f32.mrf.mxu0 }
 0x115   : > { %v1543_v29 = vsel %vm8325_vm0, %v1538_v51, %v1542_v40  ;;  %v2121_v5 = vsel %vm8325_vm0, %v8276_v43, %v2120_v48  ;;  %v2126_v6 = vrot.slane %v2125_v60, 4  ;;  %v2130_v7 = vrot.slane %v2128_v49, 5  ;;  %v1445_v49 = vld [vmem:[#allocation2] sm:$0xf] }
 0x116   : > { %v7223_v39 = vcombine.low %v1533_v57, %v1543_v29  ;;  %3823 = vrot.lane.b32.xlu1 %v7303_v59, %s7976_s13  ;;  %v8360_v10 = vrot.slane %v2133_v52, 4  ;;  %v8362_v11 = vrot.slane %v2136_v55, 5  ;;  %v699_v12 = vmax.f32 %v599_v1, 0.0 }
 0x117   : > { %v7302_v13 = vcombine.low %v8350_v2, %v8342_v63  ;;  %v2131_v43 = vsel %vm8325_vm0, %v2126_v6, %v2130_v7  ;;  %v2718_v14 = vshrl.u32 %v8350_v2, 16  ;;  %v1970_v15 = vrot.slane %v8352_v3, 5 }
 0x118   : > { %3391 = vrot.lane.b32.xlu0 %v7223_v39, %s7977_s14  ;;  %v591_v16 = vadd.f32 %v8184_v0, %v590_v4  ;;  %v7488_v17 = vpack.c.bf16 %v699_v12, %v699_v12  ;;  %v2721_v18 = vshll.u32 %v8350_v2, 16  ;;  %v7161_v19 = vrot.slane %v1883_v9, 9 }
 0x119   : > { %v1973_v23 = vrot.slane %v8357_v8, 5  ;;  %v7270_v31 = vcombine.low %v2121_v5, %v2131_v43  ;;  %v1972_v32 = vrot.slane %v1970_v15, 4  ;;  %v602_v35 = vadd.f32 %v7670_v24, %v8184_v0  ;;  %v1349_v24 = vld [vmem:[#allocation2 + $0x48] sm:$0xf] }
 0x11a   : > { %v697_v34 = vmax.f32 %v591_v16, 0.0  ;;  %3567 = vrot.lane.b32.xlu1 %v7255_v38, %s7973_s8  ;;  %v1064_v37 = vshrl.u32 %v7488_v17, 16  ;;  %v1067_v40 = vshll.u32 %v7488_v17, 16  ;;  %v1971_v44 = vsel %vm8266_vm13, %v7161_v19, %v1970_v15  ;;  %v1356_v38 = vld [vmem:[#allocation2 + $0x54] sm:$0xf]  ;;  %v593_v19 = vpop.f32.mrf.mxu0 }
 0x11b   : > { %v2565_v48 = vrot.slane %v8321_v41, 5  ;;  %v1974_v50 = vsel %vm8266_vm13, %v1972_v32, %v1973_v23  ;;  %v700_v52 = vmax.f32 %v602_v35, 0.0  ;;  %v7175_v55 = vrot.slane %v2493_v26, 9 }
 0x11c   : > { %3645 = vrot.lane.b32.xlu0 %v7270_v31, %s7978_s15  ;;  %v7486_v51 = vpack.c.bf16 %v697_v34, %v697_v34  ;;  %v1066_v59 = vrot.slane %v1064_v37, 7  ;;  %v7241_v60 = vcombine.low %v1971_v44, %v1974_v50  ;;  %v2568_v29 = vrot.slane %v8375_v36, 5 }
 0x11d   : > { %v2567_v57 = vrot.slane %v2565_v48, 4  ;;  %v7489_v39 = vpack.c.bf16 %v700_v52, %v700_v52  ;;  %v1497_v5 = vshrl.u32 %v1445_v49, 16  ;;  %v2566_v7 = vsel %vm8266_vm13, %v7175_v55, %v2565_v48 }
 0x11e   : > { %v1047_v1 = vshrl.u32 %v7486_v51, 16  ;;  %v1050_v4 = vshll.u32 %v7486_v51, 16  ;;  %v1069_v6 = vor.u32 %v1067_v40, %v1066_v59  ;;  %3475 = vrot.lane.b32.xlu1 %v7241_v60, %s7975_s12  ;;  %v1500_v12 = vshll.u32 %v1445_v49, 16  ;;  %v1360_v40 = vld [vmem:[#allocation2 + $0x5c] sm:$0x1] }
 0x11f   : > { %v2569_v9 = vsel %vm8266_vm13, %v2567_v57, %v2568_v29  ;;  %v1072_v15 = vshrl.u32 %v7489_v39, 16  ;;  %v1075_v16 = vshll.u32 %v7489_v39, 16  ;;  %v1499_v26 = vrot.slane %v1497_v5, 4  ;;  %v8403_v60 = vld [vmem:[#allocation2 + $0x3c] sm:$0xf] }
 0x120   : > { %3821 = vrot.lane.b32.xlu0 %v7302_v13, %s7976_s13  ;;  %v8391_v43 = vrot.slane %v1047_v1, 7  ;;  %v7287_v17 = vcombine.low %v2566_v7, %v2569_v9  ;;  %v1357_v23 = vsel %vm8192_vm9, %v1069_v6, %v1356_v38  ;;  %v1502_v31 = vrot.slane %v1500_v12, 5  ;;  %v3102_v5 = vld [vmem:[#allocation2 + $0x24] sm:$0xe]  ;;  %v8420_v9 = vld [vmem:[#allocation2 + $0x40] sm:$0xf] }
 0x121   : > { %v1506_v32 = vshll.u32 %v8283_v54, 16  ;;  %v1070_v34 = vrot.slane %v1066_v59, 4  ;;  %1358 = vst [vmem:[#allocation2 + $0x54] sm:$0xf] %v1357_v23  ;;  %v1074_v37 = vrot.slane %v1072_v15, 7  ;;  %v1510_v13 = vshrl.u32 %v8283_v54, 16 }
 0x122   : > { %v1052_v35 = vor.u32 %v1050_v4, %v8391_v43  ;;  %3727 = vrot.lane.b32.xlu1 %v7287_v17, %s7974_s11  ;;  %v1503_v44 = vor.u32 %v1502_v31, %v1499_v26  ;;  %v1516_v49 = vshll.u32 %v8288_v61, 16  ;;  %v594_v50 = vadd.f32 %v8184_v0, %v593_v19 }
 0x123   : > { %v1508_v48 = vrot.slane %v1506_v32, 5  ;;  %v1077_v52 = vor.u32 %v1075_v16, %v1074_v37  ;;  %v1079_v55 = vrot.slane %v1074_v37, 4  ;;  %v1512_v59 = vrot.slane %v1510_v13, 4 }
 0x124   : > { %v1350_v51 = vsel %vm8192_vm9, %v1052_v35, %v1349_v24  ;;  %v2731_v57 = vshrl.u32 %v8342_v63, 16  ;;  %v8408_v54 = vrot.slane %v2718_v14, 4  ;;  %v1504_v29 = vrot.slane %v1503_v44, 4  ;;  %v2494_v44 = vld [vmem:[#allocation2 + $0x24] sm:$0xe] }
 0x125   : > { %1351 = vst [vmem:[#allocation2 + $0x48] sm:$0xf] %v1350_v51  ;;  %v698_v38 = vmax.f32 %v594_v50, 0.0  ;;  %v1078_v61 = vsel %vm8202_vm10, %v1070_v34, %v1077_v52  ;;  %v1361_v1 = vsel %vm8127_vm4, %v1079_v55, %v1360_v40  ;;  %v1513_v4 = vor.u32 %v1512_v59, %v1508_v48  ;;  %v1451_v59 = vld [vmem:[#allocation2 + $0x24] sm:$0xf] }
 0x126   : > { %v1518_v39 = vrot.slane %v1516_v49, 5  ;;  %v8416_v6 = vrot.slane %v2721_v18, 5  ;;  %v1053_v7 = vrot.slane %v8391_v43, 4  ;;  %1359 = vst.msk [vmem:[#allocation2 + $0x58] sm:$0xf] %vm1304_vm7, %v1078_v61  ;;  %v2790_v12 = vshrl.u32 %v8403_v60, 16 }
 0x127   : > { %1362 = vst [vmem:[#allocation2 + $0x5c] sm:$0x1] %v1361_v1  ;;  %v7487_v14 = vpack.c.bf16 %v698_v38, %v698_v38  ;;  %v1509_v15 = vsel %vm8325_vm0, %v1504_v29, %v1508_v48  ;;  %v1514_v16 = vrot.slane %v1513_v4, 4  ;;  %v2793_v17 = vshll.u32 %v8403_v60, 16  ;;  %v2702_v18 = vld [vmem:[#allocation2 + $0x2c] sm:$0x1] }
 0x128   : > { %v7305_v2 = vcombine.low %v8403_v60, %v8420_v9  ;;  %v7191_v23 = vrot.slane %v3102_v5, 9  ;;  %v3174_v24 = vrot.slane %v8312_v27, 5  ;;  %v2748_v31 = vor.u32 %v8336_v56, %v8329_v46  ;;  %v1353_v48 = vld [vmem:[#allocation2 + $0x50] sm:$0x1] }
 0x129   : > { %v1055_v19 = vshrl.u32 %v7487_v14, 16  ;;  %v1058_v43 = vshll.u32 %v7487_v14, 16  ;;  %v1519_v26 = vsel %vm8325_vm0, %v1514_v16, %v1518_v39  ;;  %v2751_v32 = vshll.u32 %v8312_v27, 16 }
 0x12a   : > { %3827 = vrot.lane.b32.xlu1 %v7305_v2, %s7976_s13  ;;  %v2757_v34 = vrot.slane %v2755_v47, 4  ;;  %v7222_v35 = vcombine.low %v1509_v15, %v1519_v26  ;;  %v3176_v13 = vrot.slane %v3174_v24, 4  ;;  %v3177_v40 = vrot.slane %v2702_v18, 5  ;;  %v8442_v47 = vld [vmem:[#allocation2 + $0x2c] sm:$0x1] }
 0x12b   : > { %v1057_v37 = vrot.slane %v1055_v19, 7  ;;  %v3175_v49 = vsel %vm8266_vm13, %v7191_v23, %v3174_v24  ;;  %v2749_v50 = vrot.slane %v2748_v31, 4  ;;  %v2753_v51 = vrot.slane %v2751_v32, 5 }
 0x12c   : > { %v2761_v52 = vshll.u32 %v2702_v18, 16  ;;  %3389 = vrot.lane.b32.xlu0 %v7222_v35, %s7977_s14  ;;  %v3178_v27 = vsel %vm8266_vm13, %v3176_v13, %v3177_v40  ;;  %v2572_v55 = vrot.slane %v8281_v53, 5  ;;  %v7176_v1 = vrot.slane %v2494_v44, 9  ;;  %v3101_v35 = vld [vmem:[#allocation2 + $0x18] sm:$0xe] }
 0x12d   : > { %v1060_v46 = vor.u32 %v1058_v43, %v1057_v37  ;;  %v1062_v56 = vrot.slane %v1057_v37, 4  ;;  %v7335_v29 = vcombine.low %v3175_v49, %v3178_v27  ;;  %v2754_v38 = vsel %vm8325_vm0, %v2749_v50, %v2753_v51  ;;  %v8465_v49 = vld [vmem:[#allocation2 + $0x1c] sm:$0xf] }
 0x12e   : > { %v2758_v61 = vor.u32 %v2757_v34, %v2753_v51  ;;  %v2763_v5 = vrot.slane %v2761_v52, 5  ;;  %v2574_v14 = vrot.slane %v2572_v55, 4  ;;  %v2575_v16 = vrot.slane %v8442_v47, 5  ;;  %v8463_v34 = vld [vmem:[#allocation2 + $0x20] sm:$0x1] }
 0x12f   : > { %v1061_v4 = vsel %vm8202_vm10, %v1053_v7, %v1060_v46  ;;  %v1354_v39 = vsel %vm8127_vm4, %v1062_v56, %v1353_v48  ;;  %v1569_v2 = vshrl.u32 %v1451_v59, 16  ;;  %v1572_v18 = vshll.u32 %v1451_v59, 16  ;;  %v2066_v48 = vld [vmem:[#allocation2 + $0x30] sm:$0xf]  ;;  %v8473_v52 = vld [vmem:[#allocation2 + $0x34] sm:$0xf] }
 0x130   : > { %1352 = vst.msk [vmem:[#allocation2 + $0x4c] sm:$0xf] %vm1304_vm7, %v1061_v4  ;;  %1355 = vst [vmem:[#allocation2 + $0x50] sm:$0x1] %v1354_v39  ;;  %v2759_v15 = vrot.slane %v2758_v61, 4  ;;  %3983 = vrot.lane.b32.xlu0 %v7335_v29, %s7979_s16  ;;  %v2573_v19 = vsel %vm8266_vm13, %v7176_v1, %v2572_v55  ;;  %v1578_v7 = vshll.u32 %v8352_v3, 16  ;;  %v2576_v26 = vsel %vm8266_vm13, %v2574_v14, %v2575_v16 }
 0x131   : > { %v1582_v43 = vshrl.u32 %v8352_v3, 16  ;;  %v1588_v23 = vshll.u32 %v8357_v8, 16  ;;  %v1571_v31 = vrot.slane %v1569_v2, 4  ;;  %v1574_v32 = vrot.slane %v1572_v18, 5  ;;  %v1882_v55 = vld [vmem:[#allocation2 + $0x18] sm:$0xe] }
 0x132   : > { %v2764_v24 = vsel %vm8325_vm0, %v2759_v15, %v2763_v5  ;;  %v7288_v13 = vcombine.low %v2573_v19, %v2576_v26  ;;  %v1580_v40 = vrot.slane %v1578_v7, 5  ;;  %v8469_v3 = vrot.slane %v2790_v12, 4  ;;  %v8485_v39 = vld [vmem:[#allocation2 + $0x20] sm:$0x1] }
 0x133   : > { %v7319_v37 = vcombine.low %v2754_v38, %v2764_v24  ;;  %v1584_v44 = vrot.slane %v1582_v43, 4  ;;  %v2803_v8 = vshrl.u32 %v8420_v9, 16  ;;  %v1575_v50 = vor.u32 %v1574_v32, %v1571_v31  ;;  %v8500_v31 = vld [vmem:[#allocation2 + $0x3c] sm:$0xf] }
 0x134   : > { %v3167_v51 = vrot.slane %v8342_v63, 5  ;;  %v8477_v46 = vrot.slane %v2793_v17, 5  ;;  %3729 = vrot.lane.b32.xlu0 %v7288_v13, %s7974_s11  ;;  %v1590_v27 = vrot.slane %v1588_v23, 5  ;;  %v7190_v12 = vrot.slane %v3101_v35, 9 }
 0x135   : > { %3903 = vrot.lane.b32.xlu1 %v7319_v37, %s7980_s18  ;;  %v1585_v56 = vor.u32 %v1584_v44, %v1580_v40  ;;  %v1576_v59 = vrot.slane %v1575_v50, 4  ;;  %v3170_v38 = vrot.slane %v8463_v34, 5  ;;  %v2181_v61 = vshrl.u32 %v2066_v48, 16 }
 0x136   : > { %v3169_v29 = vrot.slane %v3167_v51, 4  ;;  %v3168_v60 = vsel %vm8266_vm13, %v7190_v12, %v3167_v51  ;;  %v2184_v17 = vshll.u32 %v2066_v48, 16  ;;  %v2194_v4 = vshrl.u32 %v8473_v52, 16 }
 0x137   : > { %v1586_v1 = vrot.slane %v1585_v56, 4  ;;  %v1581_v5 = vsel %vm8325_vm0, %v1576_v59, %v1580_v40  ;;  %v7160_v15 = vrot.slane %v1882_v55, 9  ;;  %v1963_v16 = vrot.slane %v8465_v49, 5 }
 0x138   : > { %v3171_v14 = vsel %vm8266_vm13, %v3169_v29, %v3170_v38  ;;  %v2139_v19 = vor.u32 %v8362_v11, %v8360_v10  ;;  %v2142_v7 = vshll.u32 %v8321_v41, 16  ;;  %v1966_v24 = vrot.slane %v8485_v39, 5  ;;  %v1449_v10 = vld [vmem:[#allocation2 + $0x18] sm:$0xf] }
 0x139   : > { %v1591_v2 = vsel %vm8325_vm0, %v1586_v1, %v1590_v27  ;;  %v7334_v18 = vcombine.low %v3168_v60, %v3171_v14  ;;  %v1965_v23 = vrot.slane %v1963_v16, 4  ;;  %v2148_v26 = vrot.slane %v2146_v62, 4 }
 0x13a   : > { %v7225_v43 = vcombine.low %v1581_v5, %v1591_v2  ;;  %v7257_v32 = vcombine.low %v2066_v48, %v8473_v52  ;;  %v2140_v35 = vrot.slane %v2139_v19, 4  ;;  %v2144_v37 = vrot.slane %v2142_v7, 5  ;;  %v8514_v48 = vld [vmem:[#allocation2 + $0x40] sm:$0xf]  ;;  %v1885_v19 = vld [vmem:[#allocation2 + $0x3c] sm:$0xe] }
 0x13b   : > { %3981 = vrot.lane.b32.xlu0 %v7334_v18, %s7979_s16  ;;  %v2152_v13 = vshll.u32 %v8375_v36, 16  ;;  %v8506_v11 = vrot.slane %v2181_v61, 4  ;;  %v8508_v40 = vrot.slane %v2184_v17, 5  ;;  %v1964_v41 = vsel %vm8266_vm13, %v7160_v15, %v1963_v16  ;;  %v7673_v18 = vpop.f32.mrf.mxu0 }
 0x13c   : > { %3395 = vrot.lane.b32.xlu1 %v7225_v43, %s7977_s14  ;;  %v1967_v62 = vsel %vm8266_vm13, %v1965_v23, %v1966_v24  ;;  %v2149_v50 = vor.u32 %v2148_v26, %v2144_v37  ;;  %v2205_v51 = vshrl.u32 %v8500_v31, 16  ;;  %v2208_v36 = vshll.u32 %v8500_v31, 16 }
 0x13d   : > { %v7240_v44 = vcombine.low %v1964_v41, %v1967_v62  ;;  %v2145_v56 = vsel %vm8325_vm0, %v2140_v35, %v2144_v37  ;;  %v7258_v27 = vcombine.low %v8500_v31, %v8514_v48  ;;  %v1545_v12 = vshrl.u32 %v1449_v10, 16 }
 0x13e   : > { %v1548_v55 = vshll.u32 %v1449_v10, 16  ;;  %v2150_v59 = vrot.slane %v2149_v50, 4  ;;  %v2154_v29 = vrot.slane %v2152_v13, 5  ;;  %v1554_v38 = vshll.u32 %v8465_v49, 16 }
 0x13f   : > { %3473 = vrot.lane.b32.xlu0 %v7240_v44, %s7975_s12  ;;  %v1558_v61 = vshrl.u32 %v8465_v49, 16  ;;  %v1547_v1 = vrot.slane %v1545_v12, 4  ;;  %v1564_v17 = vshll.u32 %v8485_v39, 16  ;;  %v2166_v5 = vshll.u32 %v8281_v53, 16 }
 0x140   : > { %3571 = vrot.lane.b32.xlu1 %v7257_v32, %s7973_s8  ;;  %v1550_v60 = vrot.slane %v1548_v55, 5  ;;  %v2155_v14 = vsel %vm8325_vm0, %v2150_v59, %v2154_v29  ;;  %v1556_v15 = vrot.slane %v1554_v38, 5  ;;  %v2163_v2 = vor.u32 %v8314_v28, %v8310_v22  ;;  %v8538_v32 = vld [vmem:[#allocation2 + $0x40] sm:$0xf]  ;;  %v8540_v22 = vld [vmem:[#allocation2 + $0x44] sm:$0x1] }
 0x141   : > { %v1560_v16 = vrot.slane %v1558_v61, 4  ;;  %v7271_v7 = vcombine.low %v2145_v56, %v2155_v14  ;;  %v2218_v49 = vshrl.u32 %v8514_v48, 16  ;;  %v2168_v23 = vrot.slane %v2166_v5, 5  ;;  %v8551_v59 = vld [vmem:[#allocation2 + $0x30] sm:$0xf] }
 0x142   : > { %v1551_v43 = vor.u32 %v1550_v60, %v1547_v1  ;;  %v2172_v24 = vrot.slane %v2170_v30, 4  ;;  %v2176_v26 = vshll.u32 %v8442_v47, 16  ;;  %v615_v31 = vadd.f32 %v7673_v18, %v8184_v0  ;;  %v606_v30 = vpop.f32.mrf.mxu0  ;;  %v2495_v60 = vld [vmem:[#allocation2 + $0x30] sm:$0xe] }
 0x143   : > { %3573 = vrot.lane.b32.xlu0 %v7258_v27, %s7973_s8  ;;  %v1561_v39 = vor.u32 %v1560_v16, %v1556_v15  ;;  %v1566_v35 = vrot.slane %v1564_v17, 5  ;;  %v7163_v37 = vrot.slane %v1885_v19, 9  ;;  %v1984_v13 = vrot.slane %v8538_v32, 5 }
 0x144   : > { %3647 = vrot.lane.b32.xlu1 %v7271_v7, %s7978_s15  ;;  %v1552_v28 = vrot.slane %v1551_v43, 4  ;;  %v2164_v41 = vrot.slane %v2163_v2, 4  ;;  %v2173_v62 = vor.u32 %v2172_v24, %v2168_v23  ;;  %v703_v53 = vmax.f32 %v615_v31, 0.0  ;;  %v7674_v16 = vpop.f32.mrf.mxu0  ;;  %v8563_v2 = vld [vmem:[#allocation2 + $0x38] sm:$0x1] }
 0x145   : > { %v1562_v10 = vrot.slane %v1561_v39, 4  ;;  %v2178_v0 = vrot.slane %v2176_v26, 5  ;;  %v1986_v44 = vrot.slane %v1984_v13, 4  ;;  %v1987_v50 = vrot.slane %v8540_v22, 5  ;;  %v1370_v43 = vld [vmem:[#allocation2 + $0x6c] sm:$0xf] }
 0x146   : > { %v1557_v47 = vsel %vm8325_vm0, %v1552_v28, %v1556_v15  ;;  %v2174_v27 = vrot.slane %v2173_v62, 4  ;;  %v7492_v12 = vpack.c.bf16 %v703_v53, %v703_v53  ;;  %v1985_v55 = vsel %vm8266_vm13, %v7163_v37, %v1984_v13  ;;  %v8578_v31 = vld [vmem:[#allocation2 + $0x34] sm:$0xf] }
 0x147   : > { %v1567_v56 = vsel %vm8325_vm0, %v1562_v10, %v1566_v35  ;;  %v8553_v29 = vrot.slane %v2205_v51, 4  ;;  %v8555_v38 = vrot.slane %v2208_v36, 5  ;;  %v1988_v1 = vsel %vm8266_vm13, %v1986_v44, %v1987_v50 }
 0x148   : > { %v7224_v61 = vcombine.low %v1557_v47, %v1567_v56  ;;  %v2169_v17 = vsel %vm8325_vm0, %v2164_v41, %v2168_v23  ;;  %v2179_v5 = vsel %vm8325_vm0, %v2174_v27, %v2178_v0  ;;  %v1098_v14 = vshrl.u32 %v7492_v12, 16  ;;  %v8573_v23 = vld [vmem:[%s11095_s2] ss:$0 sm:$0xff] }
 0x149   : > { %v1101_v15 = vshll.u32 %v7492_v12, 16  ;;  %v7272_v51 = vcombine.low %v2169_v17, %v2179_v5  ;;  %v7243_v36 = vcombine.low %v1985_v55, %v1988_v1  ;;  %v2766_v18 = vshrl.u32 %v8551_v59, 16 }
 0x14a   : > { %3393 = vrot.lane.b32.xlu1 %v7224_v61, %s7977_s14  ;;  %v2769_v19 = vshll.u32 %v8551_v59, 16  ;;  %v8568_v7 = vrot.slane %v1098_v14, 7  ;;  %v607_v39 = vadd.f32 %v8573_v23, %v606_v30  ;;  %v618_v24 = vadd.f32 %v8573_v23, %v7674_v16  ;;  %v609_v30 = vpop.f32.mrf.mxu0 }
 0x14b   : > { %v7177_v26 = vrot.slane %v2495_v60, 9  ;;  %3649 = vrot.lane.b32.xlu0 %v7272_v51, %s7978_s15  ;;  %v2579_v28 = vrot.slane %v8473_v52, 5  ;;  %v2582_v35 = vrot.slane %v8563_v2, 5  ;;  %v2724_v37 = vor.u32 %v8416_v6, %v8408_v54 }
 0x14c   : > { %v2727_v13 = vshll.u32 %v8342_v63, 16  ;;  %v1103_v10 = vor.u32 %v1101_v15, %v8568_v7  ;;  %v7304_v41 = vcombine.low %v8551_v59, %v8578_v31  ;;  %v701_v62 = vmax.f32 %v607_v39, 0.0  ;;  %v8601_v15 = vld [vmem:[#allocation2 + $0x54] sm:$0xf]  ;;  %v1363_v39 = vld [vmem:[#allocation2 + $0x60] sm:$0xf] }
 0x14d   : > { %v704_v53 = vmax.f32 %v618_v24, 0.0  ;;  %v2580_v47 = vsel %vm8266_vm13, %v7177_v26, %v2579_v28  ;;  %v2581_v0 = vrot.slane %v2579_v28, 4  ;;  %v2725_v44 = vrot.slane %v2724_v37, 4  ;;  %v1374_v26 = vld [vmem:[#allocation2 + $0x74] sm:$0x1] }
 0x14e   : > { %3479 = vrot.lane.b32.xlu1 %v7243_v36, %s7975_s12  ;;  %v2729_v50 = vrot.slane %v2727_v13, 5  ;;  %v1371_v54 = vsel %vm8192_vm9, %v1103_v10, %v1370_v43  ;;  %v7490_v6 = vpack.c.bf16 %v701_v62, %v701_v62  ;;  %v2733_v27 = vrot.slane %v2731_v57, 4  ;;  %v8610_v62 = vld [vmem:[#allocation2 + $0x58] sm:$0xf]  ;;  %v1884_v59 = vld [vmem:[#allocation2 + $0x30] sm:$0xe] }
 0x14f   : > { %v7493_v56 = vpack.c.bf16 %v704_v53, %v704_v53  ;;  %1372 = vst [vmem:[#allocation2 + $0x6c] sm:$0xf] %v1371_v54  ;;  %v2779_v12 = vshrl.u32 %v8578_v31, 16  ;;  %3825 = vrot.lane.b32.xlu0 %v7304_v41, %s7976_s13  ;;  %v2583_v55 = vsel %vm8266_vm13, %v2581_v0, %v2582_v35  ;;  %v2737_v61 = vshll.u32 %v8463_v34, 16  ;;  %v3104_v53 = vld [vmem:[#allocation2 + $0x3c] sm:$0xe] }
 0x150   : > { %v610_v1 = vadd.f32 %v8573_v23, %v609_v30  ;;  %v1081_v60 = vshrl.u32 %v7490_v6, 16  ;;  %v1084_v17 = vshll.u32 %v7490_v6, 16  ;;  %v8603_v63 = vrot.slane %v2766_v18, 4 }
 0x151   : > { %v1106_v5 = vshrl.u32 %v7493_v56, 16  ;;  %v1109_v14 = vshll.u32 %v7493_v56, 16  ;;  %v7289_v57 = vcombine.low %v2580_v47, %v2583_v55  ;;  %v2734_v16 = vor.u32 %v2733_v27, %v2729_v50 }
 0x152   : > { %v702_v51 = vmax.f32 %v610_v1, 0.0  ;;  %v1104_v36 = vrot.slane %v8568_v7, 4  ;;  %v1083_v43 = vrot.slane %v1081_v60, 7  ;;  %v2730_v34 = vsel %vm8325_vm0, %v2725_v44, %v2729_v50  ;;  %v2704_v50 = vld [vmem:[#allocation2 + $0x44] sm:$0x1] }
 0x153   : > { %v1108_v24 = vrot.slane %v1106_v5, 7  ;;  %3731 = vrot.lane.b32.xlu1 %v7289_v57, %s7974_s11  ;;  %v2735_v28 = vrot.slane %v2734_v16, 4  ;;  %v2739_v35 = vrot.slane %v2737_v61, 5  ;;  %v2838_v18 = vshrl.u32 %v8601_v15, 16  ;;  %v1367_v5 = vld [vmem:[#allocation2 + $0x68] sm:$0x1] }
 0x154   : > { %v7491_v37 = vpack.c.bf16 %v702_v51, %v702_v51  ;;  %v1086_v13 = vor.u32 %v1084_v17, %v1083_v43  ;;  %v2841_v7 = vshll.u32 %v8601_v15, 16  ;;  %v7307_v44 = vcombine.low %v8601_v15, %v8610_v62  ;;  %v2496_v17 = vld [vmem:[#allocation2 + $0x3c] sm:$0xe] }
 0x155   : > { %v1111_v10 = vor.u32 %v1109_v14, %v1108_v24  ;;  %v1113_v41 = vrot.slane %v1108_v24, 4  ;;  %v2740_v30 = vsel %vm8325_vm0, %v2735_v28, %v2739_v35  ;;  %v1087_v55 = vrot.slane %v1083_v43, 4 }
 0x156   : > { %v1089_v47 = vshrl.u32 %v7491_v37, 16  ;;  %v1092_v0 = vshll.u32 %v7491_v37, 16  ;;  %v1364_v54 = vsel %vm8192_vm9, %v1086_v13, %v1363_v39  ;;  %v7318_v27 = vcombine.low %v2730_v34, %v2740_v30  ;;  %v8634_v34 = vld [vmem:[#allocation2 + $0x44] sm:$0x1]  ;;  %v1455_v13 = vld [vmem:[#allocation2 + $0x3c] sm:$0xf] }
 0x157   : > { %v1112_v6 = vsel %vm8202_vm10, %v1104_v36, %v1111_v10  ;;  %v1375_v56 = vsel %vm8127_vm4, %v1113_v41, %v1374_v26  ;;  %1365 = vst [vmem:[#allocation2 + $0x60] sm:$0xf] %v1364_v54  ;;  %3831 = vrot.lane.b32.xlu1 %v7307_v44, %s7976_s13  ;;  %v7193_v1 = vrot.slane %v3104_v53, 9  ;;  %v3188_v60 = vrot.slane %v8420_v9, 5 }
 0x158   : > { %1373 = vst.msk [vmem:[#allocation2 + $0x70] sm:$0xf] %vm1304_vm7, %v1112_v6  ;;  %1376 = vst [vmem:[#allocation2 + $0x74] sm:$0x1] %v1375_v56  ;;  %v1091_v61 = vrot.slane %v1089_v47, 7  ;;  %3901 = vrot.lane.b32.xlu0 %v7318_v27, %s7980_s18  ;;  %v3191_v14 = vrot.slane %v2704_v50, 5  ;;  %v2796_v57 = vor.u32 %v8477_v46, %v8469_v3 }
 0x159   : > { %v2799_v16 = vshll.u32 %v8420_v9, 16  ;;  %v2805_v51 = vrot.slane %v2803_v8, 4  ;;  %v3189_v39 = vsel %vm8266_vm13, %v7193_v1, %v3188_v60  ;;  %v3190_v24 = vrot.slane %v3188_v60, 4  ;;  %v3103_v47 = vld [vmem:[#allocation2 + $0x30] sm:$0xe] }
 0x15a   : > { %v1094_v36 = vor.u32 %v1092_v0, %v1091_v61  ;;  %v1096_v43 = vrot.slane %v1091_v61, 4  ;;  %v2797_v26 = vrot.slane %v2796_v57, 4  ;;  %v2809_v35 = vshll.u32 %v2704_v50, 16 }
 0x15b   : > { %v2801_v28 = vrot.slane %v2799_v16, 5  ;;  %v7178_v37 = vrot.slane %v2496_v17, 9  ;;  %v3192_v8 = vsel %vm8266_vm13, %v3190_v24, %v3191_v14  ;;  %v2586_v46 = vrot.slane %v8514_v48, 5  ;;  %v8655_v17 = vld [vmem:[#allocation2 + $0x38] sm:$0x1] }
 0x15c   : > { %v1095_v3 = vsel %vm8202_vm10, %v1087_v55, %v1094_v36  ;;  %v1368_v9 = vsel %vm8127_vm4, %v1096_v43, %v1367_v5  ;;  %v7337_v10 = vcombine.low %v3189_v39, %v3192_v8  ;;  %v2811_v30 = vrot.slane %v2809_v35, 5  ;;  %v8664_v24 = vld [vmem:[#allocation2 + $0x48] sm:$0xf] }
 0x15d   : > { %1366 = vst.msk [vmem:[#allocation2 + $0x64] sm:$0xf] %vm1304_vm7, %v1095_v3  ;;  %1369 = vst [vmem:[#allocation2 + $0x68] sm:$0x1] %v1368_v9  ;;  %v2802_v41 = vsel %vm8325_vm0, %v2797_v26, %v2801_v28  ;;  %v2806_v53 = vor.u32 %v2805_v51, %v2801_v28  ;;  %v2587_v0 = vsel %vm8266_vm13, %v7178_v37, %v2586_v46  ;;  %v2588_v44 = vrot.slane %v2586_v46, 4 }
 0x15e   : > { %v2589_v50 = vrot.slane %v8634_v34, 5  ;;  %v1617_v54 = vshrl.u32 %v1455_v13, 16  ;;  %3987 = vrot.lane.b32.xlu0 %v7337_v10, %s7979_s16  ;;  %v1620_v56 = vshll.u32 %v1455_v13, 16  ;;  %v1626_v27 = vshll.u32 %v8538_v32, 16  ;;  %v1481_v9 = vld [vmem:[#allocation2 + $0x38] sm:$0x1] }
 0x15f   : > { %v2807_v6 = vrot.slane %v2806_v53, 4  ;;  %v1630_v55 = vshrl.u32 %v8538_v32, 16  ;;  %v1636_v60 = vshll.u32 %v8540_v22, 16  ;;  %v7192_v5 = vrot.slane %v3103_v47, 9  ;;  %v7884_v33 = vld [vmem:[#allocation2 + $0x70] sm:$0xf] }
 0x160   : > { %v2590_v61 = vsel %vm8266_vm13, %v2588_v44, %v2589_v50  ;;  %v1619_v1 = vrot.slane %v1617_v54, 4  ;;  %v1622_v16 = vrot.slane %v1620_v56, 5  ;;  %v1628_v51 = vrot.slane %v1626_v27, 5  ;;  %v8686_v54 = vld [vmem:[#allocation2 + $0x4c] sm:$0xf] }
 0x161   : > { %v2812_v14 = vsel %vm8325_vm0, %v2807_v6, %v2811_v30  ;;  %v7290_v57 = vcombine.low %v2587_v0, %v2590_v61  ;;  %v8661_v36 = vrot.slane %v2769_v19, 5  ;;  %v1632_v43 = vrot.slane %v1630_v55, 4  ;;  %v8695_v61 = vld [vmem:[#allocation2 + $0x54] sm:$0xf] }
 0x162   : > { %v7321_v32 = vcombine.low %v2802_v41, %v2812_v14  ;;  %v3181_v39 = vrot.slane %v8578_v31, 5  ;;  %v8668_v22 = vrot.slane %v2838_v18, 4  ;;  %v2851_v26 = vshrl.u32 %v8610_v62, 16  ;;  %v1454_v41 = vld [vmem:[#allocation2 + $0x34] sm:$0xf] }
 0x163   : > { %3733 = vrot.lane.b32.xlu0 %v7290_v57, %s7974_s11  ;;  %v1623_v28 = vor.u32 %v1622_v16, %v1619_v1  ;;  %v3184_v35 = vrot.slane %v8655_v17, 5  ;;  %v1633_v19 = vor.u32 %v1632_v43, %v1628_v51  ;;  %v1638_v37 = vrot.slane %v1636_v60, 5 }
 0x164   : > { %3907 = vrot.lane.b32.xlu1 %v7321_v32, %s7980_s18  ;;  %v3182_v13 = vsel %vm8266_vm13, %v7192_v5, %v3181_v39  ;;  %v3183_v3 = vrot.slane %v3181_v39, 4  ;;  %v8678_v18 = vrot.slane %v2841_v7, 5  ;;  %v2229_v46 = vshrl.u32 %v8664_v24, 16  ;;  %v8709_v39 = vld [vmem:[#allocation2 + $0x58] sm:$0xf] }
 0x165   : > { %v1624_v8 = vrot.slane %v1623_v28, 4  ;;  %v2232_v10 = vshll.u32 %v8664_v24, 16  ;;  %v1634_v53 = vrot.slane %v1633_v19, 4  ;;  %v7162_v47 = vrot.slane %v1884_v59, 9 }
 0x166   : > { %v3185_v30 = vsel %vm8266_vm13, %v3183_v3, %v3184_v35  ;;  %v1977_v0 = vrot.slane %v1454_v41, 5  ;;  %v1980_v15 = vrot.slane %v1481_v9, 5  ;;  %v2187_v7 = vor.u32 %v8508_v40, %v8506_v11 }
 0x167   : > { %v1629_v44 = vsel %vm8325_vm0, %v1624_v8, %v1628_v51  ;;  %v7336_v50 = vcombine.low %v3182_v13, %v3185_v30  ;;  %v1639_v6 = vsel %vm8325_vm0, %v1634_v53, %v1638_v37  ;;  %v2190_v55 = vshll.u32 %v8473_v52, 16  ;;  %v1453_v51 = vld [vmem:[#allocation2 + $0x30] sm:$0xf] }
 0x168   : > { %v1978_v56 = vsel %vm8266_vm13, %v7162_v47, %v1977_v0  ;;  %v1979_v27 = vrot.slane %v1977_v0, 4  ;;  %v7227_v1 = vcombine.low %v1629_v44, %v1639_v6  ;;  %v2188_v60 = vrot.slane %v2187_v7, 4 }
 0x169   : > { %3985 = vrot.lane.b32.xlu0 %v7336_v50, %s7979_s16  ;;  %v2196_v5 = vrot.slane %v2194_v4, 4  ;;  %v2200_v11 = vshll.u32 %v8563_v2, 16  ;;  %v8701_v40 = vrot.slane %v2229_v46, 4  ;;  %v2242_v14 = vshrl.u32 %v8686_v54, 16 }
 0x16a   : > { %v1981_v57 = vsel %vm8266_vm13, %v1979_v27, %v1980_v15  ;;  %v2192_v16 = vrot.slane %v2190_v55, 5  ;;  %3399 = vrot.lane.b32.xlu1 %v7227_v1, %s7977_s14  ;;  %v7259_v32 = vcombine.low %v8664_v24, %v8686_v54  ;;  %v2253_v52 = vshrl.u32 %v8695_v61, 16  ;;  %v757_v15 = vld [vmem:[#allocation2 + $0x84] sm:$0x1]  ;;  %v1887_v27 = vld [vmem:[#allocation2 + $0x54] sm:$0xe]  ;;  %v7677_v1 = vpop.f32.mrf.mxu0 }
 0x16b   : > { %v7242_v43 = vcombine.low %v1978_v56, %v1981_v57  ;;  %v2256_v4 = vshll.u32 %v8695_v61, 16  ;;  %v2202_v35 = vrot.slane %v2200_v11, 5  ;;  %v7260_v59 = vcombine.low %v8695_v61, %v8709_v39  ;;  %v2497_v24 = vld [vmem:[#allocation2 + $0x48] sm:$0xe] }
 0x16c   : > { %v2193_v2 = vsel %vm8325_vm0, %v2188_v60, %v2192_v16  ;;  %v2197_v28 = vor.u32 %v2196_v5, %v2192_v16  ;;  %v1593_v19 = vshrl.u32 %v1453_v51, 16  ;;  %v1596_v37 = vshll.u32 %v1453_v51, 16  ;;  %v8727_v60 = vld [vmem:[#allocation2 + $0x5c] sm:$0x1]  ;;  %v8735_v51 = vld [vmem:[#allocation2 + $0x48] sm:$0xf] }
 0x16d   : > { %3477 = vrot.lane.b32.xlu0 %v7242_v43, %s7975_s12  ;;  %v1602_v13 = vshll.u32 %v1454_v41, 16  ;;  %v1606_v3 = vshrl.u32 %v1454_v41, 16  ;;  %v1612_v46 = vshll.u32 %v1481_v9, 16  ;;  %v2211_v53 = vor.u32 %v8555_v38, %v8553_v29  ;;  %v8738_v43 = vld [vmem:[#allocation2 + $0x58] sm:$0xf] }
 0x16e   : > { %v2198_v8 = vrot.slane %v2197_v28, 4  ;;  %v2214_v30 = vshll.u32 %v8514_v48, 16  ;;  %3575 = vrot.lane.b32.xlu1 %v7259_v32, %s7973_s8  ;;  %v1595_v47 = vrot.slane %v1593_v19, 4  ;;  %v1598_v0 = vrot.slane %v1596_v37, 5 }
 0x16f   : > { %v1604_v44 = vrot.slane %v1602_v13, 5  ;;  %v1608_v50 = vrot.slane %v1606_v3, 4  ;;  %v1614_v6 = vrot.slane %v1612_v46, 5  ;;  %v2212_v56 = vrot.slane %v2211_v53, 4 }
 0x170   : > { %v2203_v7 = vsel %vm8325_vm0, %v2198_v8, %v2202_v35  ;;  %v2216_v41 = vrot.slane %v2214_v30, 5  ;;  %v1599_v29 = vor.u32 %v1598_v0, %v1595_v47  ;;  %v2220_v55 = vrot.slane %v2218_v49, 4  ;;  %v622_v8 = vpop.f32.mrf.mxu0  ;;  %v754_v0 = vld [vmem:[#allocation2 + $0x78] sm:$0x1] }
 0x171   : > { %v7273_v9 = vcombine.low %v2193_v2, %v2203_v7  ;;  %3577 = vrot.lane.b32.xlu0 %v7260_v59, %s7973_s8  ;;  %v1609_v38 = vor.u32 %v1608_v50, %v1604_v44  ;;  %v2224_v11 = vshll.u32 %v8634_v34, 16  ;;  %v631_v57 = vadd.f32 %v8573_v23, %v7677_v1 }
 0x172   : > { %v2217_v5 = vsel %vm8325_vm0, %v2212_v56, %v2216_v41  ;;  %v758_v16 = vsel %vm8127_vm4, 0, %v757_v15  ;;  %v1600_v32 = vrot.slane %v1599_v29, 4  ;;  %v2221_v49 = vor.u32 %v2220_v55, %v2216_v41  ;;  %v8761_v29 = vld [vmem:[#allocation2 + $0x50] sm:$0x1]  ;;  %v7678_v1 = vpop.f32.mrf.mxu0 }
 0x173   : > { %3651 = vrot.lane.b32.xlu1 %v7273_v9, %s7978_s15  ;;  %v1610_v48 = vrot.slane %v1609_v38, 4  ;;  %759 = vst [vmem:[#allocation2 + $0x84] sm:$0x1] %v758_v16  ;;  %v7165_v2 = vrot.slane %v1887_v27, 9  ;;  %v2226_v28 = vrot.slane %v2224_v11, 5  ;;  %v707_v35 = vmax.f32 %v631_v57, 0.0 }
 0x174   : > { %v1998_v34 = vrot.slane %v8738_v43, 5  ;;  %v2001_v59 = vrot.slane %v8727_v60, 5  ;;  %v1605_v19 = vsel %vm8325_vm0, %v1600_v32, %v1604_v44  ;;  %v2222_v13 = vrot.slane %v2221_v49, 4  ;;  %v8773_v11 = vld [vmem:[#allocation2 + $0x4c] sm:$0xf] }
 0x175   : > { %v1615_v37 = vsel %vm8325_vm0, %v1610_v48, %v1614_v6  ;;  %v2814_v3 = vshrl.u32 %v8735_v51, 16  ;;  %v7496_v53 = vpack.c.bf16 %v707_v35, %v707_v35  ;;  %v8751_v50 = vrot.slane %v2232_v10, 5  ;;  %v813_v6 = vld [vmem:[#allocation2 + $0x8c] sm:$0x1] }
 0x176   : > { %v7226_v46 = vcombine.low %v1605_v19, %v1615_v37  ;;  %v1999_v30 = vsel %vm8266_vm13, %v7165_v2, %v1998_v34  ;;  %v2000_v47 = vrot.slane %v1998_v34, 4  ;;  %v8753_v15 = vrot.slane %v2253_v52, 4 }
 0x177   : > { %v2266_v44 = vshrl.u32 %v8709_v39, 16  ;;  %v2227_v7 = vsel %vm8325_vm0, %v2222_v13, %v2226_v28  ;;  %v1132_v41 = vshrl.u32 %v7496_v53, 16  ;;  %v1135_v27 = vshll.u32 %v7496_v53, 16 }
 0x178   : > { %3397 = vrot.lane.b32.xlu1 %v7226_v46, %s7977_s14  ;;  %v7274_v56 = vcombine.low %v2217_v5, %v2227_v7  ;;  %v2002_v9 = vsel %vm8266_vm13, %v2000_v47, %v2001_v59  ;;  %v8765_v10 = vrot.slane %v2256_v4, 5  ;;  %v8767_v38 = vrot.slane %v2814_v3, 4  ;;  %v625_v47 = vpop.f32.mrf.mxu0 }
 0x179   : > { %v7245_v52 = vcombine.low %v1999_v30, %v2002_v9  ;;  %v623_v55 = vadd.f32 %v8573_v23, %v622_v8  ;;  %v8771_v5 = vrot.slane %v1132_v41, 7  ;;  %v755_v57 = vsel %vm8127_vm4, 0, %v754_v0  ;;  %v8799_v9 = vpop.permute.xlu0 %3565 }
 0x17a   : > { %3653 = vrot.lane.b32.xlu0 %v7274_v56, %s7978_s15  ;;  %v634_v16 = vadd.f32 %v8573_v23, %v7678_v1  ;;  %v814_v61 = vsel %vm8137_vm6, 0, %v813_v6  ;;  %v1384_v4 = vld [vmem:[#allocation2 + $0x84] sm:$0xf]  ;;  %756 = vst [vmem:[#allocation2 + $0x78] sm:$0x1] %v755_v57  ;;  %v7179_v48 = vrot.slane %v2497_v24, 9  ;;  %v7306_v35 = vcombine.low %v8735_v51, %v8773_v11 }
 0x17b   : > { %v705_v32 = vmax.f32 %v623_v55, 0.0  ;;  %815 = vst [vmem:[#allocation2 + $0x8c] sm:$0x1] %v814_v61  ;;  %v2593_v49 = vrot.slane %v8686_v54, 5  ;;  %v2596_v2 = vrot.slane %v8761_v29, 5  ;;  %v1137_v28 = vor.u32 %v1135_v27, %v8771_v5 }
 0x17c   : > { %3483 = vrot.lane.b32.xlu1 %v7245_v52, %s7975_s12  ;;  %v708_v34 = vmax.f32 %v634_v16, 0.0  ;;  %v2772_v59 = vor.u32 %v8661_v36, %v8603_v63  ;;  %v2775_v3 = vshll.u32 %v8578_v31, 16  ;;  %v2781_v30 = vrot.slane %v2779_v12, 4  ;;  %v810_v55 = vld [vmem:[#allocation2 + $0x80] sm:$0x1] }
 0x17d   : > { %v7494_v19 = vpack.c.bf16 %v705_v32, %v705_v32  ;;  %v2594_v37 = vsel %vm8266_vm13, %v7179_v48, %v2593_v49  ;;  %v2595_v13 = vrot.slane %v2593_v49, 4  ;;  %v1385_v8 = vsel %vm8192_vm9, %v1137_v28, %v1384_v4  ;;  %v8805_v1 = vld [vmem:[#allocation2 + $0x6c] sm:$0xf]  ;;  %v8813_v28 = vld [vmem:[#allocation2 + $0x70] sm:$0xf] }
 0x17e   : > { %3829 = vrot.lane.b32.xlu0 %v7306_v35, %s7976_s13  ;;  %v7497_v46 = vpack.c.bf16 %v708_v34, %v708_v34  ;;  %v2773_v53 = vrot.slane %v2772_v59, 4  ;;  %1386 = vst [vmem:[#allocation2 + $0x84] sm:$0xf] %v1385_v8  ;;  %v2777_v7 = vrot.slane %v2775_v3, 5  ;;  %v2785_v27 = vshll.u32 %v8655_v17, 16 }
 0x17f   : > { %v1115_v63 = vshrl.u32 %v7494_v19, 16  ;;  %v1118_v36 = vshll.u32 %v7494_v19, 16  ;;  %v2597_v0 = vsel %vm8266_vm13, %v2595_v13, %v2596_v2  ;;  %v2817_v24 = vshll.u32 %v8735_v51, 16 }
 0x180   : > { %v1140_v6 = vshrl.u32 %v7497_v46, 16  ;;  %v1143_v56 = vshll.u32 %v7497_v46, 16  ;;  %v7291_v41 = vcombine.low %v2594_v37, %v2597_v0  ;;  %v2782_v31 = vor.u32 %v2781_v30, %v2777_v7  ;;  %v8819_v19 = vpop.permute.xlu1 %3471  ;;  %v2706_v46 = vld [vmem:[#allocation2 + $0x5c] sm:$0x1]  ;;  %v8834_v0 = vpop.permute.xlu0 %3725 }
 0x181   : > { %v8802_v52 = vrot.slane %v1115_v63, 7  ;;  %v626_v12 = vadd.f32 %v8573_v23, %v625_v47  ;;  %v1138_v57 = vrot.slane %v8771_v5, 4  ;;  %v2827_v16 = vshrl.u32 %v8773_v11, 16  ;;  %v1377_v61 = vld [vmem:[#allocation2 + $0x78] sm:$0xf] }
 0x182   : > { %v1142_v4 = vrot.slane %v1140_v6, 7  ;;  %3735 = vrot.lane.b32.xlu1 %v7291_v41, %s7974_s11  ;;  %v2787_v17 = vrot.slane %v2785_v27, 5  ;;  %v1388_v51 = vld [vmem:[#allocation2 + $0x8c] sm:$0x1]  ;;  %v2778_v48 = vsel %vm8325_vm0, %v2773_v53, %v2777_v7  ;;  %v2783_v49 = vrot.slane %v2782_v31, 4 }
 0x183   : > { %v1120_v32 = vor.u32 %v1118_v36, %v8802_v52  ;;  %v706_v2 = vmax.f32 %v626_v12, 0.0  ;;  %v811_v5 = vsel %vm8137_vm6, 0, %v810_v55  ;;  %v7309_v59 = vcombine.low %v8805_v1, %v8813_v28  ;;  %v3106_v53 = vld [vmem:[#allocation2 + $0x54] sm:$0xe] }
 0x184   : > { %v1145_v35 = vor.u32 %v1143_v56, %v1142_v4  ;;  %v1147_v34 = vrot.slane %v1142_v4, 4  ;;  %v8821_v37 = vrot.slane %v2817_v24, 5  ;;  %v2788_v3 = vsel %vm8325_vm0, %v2783_v49, %v2787_v17  ;;  %812 = vst [vmem:[#allocation2 + $0x80] sm:$0x1] %v811_v5  ;;  %v2498_v27 = vld [vmem:[#allocation2 + $0x54] sm:$0xe] }
 0x185   : > { %v1378_v13 = vsel %vm8192_vm9, %v1120_v32, %v1377_v61  ;;  %v7495_v8 = vpack.c.bf16 %v706_v2, %v706_v2  ;;  %v7320_v63 = vcombine.low %v2778_v48, %v2788_v3  ;;  %v2844_v36 = vor.u32 %v8678_v18, %v8668_v22  ;;  %v8845_v61 = vld [vmem:[#allocation2 + $0x5c] sm:$0x1]  ;;  %v8850_v48 = vpop.permute.xlu1 %3469  ;;  %v1459_v5 = vld [vmem:[#allocation2 + $0x54] sm:$0xf] }
 0x186   : > { %1379 = vst [vmem:[#allocation2 + $0x78] sm:$0xf] %v1378_v13  ;;  %v1146_v30 = vsel %vm8202_vm10, %v1138_v57, %v1145_v35  ;;  %v1389_v47 = vsel %vm8127_vm4, %v1147_v34, %v1388_v51  ;;  %3835 = vrot.lane.b32.xlu1 %v7309_v59, %s7976_s13  ;;  %v1121_v7 = vrot.slane %v8802_v52, 4  ;;  %v2886_v41 = vshrl.u32 %v8805_v1, 16 }
 0x187   : > { %1387 = vst.msk [vmem:[#allocation2 + $0x88] sm:$0xf] %vm1304_vm7, %v1146_v30  ;;  %1390 = vst [vmem:[#allocation2 + $0x8c] sm:$0x1] %v1389_v47  ;;  %v1123_v6 = vshrl.u32 %v7495_v8, 16  ;;  %v1126_v56 = vshll.u32 %v7495_v8, 16  ;;  %3905 = vrot.lane.b32.xlu0 %v7320_v63, %s7980_s18  ;;  %v8855_v8 = vpop.permute.xlu0 %3569 }
 0x188   : > { %v2889_v24 = vshll.u32 %v8805_v1, 16  ;;  %v7195_v31 = vrot.slane %v3106_v53, 9  ;;  %v3202_v12 = vrot.slane %v8610_v62, 5  ;;  %v3205_v22 = vrot.slane %v2706_v46, 5  ;;  %v3105_v63 = vld [vmem:[#allocation2 + $0x48] sm:$0xe] }
 0x189   : > { %v1125_v18 = vrot.slane %v1123_v6, 7  ;;  %v2847_v55 = vshll.u32 %v8610_v62, 16  ;;  %v2853_v52 = vrot.slane %v2851_v26, 4  ;;  %v2857_v57 = vshll.u32 %v2706_v46, 16 }
 0x18a   : > { %v3203_v4 = vsel %vm8266_vm13, %v7195_v31, %v3202_v12  ;;  %v3204_v17 = vrot.slane %v3202_v12, 4  ;;  %v7180_v32 = vrot.slane %v2498_v27, 9  ;;  %v2600_v51 = vrot.slane %v8709_v39, 5 }
 0x18b   : > { %v1128_v49 = vor.u32 %v1126_v56, %v1125_v18  ;;  %v1130_v2 = vrot.slane %v1125_v18, 4  ;;  %v2845_v35 = vrot.slane %v2844_v36, 4  ;;  %v2849_v34 = vrot.slane %v2847_v55, 5  ;;  %v1381_v59 = vld [vmem:[#allocation2 + $0x80] sm:$0x1] }
 0x18c   : > { %v3206_v62 = vsel %vm8266_vm13, %v3204_v17, %v3205_v22  ;;  %v2859_v26 = vrot.slane %v2857_v57, 5  ;;  %v2602_v13 = vrot.slane %v2600_v51, 4  ;;  %v2603_v3 = vrot.slane %v8845_v61, 5  ;;  %v8872_v18 = vld [vmem:[#allocation2 + $0x50] sm:$0x1]  ;;  %v8874_v17 = vpop.permute.xlu1 %3823 }
 0x18d   : > { %v1129_v46 = vsel %vm8202_vm10, %v1121_v7, %v1128_v49  ;;  %v1382_v53 = vsel %vm8127_vm4, %v1130_v2, %v1381_v59  ;;  %v7339_v30 = vcombine.low %v3203_v4, %v3206_v62  ;;  %v2601_v47 = vsel %vm8266_vm13, %v7180_v32, %v2600_v51  ;;  %v1886_v59 = vld [vmem:[#allocation2 + $0x48] sm:$0xe]  ;;  %v8880_v62 = vpop.permute.xlu0 %3391 }
 0x18e   : > { %1380 = vst.msk [vmem:[#allocation2 + $0x7c] sm:$0xf] %vm1304_vm7, %v1129_v46  ;;  %1383 = vst [vmem:[#allocation2 + $0x80] sm:$0x1] %v1382_v53  ;;  %v2854_v36 = vor.u32 %v2853_v52, %v2849_v34  ;;  %v2604_v6 = vsel %vm8266_vm13, %v2602_v13, %v2603_v3  ;;  %v1665_v56 = vshrl.u32 %v1459_v5, 16  ;;  %v1668_v27 = vshll.u32 %v1459_v5, 16 }
 0x18f   : > { %3991 = vrot.lane.b32.xlu0 %v7339_v30, %s7979_s16  ;;  %v2850_v7 = vsel %vm8325_vm0, %v2845_v35, %v2849_v34  ;;  %v1674_v31 = vshll.u32 %v8738_v43, 16  ;;  %v1678_v12 = vshrl.u32 %v8738_v43, 16  ;;  %v1684_v22 = vshll.u32 %v8727_v60, 16  ;;  %v2074_v5 = vld [vmem:[#allocation2 + $0x60] sm:$0xf] }
 0x190   : > { %v2855_v55 = vrot.slane %v2854_v36, 4  ;;  %v1667_v52 = vrot.slane %v1665_v56, 4  ;;  %v1670_v57 = vrot.slane %v1668_v27, 5  ;;  %v7194_v4 = vrot.slane %v3105_v63, 9  ;;  %v1483_v36 = vld [vmem:[#allocation2 + $0x50] sm:$0x1] }
 0x191   : > { %v7292_v32 = vcombine.low %v2601_v47, %v2604_v6  ;;  %v1676_v51 = vrot.slane %v1674_v31, 5  ;;  %v1680_v49 = vrot.slane %v1678_v12, 4  ;;  %v3195_v2 = vrot.slane %v8773_v11, 5 }
 0x192   : > { %v2860_v35 = vsel %vm8325_vm0, %v2855_v55, %v2859_v26  ;;  %v1671_v34 = vor.u32 %v1670_v57, %v1667_v52  ;;  %v1686_v43 = vrot.slane %v1684_v22, 5  ;;  %v3198_v60 = vrot.slane %v8872_v18, 5  ;;  %v8899_v22 = vpop.permute.xlu1 %3567  ;;  %v8903_v52 = vld [vmem:[#allocation2 + $0x64] sm:$0xf] }
 0x193   : > { %v7323_v13 = vcombine.low %v2850_v7, %v2860_v35  ;;  %3737 = vrot.lane.b32.xlu0 %v7292_v32, %s7974_s11  ;;  %v1681_v3 = vor.u32 %v1680_v49, %v1676_v51  ;;  %v3196_v46 = vsel %vm8266_vm13, %v7194_v4, %v3195_v2  ;;  %v3197_v53 = vrot.slane %v3195_v2, 4  ;;  %v1458_v7 = vld [vmem:[#allocation2 + $0x4c] sm:$0xf] }
 0x194   : > { %v8887_v30 = vrot.slane %v2886_v41, 4  ;;  %v8891_v26 = vrot.slane %v2889_v24, 5  ;;  %v1672_v63 = vrot.slane %v1671_v34, 4  ;;  %v2277_v27 = vshrl.u32 %v2074_v5, 16  ;;  %v8913_v34 = vld [vmem:[#allocation2 + $0x6c] sm:$0xf] }
 0x195   : > { %3911 = vrot.lane.b32.xlu1 %v7323_v13, %s7980_s18  ;;  %v1682_v6 = vrot.slane %v1681_v3, 4  ;;  %v3199_v56 = vsel %vm8266_vm13, %v3197_v53, %v3198_v60  ;;  %v7164_v31 = vrot.slane %v1886_v59, 9  ;;  %v2280_v1 = vshll.u32 %v2074_v5, 16  ;;  %v1457_v13 = vld [vmem:[#allocation2 + $0x48] sm:$0xf] }
 0x196   : > { %v1677_v41 = vsel %vm8325_vm0, %v1672_v63, %v1676_v51  ;;  %v7338_v12 = vcombine.low %v3196_v46, %v3199_v56  ;;  %v1991_v24 = vrot.slane %v1458_v7, 5  ;;  %v1994_v57 = vrot.slane %v1483_v36, 5  ;;  %v8927_v56 = vld [vmem:[#allocation2 + $0x70] sm:$0xf] }
 0x197   : > { %v1687_v55 = vsel %vm8325_vm0, %v1682_v6, %v1686_v43  ;;  %v2235_v4 = vor.u32 %v8751_v50, %v8701_v40  ;;  %v2238_v32 = vshll.u32 %v8686_v54, 16  ;;  %v2244_v35 = vrot.slane %v2242_v14, 4  ;;  %v8915_v43 = vpop.permute.xlu0 %3645 }
 0x198   : > { %v7229_v49 = vcombine.low %v1677_v41, %v1687_v55  ;;  %3989 = vrot.lane.b32.xlu0 %v7338_v12, %s7979_s16  ;;  %v1992_v51 = vsel %vm8266_vm13, %v7164_v31, %v1991_v24  ;;  %v1993_v2 = vrot.slane %v1991_v24, 4  ;;  %v8917_v60 = vrot.slane %v2277_v27, 4 }
 0x199   : > { %v2236_v59 = vrot.slane %v2235_v4, 4  ;;  %v2240_v40 = vrot.slane %v2238_v32, 5  ;;  %v2248_v50 = vshll.u32 %v8761_v29, 16  ;;  %v8921_v3 = vrot.slane %v2280_v1, 5  ;;  %v8934_v1 = vpop.permute.xlu1 %3475 }
 0x19a   : > { %3403 = vrot.lane.b32.xlu1 %v7229_v49, %s7977_s14  ;;  %v7261_v54 = vcombine.low %v2074_v5, %v8903_v52  ;;  %v1995_v14 = vsel %vm8266_vm13, %v1993_v2, %v1994_v57  ;;  %v2301_v27 = vshrl.u32 %v8913_v34, 16  ;;  %v7262_v31 = vcombine.low %v8913_v34, %v8927_v56  ;;  %v763_v2 = vld [vmem:[#allocation2 + $0x9c] sm:$0x1] }
 0x19b   : > { %v7244_v53 = vcombine.low %v1992_v51, %v1995_v14  ;;  %v2245_v63 = vor.u32 %v2244_v35, %v2240_v40  ;;  %v2250_v6 = vrot.slane %v2248_v50, 5  ;;  %v2241_v29 = vsel %vm8325_vm0, %v2236_v59, %v2240_v40  ;;  %v8941_v35 = vpop.permute.xlu0 %3821 }
 0x19c   : > { %v1641_v41 = vshrl.u32 %v1457_v13, 16  ;;  %v1644_v12 = vshll.u32 %v1457_v13, 16  ;;  %v1650_v24 = vshll.u32 %v1458_v7, 16  ;;  %v1654_v55 = vshrl.u32 %v1458_v7, 16  ;;  %11122 = vst [vmem:[#allocation7_spill] sm:$0xff] %v8941_v35 }
 0x19d   : > { %3481 = vrot.lane.b32.xlu0 %v7244_v53, %s7975_s12  ;;  %v2246_v5 = vrot.slane %v2245_v63, 4  ;;  %v1660_v57 = vshll.u32 %v1483_v36, 16  ;;  %v2259_v49 = vor.u32 %v8765_v10, %v8753_v15  ;;  %v2262_v51 = vshll.u32 %v8709_v39, 16  ;;  %v1889_v7 = vld [vmem:[#allocation2 + $0x6c] sm:$0xe]  ;;  %v7681_v63 = vpop.f32.mrf.mxu0 }
 0x19e   : > { %3579 = vrot.lane.b32.xlu1 %v7261_v54, %s7973_s8  ;;  %v1643_v4 = vrot.slane %v1641_v41, 4  ;;  %v1646_v32 = vrot.slane %v1644_v12, 5  ;;  %v1652_v40 = vrot.slane %v1650_v24, 5  ;;  %v1656_v50 = vrot.slane %v1654_v55, 4 }
 0x19f   : > { %v2251_v59 = vsel %vm8325_vm0, %v2246_v5, %v2250_v6  ;;  %v1662_v13 = vrot.slane %v1660_v57, 5  ;;  %v2260_v54 = vrot.slane %v2259_v49, 4  ;;  %v2264_v53 = vrot.slane %v2262_v51, 5  ;;  %v8950_v6 = vld [vmem:[#allocation2 + $0x74] sm:$0x1] }
 0x1a0   : > { %v7275_v36 = vcombine.low %v2241_v29, %v2251_v59  ;;  %v1647_v14 = vor.u32 %v1646_v32, %v1643_v4  ;;  %v1657_v15 = vor.u32 %v1656_v50, %v1652_v40  ;;  %v2268_v10 = vrot.slane %v2266_v44, 4 }
 0x1a1   : > { %3581 = vrot.lane.b32.xlu0 %v7262_v31, %s7973_s8  ;;  %v2272_v41 = vshll.u32 %v8845_v61, 16  ;;  %v647_v12 = vadd.f32 %v8573_v23, %v7681_v63  ;;  %v2304_v29 = vshll.u32 %v8913_v34, 16  ;;  %v764_v24 = vsel %vm8127_vm4, 0, %v763_v2  ;;  %v8956_v31 = vpop.permute.xlu1 %3727  ;;  %v8958_v61 = vld [vmem:[#allocation2 + $0x70] sm:$0xf]  ;;  %v8965_v2 = vpop.permute.xlu0 %3389 }
 0x1a2   : > { %3655 = vrot.lane.b32.xlu1 %v7275_v36, %s7978_s15  ;;  %v1648_v5 = vrot.slane %v1647_v14, 4  ;;  %v7167_v55 = vrot.slane %v1889_v7, 9  ;;  %v1658_v57 = vrot.slane %v1657_v15, 4  ;;  %v2269_v39 = vor.u32 %v2268_v10, %v2264_v53  ;;  %765 = vst [vmem:[#allocation2 + $0x9c] sm:$0x1] %v764_v24  ;;  %v638_v63 = vpop.f32.mrf.mxu0 }
 0x1a3   : > { %v2274_v44 = vrot.slane %v2272_v41, 5  ;;  %v711_v4 = vmax.f32 %v647_v12, 0.0  ;;  %v2012_v34 = vrot.slane %v8958_v61, 5  ;;  %v2015_v51 = vrot.slane %v8950_v6, 5  ;;  %v8971_v14 = vld [vmem:[#allocation2 + $0x60] sm:$0xf] }
 0x1a4   : > { %v1653_v49 = vsel %vm8325_vm0, %v1648_v5, %v1652_v40  ;;  %v1663_v59 = vsel %vm8325_vm0, %v1658_v57, %v1662_v13  ;;  %v2265_v50 = vsel %vm8325_vm0, %v2260_v54, %v2264_v53  ;;  %v2270_v7 = vrot.slane %v2269_v39, 4  ;;  %v760_v12 = vld [vmem:[#allocation2 + $0x90] sm:$0x1]  ;;  %v819_v5 = vld [vmem:[#allocation2 + $0xa4] sm:$0x1] }
 0x1a5   : > { %v7500_v36 = vpack.c.bf16 %v711_v4, %v711_v4  ;;  %v8973_v15 = vrot.slane %v2301_v27, 4  ;;  %v7228_v40 = vcombine.low %v1653_v49, %v1663_v59  ;;  %v2013_v10 = vsel %vm8266_vm13, %v7167_v55, %v2012_v34  ;;  %v2499_v57 = vld [vmem:[#allocation2 + $0x60] sm:$0xe]  ;;  %v8986_v49 = vld [vmem:[#allocation2 + $0x68] sm:$0x1] }
 0x1a6   : > { %v2014_v41 = vrot.slane %v2012_v34, 4  ;;  %v8977_v24 = vrot.slane %v2304_v29, 5  ;;  %v2275_v13 = vsel %vm8325_vm0, %v2270_v7, %v2274_v44  ;;  %v2862_v4 = vshrl.u32 %v8971_v14, 16  ;;  %v8988_v29 = vpop.permute.xlu1 %3827  ;;  %v8992_v59 = vld [vmem:[#allocation2 + $0x64] sm:$0xf] }
 0x1a7   : > { %v1166_v54 = vshrl.u32 %v7500_v36, 16  ;;  %v1169_v53 = vshll.u32 %v7500_v36, 16  ;;  %3401 = vrot.lane.b32.xlu1 %v7228_v40, %s7977_s14  ;;  %v7276_v39 = vcombine.low %v2265_v50, %v2275_v13  ;;  %v2865_v55 = vshll.u32 %v8971_v14, 16  ;;  %11123 = vst [vmem:[#allocation8_spill] sm:$0xff] %v8988_v29  ;;  %v7682_v36 = vpop.f32.mrf.mxu0  ;;  %v9001_v40 = vld [vmem:[%s11095_s2] ss:$0 sm:$0xff] }
 0x1a8   : > { %v2016_v27 = vsel %vm8266_vm13, %v2014_v41, %v2015_v51  ;;  %v639_v7 = vadd.f32 %v8573_v23, %v638_v63  ;;  %v761_v50 = vsel %vm8127_vm4, 0, %v760_v12  ;;  %v650_v41 = vadd.f32 %v9001_v40, %v7682_v36  ;;  %v9007_v63 = vpop.permute.xlu0 %3983 }
 0x1a9   : > { %v8990_v34 = vrot.slane %v1166_v54, 7  ;;  %v7247_v44 = vcombine.low %v2013_v10, %v2016_v27  ;;  %3657 = vrot.lane.b32.xlu0 %v7276_v39, %s7978_s15  ;;  %v1398_v51 = vld [vmem:[#allocation2 + $0x9c] sm:$0xf]  ;;  %762 = vst [vmem:[#allocation2 + $0x90] sm:$0x1] %v761_v50  ;;  %v820_v10 = vsel %vm8137_vm6, 0, %v819_v5  ;;  %v7308_v54 = vcombine.low %v8971_v14, %v8992_v59 }
 0x1aa   : > { %v7181_v13 = vrot.slane %v2499_v57, 9  ;;  %v2607_v23 = vrot.slane %v8903_v52, 5  ;;  %11124 = vst [vmem:[#allocation9_spill] sm:$0xff] %v9007_v63  ;;  %v709_v39 = vmax.f32 %v639_v7, 0.0  ;;  %821 = vst [vmem:[#allocation2 + $0xa4] sm:$0x1] %v820_v10  ;;  %v2820_v36 = vor.u32 %v8821_v37, %v8767_v38  ;;  %v641_v10 = vpop.f32.mrf.mxu0 }
 0x1ab   : > { %v1171_v12 = vor.u32 %v1169_v53, %v8990_v34  ;;  %v2610_v27 = vrot.slane %v8986_v49, 5  ;;  %3487 = vrot.lane.b32.xlu1 %v7247_v44, %s7975_s12  ;;  %v712_v50 = vmax.f32 %v650_v41, 0.0  ;;  %v2823_v14 = vshll.u32 %v8773_v11, 16  ;;  %v816_v37 = vld [vmem:[#allocation2 + $0x98] sm:$0x1] }
 0x1ac   : > { %v2608_v5 = vsel %vm8266_vm13, %v7181_v13, %v2607_v23  ;;  %v2609_v57 = vrot.slane %v2607_v23, 4  ;;  %v7498_v58 = vpack.c.bf16 %v709_v39, %v709_v39  ;;  %v2829_v7 = vrot.slane %v2827_v16, 4  ;;  %v9027_v23 = vpop.permute.xlu1 %3903 }
 0x1ad   : > { %v1399_v53 = vsel %vm8192_vm9, %v1171_v12, %v1398_v51  ;;  %3833 = vrot.lane.b32.xlu0 %v7308_v54, %s7976_s13  ;;  %v7501_v44 = vpack.c.bf16 %v712_v50, %v712_v50  ;;  %v2821_v13 = vrot.slane %v2820_v36, 4  ;;  %v2833_v38 = vshll.u32 %v8872_v18, 16  ;;  %11125 = vst [vmem:[#allocation10_spill] sm:$0xff] %v9027_v23  ;;  %v9032_v50 = vpop.permute.xlu0 %3729  ;;  %v2078_v23 = vld [vmem:[#allocation2 + $0x78] sm:$0xf] }
 0x1ae   : > { %1400 = vst [vmem:[#allocation2 + $0x9c] sm:$0xf] %v1399_v53  ;;  %v2611_v41 = vsel %vm8266_vm13, %v2609_v57, %v2610_v27  ;;  %v1149_v51 = vshrl.u32 %v7498_v58, 16  ;;  %v1152_v12 = vshll.u32 %v7498_v58, 16  ;;  %v2825_v32 = vrot.slane %v2823_v14, 5 }
 0x1af   : > { %v7293_v39 = vcombine.low %v2608_v5, %v2611_v41  ;;  %v9029_v11 = vrot.slane %v2862_v4, 4  ;;  %v1174_v16 = vshrl.u32 %v7501_v44, 16  ;;  %v1177_v53 = vshll.u32 %v7501_v44, 16  ;;  %v9039_v58 = vld [vmem:[#allocation2 + $0x84] sm:$0xf] }
 0x1b0   : > { %v642_v54 = vadd.f32 %v9001_v40, %v641_v10  ;;  %v9034_v46 = vrot.slane %v1149_v51, 7  ;;  %v2830_v18 = vor.u32 %v2829_v7, %v2825_v32  ;;  %v2835_v27 = vrot.slane %v2833_v38, 5  ;;  %v1391_v36 = vld [vmem:[#allocation2 + $0x90] sm:$0xf] }
 0x1b1   : > { %3739 = vrot.lane.b32.xlu1 %v7293_v39, %s7974_s11  ;;  %v817_v57 = vsel %vm8137_vm6, 0, %v816_v37  ;;  %v1172_v4 = vrot.slane %v8990_v34, 4  ;;  %v9042_v5 = vrot.slane %v2865_v55, 5  ;;  %v1176_v14 = vrot.slane %v1174_v16, 7  ;;  %v1402_v51 = vld [vmem:[#allocation2 + $0xa4] sm:$0x1]  ;;  %v9064_v44 = vpop.permute.xlu0 %3981 }
 0x1b2   : > { %v710_v10 = vmax.f32 %v642_v54, 0.0  ;;  %818 = vst [vmem:[#allocation2 + $0x98] sm:$0x1] %v817_v57  ;;  %v1154_v41 = vor.u32 %v1152_v12, %v9034_v46  ;;  %v2826_v7 = vsel %vm8325_vm0, %v2821_v13, %v2825_v32  ;;  %v2831_v38 = vrot.slane %v2830_v18, 4  ;;  %v3108_v37 = vld [vmem:[#allocation2 + $0x6c] sm:$0xe]  ;;  %v9051_v54 = vpop.permute.xlu1 %3395 }
 0x1b3   : > { %v1179_v39 = vor.u32 %v1177_v53, %v1176_v14  ;;  %v1181_v47 = vrot.slane %v1176_v14, 4  ;;  %v9048_v34 = vld [vmem:[#allocation2 + $0x88] sm:$0xf]  ;;  %v2708_v16 = vld [vmem:[#allocation2 + $0x74] sm:$0x1]  ;;  %11126 = vst [vmem:[#allocation11_spill] sm:$0xff] %v9064_v44 }
 0x1b4   : > { %v7499_v29 = vpack.c.bf16 %v710_v10, %v710_v10  ;;  %v1392_v57 = vsel %vm8192_vm9, %v1154_v41, %v1391_v36  ;;  %v2836_v12 = vsel %vm8325_vm0, %v2831_v38, %v2835_v27  ;;  %v7311_v13 = vcombine.low %v9039_v58, %v9048_v34  ;;  %v9078_v55 = vld [vmem:[#allocation2 + $0x74] sm:$0x1] }
 0x1b5   : > { %1393 = vst [vmem:[#allocation2 + $0x90] sm:$0xf] %v1392_v57  ;;  %v1180_v53 = vsel %vm8202_vm10, %v1172_v4, %v1179_v39  ;;  %v1403_v18 = vsel %vm8127_vm4, %v1181_v47, %v1402_v51  ;;  %v7322_v14 = vcombine.low %v2826_v7, %v2836_v12  ;;  %v7197_v36 = vrot.slane %v3108_v37, 9  ;;  %v7865_v47 = vld [vmem:[#allocation2 + $0x10] sm:$0xf] }
 0x1b6   : > { %v1157_v10 = vshrl.u32 %v7499_v29, 16  ;;  %1401 = vst.msk [vmem:[#allocation2 + $0xa0] sm:$0xf] %vm1304_vm7, %v1180_v53  ;;  %1404 = vst [vmem:[#allocation2 + $0xa4] sm:$0x1] %v1403_v18  ;;  %v1160_v27 = vshll.u32 %v7499_v29, 16  ;;  %3839 = vrot.lane.b32.xlu1 %v7311_v13, %s7976_s13  ;;  %v2892_v39 = vor.u32 %v8891_v26, %v8887_v30 }
 0x1b7   : > { %v3216_v41 = vrot.slane %v8813_v28, 5  ;;  %v3219_v38 = vrot.slane %v2708_v16, 5  ;;  %v1155_v57 = vrot.slane %v9034_v46, 4  ;;  %3909 = vrot.lane.b32.xlu0 %v7322_v14, %s7980_s18  ;;  %v7866_v51 = vld [vmem:[#allocation2 + $0xc] sm:$0xf]  ;;  %v2895_v13 = vshll.u32 %v8813_v28, 16 }
 0x1b8   : > { %v1159_v4 = vrot.slane %v1157_v10, 7  ;;  %v7207_v7 = vcombine.low %v7866_v51, %v7865_v47  ;;  %v2500_v12 = vld [vmem:[#allocation2 + $0x6c] sm:$0xe]  ;;  %v11127_v18 = vshrl.u32 %v8813_v28, 16  ;;  %v2893_v10 = vrot.slane %v2892_v39, 4  ;;  %v9080_v47 = vpop.permute.xlu1 %3571 }
 0x1b9   : > { %v1395_v53 = vld [vmem:[#allocation2 + $0x98] sm:$0x1]  ;;  %v3217_v29 = vsel %vm8266_vm13, %v7197_v36, %v3216_v41  ;;  %v3218_v37 = vrot.slane %v3216_v41, 4  ;;  %v2897_v26 = vrot.slane %v2895_v13, 5  ;;  %v2905_v51 = vshll.u32 %v2708_v16, 16 }
 0x1ba   : > { %v2901_v46 = vrot.slane %v11127_v18, 4  ;;  %v1162_v32 = vor.u32 %v1160_v27, %v1159_v4  ;;  %v1164_v14 = vrot.slane %v1159_v4, 4  ;;  %v7182_v36 = vrot.slane %v2500_v12, 9  ;;  %v1463_v39 = vld [vmem:[#allocation2 + $0x6c] sm:$0xf]  ;;  %v9089_v18 = vpop.permute.xlu0 %3473 }
 0x1bb   : > { %v3220_v30 = vsel %vm8266_vm13, %v3218_v37, %v3219_v38  ;;  %v2614_v4 = vrot.slane %v8927_v56, 5  ;;  %v2907_v16 = vrot.slane %v2905_v51, 5  ;;  %v2617_v12 = vrot.slane %v9078_v55, 5 }
 0x1bc   : > { %v1163_v41 = vsel %vm8202_vm10, %v1155_v57, %v1162_v32  ;;  %v1396_v28 = vsel %vm8127_vm4, %v1164_v14, %v1395_v53  ;;  %v7341_v27 = vcombine.low %v3217_v29, %v3220_v30  ;;  %v2902_v37 = vor.u32 %v2901_v46, %v2897_v26  ;;  %v9101_v46 = vld [vmem:[#allocation2 + $0x68] sm:$0x1] }
 0x1bd   : > { %1394 = vst.msk [vmem:[#allocation2 + $0x94] sm:$0xf] %vm1304_vm7, %v1163_v41  ;;  %1397 = vst [vmem:[#allocation2 + $0x98] sm:$0x1] %v1396_v28  ;;  %v4019_v32 = vsel %vm4013_vm1, %v7207_v7, %v8880_v62  ;;  %v2898_v57 = vsel %vm8325_vm0, %v2893_v10, %v2897_v26  ;;  %v2615_v53 = vsel %vm8266_vm13, %v7182_v36, %v2614_v4  ;;  %v2616_v29 = vrot.slane %v2614_v4, 4  ;;  %v9107_v10 = vpop.permute.xlu1 %3647 }
 0x1be   : > { %3995 = vrot.lane.b32.xlu0 %v7341_v27, %s7979_s16  ;;  %v2903_v13 = vrot.slane %v2902_v37, 4  ;;  %v1713_v14 = vshrl.u32 %v1463_v39, 16  ;;  %v1716_v30 = vshll.u32 %v1463_v39, 16  ;;  %v1722_v41 = vshll.u32 %v8958_v61, 16  ;;  %v3107_v7 = vld [vmem:[#allocation2 + $0x60] sm:$0xe] }
 0x1bf   : > { %v2618_v51 = vsel %vm8266_vm13, %v2616_v29, %v2617_v12  ;;  %v1726_v62 = vshrl.u32 %v8958_v61, 16  ;;  %v1732_v38 = vshll.u32 %v8950_v6, 16  ;;  %v9112_v12 = vpop.permute.xlu0 %3573  ;;  %v7196_v61 = vrot.slane %v3107_v7, 9 }
 0x1c0   : > { %v2908_v26 = vsel %vm8325_vm0, %v2903_v13, %v2907_v16  ;;  %v7294_v36 = vcombine.low %v2615_v53, %v2618_v51  ;;  %v1715_v28 = vrot.slane %v1713_v14, 4  ;;  %v1718_v27 = vrot.slane %v1716_v30, 5  ;;  %11128 = vst [vmem:[#allocation12_spill] sm:$0xff] %v9112_v12  ;;  %v1888_v30 = vld [vmem:[#allocation2 + $0x60] sm:$0xe] }
 0x1c1   : > { %v7325_v4 = vcombine.low %v2898_v57, %v2908_v26  ;;  %v1724_v39 = vrot.slane %v1722_v41, 5  ;;  %v1728_v37 = vrot.slane %v1726_v62, 4  ;;  %v3209_v63 = vrot.slane %v8992_v59, 5  ;;  %v1485_v26 = vld [vmem:[#allocation2 + $0x68] sm:$0x1] }
 0x1c2   : > { %3741 = vrot.lane.b32.xlu0 %v7294_v36, %s7974_s11  ;;  %v1719_v29 = vor.u32 %v1718_v27, %v1715_v28  ;;  %v3212_v44 = vrot.slane %v9101_v46, 5  ;;  %v11129_v16 = vshrl.u32 %v9039_v58, 16  ;;  %v11130_v57 = vshll.u32 %v9039_v58, 16 }
 0x1c3   : > { %3915 = vrot.lane.b32.xlu1 %v7325_v4, %s7980_s18  ;;  %v1729_v6 = vor.u32 %v1728_v37, %v1724_v39  ;;  %v1734_v14 = vrot.slane %v1732_v38, 5  ;;  %v4066_v51 = vsel %vm4062_vm3, %v4019_v32, %v8819_v19  ;;  %v3210_v62 = vsel %vm8266_vm13, %v7196_v61, %v3209_v63  ;;  %v1462_v4 = vld [vmem:[#allocation2 + $0x64] sm:$0xf]  ;;  %v9134_v37 = vpop.permute.xlu1 %3393  ;;  %v9144_v12 = vpop.permute.xlu0 %3649 }
 0x1c4   : > { %v9119_v53 = vrot.slane %v11129_v16, 4  ;;  %v9123_v13 = vrot.slane %v11130_v57, 5  ;;  %v1720_v41 = vrot.slane %v1719_v29, 4  ;;  %v3211_v7 = vrot.slane %v3209_v63, 4  ;;  %v7867_v57 = vld [vmem:[#allocation2 + $0x4] sm:$0xf] }
 0x1c5   : > { %v9132_v36 = vsel %vm4095_vm5, %v4066_v51, %v8899_v22  ;;  %v1730_v58 = vrot.slane %v1729_v6, 4  ;;  %v2325_v28 = vshrl.u32 %v2078_v23, 16  ;;  %v2328_v27 = vshll.u32 %v2078_v23, 16  ;;  %v9142_v22 = vld [vmem:[#allocation2 + $0x7c] sm:$0xf] }
 0x1c6   : > { %v1725_v38 = vsel %vm8325_vm0, %v1720_v41, %v1724_v39  ;;  %v3213_v19 = vsel %vm8266_vm13, %v3211_v7, %v3212_v44  ;;  %v7166_v32 = vrot.slane %v1888_v30, 9  ;;  %v2005_v29 = vrot.slane %v1462_v4, 5  ;;  %v7868_v6 = vld [vmem:[#allocation2] sm:$0xf] }
 0x1c7   : > { %v1735_v63 = vsel %vm8325_vm0, %v1730_v58, %v1734_v14  ;;  %v7340_v61 = vcombine.low %v3210_v62, %v3213_v19  ;;  %v2008_v16 = vrot.slane %v1485_v26, 5  ;;  %v7206_v51 = vcombine.low %v7868_v6, %v7867_v57  ;;  %v9176_v6 = vld [vmem:[#allocation2 + $0x88] sm:$0xf]  ;;  %v769_v19 = vld [vmem:[#allocation2 + $0xb4] sm:$0x1] }
 0x1c8   : > { %v7231_v35 = vcombine.low %v1725_v38, %v1735_v63  ;;  %v2006_v39 = vsel %vm8266_vm13, %v7166_v32, %v2005_v29  ;;  %v2007_v41 = vrot.slane %v2005_v29, 4  ;;  %v2283_v44 = vor.u32 %v8921_v3, %v8917_v60  ;;  %v9157_v38 = vld [vmem:[#allocation2 + $0x84] sm:$0xf]  ;;  %v1461_v32 = vld [vmem:[#allocation2 + $0x60] sm:$0xf] }
 0x1c9   : > { %3993 = vrot.lane.b32.xlu0 %v7340_v61, %s7979_s16  ;;  %v4016_v14 = vsel %vm4013_vm1, %v7206_v51, %v8965_v2  ;;  %v2286_v30 = vshll.u32 %v8903_v52, 16  ;;  %v11131_v62 = vshrl.u32 %v8903_v52, 16  ;;  %v2296_v58 = vshll.u32 %v8986_v49, 16  ;;  %v9169_v61 = vpop.permute.xlu1 %3479 }
 0x1ca   : > { %3407 = vrot.lane.b32.xlu1 %v7231_v35, %s7977_s14  ;;  %v2009_v60 = vsel %vm8266_vm13, %v2007_v41, %v2008_v16  ;;  %v4064_v3 = vsel %vm4062_vm3, %v4016_v14, %v8850_v48  ;;  %v2284_v2 = vrot.slane %v2283_v44, 4  ;;  %v9165_v29 = vrot.slane %v2325_v28, 4  ;;  %11132 = vst [vmem:[#allocation13_spill] sm:$0xff] %v9169_v61  ;;  %v9182_v41 = vpop.permute.xlu0 %3825 }
 0x1cb   : > { %v2292_v7 = vrot.slane %v11131_v62, 4  ;;  %v9167_v52 = vrot.slane %v2328_v27, 5  ;;  %v7246_v63 = vcombine.low %v2006_v39, %v2009_v60  ;;  %v2288_v49 = vrot.slane %v2286_v30, 5 }
 0x1cc   : > { %v7263_v35 = vcombine.low %v2078_v23, %v9142_v22  ;;  %v9174_v57 = vsel %vm4095_vm5, %v4064_v3, %v8799_v9  ;;  %v2298_v16 = vrot.slane %v2296_v58, 5  ;;  %v2349_v48 = vshrl.u32 %v9157_v38, 16 }
 0x1cd   : > { %3485 = vrot.lane.b32.xlu0 %v7246_v63, %s7975_s12  ;;  %v2293_v28 = vor.u32 %v2292_v7, %v2288_v49  ;;  %v7264_v27 = vcombine.low %v9157_v38, %v9176_v6  ;;  %v1689_v51 = vshrl.u32 %v1461_v32, 16  ;;  %v1692_v39 = vshll.u32 %v1461_v32, 16 }
 0x1ce   : > { %3583 = vrot.lane.b32.xlu1 %v7263_v35, %s7973_s8  ;;  %v2289_v9 = vsel %vm8325_vm0, %v2284_v2, %v2288_v49  ;;  %v1698_v23 = vshll.u32 %v1462_v4, 16  ;;  %v1702_v44 = vshrl.u32 %v1462_v4, 16  ;;  %v1708_v14 = vshll.u32 %v1485_v26, 16 }
 0x1cf   : > { %v2294_v30 = vrot.slane %v2293_v28, 4  ;;  %v1691_v62 = vrot.slane %v1689_v51, 4  ;;  %v1694_v58 = vrot.slane %v1692_v39, 5  ;;  %v2307_v7 = vor.u32 %v8977_v24, %v8973_v15  ;;  %v1891_v28 = vld [vmem:[#allocation2 + $0x84] sm:$0xe]  ;;  %v9195_v51 = vpop.permute.xlu1 %3731 }
 0x1d0   : > { %v1700_v60 = vrot.slane %v1698_v23, 5  ;;  %v1704_v3 = vrot.slane %v1702_v44, 4  ;;  %v1710_v63 = vrot.slane %v1708_v14, 5  ;;  %v2310_v32 = vshll.u32 %v8927_v56, 16  ;;  %11134 = vst [vmem:[#allocation14_spill] sm:$0xff] %v9195_v51  ;;  %v7685_v44 = vpop.f32.mrf.mxu0 }
 0x1d1   : > { %v2299_v35 = vsel %vm8325_vm0, %v2294_v30, %v2298_v16  ;;  %3585 = vrot.lane.b32.xlu0 %v7264_v27, %s7973_s8  ;;  %v1695_v2 = vor.u32 %v1694_v58, %v1691_v62  ;;  %v2308_v4 = vrot.slane %v2307_v7, 4  ;;  %v11133_v26 = vshrl.u32 %v8927_v56, 16  ;;  %v9198_v14 = vld [vmem:[#allocation2 + $0x8c] sm:$0x1]  ;;  %v9204_v62 = vld [vmem:[#allocation2 + $0x78] sm:$0xf]  ;;  %v9206_v58 = vpop.permute.xlu0 %3901 }
 0x1d2   : > { %v7277_v15 = vcombine.low %v2289_v9, %v2299_v35  ;;  %v1705_v24 = vor.u32 %v1704_v3, %v1700_v60  ;;  %v2312_v39 = vrot.slane %v2310_v32, 5  ;;  %v2320_v23 = vshll.u32 %v9078_v55, 16  ;;  %v9209_v3 = vld [vmem:[#allocation2 + $0x88] sm:$0xf]  ;;  %v2501_v51 = vld [vmem:[#allocation2 + $0x78] sm:$0xe] }
 0x1d3   : > { %v2316_v49 = vrot.slane %v11133_v26, 4  ;;  %v2352_v16 = vshll.u32 %v9157_v38, 16  ;;  %v1696_v30 = vrot.slane %v1695_v2, 4  ;;  %v663_v27 = vadd.f32 %v9001_v40, %v7685_v44 }
 0x1d4   : > { %v770_v56 = vsel %vm8127_vm4, 0, %v769_v19  ;;  %3659 = vrot.lane.b32.xlu1 %v7277_v15, %s7978_s15  ;;  %v1706_v9 = vrot.slane %v1705_v24, 4  ;;  %v2322_v55 = vrot.slane %v2320_v23, 5  ;;  %v7169_v32 = vrot.slane %v1891_v28, 9  ;;  %v654_v23 = vpop.f32.mrf.mxu0 }
 0x1d5   : > { %v2317_v7 = vor.u32 %v2316_v49, %v2312_v39  ;;  %771 = vst [vmem:[#allocation2 + $0xb4] sm:$0x1] %v770_v56  ;;  %v1701_v38 = vsel %vm8325_vm0, %v1696_v30, %v1700_v60  ;;  %v715_v35 = vmax.f32 %v663_v27, 0.0  ;;  %v2026_v2 = vrot.slane %v9209_v3, 5  ;;  %v766_v30 = vld [vmem:[#allocation2 + $0xa8] sm:$0x1]  ;;  %v9222_v27 = vpop.permute.xlu1 %3831 }
 0x1d6   : > { %v2029_v19 = vrot.slane %v9198_v14, 5  ;;  %v1711_v26 = vsel %vm8325_vm0, %v1706_v9, %v1710_v63  ;;  %v2313_v15 = vsel %vm8325_vm0, %v2308_v4, %v2312_v39  ;;  %v2910_v24 = vshrl.u32 %v9204_v62, 16  ;;  %11135 = vst [vmem:[#allocation15_spill] sm:$0xff] %v9222_v27  ;;  %v825_v9 = vld [vmem:[#allocation2 + $0xbc] sm:$0x1]  ;;  %v9235_v27 = vpop.permute.xlu0 %3987 }
 0x1d7   : > { %v2318_v49 = vrot.slane %v2317_v7, 4  ;;  %v9220_v44 = vrot.slane %v2349_v48, 4  ;;  %v7230_v28 = vcombine.low %v1701_v38, %v1711_v26  ;;  %v7504_v56 = vpack.c.bf16 %v715_v35, %v715_v35  ;;  %v9233_v26 = vld [vmem:[#allocation2 + $0x80] sm:$0x1]  ;;  %11136 = vst [vmem:[#allocation16_spill] sm:$0xff] %v9235_v27 }
 0x1d8   : > { %v2028_v60 = vrot.slane %v2026_v2, 4  ;;  %v2027_v4 = vsel %vm8266_vm13, %v7169_v32, %v2026_v2  ;;  %v2913_v39 = vshll.u32 %v9204_v62, 16  ;;  %v655_v32 = vadd.f32 %v9001_v40, %v654_v23 }
 0x1d9   : > { %v2323_v63 = vsel %vm8325_vm0, %v2318_v49, %v2322_v55  ;;  %3405 = vrot.lane.b32.xlu1 %v7230_v28, %s7977_s14  ;;  %v1200_v7 = vshrl.u32 %v7504_v56, 16  ;;  %v1203_v38 = vshll.u32 %v7504_v56, 16  ;;  %v9237_v55 = vrot.slane %v2352_v16, 5  ;;  %v9247_v56 = vld [vmem:[#allocation2 + $0x7c] sm:$0xf] }
 0x1da   : > { %v7278_v48 = vcombine.low %v2313_v15, %v2323_v63  ;;  %v2030_v35 = vsel %vm8266_vm13, %v2028_v60, %v2029_v19  ;;  %v9239_v49 = vrot.slane %v2910_v24, 4  ;;  %v767_v2 = vsel %vm8127_vm4, 0, %v766_v30  ;;  %v7686_v15 = vpop.f32.mrf.mxu0 }
 0x1db   : > { %v9245_v28 = vrot.slane %v1200_v7, 7  ;;  %v7249_v19 = vcombine.low %v2027_v4, %v2030_v35  ;;  %768 = vst [vmem:[#allocation2 + $0xa8] sm:$0x1] %v767_v2  ;;  %v666_v60 = vadd.f32 %v9001_v40, %v7686_v15  ;;  %v826_v16 = vsel %vm8137_vm6, 0, %v825_v9  ;;  %v9260_v2 = vpop.permute.xlu1 %3907 }
 0x1dc   : > { %3661 = vrot.lane.b32.xlu0 %v7278_v48, %s7978_s15  ;;  %v1412_v24 = vld [vmem:[#allocation2 + $0xb4] sm:$0xf]  ;;  %v713_v63 = vmax.f32 %v655_v32, 0.0  ;;  %827 = vst [vmem:[#allocation2 + $0xbc] sm:$0x1] %v826_v16  ;;  %v7183_v23 = vrot.slane %v2501_v51, 9  ;;  %v7310_v7 = vcombine.low %v9204_v62, %v9247_v56  ;;  %v2868_v15 = vor.u32 %v9042_v5, %v9029_v11  ;;  %v657_v16 = vpop.f32.mrf.mxu0 }
 0x1dd   : > { %v2621_v30 = vrot.slane %v9142_v22, 5  ;;  %v2624_v27 = vrot.slane %v9233_v26, 5  ;;  %v1205_v48 = vor.u32 %v1203_v38, %v9245_v28  ;;  %3491 = vrot.lane.b32.xlu1 %v7249_v19, %s7975_s12  ;;  %v9256_v4 = vrot.slane %v2913_v39, 5  ;;  %11137 = vst [vmem:[#allocation17_spill] sm:$0xff] %v9260_v2  ;;  %v9272_v2 = vpop.permute.xlu0 %3733 }
 0x1de   : > { %v716_v35 = vmax.f32 %v666_v60, 0.0  ;;  %v7502_v9 = vpack.c.bf16 %v713_v63, %v713_v63  ;;  %v2871_v19 = vshll.u32 %v8992_v59, 16  ;;  %v11138_v62 = vshrl.u32 %v8992_v59, 16  ;;  %v822_v63 = vld [vmem:[#allocation2 + $0xb0] sm:$0x1]  ;;  %11139 = vst [vmem:[#allocation18_spill] sm:$0xff] %v9272_v2 }
 0x1df   : > { %v2622_v51 = vsel %vm8266_vm13, %v7183_v23, %v2621_v30  ;;  %v2623_v32 = vrot.slane %v2621_v30, 4  ;;  %v1413_v38 = vsel %vm8192_vm9, %v1205_v48, %v1412_v24  ;;  %v2869_v5 = vrot.slane %v2868_v15, 4  ;;  %v7844_v24 = vld [vmem:[%s11096_s3 + $0x20] ss:$0 sps:$4 sm:$0xff]  }
 0x1e0   : > { %3837 = vrot.lane.b32.xlu0 %v7310_v7, %s7976_s13  ;;  %v7505_v39 = vpack.c.bf16 %v716_v35, %v716_v35  ;;  %v2877_v60 = vrot.slane %v11138_v62, 4  ;;  %1414 = vst [vmem:[#allocation2 + $0xb4] sm:$0xf] %v1413_v38  ;;  %v1183_v23 = vshrl.u32 %v7502_v9, 16  ;;  %v1186_v30 = vshll.u32 %v7502_v9, 16  ;;  %7734 = vmatprep.subr.msk.bf16.mxu1 %vm4369_vm8, %v7844_v24 }
 0x1e1   : > { %v2625_v11 = vsel %vm8266_vm13, %v2623_v32, %v2624_v27  ;;  %v2873_v59 = vrot.slane %v2871_v19, 5  ;;  %v2881_v61 = vshll.u32 %v9101_v46, 16  ;;  %v658_v38 = vadd.f32 %v9001_v40, %v657_v16  ;;  %v7869_v46 = vld [vmem:[#allocation2 + $0x28] sm:$0xf]  ;;  %v7870_v19 = vld [vmem:[#allocation2 + $0x24] sm:$0xf]  ;;  %v9298_v25 = vpop.permute.xlu0 %3985 }
 0x1e2   : > { %v1208_v48 = vshrl.u32 %v7505_v39, 16  ;;  %v1211_v7 = vshll.u32 %v7505_v39, 16  ;;  %v7295_v35 = vcombine.low %v2622_v51, %v2625_v11  ;;  %v9279_v62 = vrot.slane %v1183_v23, 7  ;;  %v1405_v32 = vld [vmem:[#allocation2 + $0xa8] sm:$0xf]  ;;  %v7846_v51 = vld [vmem:[%s11096_s3 + $0x18] sm:$0xff]   ;;  %v9290_v39 = vpop.permute.xlu1 %3399 }
 0x1e3   : > { %v823_v9 = vsel %vm8137_vm6, 0, %v822_v63  ;;  %v1206_v27 = vrot.slane %v9245_v28, 4  ;;  %v2878_v2 = vor.u32 %v2877_v60, %v2873_v59  ;;  %v7209_v16 = vcombine.low %v7870_v19, %v7869_v46  ;;  %v1416_v63 = vld [vmem:[#allocation2 + $0xbc] sm:$0x1]  ;;  %v3110_v19 = vld [vmem:[#allocation2 + $0x84] sm:$0xe] }
 0x1e4   : > { %v1210_v15 = vrot.slane %v1208_v48, 7  ;;  %3743 = vrot.lane.b32.xlu1 %v7295_v35, %s7974_s11  ;;  %824 = vst [vmem:[#allocation2 + $0xb0] sm:$0x1] %v823_v9  ;;  %v1188_v40 = vor.u32 %v1186_v30, %v9279_v62  ;;  %v2883_v28 = vrot.slane %v2881_v61, 5  ;;  %v714_v23 = vmax.f32 %v658_v38, 0.0 }
 0x1e5   : > { %v9294_v11 = vld [vmem:[#allocation2 + $0x9c] sm:$0xf]  ;;  %v2874_v35 = vsel %vm8325_vm0, %v2869_v5, %v2873_v59  ;;  %v2879_v9 = vrot.slane %v2878_v2, 4  ;;  %v4025_v46 = vsel %vm4013_vm1, %v7209_v16, %v9051_v54  ;;  %v4371_v38 = vsel %vm4369_vm8, %v7844_v24, 0  ;;  %v7847_v16 = vld [vmem:[%s11096_s3 + $0x10] sm:$0xff]  }
 0x1e6   : > { %v1213_v60 = vor.u32 %v1211_v7, %v1210_v15  ;;  %v1215_v48 = vrot.slane %v1210_v15, 4  ;;  %v1406_v30 = vsel %vm8192_vm9, %v1188_v40, %v1405_v32  ;;  %v7503_v61 = vpack.c.bf16 %v714_v23, %v714_v23  ;;  %7692 = vmatpush3.bf16.msra.mxu1 %v4371_v38  ;;  %v9312_v32 = vld [vmem:[#allocation2 + $0x8c] sm:$0x1] }
 0x1e7   : > { %1407 = vst [vmem:[#allocation2 + $0xa8] sm:$0xf] %v1406_v30  ;;  %v2884_v2 = vsel %vm8325_vm0, %v2879_v9, %v2883_v28  ;;  %v2982_v59 = vshrl.u32 %v9294_v11, 16  ;;  %7693 = vmatprep.subr.bf16.mxu1 %v7846_v51  ;;  %v4070_v28 = vsel %vm4062_vm3, %v4025_v46, %v8934_v1  ;;  %v3230_v30 = vrot.slane %v9048_v34, 5 }
 0x1e8   : > { %v1214_v7 = vsel %vm8202_vm10, %v1206_v27, %v1213_v60  ;;  %v1417_v5 = vsel %vm8127_vm4, %v1215_v48, %v1416_v63  ;;  %v7324_v24 = vcombine.low %v2874_v35, %v2884_v2  ;;  %v1191_v15 = vshrl.u32 %v7503_v61, 16  ;;  %v9316_v27 = vld [vmem:[#allocation2 + $0xa0] sm:$0xf]  ;;  %v9326_v48 = vpop.permute.xlu1 %3575 }
 0x1e9   : > { %1415 = vst.msk [vmem:[#allocation2 + $0xb8] sm:$0xf] %vm1304_vm7, %v1214_v7  ;;  %1418 = vst [vmem:[#allocation2 + $0xbc] sm:$0x1] %v1417_v5  ;;  %v1194_v40 = vshll.u32 %v7503_v61, 16  ;;  %v1189_v63 = vrot.slane %v9279_v62, 4  ;;  %v7313_v23 = vcombine.low %v9294_v11, %v9316_v27  ;;  %v9331_v9 = vsel %vm4095_vm5, %v4070_v28, %v9080_v47  ;;  %v9342_v7 = vpop.permute.xlu0 %3477 }
 0x1ea   : > { %v7199_v60 = vrot.slane %v3110_v19, 9  ;;  %3913 = vrot.lane.b32.xlu0 %v7324_v24, %s7980_s18  ;;  %v1193_v35 = vrot.slane %v1191_v15, 7  ;;  %v3233_v62 = vrot.slane %v9312_v32, 5  ;;  %v9335_v38 = vrot.slane %v2982_v59, 4  ;;  %7694 = vmatpush3.bf16.msra.mxu1 %v7846_v51  ;;  %v2502_v59 = vld [vmem:[#allocation2 + $0x84] sm:$0xe] }
 0x1eb   : > { %v1409_v61 = vld [vmem:[#allocation2 + $0xb0] sm:$0x1]  ;;  %v2985_v1 = vshll.u32 %v9294_v11, 16  ;;  %3843 = vrot.lane.b32.xlu1 %v7313_v23, %s7976_s13  ;;  %v2940_v19 = vor.u32 %v9123_v13, %v9119_v53  ;;  %v3232_v24 = vrot.slane %v3230_v30, 4  ;;  %7695 = vmatprep.subr.bf16.mxu1 %v7847_v16  ;;  %v7848_v15 = vld [vmem:[%s11096_s3 + $0x8] sm:$0xff]   ;;  %v2943_v51 = vshll.u32 %v9048_v34, 16 }
 0x1ec   : > { %v1196_v47 = vor.u32 %v1194_v40, %v1193_v35  ;;  %v1198_v5 = vrot.slane %v1193_v35, 4  ;;  %v3231_v2 = vsel %vm8266_vm13, %v7199_v60, %v3230_v30  ;;  %v11140_v53 = vshrl.u32 %v9048_v34, 16  ;;  %v9352_v23 = vld [vmem:[#allocation2 + $0x8c] sm:$0x1]  ;;  %v1467_v30 = vld [vmem:[#allocation2 + $0x84] sm:$0xf] }
 0x1ed   : > { %v2941_v28 = vrot.slane %v2940_v19, 4  ;;  %v3234_v35 = vsel %vm8266_vm13, %v3232_v24, %v3233_v62  ;;  %v4132_v34 = vsel %vm4128_vm11, %v9132_v36, %v9107_v10  ;;  %v2953_v46 = vshll.u32 %v9312_v32, 16  ;;  %v7872_v24 = vld [vmem:[#allocation2 + $0x18] sm:$0xf] }
 0x1ee   : > { %v2949_v13 = vrot.slane %v11140_v53, 4  ;;  %v1197_v40 = vsel %vm8202_vm10, %v1189_v63, %v1196_v47  ;;  %v1410_v60 = vsel %vm8127_vm4, %v1198_v5, %v1409_v61  ;;  %v7343_v19 = vcombine.low %v3231_v2, %v3234_v35  ;;  %7696 = vmatpush3.bf16.msra.mxu1 %v7847_v16  ;;  %v9365_v63 = vpop.permute.xlu1 %3651  ;;  %v7871_v5 = vld [vmem:[#allocation2 + $0x1c] sm:$0xf]  ;;  %v7850_v2 = vld [vmem:[%s11096_s3] sm:$0xff]  }
 0x1ef   : > { %1408 = vst.msk [vmem:[#allocation2 + $0xac] sm:$0xf] %vm1304_vm7, %v1197_v40  ;;  %1411 = vst [vmem:[#allocation2 + $0xb0] sm:$0x1] %v1410_v60  ;;  %v2945_v53 = vrot.slane %v2943_v51, 5  ;;  %v7184_v61 = vrot.slane %v2502_v59, 9  ;;  %v7208_v40 = vcombine.low %v7872_v24, %v7871_v5  ;;  %7697 = vmatprep.subr.bf16.mxu1 %v7848_v15  ;;  %v9375_v59 = vpop.permute.xlu0 %3577 }
 0x1f0   : > { %v2628_v47 = vrot.slane %v9176_v6, 5  ;;  %v2631_v62 = vrot.slane %v9352_v23, 5  ;;  %3999 = vrot.lane.b32.xlu0 %v7343_v19, %s7979_s16  ;;  %v2955_v32 = vrot.slane %v2953_v46, 5  ;;  %v1761_v16 = vshrl.u32 %v1467_v30, 16  ;;  %11141 = vst [vmem:[#allocation19_spill] sm:$0xff] %v9375_v59 }
 0x1f1   : > { %v2946_v10 = vsel %vm8325_vm0, %v2941_v28, %v2945_v53  ;;  %v2950_v36 = vor.u32 %v2949_v13, %v2945_v53  ;;  %v4022_v35 = vsel %vm4013_vm1, %v7208_v40, %v9134_v37  ;;  %v1764_v5 = vshll.u32 %v1467_v30, 16  ;;  %v3109_v37 = vld [vmem:[#allocation2 + $0x78] sm:$0xe] }
 0x1f2   : > { %v2629_v51 = vsel %vm8266_vm13, %v7184_v61, %v2628_v47  ;;  %v2630_v60 = vrot.slane %v2628_v47, 4  ;;  %v4068_v19 = vsel %vm4062_vm3, %v4022_v35, %v9089_v18  ;;  %v1763_v54 = vrot.slane %v1761_v16, 4  ;;  %7698 = vmatpush3.bf16.msra.mxu1 %v7848_v15  ;;  %v9389_v47 = vld [vmem:[#allocation2 + $0x80] sm:$0x1] }
 0x1f3   : > { %v2951_v24 = vrot.slane %v2950_v36, 4  ;;  %v1770_v28 = vshll.u32 %v9209_v3, 16  ;;  %v4101_v13 = vsel %vm4095_vm5, %v4068_v19, %v8855_v8  ;;  %v1766_v53 = vrot.slane %v1764_v5, 5  ;;  %7699 = vmatprep.subr.bf16.mxu1 %v7850_v2  ;;  %v9395_v36 = vpop.permute.xlu1 %3397  ;;  %v9405_v5 = vpop.permute.xlu0 %3653  ;;  %v9410_v19 = vld [vmem:[#allocation2 + $0x94] sm:$0xf] }
 0x1f4   : > { %v2632_v46 = vsel %vm8266_vm13, %v2630_v60, %v2631_v62  ;;  %v1774_v61 = vshrl.u32 %v9209_v3, 16  ;;  %v4134_v15 = vsel %vm4128_vm11, %v4101_v13, %v9144_v12  ;;  %v1780_v60 = vshll.u32 %v9198_v14, 16  ;;  %v9398_v3 = vld [vmem:[#allocation2 + $0x90] sm:$0xf] }
 0x1f5   : > { %v2956_v18 = vsel %vm8325_vm0, %v2951_v24, %v2955_v32  ;;  %v7296_v30 = vcombine.low %v2629_v51, %v2632_v46  ;;  %v1772_v40 = vrot.slane %v1770_v28, 5  ;;  %v1767_v16 = vor.u32 %v1766_v53, %v1763_v54 }
 0x1f6   : > { %v7327_v62 = vcombine.low %v2946_v10, %v2956_v18  ;;  %v1776_v8 = vrot.slane %v1774_v61, 4  ;;  %v4165_v35 = vsel %vm4161_vm12, %v4132_v34, %v8956_v31  ;;  %v7198_v32 = vrot.slane %v3109_v37, 9  ;;  %7700 = vmatpush3.bf16.msra.mxu1 %v7850_v2 }
 0x1f7   : > { %3745 = vrot.lane.b32.xlu0 %v7296_v30, %s7974_s11  ;;  %v3223_v51 = vrot.slane %v9247_v56, 5  ;;  %v3226_v12 = vrot.slane %v9389_v47, 5  ;;  %v1768_v54 = vrot.slane %v1767_v16, 4  ;;  %v1782_v14 = vrot.slane %v1780_v60, 5  ;;  %v9433_v30 = vpop.permute.xlu1 %3483  ;;  %v9440_v16 = vld [vmem:[#allocation2 + $0x7c] sm:$0xf] }
 0x1f8   : > { %3919 = vrot.lane.b32.xlu1 %v7327_v62, %s7980_s18  ;;  %v1777_v10 = vor.u32 %v1776_v8, %v1772_v40  ;;  %v4167_v24 = vsel %vm4161_vm12, %v4134_v15, %v9032_v50  ;;  %v2373_v28 = vshrl.u32 %v9398_v3, 16  ;;  %v2376_v2 = vshll.u32 %v9398_v3, 16  ;;  %v1890_v50 = vld [vmem:[#allocation2 + $0x78] sm:$0xe] }
 0x1f9   : > { %v3224_v31 = vsel %vm8266_vm13, %v7198_v32, %v3223_v51  ;;  %v3225_v34 = vrot.slane %v3223_v51, 4  ;;  %v9418_v46 = vrot.slane %v2985_v1, 5  ;;  %v1773_v13 = vsel %vm8325_vm0, %v1768_v54, %v1772_v40  ;;  %v9431_v1 = vld [vmem:[#allocation2 + $0x80] sm:$0x1]  ;;  %v9445_v32 = vpop.permute.xlu0 %3829 }
 0x1fa   : > { %v1778_v53 = vrot.slane %v1777_v10, 4  ;;  %v4198_v61 = vsel %vm11104_vm14, %v4165_v35, %v8874_v17  ;;  %v9428_v18 = vsel %vm11104_vm14, %v4167_v24, %v9182_v41  ;;  %v2382_v11 = vshll.u32 %v9410_v19, 16 }
 0x1fb   : > { %v3227_v37 = vsel %vm8266_vm13, %v3225_v34, %v3226_v12  ;;  %v9437_v62 = vrot.slane %v2373_v28, 4  ;;  %v2386_v17 = vshrl.u32 %v9410_v19, 16  ;;  %v9442_v60 = vrot.slane %v2376_v2, 5 }
 0x1fc   : > { %v1783_v15 = vsel %vm8325_vm0, %v1778_v53, %v1782_v14  ;;  %v7342_v40 = vcombine.low %v3224_v31, %v3227_v37  ;;  %v7168_v41 = vrot.slane %v1890_v50, 9  ;;  %v2019_v35 = vrot.slane %v9440_v16, 5  ;;  %v2084_v14 = vld [vmem:[#allocation2 + $0x9c] sm:$0xf] }
 0x1fd   : > { %v7233_v8 = vcombine.low %v1773_v13, %v1783_v15  ;;  %v7265_v51 = vcombine.low %v9398_v3, %v9410_v19  ;;  %v2022_v12 = vrot.slane %v9431_v1, 5  ;;  %v4130_v54 = vsel %vm4128_vm11, %v9174_v57, %v8915_v43  ;;  %v11143_v13 = vld [vmem:[#allocation7_spill] sm:$0xff] }
 0x1fe   : > { %3997 = vrot.lane.b32.xlu0 %v7342_v40, %s7979_s16  ;;  %v2331_v10 = vor.u32 %v9167_v52, %v9165_v29  ;;  %v9457_v24 = vrot.slane %v2382_v11, 5  ;;  %v2020_v31 = vsel %vm8266_vm13, %v7168_v41, %v2019_v35  ;;  %v2021_v34 = vrot.slane %v2019_v35, 4  ;;  %v9468_v52 = vld [vmem:[#allocation2 + $0xa0] sm:$0xf] }
 0x1ff   : > { %3411 = vrot.lane.b32.xlu1 %v7233_v8, %s7977_s14  ;;  %v4163_v3 = vsel %vm4161_vm12, %v4130_v54, %v8834_v0  ;;  %v9463_v28 = vrot.slane %v2386_v17, 4  ;;  %v2334_v43 = vshll.u32 %v9142_v22, 16  ;;  %v11142_v57 = vshrl.u32 %v9142_v22, 16  ;;  %v9475_v0 = vpop.permute.xlu1 %3735 }
 0x200   : > { %v2023_v2 = vsel %vm8266_vm13, %v2021_v34, %v2022_v12  ;;  %v4196_v53 = vsel %vm11104_vm14, %v4163_v3, %v11143_v13  ;;  %v2344_v50 = vshll.u32 %v9233_v26, 16  ;;  %v2397_v37 = vshrl.u32 %v2084_v14, 16  ;;  %11144 = vst [vmem:[#allocation7_spill] sm:$0xff] %v9475_v0  ;;  %v9483_v12 = vpop.permute.xlu0 %3905  ;;  %v1465_v34 = vld [vmem:[#allocation2 + $0x78] sm:$0xf]  ;;  %v11147_v13 = vld [vmem:[#allocation9_spill] sm:$0xff] }
 0x201   : > { %v2340_v29 = vrot.slane %v11142_v57, 4  ;;  %v7248_v11 = vcombine.low %v2020_v31, %v2023_v2  ;;  %v2332_v15 = vrot.slane %v2331_v10, 4  ;;  %v2336_v40 = vrot.slane %v2334_v43, 5  ;;  %v11146_v2 = vld [vmem:[#allocation11_spill] sm:$0xff] }
 0x202   : > { %v2400_v17 = vshll.u32 %v2084_v14, 16  ;;  %v4229_v8 = vsel %vm4227_vm15, %v4196_v53, %v9206_v58  ;;  %v2346_v41 = vrot.slane %v2344_v50, 5  ;;  %v9486_v54 = vrot.slane %v2397_v37, 4  ;;  %v11145_v58 = vld [vmem:[#allocation10_spill] sm:$0xff] }
 0x203   : > { %3587 = vrot.lane.b32.xlu1 %v7265_v51, %s7973_s8  ;;  %3489 = vrot.lane.b32.xlu0 %v7248_v11, %s7975_s12  ;;  %v2341_v26 = vor.u32 %v2340_v29, %v2336_v40  ;;  %v7266_v51 = vcombine.low %v2084_v14, %v9468_v52  ;;  %vm4260_vm8 = vcmask 523264   ;;  %vm4336_vm14 = vcmask 588800  }
 0x204   : > { %v9488_v10 = vrot.slane %v2400_v17, 5  ;;  %v4231_v3 = vsel %vm4227_vm15, %v4198_v61, %v11145_v58  ;;  %v2337_v43 = vsel %vm8325_vm0, %v2332_v15, %v2336_v40  ;;  %v4262_v29 = vsel %vm4260_vm8, %v4229_v8, %v11146_v2  ;;  %v9503_v17 = vpop.permute.xlu1 %3835  ;;  %v9514_v2 = vld [vmem:[#allocation2 + $0xa4] sm:$0x1] }
 0x205   : > { %v2342_v57 = vrot.slane %v2341_v26, 4  ;;  %v4264_v53 = vsel %vm4260_vm8, %v4231_v3, %v11147_v13  ;;  %7701 = vmatprep.mubr.msk.bf16.mxu1 %vm4336_vm14, %v4262_v29  ;;  %v1737_v50 = vshrl.u32 %v1465_v34, 16  ;;  %v1740_v37 = vshll.u32 %v1465_v34, 16  ;;  %11148 = vst [vmem:[#allocation10_spill] sm:$0xff] %v9503_v17  ;;  %v1893_v26 = vld [vmem:[#allocation2 + $0x9c] sm:$0xe] }
 0x206   : > { %v1746_v14 = vshll.u32 %v9440_v16, 16  ;;  %v1750_v11 = vshrl.u32 %v9440_v16, 16  ;;  %v2403_v15 = vor.u32 %v9488_v10, %v9486_v54  ;;  %7702 = vmatmul.mubr.msk.bf16.vlgmr.msra.gmra.mxu1 %vm4336_vm14, %v4264_v53  ;;  %v1756_v40 = vshll.u32 %v9431_v1, 16  ;;  %v9519_v29 = vld [vmem:[#allocation2 + $0x90] sm:$0xf] }
 0x207   : > { %v2347_v61 = vsel %vm8325_vm0, %v2342_v57, %v2346_v41  ;;  %3589 = vrot.lane.b32.xlu0 %v7266_v51, %s7973_s8  ;;  %v2355_v8 = vor.u32 %v9237_v55, %v9220_v44  ;;  %v1739_v16 = vrot.slane %v1737_v50, 4  ;;  %v1742_v58 = vrot.slane %v1740_v37, 5  ;;  %v9516_v41 = vpop.permute.xlu0 %3991  ;;  %v9525_v13 = vld [vmem:[#allocation2 + $0xa0] sm:$0xf] }
 0x208   : > { %v7279_v34 = vcombine.low %v2337_v43, %v2347_v61  ;;  %v1748_v3 = vrot.slane %v1746_v14, 5  ;;  %11149 = vst [vmem:[#allocation11_spill] sm:$0xff] %v9516_v41  ;;  %v1752_v57 = vrot.slane %v1750_v11, 4  ;;  %v1758_v54 = vrot.slane %v1756_v40, 5  ;;  %v775_v41 = vld [vmem:[#allocation2 + $0xcc] sm:$0x1] }
 0x209   : > { %v2356_v10 = vrot.slane %v2355_v8, 4  ;;  %v2358_v51 = vshll.u32 %v9176_v6, 16  ;;  %v1743_v1 = vor.u32 %v1742_v58, %v1739_v16  ;;  %v11150_v44 = vshrl.u32 %v9176_v6, 16  ;;  %v9529_v8 = vld [vmem:[#allocation2 + $0x94] sm:$0xf]  ;;  %v9533_v16 = vpop.permute.xlu1 %3911 }
 0x20a   : > { %3663 = vrot.lane.b32.xlu1 %v7279_v34, %s7978_s15  ;;  %v2368_v43 = vshll.u32 %v9352_v23, 16  ;;  %v7171_v53 = vrot.slane %v1893_v26, 9  ;;  %v1753_v50 = vor.u32 %v1752_v57, %v1748_v3  ;;  %v2040_v14 = vrot.slane %v9525_v13, 5  ;;  %11151 = vst [vmem:[#allocation9_spill] sm:$0xff] %v9533_v16 }
 0x20b   : > { %v2364_v55 = vrot.slane %v11150_v44, 4  ;;  %v2360_v37 = vrot.slane %v2358_v51, 5  ;;  %v2043_v11 = vrot.slane %v9514_v2, 5  ;;  %v1744_v61 = vrot.slane %v1743_v1, 4  ;;  %v9541_v31 = vpop.permute.xlu0 %3737 }
 0x20c   : > { %v2370_v40 = vrot.slane %v2368_v43, 5  ;;  %v2958_v34 = vshrl.u32 %v9519_v29, 16  ;;  %v2961_v6 = vshll.u32 %v9519_v29, 16  ;;  %v1754_v23 = vrot.slane %v1753_v50, 4  ;;  %11152 = vst [vmem:[#allocation20_spill] sm:$0xff] %v9541_v31 }
 0x20d   : > { %v2361_v26 = vsel %vm8325_vm0, %v2356_v10, %v2360_v37  ;;  %v2365_v58 = vor.u32 %v2364_v55, %v2360_v37  ;;  %v2041_v57 = vsel %vm8266_vm13, %v7171_v53, %v2040_v14  ;;  %v1749_v51 = vsel %vm8325_vm0, %v1744_v61, %v1748_v3 }
 0x20e   : > { %v2042_v1 = vrot.slane %v2040_v14, 4  ;;  %v2960_v44 = vrot.slane %v2958_v34, 4  ;;  %v2963_v43 = vrot.slane %v2961_v6, 5  ;;  %v1759_v35 = vsel %vm8325_vm0, %v1754_v23, %v1758_v54  ;;  %v2103_v34 = vld [vmem:[#allocation2 + $0x98] sm:$0x1] }
 0x20f   : > { %v2366_v22 = vrot.slane %v2365_v58, 4  ;;  %v2967_v50 = vshll.u32 %v9529_v8, 16  ;;  %v2971_v10 = vshrl.u32 %v9529_v8, 16  ;;  %v11153_v55 = vor.u32 %v9442_v60, %v9437_v62  ;;  %v2503_v54 = vld [vmem:[#allocation2 + $0x90] sm:$0xe] }
 0x210   : > { %v11154_v3 = vshll.u32 %v9468_v52, 16  ;;  %v7232_v14 = vcombine.low %v1749_v51, %v1759_v35  ;;  %v2044_v61 = vsel %vm8266_vm13, %v2042_v1, %v2043_v11  ;;  %v9558_v6 = vrot.slane %v2403_v15, 4  ;;  %v7689_v51 = vpop.f32.mrf.mxu0  ;;  %v9570_v1 = vpop.permute.xlu1 %3403  ;;  %v9603_v11 = vld [vmem:[#allocation2 + $0xb8] sm:$0xf] }
 0x211   : > { %v9550_v53 = vrot.slane %v11153_v55, 4  ;;  %v11155_v23 = vshrl.u32 %v9468_v52, 16  ;;  %v2371_v62 = vsel %vm8325_vm0, %v2366_v22, %v2370_v40  ;;  %v2964_v60 = vor.u32 %v2963_v43, %v2960_v44  ;;  %v9583_v43 = vpop.permute.xlu0 %3989 }
 0x212   : > { %v9554_v37 = vrot.slane %v11154_v3, 5  ;;  %3409 = vrot.lane.b32.xlu1 %v7232_v14, %s7977_s14  ;;  %v7280_v55 = vcombine.low %v2361_v26, %v2371_v62  ;;  %v7251_v3 = vcombine.low %v2041_v57, %v2044_v61  ;;  %v9567_v35 = vrot.slane %v2967_v50, 5  ;;  %11157 = vst [vmem:[#allocation21_spill] sm:$0xff] %v9583_v43  ;;  %v7873_v50 = vld [vmem:[#allocation2 + $0x40] sm:$0xf] }
 0x213   : > { %v9562_v58 = vrot.slane %v11155_v23, 4  ;;  %v9572_v15 = vrot.slane %v2971_v10, 4  ;;  %v7185_v17 = vrot.slane %v2503_v54, 9  ;;  %v2635_v23 = vrot.slane %v9410_v19, 5  ;;  %v7874_v10 = vld [vmem:[#allocation2 + $0x3c] sm:$0xf] }
 0x214   : > { %v2638_v31 = vrot.slane %v2103_v34, 5  ;;  %3665 = vrot.lane.b32.xlu0 %v7280_v55, %s7978_s15  ;;  %v7312_v22 = vcombine.low %v9519_v29, %v9529_v8  ;;  %v2916_v40 = vor.u32 %v9256_v4, %v9239_v49  ;;  %v2919_v26 = vshll.u32 %v9247_v56, 16  ;;  %v772_v29 = vld [vmem:[#allocation2 + $0xc0] sm:$0x1] }
 0x215   : > { %v11156_v57 = vshrl.u32 %v9247_v56, 16  ;;  %v7211_v19 = vcombine.low %v7874_v10, %v7873_v50  ;;  %v2636_v14 = vsel %vm8266_vm13, %v7185_v17, %v2635_v23  ;;  %v2637_v61 = vrot.slane %v2635_v23, 4  ;;  %v9592_v56 = vld [vmem:[%s11095_s2] ss:$0 sm:$0xff]  ;;  %v2695_v17 = vld [vmem:[#allocation2 + $0xb4] sm:$0xf] }
 0x216   : > { %v2929_v54 = vshll.u32 %v9389_v47, 16  ;;  %3495 = vrot.lane.b32.xlu1 %v7251_v3, %s7975_s12  ;;  %v2917_v49 = vrot.slane %v2916_v40, 4  ;;  %v2921_v4 = vrot.slane %v2919_v26, 5  ;;  %v679_v62 = vadd.f32 %v9592_v56, %v7689_v51 }
 0x217   : > { %v2925_v44 = vrot.slane %v11156_v57, 4  ;;  %v776_v55 = vsel %vm8127_vm4, 0, %v775_v41  ;;  %v670_v57 = vpop.f32.mrf.mxu0  ;;  %v4031_v47 = vsel %vm4013_vm1, %v7211_v19, %v9290_v39  ;;  %v2392_v23 = vshll.u32 %v2103_v34, 16  ;;  %v9605_v41 = vpop.permute.xlu1 %3579 }
 0x218   : > { %v2639_v3 = vsel %vm8266_vm13, %v2637_v61, %v2638_v31  ;;  %777 = vst [vmem:[#allocation2 + $0xcc] sm:$0x1] %v776_v55  ;;  %v671_v40 = vadd.f32 %v9592_v56, %v670_v57  ;;  %3841 = vrot.lane.b32.xlu0 %v7312_v22, %s7976_s13  ;;  %v2931_v51 = vrot.slane %v2929_v54, 5  ;;  %v719_v10 = vmax.f32 %v679_v62, 0.0  ;;  %11158 = vst [vmem:[#allocation22_spill] sm:$0xff] %v9605_v41  ;;  %v9614_v61 = vpop.permute.xlu0 %3481 }
 0x219   : > { %v7297_v26 = vcombine.low %v2636_v14, %v2639_v3  ;;  %v2926_v50 = vor.u32 %v2925_v44, %v2921_v4  ;;  %v9607_v16 = vrot.slane %v2964_v60, 4  ;;  %v773_v34 = vsel %vm8127_vm4, 0, %v772_v29  ;;  %11159 = vst [vmem:[#allocation23_spill] sm:$0xff] %v9614_v61  ;;  %v11160_v60 = vld [vmem:[#allocation13_spill] sm:$0xff]  ;;  %v3112_v57 = vld [vmem:[#allocation2 + $0x9c] sm:$0xe] }
 0x21a   : > { %v717_v39 = vmax.f32 %v671_v40, 0.0  ;;  %v3030_v31 = vshrl.u32 %v2695_v17, 16  ;;  %v2922_v22 = vsel %vm8325_vm0, %v2917_v49, %v2921_v4  ;;  %v7508_v44 = vpack.c.bf16 %v719_v10, %v719_v10  ;;  %774 = vst [vmem:[#allocation2 + $0xc0] sm:$0x1] %v773_v34  ;;  %v828_v61 = vld [vmem:[#allocation2 + $0xc8] sm:$0x1] }
 0x21b   : > { %3747 = vrot.lane.b32.xlu1 %v7297_v26, %s7974_s11  ;;  %v2927_v19 = vrot.slane %v2926_v50, 4  ;;  %v3033_v14 = vshll.u32 %v2695_v17, 16  ;;  %v9616_v54 = vrot.slane %v2392_v23, 5  ;;  %v4074_v62 = vsel %vm4062_vm3, %v4031_v47, %v11160_v60  ;;  %v9625_v26 = vld [vmem:[#allocation2 + $0xa4] sm:$0x1]  ;;  %v7690_v50 = vpop.f32.mrf.mxu0 }
 0x21c   : > { %v7506_v55 = vpack.c.bf16 %v717_v39, %v717_v39  ;;  %v3039_v29 = vshll.u32 %v9603_v11, 16  ;;  %v1234_v40 = vshrl.u32 %v7508_v44, 16  ;;  %v1237_v49 = vshll.u32 %v7508_v44, 16  ;;  %v9637_v44 = vpop.permute.xlu1 %3655 }
 0x21d   : > { %v2932_v3 = vsel %vm8325_vm0, %v2927_v19, %v2931_v51  ;;  %v9623_v4 = vrot.slane %v3030_v31, 4  ;;  %v9627_v43 = vrot.slane %v3033_v14, 5  ;;  %v9633_v39 = vsel %vm4095_vm5, %v4074_v62, %v9326_v48  ;;  %v831_v31 = vld [vmem:[#allocation2 + $0xd4] sm:$0x1]  ;;  %v673_v59 = vpop.f32.mrf.mxu0 }
 0x21e   : > { %v7326_v10 = vcombine.low %v2922_v22, %v2932_v3  ;;  %v1217_v23 = vshrl.u32 %v7506_v55, 16  ;;  %v1220_v34 = vshll.u32 %v7506_v55, 16  ;;  %v9629_v47 = vrot.slane %v1234_v40, 7  ;;  %11161 = vst [vmem:[#allocation13_spill] sm:$0xff] %v9633_v39 }
 0x21f   : > { %v3043_v51 = vshrl.u32 %v9603_v11, 16  ;;  %v7315_v19 = vcombine.low %v2695_v17, %v9603_v11  ;;  %v1426_v22 = vld [vmem:[#allocation2 + $0xcc] sm:$0xf]  ;;  %v7201_v14 = vrot.slane %v3112_v57, 9  ;;  %v3244_v55 = vrot.slane %v9316_v27, 5 }
 0x220   : > { %3917 = vrot.lane.b32.xlu0 %v7326_v10, %s7980_s18  ;;  %v9640_v60 = vrot.slane %v1217_v23, 7  ;;  %v3247_v3 = vrot.slane %v9625_v26, 5  ;;  %v1239_v48 = vor.u32 %v1237_v49, %v9629_v47  ;;  %v9645_v62 = vrot.slane %v3039_v29, 5  ;;  %v9650_v10 = vpop.permute.xlu0 %3581  ;;  %v9674_v21 = vpop.permute.xlu1 %3401 }
 0x221   : > { %3847 = vrot.lane.b32.xlu1 %v7315_v19, %s7976_s13  ;;  %v682_v17 = vadd.f32 %v9592_v56, %v7690_v50  ;;  %11162 = vst [vmem:[#allocation24_spill] sm:$0xff] %v9650_v10  ;;  %v1419_v57 = vld [vmem:[#allocation2 + $0xc0] sm:$0xf]  ;;  %v3245_v49 = vsel %vm8266_vm13, %v7201_v14, %v3244_v55  ;;  %v3246_v29 = vrot.slane %v3244_v55, 4  ;;  %v9659_v19 = vrot.slane %v3043_v51, 4 }
 0x222   : > { %v1222_v23 = vor.u32 %v1220_v34, %v9640_v60  ;;  %v1427_v40 = vsel %vm8192_vm9, %v1239_v48, %v1426_v22  ;;  %v832_v10 = vsel %vm8137_vm6, 0, %v831_v31  ;;  %v1240_v34 = vrot.slane %v9629_v47, 4  ;;  %v2504_v48 = vld [vmem:[#allocation2 + $0x9c] sm:$0xe] }
 0x223   : > { %v720_v50 = vmax.f32 %v682_v17, 0.0  ;;  %1428 = vst [vmem:[#allocation2 + $0xcc] sm:$0xf] %v1427_v40  ;;  %v3248_v14 = vsel %vm8266_vm13, %v3246_v29, %v3247_v3  ;;  %833 = vst [vmem:[#allocation2 + $0xd4] sm:$0x1] %v832_v10  ;;  %v674_v55 = vadd.f32 %v9592_v56, %v673_v59  ;;  %v11164_v39 = vmov 0  }
 0x224   : > { %v1420_v41 = vsel %vm8192_vm9, %v1222_v23, %v1419_v57  ;;  %1442 = vst.msk [vmem:[#allocation2 + $0xcc] sm:$0xf] %vm1304_vm7, %v11164_v39  ;;  %v7345_v22 = vcombine.low %v3245_v49, %v3248_v14  ;;  %v829_v47 = vsel %vm8137_vm6, 0, %v828_v61  ;;  %v2988_v3 = vor.u32 %v9418_v46, %v9335_v38  ;;  %v9681_v10 = vld [vmem:[#allocation2 + $0xa4] sm:$0x1]  ;;  %v9690_v57 = vpop.permute.xlu0 %3657 }
 0x225   : > { %1421 = vst [vmem:[#allocation2 + $0xc0] sm:$0xf] %v1420_v41  ;;  %v7509_v31 = vpack.c.bf16 %v720_v50, %v720_v50  ;;  %v718_v40 = vmax.f32 %v674_v55, 0.0  ;;  %830 = vst [vmem:[#allocation2 + $0xc8] sm:$0x1] %v829_v47  ;;  %v2991_v59 = vshll.u32 %v9316_v27, 16  ;;  %v9687_v61 = vsel %vm4128_vm11, %v9331_v9, %v9365_v63 }
 0x226   : > { %v11165_v56 = vshrl.u32 %v9316_v27, 16  ;;  %4003 = vrot.lane.b32.xlu0 %v7345_v22, %s7979_s16  ;;  %v3001_v23 = vshll.u32 %v9625_v26, 16  ;;  %v2989_v46 = vrot.slane %v2988_v3, 4  ;;  %v7186_v27 = vrot.slane %v2504_v48, 9  ;;  %v1471_v47 = vld [vmem:[#allocation2 + $0x9c] sm:$0xf]  ;;  %v9698_v3 = vpop.permute.xlu1 %3487 }
 0x227   : > { %v1242_v41 = vshrl.u32 %v7509_v31, 16  ;;  %v1245_v0 = vshll.u32 %v7509_v31, 16  ;;  %v7507_v38 = vpack.c.bf16 %v718_v40, %v718_v40  ;;  %v2993_v49 = vrot.slane %v2991_v59, 5 }
 0x228   : > { %v2997_v17 = vrot.slane %v11165_v56, 4  ;;  %v3003_v50 = vrot.slane %v3001_v23, 5  ;;  %v2642_v55 = vrot.slane %v9468_v52, 5  ;;  %v2645_v52 = vrot.slane %v9681_v10, 5  ;;  %v7876_v23 = vld [vmem:[#allocation2 + $0x34] sm:$0xf] }
 0x229   : > { %v1244_v29 = vrot.slane %v1242_v41, 7  ;;  %v1225_v22 = vshrl.u32 %v7507_v38, 16  ;;  %v1228_v31 = vshll.u32 %v7507_v38, 16  ;;  %v2994_v9 = vsel %vm8325_vm0, %v2989_v46, %v2993_v49  ;;  %v7877_v38 = vld [vmem:[#allocation2 + $0x30] sm:$0xf] }
 0x22a   : > { %v2998_v63 = vor.u32 %v2997_v17, %v2993_v49  ;;  %v1430_v51 = vld [vmem:[#allocation2 + $0xd4] sm:$0x1]  ;;  %v2643_v40 = vsel %vm8266_vm13, %v7186_v27, %v2642_v55  ;;  %v2644_v48 = vrot.slane %v2642_v55, 4  ;;  %v7210_v14 = vcombine.low %v7877_v38, %v7876_v23  ;;  %v9705_v27 = vpop.permute.xlu0 %3833 }
 0x22b   : > { %v1247_v26 = vor.u32 %v1245_v0, %v1244_v29  ;;  %v1249_v56 = vrot.slane %v1244_v29, 4  ;;  %v1227_v59 = vrot.slane %v1225_v22, 7  ;;  %v1809_v49 = vshrl.u32 %v1471_v47, 16 }
 0x22c   : > { %v2999_v41 = vrot.slane %v2998_v63, 4  ;;  %v1423_v46 = vld [vmem:[#allocation2 + $0xc8] sm:$0x1]  ;;  %v1812_v29 = vshll.u32 %v1471_v47, 16  ;;  %v2646_v23 = vsel %vm8266_vm13, %v2644_v48, %v2645_v52  ;;  %v4028_v47 = vsel %vm4013_vm1, %v7210_v14, %v9395_v36 }
 0x22d   : > { %v1248_v17 = vsel %vm8202_vm10, %v1240_v34, %v1247_v26  ;;  %v1431_v0 = vsel %vm8127_vm4, %v1249_v56, %v1430_v51  ;;  %v1230_v55 = vor.u32 %v1228_v31, %v1227_v59  ;;  %v1232_v22 = vrot.slane %v1227_v59, 4  ;;  %v3111_v31 = vld [vmem:[#allocation2 + $0x90] sm:$0xe]  ;;  %v11167_v36 = vld [vmem:[#allocation12_spill] sm:$0xff] }
 0x22e   : > { %1429 = vst.msk [vmem:[#allocation2 + $0xd0] sm:$0xf] %vm1304_vm7, %v1248_v17  ;;  %1432 = vst [vmem:[#allocation2 + $0xd4] sm:$0x1] %v1431_v0  ;;  %v3004_v63 = vsel %vm8325_vm0, %v2999_v41, %v3003_v50  ;;  %v7298_v51 = vcombine.low %v2643_v40, %v2646_v23  ;;  %v1811_v26 = vrot.slane %v1809_v49, 4  ;;  %v11166_v56 = vrot.slane %v9640_v60, 4 }
 0x22f   : > { %1443 = vst.msk [vmem:[#allocation2 + $0xd0] sm:$0xf] %vm1304_vm7, %v11164_v39  ;;  %v7329_v34 = vcombine.low %v2994_v9, %v3004_v63  ;;  %v1424_v48 = vsel %vm8127_vm4, %v1232_v22, %v1423_v46  ;;  %v4072_v59 = vsel %vm4062_vm3, %v4028_v47, %v9342_v7  ;;  %v1814_v41 = vrot.slane %v1812_v29, 5  ;;  %v9736_v7 = vld [vmem:[#allocation2 + $0xa8] sm:$0xf]  ;;  %v9738_v9 = vpop.permute.xlu1 %3739  ;;  %v11169_v46 = vld [vmem:[#allocation14_spill] sm:$0xff] }
 0x230   : > { %1444 = vst.msk [vmem:[#allocation2 + $0xd4] sm:$0x1] %vm721_vm2, %v11164_v39  ;;  %v1231_v50 = vsel %vm8202_vm10, %v11166_v56, %v1230_v55  ;;  %v9726_v39 = vld [vmem:[#allocation2 + $0x98] sm:$0x1]  ;;  %1425 = vst [vmem:[#allocation2 + $0xc8] sm:$0x1] %v1424_v48  ;;  %3749 = vrot.lane.b32.xlu0 %v7298_v51, %s7974_s11  ;;  %v4105_v42 = vsel %vm4095_vm5, %v4072_v59, %v11167_v36  ;;  %v4169_v49 = vsel %vm4161_vm12, %v9687_v61, %v11169_v46  ;;  %v9748_v55 = vpop.permute.xlu0 %3909 }
 0x231   : > { %1422 = vst.msk [vmem:[#allocation2 + $0xc4] sm:$0xf] %vm1304_vm7, %v1231_v50  ;;  %3923 = vrot.lane.b32.xlu1 %v7329_v34, %s7980_s18  ;;  %v1818_v60 = vshll.u32 %v9525_v13, 16  ;;  %v1822_v20 = vshrl.u32 %v9525_v13, 16  ;;  %v1828_v14 = vshll.u32 %v9514_v2, 16  ;;  %v4138_v40 = vsel %vm4128_vm11, %v4105_v42, %v9405_v5  ;;  %v11171_v23 = vld [vmem:[#allocation18_spill] sm:$0xff] }
 0x232   : > { %v1815_v52 = vor.u32 %v1814_v41, %v1811_v26  ;;  %v7200_v38 = vrot.slane %v3111_v31, 9  ;;  %v11168_v17 = vrot.slane %v9529_v8, 5  ;;  %v3240_v2 = vrot.slane %v9726_v39, 5  ;;  %v1892_v47 = vld [vmem:[#allocation2 + $0x90] sm:$0xe]  ;;  %v11173_v41 = vld [vmem:[#allocation8_spill] sm:$0xff] }
 0x233   : > { %v1820_v29 = vrot.slane %v1818_v60, 5  ;;  %v1824_v13 = vrot.slane %v1822_v20, 4  ;;  %v4171_v34 = vsel %vm4161_vm12, %v4138_v40, %v11171_v23  ;;  %v2421_v51 = vshrl.u32 %v9736_v7, 16  ;;  %v9759_v56 = vld [vmem:[#allocation2 + $0xac] sm:$0xf] }
 0x234   : > { %v3239_v0 = vrot.slane %v11168_v17, 4  ;;  %v1816_v22 = vrot.slane %v1815_v52, 4  ;;  %v11170_v63 = vmov %v11168_v17  ;;  %v1830_v61 = vrot.slane %v1828_v14, 5  ;;  %v9762_v48 = vld [vmem:[#allocation2 + $0x98] sm:$0x1] }
 0x235   : > { %v3238_v5 = vsel %vm8266_vm13, %v7200_v38, %v11170_v63  ;;  %v1825_v26 = vor.u32 %v1824_v13, %v1820_v29  ;;  %v2424_v50 = vshll.u32 %v9736_v7, 16  ;;  %v11172_v8 = vor.u32 %v9627_v43, %v9623_v4  ;;  %v9781_v38 = vld [vmem:[#allocation2 + $0x94] sm:$0xf]  ;;  %v9783_v4 = vpop.permute.xlu1 %3839  ;;  %v9804_v63 = vpop.permute.xlu0 %3995 }
 0x236   : > { %v3241_v31 = vsel %vm8266_vm13, %v3239_v0, %v3240_v2  ;;  %vm11174_vm2 = vcmask 392192   ;;  %v11175_v42 = vshll.u32 %v9681_v10, 16  ;;  %v1821_v14 = vsel %vm8325_vm0, %v1816_v22, %v1820_v29  ;;  %v9802_v22 = vld [vmem:[#allocation2 + $0x90] sm:$0xf] }
 0x237   : > { %v9767_v59 = vrot.slane %v11172_v8, 4  ;;  %v4202_v36 = vsel %vm11174_vm2, %v4169_v49, %v11173_v41  ;;  %v7344_v20 = vcombine.low %v3238_v5, %v3241_v31  ;;  %v1826_v40 = vrot.slane %v1825_v26, 4  ;;  %vm11176_vm4 = vmmov %vm11174_vm2  ;;  %v9791_v49 = vld [vmem:[#allocation2 + $0xb4] sm:$0xf] }
 0x238   : > { %v9773_v60 = vrot.slane %v11175_v42, 5  ;;  %v9779_v52 = vsel %vm11176_vm4, %v4171_v34, %v9445_v32  ;;  %v7170_v43 = vrot.slane %v1892_v47, 9  ;;  %v9786_v17 = vrot.slane %v2421_v51, 4  ;;  %v9810_v47 = vld [vmem:[#allocation2 + $0xb8] sm:$0xf]  ;;  %v11177_v31 = vld [vmem:[#allocation17_spill] sm:$0xff]  ;;  %vm11188_vm6 = vmmov %vm11174_vm2 }
 0x239   : > { %4001 = vrot.lane.b32.xlu0 %v7344_v20, %s7979_s16  ;;  %v2434_v10 = vshrl.u32 %v9759_v56, 16  ;;  %v2033_v0 = vrot.slane %v9781_v38, 5  ;;  %v2036_v46 = vrot.slane %v9762_v48, 5  ;;  %v1831_v32 = vsel %vm8325_vm0, %v1826_v40, %v1830_v61  ;;  %v9831_v40 = vpop.permute.xlu1 %3915  ;;  %vm11196_vm9 = vmmov %vm11174_vm2 }
 0x23a   : > { %v9795_v29 = vrot.slane %v2424_v50, 5  ;;  %v4233_v13 = vsel %vm4227_vm15, %v9428_v18, %v9483_v12  ;;  %v2389_v2 = vor.u32 %v9463_v28, %v9457_v24  ;;  %v7235_v5 = vcombine.low %v1821_v14, %v1831_v32  ;;  %v1895_v14 = vld [vmem:[#allocation2 + $0xb4] sm:$0xe]  ;;  %vm11198_vm10 = vmmov %vm11174_vm2 }
 0x23b   : > { %v7267_v23 = vcombine.low %v9736_v7, %v9759_v56  ;;  %v2034_v34 = vsel %vm8266_vm13, %v7170_v43, %v2033_v0  ;;  %v2035_v51 = vrot.slane %v2033_v0, 4  ;;  %v2385_v18 = vsel %vm8325_vm0, %v9550_v53, %v9457_v24  ;;  %v11178_v53 = vld [vmem:[#allocation16_spill] sm:$0xff] }
 0x23c   : > { %v2390_v28 = vrot.slane %v2389_v2, 4  ;;  %v2445_v12 = vshrl.u32 %v9791_v49, 16  ;;  %v2448_v26 = vshll.u32 %v9791_v49, 16  ;;  %3415 = vrot.lane.b32.xlu1 %v7235_v5, %s7977_s14  ;;  %v4266_v61 = vsel %vm4260_vm8, %v4233_v13, %v9298_v25  ;;  %v9847_v5 = vld [vmem:[#allocation2 + $0xb8] sm:$0xf] }
 0x23d   : > { %v2037_v7 = vsel %vm8266_vm13, %v2035_v51, %v2036_v46  ;;  %v4235_v50 = vsel %vm4227_vm15, %v4202_v36, %v11177_v31  ;;  %v1785_v8 = vshrl.u32 %v9802_v22, 16  ;;  %v2458_v24 = vshrl.u32 %v9810_v47, 16  ;;  %7705 = vmatprep.mubr.msk.bf16.mxu1 %vm4336_vm14, %v4266_v61  ;;  %v9839_v46 = vld [vmem:[#allocation2 + $0xbc] sm:$0x1]  ;;  %11179 = vst [vmem:[#allocation6_spill] sm:$0xff] %v9847_v5 }
 0x23e   : > { %v7250_v41 = vcombine.low %v2034_v34, %v2037_v7  ;;  %v4268_v42 = vsel %vm4260_vm8, %v4235_v50, %v11178_v53  ;;  %v1788_v20 = vshll.u32 %v9802_v22, 16  ;;  %v2395_v25 = vsel %vm8325_vm0, %v2390_v28, %v9616_v54  ;;  %v9849_v34 = vpop.permute.xlu0 %3741  ;;  %v9853_v31 = vld [vmem:[#allocation2 + $0xa8] sm:$0xf] }
 0x23f   : > { %7706 = vmatmul.mubr.msk.bf16.gmra.mxu1 %vm4336_vm14, %v4268_v42  ;;  %v1787_v36 = vrot.slane %v1785_v8, 4  ;;  %v1794_v43 = vshll.u32 %v9781_v38, 16  ;;  %v1798_v0 = vshrl.u32 %v9781_v38, 16  ;;  %v7268_v32 = vcombine.low %v9791_v49, %v9810_v47  ;;  %v9860_v42 = vld [vmem:[#allocation2 + $0xac] sm:$0xf] }
 0x240   : > { %3493 = vrot.lane.b32.xlu0 %v7250_v41, %s7975_s12  ;;  %v1790_v13 = vrot.slane %v1788_v20, 5  ;;  %v1804_v2 = vshll.u32 %v9762_v48, 16  ;;  %v2413_v54 = vor.u32 %v9562_v58, %v9554_v37  ;;  %3591 = vrot.lane.b32.xlu1 %v7267_v23, %s7973_s8  ;;  %v7173_v7 = vrot.slane %v1895_v14, 9 }
 0x241   : > { %v1796_v51 = vrot.slane %v1794_v43, 5  ;;  %v1800_v28 = vrot.slane %v1798_v0, 4  ;;  %v2054_v61 = vrot.slane %v9847_v5, 5  ;;  %v7281_v49 = vcombine.low %v2385_v18, %v2395_v25  ;;  %v9869_v43 = vpop.permute.xlu1 %3407 }
 0x242   : > { %v1791_v50 = vor.u32 %v1790_v13, %v1787_v36  ;;  %v2414_v8 = vrot.slane %v2413_v54, 4  ;;  %v2057_v48 = vrot.slane %v9839_v46, 5  ;;  %v1806_v58 = vrot.slane %v1804_v2, 5  ;;  %v2505_v36 = vld [vmem:[#allocation2 + $0xa8] sm:$0xe] }
 0x243   : > { %v1801_v41 = vor.u32 %v1800_v28, %v1796_v51  ;;  %v2409_v53 = vsel %vm8325_vm0, %v9558_v6, %v9554_v37  ;;  %v2056_v23 = vrot.slane %v2054_v61, 4  ;;  %v9862_v20 = vrot.slane %v2445_v12, 4  ;;  %v9884_v28 = vpop.permute.xlu0 %3993 }
 0x244   : > { %3593 = vrot.lane.b32.xlu0 %v7268_v32, %s7973_s8  ;;  %v1792_v14 = vrot.slane %v1791_v50, 4  ;;  %v2419_v18 = vsel %vm8325_vm0, %v2414_v8, %v9773_v60  ;;  %v3006_v25 = vshrl.u32 %v9853_v31, 16  ;;  %3667 = vrot.lane.b32.xlu1 %v7281_v49, %s7978_s15  ;;  %v9872_v37 = vrot.slane %v2448_v26, 5  ;;  %v9877_v32 = vld [vmem:[#allocation2 + $0xb0] sm:$0x1] }
 0x245   : > { %v1802_v6 = vrot.slane %v1801_v41, 4  ;;  %v2055_v12 = vsel %vm8266_vm13, %v7173_v7, %v2054_v61  ;;  %v3009_v0 = vshll.u32 %v9853_v31, 16  ;;  %v7282_v13 = vcombine.low %v2409_v53, %v2419_v18  ;;  %v7878_v49 = vld [vmem:[#allocation2 + $0x58] sm:$0xf]  ;;  %v7879_v7 = vld [vmem:[#allocation2 + $0x54] sm:$0xf] }
 0x246   : > { %v1797_v60 = vsel %vm8325_vm0, %v1792_v14, %v1796_v51  ;;  %v2058_v2 = vsel %vm8266_vm13, %v2056_v23, %v2057_v48  ;;  %v7213_v61 = vcombine.low %v7879_v7, %v7878_v49  ;;  %v7187_v50 = vrot.slane %v2505_v36, 9  ;;  %v2714_v23 = vld [vmem:[#allocation2 + $0xbc] sm:$0x1]  ;;  %v9913_v49 = vld [vmem:[#allocation2 + $0xb4] sm:$0xf] }
 0x247   : > { %v1807_v26 = vsel %vm8325_vm0, %v1802_v6, %v1806_v58  ;;  %v2649_v8 = vrot.slane %v9759_v56, 5  ;;  %v9890_v51 = vrot.slane %v3006_v25, 4  ;;  %v2652_v48 = vrot.slane %v9877_v32, 5  ;;  %v3114_v6 = vld [vmem:[#allocation2 + $0xb4] sm:$0xe]  ;;  %11180 = vst [vmem:[#allocation12_spill] sm:$0xff] %v9913_v49 }
 0x248   : > { %v7234_v41 = vcombine.low %v1797_v60, %v1807_v26  ;;  %3669 = vrot.lane.b32.xlu0 %v7282_v13, %s7978_s15  ;;  %v2974_v53 = vor.u32 %v9572_v15, %v9567_v35  ;;  %v7253_v14 = vcombine.low %v2055_v12, %v2058_v2  ;;  %v4037_v58 = vsel %vm4013_vm1, %v7213_v61, %v9570_v1  ;;  %v9907_v13 = vpop.permute.xlu1 %3583 }
 0x249   : > { %v2651_v18 = vrot.slane %v2649_v8, 4  ;;  %v2977_v36 = vshll.u32 %v9726_v39, 16  ;;  %v7314_v25 = vcombine.low %v9853_v31, %v9860_v42  ;;  %v2970_v60 = vsel %vm8325_vm0, %v9607_v16, %v9567_v35 }
 0x24a   : > { %3413 = vrot.lane.b32.xlu1 %v7234_v41, %s7977_s14  ;;  %v2975_v15 = vrot.slane %v2974_v53, 4  ;;  %v3046_v12 = vor.u32 %v9659_v19, %v9645_v62  ;;  %v2650_v1 = vsel %vm8266_vm13, %v7187_v50, %v2649_v8  ;;  %v4078_v2 = vsel %vm4062_vm3, %v4037_v58, %v9433_v30  ;;  %v9920_v41 = vpop.permute.xlu0 %3485  ;;  %v11182_v53 = vld [vmem:[#allocation13_spill] sm:$0xff] }
 0x24b   : > { %v2979_v39 = vrot.slane %v2977_v36, 5  ;;  %v3049_v26 = vshll.u32 %v2714_v23, 16  ;;  %v2653_v16 = vsel %vm8266_vm13, %v2651_v18, %v2652_v48  ;;  %v7203_v7 = vrot.slane %v3114_v6, 9 }
 0x24c   : > { %3845 = vrot.lane.b32.xlu0 %v7314_v25, %s7976_s13  ;;  %v3047_v35 = vrot.slane %v3046_v12, 4  ;;  %v11181_v19 = vrot.slane %v9603_v11, 5  ;;  %v3261_v30 = vrot.slane %v2714_v23, 5  ;;  %v4140_v58 = vsel %vm4128_vm11, %v11182_v53, %v9637_v44  ;;  %v2506_v23 = vld [vmem:[#allocation2 + $0xb4] sm:$0xe]  ;;  %v11184_v12 = vld [vmem:[#allocation7_spill] sm:$0xff] }
 0x24d   : > { %v2980_v50 = vsel %vm8325_vm0, %v2975_v15, %v2979_v39  ;;  %v3051_v8 = vrot.slane %v3049_v26, 5  ;;  %v3042_v48 = vsel %vm8325_vm0, %v9767_v59, %v9645_v62  ;;  %v1857_v25 = vshrl.u32 %v9913_v49, 16  ;;  %v9942_v39 = vld [vmem:[#allocation2 + $0xbc] sm:$0x1] }
 0x24e   : > { %v3260_v61 = vrot.slane %v11181_v19, 4  ;;  %3499 = vrot.lane.b32.xlu1 %v7253_v14, %s7975_s12  ;;  %v7328_v36 = vcombine.low %v2970_v60, %v2980_v50  ;;  %v11183_v18 = vmov %v11181_v19  ;;  %v7299_v15 = vcombine.low %v2650_v1, %v2653_v16  ;;  %v9948_v1 = vpop.permute.xlu1 %3659  ;;  %v9952_v50 = vld [vmem:[#allocation2 + $0xc0] sm:$0xf] }
 0x24f   : > { %v3259_v6 = vsel %vm8266_vm13, %v7203_v7, %v11183_v18  ;;  %v4173_v14 = vsel %vm4161_vm12, %v4140_v58, %v11184_v12  ;;  %v1860_v60 = vshll.u32 %v9913_v49, 16  ;;  %v3052_v11 = vsel %vm8325_vm0, %v3047_v35, %v3051_v8  ;;  %v7880_v8 = vld [vmem:[#allocation2 + $0x4c] sm:$0xf]  ;;  %v7881_v58 = vld [vmem:[#allocation2 + $0x48] sm:$0xf]  ;;  %v9957_v18 = vpop.permute.xlu0 %3585 }
 0x250   : > { %v3262_v44 = vsel %vm8266_vm13, %v3260_v61, %v3261_v30  ;;  %3921 = vrot.lane.b32.xlu0 %v7328_v36, %s7980_s18  ;;  %v1859_v59 = vrot.slane %v1857_v25, 4  ;;  %v1866_v26 = vshll.u32 %v9847_v5, 16  ;;  %v1870_v7 = vshrl.u32 %v9847_v5, 16  ;;  %v10126_v49 = vld [vmem:[#allocation2 + $0xc8] sm:$0x1] }
 0x251   : > { %v7347_v62 = vcombine.low %v3259_v6, %v3262_v44  ;;  %v1862_v16 = vrot.slane %v1860_v60, 5  ;;  %v1876_v19 = vshll.u32 %v9839_v46, 16  ;;  %v7188_v61 = vrot.slane %v2506_v23, 9  ;;  %v3115_v5 = vld [vmem:[#allocation2 + $0xc0] sm:$0xe] }
 0x252   : > { %3751 = vrot.lane.b32.xlu1 %v7299_v15, %s7974_s11  ;;  %v1868_v30 = vrot.slane %v1866_v26, 5  ;;  %v2656_v53 = vrot.slane %v9810_v47, 5  ;;  %v2659_v35 = vrot.slane %v9942_v39, 5  ;;  %v7212_v36 = vcombine.low %v7881_v58, %v7880_v8  ;;  %v11185_v8 = vld [vmem:[#allocation23_spill] sm:$0xff] }
 0x253   : > { %v7331_v6 = vcombine.low %v3042_v48, %v3052_v11  ;;  %v1863_v25 = vor.u32 %v1862_v16, %v1859_v59  ;;  %v1872_v44 = vrot.slane %v1870_v7, 4  ;;  %v1878_v12 = vrot.slane %v1876_v19, 5  ;;  %v9968_v11 = vld [vmem:[#allocation2 + $0xb0] sm:$0x1]  ;;  %v3113_v59 = vld [vmem:[#allocation2 + $0xa8] sm:$0xe] }
 0x254   : > { %4007 = vrot.lane.b32.xlu0 %v7347_v62, %s7979_s16  ;;  %v2657_v46 = vsel %vm8266_vm13, %v7188_v61, %v2656_v53  ;;  %v2658_v23 = vrot.slane %v2656_v53, 4  ;;  %v4034_v15 = vsel %vm4013_vm1, %v7212_v36, %v9674_v21  ;;  %v2469_v60 = vshrl.u32 %v9952_v50, 16  ;;  %v11186_v16 = vld [vmem:[#allocation22_spill] sm:$0xff]  ;;  %v11187_v21 = vld [vmem:[#allocation15_spill] sm:$0xff]  ;;  %v9985_v53 = vpop.permute.xlu1 %3405 }
 0x255   : > { %v1864_v26 = vrot.slane %v1863_v25, 4  ;;  %v1873_v54 = vor.u32 %v1872_v44, %v1868_v30  ;;  %v4076_v58 = vsel %vm4062_vm3, %v4034_v15, %v11185_v8  ;;  %v2472_v48 = vshll.u32 %v9952_v50, 16  ;;  %v11189_v25 = vld [vmem:[#allocation19_spill] sm:$0xff]  ;;  %v9995_v8 = vpop.permute.xlu0 %3661 }
 0x256   : > { %v9972_v62 = vrot.slane %v3009_v0, 5  ;;  %v9976_v7 = vsel %vm4095_vm5, %v4078_v2, %v11186_v16  ;;  %3927 = vrot.lane.b32.xlu1 %v7331_v6, %s7980_s18  ;;  %v9981_v19 = vsel %vm11188_vm6, %v4173_v14, %v11187_v21  ;;  %v2660_v61 = vsel %vm8266_vm13, %v2658_v23, %v2659_v35  ;;  %v10005_v23 = vld [vmem:[#allocation2 + $0xb0] sm:$0x1] }
 0x257   : > { %v1869_v31 = vsel %vm8325_vm0, %v1864_v26, %v1868_v30  ;;  %v1874_v0 = vrot.slane %v1873_v54, 4  ;;  %v7300_v36 = vcombine.low %v2657_v46, %v2660_v61  ;;  %v4109_v2 = vsel %vm4095_vm5, %v4076_v58, %v11189_v25  ;;  %v10019_v61 = vld [vmem:[#allocation2 + $0xc4] sm:$0xf] }
 0x258   : > { %v9991_v44 = vrot.slane %v2469_v60, 4  ;;  %v7202_v6 = vrot.slane %v3113_v59, 9  ;;  %v3251_v15 = vrot.slane %v9860_v42, 5  ;;  %v3254_v14 = vrot.slane %v9968_v11, 5  ;;  %v1894_v60 = vld [vmem:[#allocation2 + $0xa8] sm:$0xe]  ;;  %v10025_v25 = vpop.permute.xlu1 %3491 }
 0x259   : > { %v1879_v35 = vsel %vm8325_vm0, %v1874_v0, %v1878_v12  ;;  %3753 = vrot.lane.b32.xlu0 %v7300_v36, %s7974_s11  ;;  %v10000_v30 = vrot.slane %v2472_v48, 5  ;;  %v2427_v54 = vor.u32 %v9795_v29, %v9786_v17  ;;  %v2430_v46 = vshll.u32 %v9759_v56, 16  ;;  %v10016_v29 = vld [vmem:[#allocation2 + $0xac] sm:$0xf] }
 0x25a   : > { %v7237_v26 = vcombine.low %v1869_v31, %v1879_v35  ;;  %v10009_v58 = vsel %vm4128_vm11, %v4109_v2, %v9690_v57  ;;  %v3252_v12 = vsel %vm8266_vm13, %v7202_v6, %v3251_v15  ;;  %v3253_v59 = vrot.slane %v3251_v15, 4  ;;  %v10029_v6 = vld [vmem:[#allocation2 + $0xcc] sm:$0xf]  ;;  %v10031_v15 = vld [vmem:[#allocation2 + $0xd0] sm:$0xf] }
 0x25b   : > { %v2428_v16 = vrot.slane %v2427_v54, 4  ;;  %v2432_v48 = vrot.slane %v2430_v46, 5  ;;  %v2436_v21 = vrot.slane %v2434_v10, 4  ;;  %v2440_v17 = vshll.u32 %v9877_v32, 16 }
 0x25c   : > { %3419 = vrot.lane.b32.xlu1 %v7237_v26, %s7977_s14  ;;  %v3255_v57 = vsel %vm8266_vm13, %v3253_v59, %v3254_v14  ;;  %v7172_v31 = vrot.slane %v1894_v60, 9  ;;  %v2047_v0 = vrot.slane %v10016_v29, 5  ;;  %v2050_v36 = vrot.slane %v10005_v23, 5  ;;  %v10038_v60 = vpop.permute.xlu0 %3837 }
 0x25d   : > { %v7269_v56 = vcombine.low %v9952_v50, %v10019_v61  ;;  %v7346_v10 = vcombine.low %v3252_v12, %v3255_v57  ;;  %v2437_v32 = vor.u32 %v2436_v21, %v2432_v48  ;;  %v2442_v2 = vrot.slane %v2440_v17, 5  ;;  %v10054_v57 = vld [vmem:[#allocation2 + $0xa8] sm:$0xf] }
 0x25e   : > { %v2433_v14 = vsel %vm8325_vm0, %v2428_v16, %v2432_v48  ;;  %v2048_v35 = vsel %vm8266_vm13, %v7172_v31, %v2047_v0  ;;  %v2049_v54 = vrot.slane %v2047_v0, 4  ;;  %v3078_v46 = vshrl.u32 %v10029_v6, 16 }
 0x25f   : > { %4005 = vrot.lane.b32.xlu0 %v7346_v10, %s7979_s16  ;;  %v2438_v50 = vrot.slane %v2437_v32, 4  ;;  %v4237_v26 = vsel %vm4227_vm15, %v9779_v52, %v9748_v55  ;;  %v3081_v12 = vshll.u32 %v10029_v6, 16  ;;  %v7317_v48 = vcombine.low %v10029_v6, %v10031_v15  ;;  %v10063_v6 = vpop.permute.xlu1 %3743 }
 0x260   : > { %3595 = vrot.lane.b32.xlu1 %v7269_v56, %s7973_s8  ;;  %v2051_v16 = vsel %vm8266_vm13, %v2049_v54, %v2050_v36  ;;  %v2451_v21 = vor.u32 %v9872_v37, %v9862_v20  ;;  %v2454_v17 = vshll.u32 %v9810_v47, 16  ;;  %v10058_v31 = vrot.slane %v3078_v46, 4  ;;  %v11190_v20 = vld [vmem:[#allocation21_spill] sm:$0xff]  ;;  %v11192_v46 = vld [vmem:[#allocation11_spill] sm:$0xff]  ;;  %s7606_s8 = sshll.u32 %s7962_s24, 9 }
 0x261   : > { %v2443_v55 = vsel %vm8325_vm0, %v2438_v50, %v2442_v2  ;;  %v7252_v52 = vcombine.low %v2048_v35, %v2051_v16  ;;  %v2460_v0 = vrot.slane %v2458_v24, 4  ;;  %v2464_v32 = vshll.u32 %v9942_v39, 16  ;;  %v11191_v54 = vld [vmem:[#allocation9_spill] sm:$0xff] }
 0x262   : > { %v7283_v36 = vcombine.low %v2433_v14, %v2443_v55  ;;  %v2452_v56 = vrot.slane %v2451_v21, 4  ;;  %v2456_v10 = vrot.slane %v2454_v17, 5  ;;  %v4270_v37 = vsel %vm4260_vm8, %v4237_v26, %v11190_v20  ;;  %v10079_v26 = vpop.permute.xlu0 %3913 }
 0x263   : > { %3497 = vrot.lane.b32.xlu0 %v7252_v52, %s7975_s12  ;;  %v4239_v2 = vsel %vm4227_vm15, %v9981_v19, %v11191_v54  ;;  %v1833_v35 = vshrl.u32 %v10054_v57, 16  ;;  %v1836_v47 = vshll.u32 %v10054_v57, 16  ;;  %v2466_v14 = vrot.slane %v2464_v32, 5  ;;  %7709 = vmatprep.mubr.msk.bf16.mxu1 %vm4336_vm14, %v4270_v37  ;;  %v2507_v54 = vld [vmem:[#allocation2 + $0xc0] sm:$0xe]  ;;  %s7473_s12 = sshll.u32 %s8085_s17, 7  ;;  %s11038_s17 = scalar_lea.hbm %s11099_s6, %s7606_s8 }
 0x264   : > { %3671 = vrot.lane.b32.xlu1 %v7283_v36, %s7978_s15  ;;  %v2457_v24 = vsel %vm8325_vm0, %v2452_v56, %v2456_v10  ;;  %v2461_v39 = vor.u32 %v2460_v0, %v2456_v10  ;;  %v4272_v50 = vsel %vm4260_vm8, %v4239_v2, %v11192_v46  ;;  %v1842_v21 = vshll.u32 %v10016_v29, 16 }
 0x265   : > { %7710 = vmatmul.mubr.msk.bf16.gmra.mxu1 %vm4336_vm14, %v4272_v50  ;;  %v1835_v19 = vrot.slane %v1833_v35, 4  ;;  %v1838_v16 = vrot.slane %v1836_v47, 5  ;;  %v1846_v17 = vshrl.u32 %v10016_v29, 16  ;;  %v1852_v52 = vshll.u32 %v10005_v23, 16 }
 0x266   : > { %v2462_v55 = vrot.slane %v2461_v39, 4  ;;  %v3012_v0 = vor.u32 %v9972_v62, %v9890_v51  ;;  %v3015_v36 = vshll.u32 %v9860_v42, 16  ;;  %v1844_v10 = vrot.slane %v1842_v21, 5  ;;  %v10093_v39 = vld [vmem:[#allocation2 + $0xc8] sm:$0x1]  ;;  %v10095_v51 = vpop.permute.xlu1 %3843 }
 0x267   : > { %v1839_v56 = vor.u32 %v1838_v16, %v1835_v19  ;;  %v1848_v32 = vrot.slane %v1846_v17, 4  ;;  %v11193_v20 = vshrl.u32 %v9860_v42, 16  ;;  %v1854_v35 = vrot.slane %v1852_v52, 5  ;;  %v2697_v42 = vld [vmem:[#allocation2 + $0xc0] sm:$0xf] }
 0x268   : > { %3851 = vrot.lane.b32.xlu1 %v7317_v48, %s7976_s13  ;;  %v2467_v2 = vsel %vm8325_vm0, %v2462_v55, %v2466_v14  ;;  %v3013_v47 = vrot.slane %v3012_v0, 4  ;;  %v3017_v23 = vrot.slane %v3015_v36, 5  ;;  %v3025_v19 = vshll.u32 %v9968_v11, 16  ;;  %v10101_v14 = vpop.permute.xlu0 %3999 }
 0x269   : > { %v3021_v37 = vrot.slane %v11193_v20, 4  ;;  %v7284_v62 = vcombine.low %v2457_v24, %v2467_v2  ;;  %v1840_v46 = vrot.slane %v1839_v56, 4  ;;  %v1849_v50 = vor.u32 %v1848_v32, %v1844_v10  ;;  %v10099_v20 = vld [vmem:[#allocation2 + $0xc4] sm:$0xf] }
 0x26a   : > { %v3083_v16 = vrot.slane %v3081_v12, 5  ;;  %v7189_v17 = vrot.slane %v2507_v54, 9  ;;  %v2663_v48 = vrot.slane %v10019_v61, 5  ;;  %v3027_v52 = vrot.slane %v3025_v19, 5  ;;  %v10120_v19 = vpop.permute.xlu1 %3919 }
 0x26b   : > { %v3022_v21 = vor.u32 %v3021_v37, %v3017_v23  ;;  %3673 = vrot.lane.b32.xlu0 %v7284_v62, %s7978_s15  ;;  %v1845_v55 = vsel %vm8325_vm0, %v1840_v46, %v1844_v10  ;;  %v1850_v24 = vrot.slane %v1849_v50, 4  ;;  %v2666_v0 = vrot.slane %v10093_v39, 5  ;;  %v10113_v62 = vld [vmem:[#allocation2 + $0xd4] sm:$0x1]  ;;  %v11194_v10 = vld [vmem:[#allocation20_spill] sm:$0xff] }
 0x26c   : > { %v3018_v11 = vsel %vm8325_vm0, %v3013_v47, %v3017_v23  ;;  %v2665_v36 = vrot.slane %v2663_v48, 4  ;;  %v3054_v56 = vshrl.u32 %v2697_v42, 16  ;;  %v2482_v32 = vshrl.u32 %v10019_v61, 16 }
 0x26d   : > { %v3023_v12 = vrot.slane %v3022_v21, 4  ;;  %v1855_v37 = vsel %vm8325_vm0, %v1850_v24, %v1854_v35  ;;  %v3057_v54 = vshll.u32 %v2697_v42, 16  ;;  %v3067_v2 = vshrl.u32 %v10099_v20, 16 }
 0x26e   : > { %v4175_v46 = vsel %vm4161_vm12, %v10009_v58, %v11194_v10  ;;  %v7236_v50 = vcombine.low %v1845_v55, %v1855_v37  ;;  %v3056_v23 = vrot.slane %v3054_v56, 4  ;;  %v2664_v35 = vsel %vm8266_vm13, %v7189_v17, %v2663_v48  ;;  %v10134_v56 = vpop.permute.xlu0 %3745 }
 0x26f   : > { %v3028_v47 = vsel %vm8325_vm0, %v3023_v12, %v3027_v52  ;;  %v2667_v24 = vsel %vm8266_vm13, %v2665_v36, %v2666_v0  ;;  %v3059_v59 = vrot.slane %v3057_v54, 5  ;;  %v3084_v58 = vor.u32 %v3083_v16, %v10058_v31 }
 0x270   : > { %v7330_v21 = vcombine.low %v3018_v11, %v3028_v47  ;;  %3417 = vrot.lane.b32.xlu1 %v7236_v50, %s7977_s14  ;;  %v3087_v55 = vshll.u32 %v10031_v15, 16  ;;  %v11195_v52 = vshrl.u32 %v10031_v15, 16  ;;  %v3097_v11 = vshll.u32 %v10113_v62, 16  ;;  %s10300_s14 = scalar_lea.vmem %s11098_s5, %s7473_s12 }
 0x271   : > { %v4208_v17 = vsel %vm11196_vm9, %v4175_v46, %v9705_v27  ;;  %v3060_v48 = vor.u32 %v3059_v59, %v3056_v23  ;;  %v3063_v0 = vshll.u32 %v10099_v20, 16  ;;  %v3069_v36 = vrot.slane %v3067_v2, 4  ;;  %v10147_v23 = vpop.permute.xlu1 %3411 }
 0x272   : > { %v3093_v12 = vrot.slane %v11195_v52, 4  ;;  %3925 = vrot.lane.b32.xlu0 %v7330_v21, %s7980_s18  ;;  %v7301_v37 = vcombine.low %v2664_v35, %v2667_v24  ;;  %v3085_v31 = vrot.slane %v3084_v58, 4  ;;  %v3089_v16 = vrot.slane %v3087_v55, 5 }
 0x273   : > { %v3073_v54 = vshll.u32 %v10126_v49, 16  ;;  %v7316_v10 = vcombine.low %v2697_v42, %v10099_v20  ;;  %v3061_v50 = vrot.slane %v3060_v48, 4  ;;  %v3065_v47 = vrot.slane %v3063_v0, 5 }
 0x274   : > { %v2475_v52 = vor.u32 %v10000_v30, %v9991_v44  ;;  %3755 = vrot.lane.b32.xlu1 %v7301_v37, %s7974_s11  ;;  %v3090_v27 = vsel %vm8325_vm0, %v3085_v31, %v3089_v16  ;;  %v3094_v59 = vor.u32 %v3093_v12, %v3089_v16  ;;  %v3099_v2 = vrot.slane %v3097_v11, 5  ;;  %v3116_v30 = vld [vmem:[#allocation2 + $0xcc] sm:$0xe]  ;;  %v10154_v12 = vpop.permute.xlu0 %3997 }
 0x275   : > { %v3075_v46 = vrot.slane %v3073_v54, 5  ;;  %v3066_v42 = vsel %vm8325_vm0, %v3061_v50, %v3065_v47  ;;  %v3070_v21 = vor.u32 %v3069_v36, %v3065_v47  ;;  %v2478_v44 = vshll.u32 %v10019_v61, 16 }
 0x276   : > { %3849 = vrot.lane.b32.xlu0 %v7316_v10, %s7976_s13  ;;  %v2476_v35 = vrot.slane %v2475_v52, 4  ;;  %v3095_v24 = vrot.slane %v3094_v59, 4  ;;  %v2484_v58 = vrot.slane %v2482_v32, 4  ;;  %v2488_v55 = vshll.u32 %v10093_v39, 16  ;;  %v10171_v52 = vpop.permute.xlu1 %3587 }
 0x277   : > { %v7204_v48 = vrot.slane %v3115_v5, 9  ;;  %v3071_v11 = vrot.slane %v3070_v21, 4  ;;  %v2480_v0 = vrot.slane %v2478_v44, 5  ;;  %v3265_v37 = vrot.slane %v10099_v20, 5 }
 0x278   : > { %v3268_v31 = vrot.slane %v10126_v49, 5  ;;  %v3100_v36 = vsel %vm8325_vm0, %v3095_v24, %v3099_v2  ;;  %v2490_v16 = vrot.slane %v2488_v55, 5  ;;  %v4144_v61 = vsel %vm4128_vm11, %v9976_v7, %v9948_v1  ;;  %v11197_v7 = vld [vmem:[#allocation10_spill] sm:$0xff]  ;;  %v7883_v55 = vld [vmem:[#allocation2 + $0x60] sm:$0xf] }
 0x279   : > { %v7205_v32 = vrot.slane %v3116_v30, 9  ;;  %v7333_v54 = vcombine.low %v3090_v27, %v3100_v36  ;;  %v3076_v5 = vsel %vm8325_vm0, %v3071_v11, %v3075_v46  ;;  %v2481_v39 = vsel %vm8325_vm0, %v2476_v35, %v2480_v0  ;;  %v7885_v11 = vld [vmem:[#allocation2 + $0x6c] sm:$0xf]  ;;  %v7886_v36 = vld [vmem:[#allocation2 + $0x7c] sm:$0xf] }
 0x27a   : > { %v2485_v10 = vor.u32 %v2484_v58, %v2480_v0  ;;  %v7332_v20 = vcombine.low %v3066_v42, %v3076_v5  ;;  %v3266_v49 = vsel %vm8266_vm13, %v7204_v48, %v3265_v37  ;;  %v3267_v50 = vrot.slane %v3265_v37, 4  ;;  %v3490_v42 = vpop.permute.xlu0 %3489 }
 0x27b   : > { %v4177_v47 = vsel %vm4161_vm12, %v4144_v61, %v9738_v9  ;;  %3931 = vrot.lane.b32.xlu1 %v7333_v54, %s7980_s18  ;;  %v3272_v59 = vrot.slane %v10031_v15, 5  ;;  %v3275_v2 = vrot.slane %v10113_v62, 5  ;;  %v4241_v9 = vsel %vm4227_vm15, %v4208_v17, %v10079_v26 }
 0x27c   : > { %v2486_v1 = vrot.slane %v2485_v10, 4  ;;  %v4210_v27 = vsel %vm11198_vm10, %v4177_v47, %v11197_v7  ;;  %3929 = vrot.lane.b32.xlu0 %v7332_v20, %s7980_s18  ;;  %v3269_v46 = vsel %vm8266_vm13, %v3267_v50, %v3268_v31  ;;  %v4274_v24 = vsel %vm4260_vm8, %v4241_v9, %v9884_v28  ;;  %v3664_v17 = vpop.permute.xlu1 %3663 }
 0x27d   : > { %v3273_v35 = vsel %vm8266_vm13, %v7205_v32, %v3272_v59  ;;  %v3274_v44 = vrot.slane %v3272_v59, 4  ;;  %v4243_v15 = vsel %vm4227_vm15, %v4210_v27, %v9831_v40  ;;  %v7348_v30 = vcombine.low %v3266_v49, %v3269_v46  ;;  %7713 = vmatprep.mubr.msk.bf16.mxu1 %vm4336_vm14, %v4274_v24  ;;  %v7882_v40 = vld [vmem:[#allocation2 + $0x64] sm:$0xf]  ;;  %v11199_v49 = vld [vmem:[#allocation24_spill] sm:$0xff] }
 0x27e   : > { %v2491_v21 = vsel %vm8325_vm0, %v2486_v1, %v2490_v16  ;;  %v4276_v26 = vsel %vm4260_vm8, %v4243_v15, %v9804_v63  ;;  %v7214_v48 = vcombine.low %v7883_v55, %v7882_v40  ;;  %v10199_v28 = vpop.permute.xlu0 %3589  ;;  %v7215_v0 = vcombine.low %v7885_v11, %v7884_v33  ;;  %v7887_v16 = vld [vmem:[#allocation2 + $0x78] sm:$0xf]  ;;  %vm11201_vm0 = vmmov %vm11174_vm2 }
 0x27f   : > { %v7285_v62 = vcombine.low %v2481_v39, %v2491_v21  ;;  %v3276_v58 = vsel %vm8266_vm13, %v3274_v44, %v3275_v2  ;;  %7714 = vmatmul.mubr.msk.bf16.gmra.mxu1 %vm4336_vm14, %v4276_v26  ;;  %v7220_v31 = vcombine.low %v10054_v57, %v10016_v29  ;;  %v7216_v61 = vcombine.low %v7887_v16, %v7886_v36  ;;  %vm11200_vm13 = vmmov %vm11174_vm2  ;;  %v7888_v44 = vld [vmem:[#allocation2 + $0x88] sm:$0xf] }
 0x280   : > { %4009 = vrot.lane.b32.xlu0 %v7348_v30, %s7979_s16  ;;  %v7349_v45 = vcombine.low %v3273_v35, %v3276_v58  ;;  %v4040_v37 = vsel %vm4013_vm1, %v7214_v48, %v9985_v53  ;;  %v4043_v63 = vsel %vm4013_vm1, %v7215_v0, %v9869_v43  ;;  %vm11202_vm2 = vmmov %vm11201_vm0  ;;  %v4602_v36 = vlaneseq }
 0x281   : > { %3675 = vrot.lane.b32.xlu1 %v7285_v62, %s7978_s15  ;;  %v4080_v54 = vsel %vm4062_vm3, %v4040_v37, %v9920_v41  ;;  %v4082_v39 = vsel %vm4062_vm3, %v4043_v63, %v9698_v3  ;;  %vm11203_vm4 = vmmov %vm11201_vm0  ;;  %v7981_v37 = vmov 1983009808   ;;  %vm5270_vm6 = vcmask 58368   ;;  %s271_s15 = sand.u32 1, %s7954_s22  }
 0x282   : > { %v4115_v20 = vsel %vm4095_vm5, %v4082_v39, %v9907_v13  ;;  %v4113_v50 = vsel %vm4095_vm5, %v4080_v54, %v11199_v49  ;;  %v4600_v63 = vunpack.c.l.s4 %v7981_v37  ;;  %v4603_v39 = vshrl.u32 %v4602_v36, 7  ;;  %vm11206_vm9 = vmmov %vm11201_vm0  ;;  %s7078_s18 = sshll.u32 %s271_s15, 5  ;;  %s11046_s24 = scalar_lea.sflag [#allocation4], %s271_s15 }
 0x283   : > { %v4148_v47 = vsel %vm4128_vm11, %v4115_v20, %v3664_v17  ;;  %v4146_v3 = vsel %vm4128_vm11, %v4113_v50, %v9995_v8  ;;  %v7218_v50 = vcombine.low %v9802_v22, %v9781_v38  ;;  %vm11207_vm10 = vmmov %vm11201_vm0  ;;  %s10445_s20 = scalar_lea.vmem [#allocation3], %s7078_s18  ;;  %s7982_s18 = smov [#allocation3]  }
 0x284   : > { %v3410_v32 = vpop.permute.xlu1 %3409  ;;  %v4181_v7 = vsel %vm4161_vm12, %v4148_v47, %v10063_v6  ;;  %s6956_s11 = sshll.u32 %s10445_s20, 4  ;;  %s7898_s27 = sshll.u32 %s7982_s18, 4  ;;  %s11040_s11 = int_to_ptr.vmem [resolvable:$true] %s6956_s11  ;;  %s7899_s27 = int_to_ptr.vmem [resolvable:$false] %s7898_s27 }
 0x285   : > { %4011 = vrot.lane.b32.xlu1 %v7349_v45, %s7979_s16  ;;  %v4046_v5 = vsel %vm4013_vm1, %v7216_v61, %v3410_v32  ;;  %v4214_v27 = vsel %vm11200_vm13, %v4181_v7, %v9783_v4  ;;  %v7890_v7 = vld [vmem:[#allocation2 + $0xa0] sm:$0xf]  ;;  %vm6839_vm13 = vcmask 1041409   ;;  %s7900_s28 = scalar_lea.vmem %s7899_s27, 1024  ;;  %p7901_p1 = scmp.lt.s32.totalorder %s11040_s11, %s7899_s27 }
 0x286   : > { %v4084_v53 = vsel %vm4062_vm3, %v4046_v5, %v3490_v42  ;;  %v3666_v10 = vpop.permute.xlu0 %3665  ;;  %v4601_v5 = vunpack.c.0.s8 %v4600_v63 }
 0x287   : > { %v4117_v43 = vsel %vm4095_vm5, %v4084_v53, %v9957_v18  ;;  %v4179_v18 = vsel %vm4161_vm12, %v4146_v3, %v9849_v34  ;;  %v10283_v53 = vld [vmem:[%s11097_s4] ss:$0 sm:$0xff] }
 0x288   : > { %v4150_v41 = vsel %vm4128_vm11, %v4117_v43, %v3666_v10  ;;  %v4212_v59 = vsel %vm11201_vm0, %v4179_v18, %v10038_v60  ;;  %v10242_v6 = vpop.permute.xlu1 %3495  ;;  %v10289_v49 = vsub.s32 %v4601_v5, %v4603_v39 }
 0x289   : > { %v4183_v1 = vsel %vm4161_vm12, %v4150_v41, %v10134_v56  ;;  %v4247_v56 = vsel %vm4227_vm15, %v4214_v27, %v10120_v19 }
 0x28a   : > { %v3842_v13 = vpop.permute.xlu0 %3841  ;;  %v4280_v34 = vsel %vm4260_vm8, %v4247_v56, %v10101_v14 }
 0x28d   : > { %v3748_v4 = vpop.permute.xlu1 %3747 }
 0x292   : > { %v3918_v2 = vpop.permute.xlu0 %3917 }
 0x293   : > { %v4245_v46 = vsel %vm4227_vm15, %v4212_v59, %v3918_v2  ;;  %v10245_v9 = vpop.permute.xlu1 %3847 }
 0x294   : > { %v4278_v8 = vsel %vm4260_vm8, %v4245_v46, %v10154_v12  ;;  %v7889_v12 = vld [vmem:[#allocation2 + $0x84] sm:$0xf] }
 0x295   : > { %7717 = vmatprep.mubr.msk.bf16.mxu1 %vm4336_vm14, %v4278_v8  ;;  %v7217_v15 = vcombine.low %v7889_v12, %v7888_v44 }
 0x296   : > { %7718 = vmatmul.mubr.msk.bf16.gmra.mxu1 %vm4336_vm14, %v4280_v34 }
 0x297   : > { %v4049_v14 = vsel %vm4013_vm1, %v7217_v15, %v10147_v23 }
 0x298   : > { %v4004_v60 = vpop.permute.xlu0 %4003  ;;  %v4086_v24 = vsel %vm4062_vm3, %v4049_v14, %v10025_v25  ;;  %v4216_v25 = vsel %vm11203_vm4, %v4183_v1, %v3842_v13  ;;  %v7891_v13 = vld [vmem:[#allocation2 + $0x9c] sm:$0xf] }
 0x299   : > { %v4119_v45 = vsel %vm4095_vm5, %v4086_v24, %v10171_v52  ;;  %v7219_v18 = vcombine.low %v7891_v13, %v7890_v7 }
 0x2a2   : > { %v10247_v42 = vpop.permute.xlu0 %3749 }
 0x2a3   : > { %v3924_v19 = vpop.permute.xlu1 %3923 }
 0x2ab   : > { %v4002_v21 = vpop.permute.xlu0 %4001 }
 0x2ae   : > { %v3416_v35 = vpop.permute.xlu1 %3415 }
 0x2af   : > { %v4055_v46 = vsel %vm4013_vm1, %v7219_v18, %v3416_v35 }
 0x2b0   : > { %v4090_v35 = vsel %vm4062_vm3, %v4055_v46, %v10242_v6 }
 0x2b2   : > { %v3494_v62 = vpop.permute.xlu0 %3493  ;;  %v10251_v30 = vpop.permute.xlu1 %3591 }
 0x2b6   : > { %v10255_v58 = vpop.permute.xlu0 %3593  ;;  %v3668_v26 = vpop.permute.xlu1 %3667 }
 0x2b7   : > { %v4152_v17 = vsel %vm4128_vm11, %v4119_v45, %v3668_v26 }
 0x2b8   : > { %v4185_v40 = vsel %vm4161_vm12, %v4152_v17, %v3748_v4 }
 0x2b9   : > { %v4218_v55 = vsel %vm11202_vm2, %v4185_v40, %v10095_v51  ;;  %vm6841_vm2 = vcmask 1042434  }
 0x2ba   : > { %v10263_v48 = vpop.permute.xlu0 %3669  ;;  %v4251_v52 = vsel %vm4227_vm15, %v4218_v55, %v3924_v19 }
 0x2bb   : > { %v4284_v32 = vsel %vm4260_vm8, %v4251_v52, %v4004_v60 }
 0x2bc   : > { %v3414_v23 = vpop.permute.xlu1 %3413 }
 0x2bd   : > { %v4052_v27 = vsel %vm4013_vm1, %v7218_v50, %v3414_v23 }
 0x2be   : > { %v10265_v33 = vpop.permute.xlu0 %3845  ;;  %v4088_v8 = vsel %vm4062_vm3, %v4052_v27, %v3494_v62 }
 0x2bf   : > { %v4121_v26 = vsel %vm4095_vm5, %v4088_v8, %v10199_v28  ;;  %v4123_v28 = vsel %vm4095_vm5, %v4090_v35, %v10251_v30 }
 0x2c0   : > { %v10267_v11 = vpop.permute.xlu1 %3499 }
 0x2c2   : > { %v3922_v0 = vpop.permute.xlu0 %3921 }
 0x2c3   : > { %v4249_v16 = vsel %vm4227_vm15, %v4216_v25, %v3922_v0 }
 0x2c4   : > { %v10272_v61 = vpop.permute.xlu1 %3751  ;;  %v4282_v51 = vsel %vm4260_vm8, %v4249_v16, %v4002_v21 }
 0x2c5   : > { %7721 = vmatprep.mubr.msk.bf16.mxu1 %vm4336_vm14, %v4282_v51 }
 0x2c6   : > { %7722 = vmatmul.mubr.msk.bf16.gmra.mxu1 %vm4336_vm14, %v4284_v32  ;;  %v10278_v54 = vpop.permute.xlu0 %4007  ;;  %v7703_v20 = vpop.f32.mrf.mxu1 }
 0x2c7   : > { %v4416_v43 = vadd.f32 %v7703_v20, %v10283_v53 }
 0x2c8   : > { %v10285_v10 = vpop.permute.xlu1 %3927  ;;  %v4407_v41 = vpop.f32.mrf.mxu1 }
 0x2c9   : > { %v4536_v1 = vmax.f32 %v4416_v43, 0.0  ;;  %v4408_v3 = vadd.f32 %v10283_v53, %v4407_v41 }
 0x2ca   : > { %v7704_v52 = vpop.f32.mrf.mxu1 }
 0x2cb   : > { %v10293_v47 = vpop.permute.xlu0 %3753  ;;  %v4632_v38 = vcombine.high %v4536_v1, %v4536_v1  ;;  %v4639_v22 = vrot.slane %v4536_v1, %v10289_v49  ;;  %v7512_v2 = vpack.c.bf16 %v4536_v1, %v4536_v1  ;;  %v4534_v56 = vmax.f32 %v4408_v3, 0.0 }
 0x2cc   : > { %v4419_v41 = vadd.f32 %v7704_v52, %v10283_v53  ;;  %v4154_v1 = vsel %vm4128_vm11, %v4121_v26, %v10263_v48 }
 0x2cd   : > { %v4646_v34 = vrot.slane %v4632_v38, %v10289_v49  ;;  %v4647_v4 = vcombine.high %v4639_v22, %v4639_v22  ;;  %v5327_v60 = vsel %vm5270_vm6, %v4639_v22, -inf  ;;  %6489 = vst.msk [vmem:[%s10300_s14 + $0x8] sm:$0xf] %vm1304_vm7, %v7512_v2  ;;  %v4598_v44 = vcombine.high %v4534_v56, %v4534_v56 }
 0x2ce   : > { %v10302_v59 = vpop.permute.xlu1 %3419  ;;  %v5328_v21 = vrot.slane %v5327_v60, 4  ;;  %v4605_v12 = vrot.slane %v4534_v56, %v10289_v49  ;;  %v7510_v15 = vpack.c.bf16 %v4534_v56, %v4534_v56  ;;  %v4187_v46 = vsel %vm4161_vm12, %v4154_v1, %v10247_v42 }
 0x2cf   : > { %v4648_v62 = vcombine.high %v4646_v34, %v4646_v34  ;;  %v5334_v24 = vsel %vm5270_vm6, %v4647_v4, -inf  ;;  %v5341_v45 = vsel %vm5270_vm6, %v4646_v34, -inf  ;;  %v4612_v25 = vrot.slane %v4598_v44, %v10289_v49 }
 0x2d0   : > { %v5329_v17 = vmax.f32 %v5327_v60, %v5328_v21  ;;  %v5335_v40 = vrot.slane %v5334_v24, 4  ;;  %v5342_v55 = vrot.slane %v5341_v45, 4  ;;  %6487 = vst.msk [vmem:[%s10300_s14] sm:$0xf] %vm1304_vm7, %v7510_v15  ;;  %v4613_v6 = vcombine.high %v4605_v12, %v4605_v12  ;;  %v11205_v15 = vld [vmem:[#allocation12_spill] sm:$0xff] }
 0x2d1   : > { %v10311_v19 = vpop.permute.xlu0 %4005  ;;  %v5348_v23 = vsel %vm5270_vm6, %v4648_v62, -inf  ;;  %v5271_v0 = vsel %vm5270_vm6, %v4605_v12, -inf  ;;  %v4614_v27 = vcombine.high %v4612_v25, %v4612_v25  ;;  %v5285_v30 = vsel %vm5270_vm6, %v4612_v25, -inf  ;;  %v11204_v12 = vld [vmem:[#allocation6_spill] sm:$0xff] }
 0x2d2   : > { %v10316_v14 = vpop.permute.xlu1 %3595  ;;  %v5330_v37 = vrot.slane %v5329_v17, 2  ;;  %v5336_v63 = vmax.f32 %v5334_v24, %v5335_v40  ;;  %v5343_v36 = vmax.f32 %v5341_v45, %v5342_v55  ;;  %v5349_v16 = vrot.slane %v5348_v23, 4 }
 0x2d3   : > { %v5272_v32 = vrot.slane %v5271_v0, 4  ;;  %v5278_v5 = vsel %vm5270_vm6, %v4613_v6, -inf  ;;  %v4537_v34 = vmax.f32 %v4419_v41, 0.0  ;;  %v5286_v44 = vrot.slane %v5285_v30, 4 }
 0x2d4   : > { %v5337_v43 = vrot.slane %v5336_v63, 2  ;;  %v5344_v50 = vrot.slane %v5343_v36, 2  ;;  %v5331_v3 = vmax.f32 %v5329_v17, %v5330_v37  ;;  %v5279_v13 = vrot.slane %v5278_v5, 4 }
 0x2d5   : > { %v3498_v20 = vpop.permute.xlu0 %3497  ;;  %v5273_v7 = vmax.f32 %v5271_v0, %v5272_v32  ;;  %v5350_v18 = vmax.f32 %v5348_v23, %v5349_v16  ;;  %v7221_v35 = vcombine.low %v11205_v15, %v11204_v12  ;;  %v5292_v45 = vsel %vm5270_vm6, %v4614_v27, -inf }
 0x2d6   : > { %v3672_v51 = vpop.permute.xlu1 %3671  ;;  %v5338_v22 = vmax.f32 %v5336_v63, %v5337_v43  ;;  %v5280_v56 = vmax.f32 %v5278_v5, %v5279_v13  ;;  %v5345_v8 = vmax.f32 %v5343_v36, %v5344_v50  ;;  %v5332_v48 = vrot.slane %v5331_v3, 1 }
 0x2d7   : > { %v4156_v39 = vsel %vm4128_vm11, %v4123_v28, %v3672_v51  ;;  %v5274_v2 = vrot.slane %v5273_v7, 2  ;;  %v5351_v24 = vrot.slane %v5350_v18, 2  ;;  %v4220_v42 = vsel %vm11207_vm10, %v4187_v46, %v10265_v33 }
 0x2d8   : > { %v4189_v38 = vsel %vm4161_vm12, %v4156_v39, %v10272_v61  ;;  %v5281_v21 = vrot.slane %v5280_v56, 2  ;;  %v5339_v26 = vrot.slane %v5338_v22, 1  ;;  %v5287_v40 = vmax.f32 %v5285_v30, %v5286_v44 }
 0x2d9   : > { %v5275_v60 = vmax.f32 %v5273_v7, %v5274_v2  ;;  %v4222_v61 = vsel %vm11206_vm9, %v4189_v38, %v10245_v9  ;;  %v5346_v55 = vrot.slane %v5345_v8, 1  ;;  %v5293_v25 = vrot.slane %v5292_v45, 4 }
 0x2da   : > { %v10339_v4 = vpop.permute.xlu1 %3851  ;;  %v5282_v17 = vmax.f32 %v5280_v56, %v5281_v21  ;;  %v4649_v6 = vcombine.high %v4537_v34, %v4537_v34  ;;  %v4255_v0 = vsel %vm4227_vm15, %v4222_v61, %v10285_v10  ;;  %v5333_v52 = vmax.f32 %v5331_v3, %v5332_v48 }
 0x2db   : > { %v5276_v23 = vrot.slane %v5275_v60, 1  ;;  %v5288_v9 = vrot.slane %v5287_v40, 2  ;;  %v5352_v63 = vmax.f32 %v5350_v18, %v5351_v24  ;;  %v5294_v36 = vmax.f32 %v5292_v45, %v5293_v25 }
 0x2dc   : > { %v5283_v37 = vrot.slane %v5282_v17, 1  ;;  %v4656_v16 = vrot.slane %v4537_v34, %v10289_v49  ;;  %v7513_v28 = vpack.c.bf16 %v4537_v34, %v4537_v34  ;;  %v5340_v51 = vmax.f32 %v5338_v22, %v5339_v26 }
 0x2dd   : > { %v3674_v62 = vpop.permute.xlu0 %3673  ;;  %v5289_v5 = vmax.f32 %v5287_v40, %v5288_v9  ;;  %v4663_v39 = vrot.slane %v4649_v6, %v10289_v49  ;;  %v5347_v50 = vmax.f32 %v5345_v8, %v5346_v55  ;;  %v5277_v41 = vmax.f32 %v5275_v60, %v5276_v23 }
 0x2de   : > { %v5284_v32 = vmax.f32 %v5282_v17, %v5283_v37  ;;  %v5295_v1 = vrot.slane %v5294_v36, 2  ;;  %6490 = vst.msk [vmem:[%s10300_s14 + $0xc] sm:$0xf] %vm1304_vm7, %v7513_v28  ;;  %v4288_v30 = vsel %vm4260_vm8, %v4255_v0, %v10278_v54  ;;  %v5353_v56 = vrot.slane %v5352_v63, 1 }
 0x2df   : > { %v5290_v13 = vrot.slane %v5289_v5, 1  ;;  %v4665_v22 = vcombine.high %v4663_v39, %v4663_v39  ;;  %v4061_v8 = vsel %vm4013_vm1, %v7221_v35, %v10302_v59  ;;  %v6168_v21 = vsel %vm4013_vm1, %v5333_v52, -inf  ;;  %v4410_v59 = vpop.f32.mrf.mxu1 }
 0x2e0   : > { %v6170_v18 = vsel %vm4013_vm1, %v5284_v32, -inf  ;;  %v5296_v57 = vmax.f32 %v5294_v36, %v5295_v1  ;;  %v6174_v44 = vsel %vm4013_vm1, %v5347_v50, -inf  ;;  %v5369_v45 = vsel %vm5270_vm6, %v4663_v39, -inf }
 0x2e1   : > { %v5291_v38 = vmax.f32 %v5289_v5, %v5290_v13  ;;  %v5370_v17 = vrot.slane %v5369_v45, 4  ;;  %v4411_v52 = vadd.f32 %v10283_v53, %v4410_v59  ;;  %v4094_v37 = vsel %vm4062_vm3, %v4061_v8, %v10267_v11 }
 0x2e2   : > { %v3418_v33 = vpop.permute.xlu1 %3417  ;;  %v5297_v54 = vrot.slane %v5296_v57, 1 }
 0x2e3   : > { %v4058_v10 = vsel %vm4013_vm1, %v7220_v31, %v3418_v33  ;;  %v4664_v31 = vcombine.high %v4656_v16, %v4656_v16  ;;  %v6173_v12 = vsel %vm4013_vm1, %v5291_v38, -inf }
 0x2e4   : > { %v3926_v43 = vpop.permute.xlu0 %3925  ;;  %v4092_v3 = vsel %vm4062_vm3, %v4058_v10, %v3498_v20  ;;  %v6171_v20 = vsel %vm4013_vm1, %v5340_v51, -inf  ;;  %v5298_v40 = vmax.f32 %v5296_v57, %v5297_v54  ;;  %v6175_v55 = vmax.f32 %v6173_v12, %v6174_v44  ;;  %vm11208_vm3 = vmmov %vm11201_vm0 }
 0x2e5   : > { %v4253_v7 = vsel %vm4227_vm15, %v4220_v42, %v3926_v43  ;;  %v4125_v27 = vsel %vm4095_vm5, %v4092_v3, %v10255_v58  ;;  %v6167_v58 = vsel %vm4013_vm1, %v5277_v41, -inf  ;;  %v6172_v46 = vmax.f32 %v6170_v18, %v6171_v20 }
 0x2e6   : > { %v4286_v29 = vsel %vm4260_vm8, %v4253_v7, %v10311_v19  ;;  %v3756_v2 = vpop.permute.xlu1 %3755  ;;  %v5355_v19 = vsel %vm5270_vm6, %v4656_v16, -inf  ;;  %v4158_v34 = vsel %vm4128_vm11, %v4125_v27, %v3674_v62  ;;  %v5362_v15 = vsel %vm5270_vm6, %v4664_v31, -inf }
 0x2e7   : > { %7725 = vmatprep.mubr.msk.bf16.mxu1 %vm4336_vm14, %v4286_v29  ;;  %v5356_v60 = vrot.slane %v5355_v19, 4  ;;  %v6169_v61 = vmax.f32 %v6167_v58, %v6168_v21  ;;  %v5363_v24 = vrot.slane %v5362_v15, 4  ;;  %v5376_v42 = vsel %vm5270_vm6, %v4665_v22, -inf }
 0x2e8   : > { %7726 = vmatmul.mubr.msk.bf16.gmra.mxu1 %vm4336_vm14, %v4288_v30  ;;  %v3850_v48 = vpop.permute.xlu0 %3849  ;;  %v4191_v35 = vsel %vm4161_vm12, %v4158_v34, %v10293_v47  ;;  %v5354_v62 = vmax.f32 %v5352_v63, %v5353_v56  ;;  %v7543_v26 = vpack.c.bf16 %v6172_v46, %v6172_v46  ;;  %v5377_v25 = vrot.slane %v5376_v42, 4 }
 0x2e9   : > { %v5357_v23 = vmax.f32 %v5355_v19, %v5356_v60  ;;  %v5364_v0 = vmax.f32 %v5362_v15, %v5363_v24  ;;  %v7542_v36 = vpack.c.bf16 %v6169_v61, %v6169_v61  ;;  %v5371_v16 = vmax.f32 %v5369_v45, %v5370_v17 }
 0x2ea   : > { %v5378_v28 = vmax.f32 %v5376_v42, %v5377_v25  ;;  %v4127_v47 = vsel %vm4095_vm5, %v4094_v37, %v10316_v14  ;;  %v4224_v63 = vsel %vm11201_vm0, %v4191_v35, %v3850_v48  ;;  %v6177_v33 = vsel %vm4013_vm1, %v5354_v62, -inf }
 0x2eb   : > { %v4535_v51 = vmax.f32 %v4411_v52, 0.0  ;;  %v6176_v32 = vsel %vm4013_vm1, %v5298_v40, -inf  ;;  %v7544_v5 = vpack.c.bf16 %v6175_v55, %v6175_v55  ;;  %v6776_v39 = vunpack.c.l.b16 %v7543_v26 }
 0x2ec   : > { %v5358_v10 = vrot.slane %v5357_v23, 2  ;;  %v5365_v11 = vrot.slane %v5364_v0, 2  ;;  %v6775_v7 = vunpack.c.l.b16 %v7542_v36  ;;  %v5372_v13 = vrot.slane %v5371_v16, 2 }
 0x2ed   : > { %v3932_v6 = vpop.permute.xlu1 %3931  ;;  %v4615_v43 = vcombine.high %v4535_v51, %v4535_v51  ;;  %v4622_v50 = vrot.slane %v4535_v51, %v10289_v49  ;;  %v7511_v41 = vpack.c.bf16 %v4535_v51, %v4535_v51  ;;  %v5379_v18 = vrot.slane %v5378_v28, 2 }
 0x2ee   : > { %v3930_v9 = vpop.permute.xlu0 %3929  ;;  %v6178_v57 = vmax.f32 %v6176_v32, %v6177_v33  ;;  %v6777_v20 = vunpack.c.l.b16 %v7544_v5  ;;  %v6840_v38 = vsel %vm6839_vm13, %v6776_v39, %v6775_v7  ;;  %v5359_v22 = vmax.f32 %v5357_v23, %v5358_v10 }
 0x2ef   : > { %v4257_v1 = vsel %vm4227_vm15, %v4224_v63, %v3930_v9  ;;  %v4629_v31 = vrot.slane %v4615_v43, %v10289_v49  ;;  %6488 = vst.msk [vmem:[%s10300_s14 + $0x4] sm:$0xf] %vm1304_vm7, %v7511_v41  ;;  %v5366_v58 = vmax.f32 %v5364_v0, %v5365_v11  ;;  %v4630_v46 = vcombine.high %v4622_v50, %v4622_v50 }
 0x2f0   : > { %v5373_v48 = vmax.f32 %v5371_v16, %v5372_v13  ;;  %v5380_v54 = vmax.f32 %v5378_v28, %v5379_v18  ;;  %v5299_v60 = vsel %vm5270_vm6, %v4622_v50, -inf  ;;  %v5360_v15 = vrot.slane %v5359_v22, 1 }
 0x2f1   : > { %v4631_v19 = vcombine.high %v4629_v31, %v4629_v31  ;;  %v5300_v44 = vrot.slane %v5299_v60, 4  ;;  %v5306_v12 = vsel %vm5270_vm6, %v4630_v46, -inf  ;;  %v5367_v45 = vrot.slane %v5366_v58, 1 }
 0x2f2   : > { %v4010_v3 = vpop.permute.xlu0 %4009  ;;  %v5307_v61 = vrot.slane %v5306_v12, 4  ;;  %v5374_v62 = vrot.slane %v5373_v48, 1  ;;  %v5381_v26 = vrot.slane %v5380_v54, 1  ;;  %vm6843_vm5 = vcmask 1043459  }
 0x2f3   : > { %v3676_v14 = vpop.permute.xlu1 %3675  ;;  %v4290_v29 = vsel %vm4260_vm8, %v4257_v1, %v4010_v3  ;;  %v5320_v24 = vsel %vm5270_vm6, %v4631_v19, -inf  ;;  %v5301_v42 = vmax.f32 %v5299_v60, %v5300_v44  ;;  %v5361_v0 = vmax.f32 %v5359_v22, %v5360_v15 }
 0x2f4   : > { %v4160_v27 = vsel %vm4128_vm11, %v4127_v47, %v3676_v14  ;;  %7729 = vmatprep.mubr.msk.bf16.mxu1 %vm4336_vm14, %v4290_v29  ;;  %v5321_v35 = vrot.slane %v5320_v24, 4  ;;  %v5308_v17 = vmax.f32 %v5306_v12, %v5307_v61  ;;  %v5368_v37 = vmax.f32 %v5366_v58, %v5367_v45 }
 0x2f5   : > { %v4193_v30 = vsel %vm4161_vm12, %v4160_v27, %v3756_v2  ;;  %v7545_v2 = vpack.c.bf16 %v6178_v57, %v6178_v57  ;;  %v5302_v40 = vrot.slane %v5301_v42, 2  ;;  %v5375_v28 = vmax.f32 %v5373_v48, %v5374_v62 }
 0x2f6   : > { %v4226_v56 = vsel %vm11208_vm3, %v4193_v30, %v10339_v4  ;;  %v5313_v4 = vsel %vm5270_vm6, %v4629_v31, -inf  ;;  %v5322_v23 = vmax.f32 %v5320_v24, %v5321_v35  ;;  %v5309_v52 = vrot.slane %v5308_v17, 2 }
 0x2f7   : > { %v4259_v8 = vsel %vm4227_vm15, %v4226_v56, %v3932_v6  ;;  %v4012_v34 = vpop.permute.xlu1 %4011  ;;  %v5314_v59 = vrot.slane %v5313_v4, 4  ;;  %v6778_v25 = vunpack.c.l.b16 %v7545_v2  ;;  %v6842_v6 = vsel %vm6841_vm2, %v6777_v20, %v6840_v38 }
 0x2f8   : > { %v4292_v21 = vsel %vm4260_vm8, %v4259_v8, %v4012_v34  ;;  %v5303_v9 = vmax.f32 %v5301_v42, %v5302_v40  ;;  %v5323_v16 = vrot.slane %v5322_v23, 2  ;;  %v5382_v47 = vmax.f32 %v5380_v54, %v5381_v26 }
 0x2f9   : > { %7730 = vmatmul.mubr.msk.bf16.gmra.mxu1 %vm4336_vm14, %v4292_v21  ;;  %v5315_v55 = vmax.f32 %v5313_v4, %v5314_v59  ;;  %v5310_v63 = vmax.f32 %v5308_v17, %v5309_v52  ;;  %vm6845_vm11 = vcmask 1044484   ;;  %v6180_v39 = vsel %vm4013_vm1, %v5361_v0, -inf }
 0x2fa   : > { %v5304_v33 = vrot.slane %v5303_v9, 1  ;;  %v5324_v32 = vmax.f32 %v5322_v23, %v5323_v16  ;;  %v6844_v11 = vsel %vm6843_vm5, %v6778_v25, %v6842_v6  ;;  %vm6847_vm12 = vcmask 1045509  }
 0x2fb   : > { %v5316_v36 = vrot.slane %v5315_v55, 2  ;;  %v5311_v10 = vrot.slane %v5310_v63, 1  ;;  %v6183_v50 = vsel %vm4013_vm1, %v5368_v37, -inf  ;;  %vm6849_vm14 = vcmask 1046534  }
 0x2fc   : > { %v5305_v41 = vmax.f32 %v5303_v9, %v5304_v33  ;;  %v5325_v14 = vrot.slane %v5324_v32, 1  ;;  %v6186_v7 = vsel %vm4013_vm1, %v5375_v28, -inf  ;;  %v6189_v13 = vsel %vm4013_vm1, %v5382_v47, -inf }
 0x2fd   : > { %v5317_v51 = vmax.f32 %v5315_v55, %v5316_v36  ;;  %v5312_v18 = vmax.f32 %v5310_v63, %v5311_v10  ;;  %vm6851_vm15 = vcmask 1047559  }
 0x2fe   : > { %v5326_v57 = vmax.f32 %v5324_v32, %v5325_v14  ;;  %v6179_v31 = vsel %vm4013_vm1, %v5305_v41, -inf }
 0x2ff   : > { %v7707_v5 = vpop.f32.mrf.mxu1  ;;  %v5318_v1 = vrot.slane %v5317_v51, 1  ;;  %v6181_v20 = vmax.f32 %v6179_v31, %v6180_v39  ;;  %v6182_v38 = vsel %vm4013_vm1, %v5312_v18, -inf }
 0x300   : > { %v4432_v43 = vadd.f32 %v7707_v5, %v10283_v53  ;;  %v6184_v58 = vmax.f32 %v6182_v38, %v6183_v50  ;;  %v6188_v19 = vsel %vm4013_vm1, %v5326_v57, -inf }
 0x301   : > { %v4423_v3 = vpop.f32.mrf.mxu1  ;;  %v5319_v29 = vmax.f32 %v5317_v51, %v5318_v1  ;;  %v6190_v48 = vmax.f32 %v6188_v19, %v6189_v13  ;;  %v7546_v54 = vpack.c.bf16 %v6181_v20, %v6181_v20 }
 0x302   : > { %v4540_v27 = vmax.f32 %v4432_v43, 0.0  ;;  %v4424_v30 = vadd.f32 %v10283_v53, %v4423_v3  ;;  %v7547_v2 = vpack.c.bf16 %v6184_v58, %v6184_v58 }
 0x303   : > { %v6185_v46 = vsel %vm4013_vm1, %v5319_v29, -inf  ;;  %v7549_v61 = vpack.c.bf16 %v6190_v48, %v6190_v48  ;;  %v6779_v4 = vunpack.c.l.b16 %v7546_v54  ;;  %v7708_v31 = vpop.f32.mrf.mxu1 }
 0x304   : > { %v4700_v22 = vcombine.high %v4540_v27, %v4540_v27  ;;  %v4707_v56 = vrot.slane %v4540_v27, %v10289_v49  ;;  %v7516_v8 = vpack.c.bf16 %v4540_v27, %v4540_v27  ;;  %v6187_v34 = vmax.f32 %v6185_v46, %v6186_v7 }
 0x305   : > { %v10428_v12 = vmax.f32 %v4424_v30, 0.0  ;;  %v6780_v45 = vunpack.c.l.b16 %v7547_v2  ;;  %v6782_v26 = vunpack.c.l.b16 %v7549_v61  ;;  %v6846_v17 = vsel %vm6845_vm11, %v6779_v4, %v6844_v11  ;;  %v4426_v2 = vpop.f32.mrf.mxu1 }
 0x306   : > { %v4714_v60 = vrot.slane %v4700_v22, %v10289_v49  ;;  %v4715_v21 = vcombine.high %v4707_v56, %v4707_v56  ;;  %v5439_v44 = vsel %vm5270_vm6, %v4707_v56, -inf  ;;  %6493 = vst.msk [vmem:[%s10300_s14 + $0x18] sm:$0xf] %vm1304_vm7, %v7516_v8  ;;  %v7548_v15 = vpack.c.bf16 %v6187_v34, %v6187_v34 }
 0x307   : > { %v5440_v42 = vrot.slane %v5439_v44, 4  ;;  %v6848_v55 = vsel %vm6847_vm12, %v6780_v45, %v6846_v17  ;;  %v4666_v9 = vcombine.high %v10428_v12, %v10428_v12  ;;  %v4673_v47 = vrot.slane %v10428_v12, %v10289_v49 }
 0x308   : > { %v4716_v24 = vcombine.high %v4714_v60, %v4714_v60  ;;  %v5446_v59 = vsel %vm5270_vm6, %v4715_v21, -inf  ;;  %v5453_v35 = vsel %vm5270_vm6, %v4714_v60, -inf  ;;  %v6781_v62 = vunpack.c.l.b16 %v7548_v15 }
 0x309   : > { %v5447_v40 = vrot.slane %v5446_v59, 4  ;;  %v5441_v23 = vmax.f32 %v5439_v44, %v5440_v42  ;;  %v5454_v25 = vrot.slane %v5453_v35, 4  ;;  %v4680_v32 = vrot.slane %v4666_v9, %v10289_v49 }
 0x30a   : > { %v5460_v6 = vsel %vm5270_vm6, %v4716_v24, -inf  ;;  %v6850_v0 = vsel %vm6849_vm14, %v6781_v62, %v6848_v55  ;;  %v4681_v10 = vcombine.high %v4673_v47, %v4673_v47  ;;  %v5383_v11 = vsel %vm5270_vm6, %v4673_v47, -inf }
 0x30b   : > { %v5448_v52 = vmax.f32 %v5446_v59, %v5447_v40  ;;  %v5461_v37 = vrot.slane %v5460_v6, 4  ;;  %v6852_v36 = vsel %vm6851_vm15, %v6782_v26, %v6850_v0  ;;  %v5442_v16 = vrot.slane %v5441_v23, 2 }
 0x30c   : > { %v5455_v28 = vmax.f32 %v5453_v35, %v5454_v25  ;;  %v6902_v63 = vpack.c.b16 %v6852_v36, %v6852_v36  ;;  %v4682_v41 = vcombine.high %v4680_v32, %v4680_v32  ;;  %v5384_v1 = vrot.slane %v5383_v11, 4 }
 0x30d   : > { %v5449_v33 = vrot.slane %v5448_v52, 2  ;;  %v5462_v51 = vmax.f32 %v5460_v6, %v5461_v37  ;;  %v5443_v5 = vmax.f32 %v5441_v23, %v5442_v16  ;;  %v5390_v7 = vsel %vm5270_vm6, %v4681_v10, -inf }
 0x30e   : > { %v5456_v39 = vrot.slane %v5455_v28, 2  ;;  %6918 = vst.msk [vmem:[%s10445_s20] sm:$0xf] %vm1304_vm7, %v6902_v63  ;;  %v5397_v13 = vsel %vm5270_vm6, %v4680_v32, -inf  ;;  %v5385_v29 = vmax.f32 %v5383_v11, %v5384_v1  ;;  %v5391_v57 = vrot.slane %v5390_v7, 4 }
 0x30f   : > { %v5450_v43 = vmax.f32 %v5448_v52, %v5449_v33  ;;  %v5463_v50 = vrot.slane %v5462_v51, 2  ;;  %v5444_v14 = vrot.slane %v5443_v5, 1  ;;  %v5398_v20 = vrot.slane %v5397_v13, 4 }
 0x310   : > { %v5457_v3 = vmax.f32 %v5455_v28, %v5456_v39  ;;  %v5404_v38 = vsel %vm5270_vm6, %v4682_v41, -inf  ;;  %v5386_v58 = vrot.slane %v5385_v29, 2  ;;  %v5392_v46 = vmax.f32 %v5390_v7, %v5391_v57 }
 0x311   : > { %v5451_v18 = vrot.slane %v5450_v43, 1  ;;  %v5464_v27 = vmax.f32 %v5462_v51, %v5463_v50  ;;  %v5445_v22 = vmax.f32 %v5443_v5, %v5444_v14  ;;  %v5399_v8 = vmax.f32 %v5397_v13, %v5398_v20 }
 0x312   : > { %v5458_v30 = vrot.slane %v5457_v3, 1  ;;  %v5405_v34 = vrot.slane %v5404_v38, 4  ;;  %v5387_v54 = vmax.f32 %v5385_v29, %v5386_v58  ;;  %v5393_v60 = vrot.slane %v5392_v46, 2 }
 0x313   : > { %v5465_v56 = vrot.slane %v5464_v27, 1  ;;  %v5452_v19 = vmax.f32 %v5450_v43, %v5451_v18  ;;  %v5400_v44 = vrot.slane %v5399_v8, 2  ;;  %v7514_v61 = vpack.c.bf16 %v10428_v12, %v10428_v12 }
 0x314   : > { %v5459_v48 = vmax.f32 %v5457_v3, %v5458_v30  ;;  %v5406_v15 = vmax.f32 %v5404_v38, %v5405_v34  ;;  %v6192_v4 = vsel %vm4013_vm1, %v5445_v22, -inf  ;;  %v5388_v24 = vrot.slane %v5387_v54, 1 }
 0x315   : > { %v5466_v21 = vmax.f32 %v5464_v27, %v5465_v56  ;;  %v5394_v45 = vmax.f32 %v5392_v46, %v5393_v60  ;;  %v4435_v42 = vadd.f32 %v7708_v31, %v10283_v53  ;;  %v6195_v59 = vsel %vm4013_vm1, %v5452_v19, -inf  ;;  %6491 = vst.msk [vmem:[%s10300_s14 + $0x10] sm:$0xf] %vm1304_vm7, %v7514_v61 }
 0x316   : > { %v5401_v35 = vmax.f32 %v5399_v8, %v5400_v44  ;;  %v5407_v62 = vrot.slane %v5406_v15, 2  ;;  %v4427_v26 = vadd.f32 %v10283_v53, %v4426_v2  ;;  %v6198_v17 = vsel %vm4013_vm1, %v5459_v48, -inf }
 0x317   : > { %v5389_v40 = vmax.f32 %v5387_v54, %v5388_v24  ;;  %v5395_v55 = vrot.slane %v5394_v45, 1  ;;  %v4541_v23 = vmax.f32 %v4435_v42, 0.0  ;;  %v6201_v12 = vsel %vm4013_vm1, %v5466_v21, -inf }
 0x318   : > { %v5402_v25 = vrot.slane %v5401_v35, 1  ;;  %v5408_v6 = vmax.f32 %v5406_v15, %v5407_v62  ;;  %v10462_v0 = vmax.f32 %v4427_v26, 0.0 }
 0x319   : > { %v5396_v52 = vmax.f32 %v5394_v45, %v5395_v55  ;;  %v6191_v37 = vsel %vm4013_vm1, %v5389_v40, -inf  ;;  %v4717_v9 = vcombine.high %v4541_v23, %v4541_v23  ;;  %v4724_v36 = vrot.slane %v4541_v23, %v10289_v49 }
 0x31a   : > { %v5403_v16 = vmax.f32 %v5401_v35, %v5402_v25  ;;  %v5409_v28 = vrot.slane %v5408_v6, 1  ;;  %v6193_v47 = vmax.f32 %v6191_v37, %v6192_v4  ;;  %v7517_v63 = vpack.c.bf16 %v4541_v23, %v4541_v23 }
 0x31b   : > { %v6194_v33 = vsel %vm4013_vm1, %v5396_v52, -inf  ;;  %v4731_v51 = vrot.slane %v4717_v9, %v10289_v49  ;;  %v4732_v32 = vcombine.high %v4724_v36, %v4724_v36  ;;  %v5467_v5 = vsel %vm5270_vm6, %v4724_v36, -inf }
 0x31c   : > { %v5410_v39 = vmax.f32 %v5408_v6, %v5409_v28  ;;  %v6196_v10 = vmax.f32 %v6194_v33, %v6195_v59  ;;  %v6197_v11 = vsel %vm4013_vm1, %v5403_v16, -inf  ;;  %v7550_v43 = vpack.c.bf16 %v6193_v47, %v6193_v47  ;;  %6494 = vst.msk [vmem:[%s10300_s14 + $0x1c] sm:$0xf] %vm1304_vm7, %v7517_v63 }
 0x31d   : > { %v6199_v50 = vmax.f32 %v6197_v11, %v6198_v17  ;;  %v4733_v41 = vcombine.high %v4731_v51, %v4731_v51  ;;  %v5468_v1 = vrot.slane %v5467_v5, 4  ;;  %v5474_v14 = vsel %vm5270_vm6, %v4732_v32, -inf }
 0x31e   : > { %v6200_v3 = vsel %vm4013_vm1, %v5410_v39, -inf  ;;  %v7551_v7 = vpack.c.bf16 %v6196_v10, %v6196_v10  ;;  %v6783_v13 = vunpack.c.l.b16 %v7550_v43  ;;  %v5475_v18 = vrot.slane %v5474_v14, 4 }
 0x31f   : > { %v6202_v27 = vmax.f32 %v6200_v3, %v6201_v12  ;;  %v7552_v29 = vpack.c.bf16 %v6199_v50, %v6199_v50  ;;  %v5469_v57 = vmax.f32 %v5467_v5, %v5468_v1  ;;  %v5481_v31 = vsel %vm5270_vm6, %v4731_v51, -inf }
 0x320   : > { %v6784_v30 = vunpack.c.l.b16 %v7551_v7  ;;  %v5476_v20 = vmax.f32 %v5474_v14, %v5475_v18  ;;  %v5482_v38 = vrot.slane %v5481_v31, 4  ;;  %v5488_v22 = vsel %vm5270_vm6, %v4733_v41, -inf }
 0x321   : > { %v7553_v56 = vpack.c.bf16 %v6202_v27, %v6202_v27  ;;  %v6785_v58 = vunpack.c.l.b16 %v7552_v29  ;;  %v5470_v46 = vrot.slane %v5469_v57, 2  ;;  %v5489_v19 = vrot.slane %v5488_v22, 4 }
 0x322   : > { %v6853_v8 = vsel %vm6839_vm13, %v6784_v30, %v6783_v13  ;;  %v5477_v34 = vrot.slane %v5476_v20, 2  ;;  %v5483_v48 = vmax.f32 %v5481_v31, %v5482_v38  ;;  %v4683_v54 = vcombine.high %v10462_v0, %v10462_v0 }
 0x323   : > { %v6786_v2 = vunpack.c.l.b16 %v7553_v56  ;;  %v6854_v21 = vsel %vm6841_vm2, %v6785_v58, %v6853_v8  ;;  %v5471_v44 = vmax.f32 %v5469_v57, %v5470_v46  ;;  %v5490_v15 = vmax.f32 %v5488_v22, %v5489_v19 }
 0x324   : > { %v5478_v61 = vmax.f32 %v5476_v20, %v5477_v34  ;;  %v5484_v4 = vrot.slane %v5483_v48, 2  ;;  %v4690_v24 = vrot.slane %v10462_v0, %v10289_v49  ;;  %v4697_v45 = vrot.slane %v4683_v54, %v10289_v49 }
 0x325   : > { %v7711_v60 = vpop.f32.mrf.mxu1  ;;  %v5472_v59 = vrot.slane %v5471_v44, 1  ;;  %v5491_v35 = vrot.slane %v5490_v15, 2  ;;  %v7515_v62 = vpack.c.bf16 %v10462_v0, %v10462_v0  ;;  %v10486_v26 = vsel %vm6843_vm5, %v6786_v2, %v6854_v21 }
 0x326   : > { %v5479_v17 = vrot.slane %v5478_v61, 1  ;;  %v5485_v40 = vmax.f32 %v5483_v48, %v5484_v4  ;;  %v4698_v55 = vcombine.high %v4690_v24, %v4690_v24  ;;  %v4699_v23 = vcombine.high %v4697_v45, %v4697_v45 }
 0x327   : > { %v4439_v42 = vpop.f32.mrf.mxu1  ;;  %v5473_v12 = vmax.f32 %v5471_v44, %v5472_v59  ;;  %v5492_v25 = vmax.f32 %v5490_v15, %v5491_v35  ;;  %v5411_v6 = vsel %vm5270_vm6, %v4690_v24, -inf  ;;  %v5425_v52 = vsel %vm5270_vm6, %v4697_v45, -inf  ;;  %6492 = vst.msk [vmem:[%s10300_s14 + $0x14] sm:$0xf] %vm1304_vm7, %v7515_v62 }
 0x328   : > { %v5480_v37 = vmax.f32 %v5478_v61, %v5479_v17  ;;  %v5486_v9 = vrot.slane %v5485_v40, 1  ;;  %v5412_v36 = vrot.slane %v5411_v6, 4  ;;  %v5418_v0 = vsel %vm5270_vm6, %v4698_v55, -inf }
 0x329   : > { %v7712_v16 = vpop.f32.mrf.mxu1  ;;  %v5493_v28 = vrot.slane %v5492_v25, 1  ;;  %v6204_v47 = vsel %vm4013_vm1, %v5473_v12, -inf  ;;  %v5419_v63 = vrot.slane %v5418_v0, 4  ;;  %v5426_v33 = vrot.slane %v5425_v52, 4 }
 0x32a   : > { %v5487_v51 = vmax.f32 %v5485_v40, %v5486_v9  ;;  %v6207_v32 = vsel %vm4013_vm1, %v5480_v37, -inf  ;;  %v5413_v5 = vmax.f32 %v5411_v6, %v5412_v36  ;;  %v5432_v39 = vsel %vm5270_vm6, %v4699_v23, -inf }
 0x32b   : > { %v5494_v10 = vmax.f32 %v5492_v25, %v5493_v28  ;;  %v5420_v11 = vmax.f32 %v5418_v0, %v5419_v63  ;;  %v5427_v43 = vmax.f32 %v5425_v52, %v5426_v33  ;;  %v5433_v50 = vrot.slane %v5432_v39, 4  ;;  %v4442_v7 = vpop.f32.mrf.mxu1 }
 0x32c   : > { %v6210_v41 = vsel %vm4013_vm1, %v5487_v51, -inf  ;;  %v5414_v1 = vrot.slane %v5413_v5, 2  ;;  %v4448_v14 = vadd.f32 %v7711_v60, %v10283_v53  ;;  %v4440_v3 = vadd.f32 %v10283_v53, %v4439_v42 }
 0x32d   : > { %v6213_v13 = vsel %vm4013_vm1, %v5494_v10, -inf  ;;  %v5421_v18 = vrot.slane %v5420_v11, 2  ;;  %v5428_v27 = vrot.slane %v5427_v43, 2  ;;  %v5434_v29 = vmax.f32 %v5432_v39, %v5433_v50 }
 0x32e   : > { %v5415_v57 = vmax.f32 %v5413_v5, %v5414_v1  ;;  %v4544_v31 = vmax.f32 %v4448_v14, 0.0  ;;  %v10500_v30 = vmax.f32 %v4440_v3, 0.0  ;;  %v10503_v20 = vadd.f32 %v7712_v16, %v10283_v53 }
 0x32f   : > { %v5422_v38 = vmax.f32 %v5420_v11, %v5421_v18  ;;  %v5429_v22 = vmax.f32 %v5427_v43, %v5428_v27  ;;  %v5435_v56 = vrot.slane %v5434_v29, 2  ;;  %v10506_v58 = vadd.f32 %v10283_v53, %v4442_v7 }
 0x330   : > { %v5416_v46 = vrot.slane %v5415_v57, 1  ;;  %v4768_v19 = vcombine.high %v4544_v31, %v4544_v31  ;;  %v4775_v8 = vrot.slane %v4544_v31, %v10289_v49  ;;  %v7520_v34 = vpack.c.bf16 %v4544_v31, %v4544_v31 }
 0x331   : > { %v5423_v48 = vrot.slane %v5422_v38, 1  ;;  %v5430_v54 = vrot.slane %v5429_v22, 1  ;;  %v5436_v60 = vmax.f32 %v5434_v29, %v5435_v56  ;;  %v4734_v2 = vcombine.high %v10500_v30, %v10500_v30 }
 0x332   : > { %v5417_v21 = vmax.f32 %v5415_v57, %v5416_v46  ;;  %v4782_v44 = vrot.slane %v4768_v19, %v10289_v49  ;;  %v4783_v15 = vcombine.high %v4775_v8, %v4775_v8  ;;  %v5551_v61 = vsel %vm5270_vm6, %v4775_v8, -inf  ;;  %6497 = vst.msk [vmem:[%s10300_s14 + $0x28] sm:$0xf] %vm1304_vm7, %v7520_v34 }
 0x333   : > { %v5424_v53 = vmax.f32 %v5422_v38, %v5423_v48  ;;  %v5431_v4 = vmax.f32 %v5429_v22, %v5430_v54  ;;  %v5437_v24 = vrot.slane %v5436_v60, 1  ;;  %v5552_v45 = vrot.slane %v5551_v61, 4 }
 0x334   : > { %v6203_v42 = vsel %vm4013_vm1, %v5417_v21, -inf  ;;  %v4784_v59 = vcombine.high %v4782_v44, %v4782_v44  ;;  %v5558_v35 = vsel %vm5270_vm6, %v4783_v15, -inf  ;;  %v5565_v62 = vsel %vm5270_vm6, %v4782_v44, -inf }
 0x335   : > { %v5438_v17 = vmax.f32 %v5436_v60, %v5437_v24  ;;  %v6205_v40 = vmax.f32 %v6203_v42, %v6204_v47  ;;  %v6206_v55 = vsel %vm4013_vm1, %v5424_v53, -inf  ;;  %v6209_v23 = vsel %vm4013_vm1, %v5431_v4, -inf }
 0x336   : > { %v6208_v12 = vmax.f32 %v6206_v55, %v6207_v32  ;;  %v6211_v25 = vmax.f32 %v6209_v23, %v6210_v41  ;;  %v5553_v6 = vmax.f32 %v5551_v61, %v5552_v45  ;;  %v5559_v52 = vrot.slane %v5558_v35, 4 }
 0x337   : > { %v6212_v37 = vsel %vm4013_vm1, %v5438_v17, -inf  ;;  %v7554_v9 = vpack.c.bf16 %v6205_v40, %v6205_v40  ;;  %v5566_v36 = vrot.slane %v5565_v62, 4  ;;  %v5572_v0 = vsel %vm5270_vm6, %v4784_v59, -inf }
 0x338   : > { %v6214_v16 = vmax.f32 %v6212_v37, %v6213_v13  ;;  %v7555_v28 = vpack.c.bf16 %v6208_v12, %v6208_v12  ;;  %v7556_v63 = vpack.c.bf16 %v6211_v25, %v6211_v25  ;;  %v5554_v33 = vrot.slane %v5553_v6, 2 }
 0x339   : > { %v6787_v51 = vunpack.c.l.b16 %v7554_v9  ;;  %v5560_v47 = vmax.f32 %v5558_v35, %v5559_v52  ;;  %v5567_v5 = vmax.f32 %v5565_v62, %v5566_v36  ;;  %v5573_v39 = vrot.slane %v5572_v0, 4 }
 0x33a   : > { %v7557_v10 = vpack.c.bf16 %v6214_v16, %v6214_v16  ;;  %v6788_v11 = vunpack.c.l.b16 %v7555_v28  ;;  %v6789_v32 = vunpack.c.l.b16 %v7556_v63  ;;  %v5555_v43 = vmax.f32 %v5553_v6, %v5554_v33 }
 0x33b   : > { %v6856_v50 = vsel %vm6845_vm11, %v6787_v51, %v10486_v26  ;;  %v5561_v41 = vrot.slane %v5560_v47, 2  ;;  %v5568_v1 = vrot.slane %v5567_v5, 2  ;;  %v5574_v14 = vmax.f32 %v5572_v0, %v5573_v39 }
 0x33c   : > { %v6790_v3 = vunpack.c.l.b16 %v7557_v10  ;;  %v6857_v7 = vsel %vm6847_vm12, %v6788_v11, %v6856_v50  ;;  %v5556_v13 = vrot.slane %v5555_v43, 1  ;;  %v4741_v18 = vrot.slane %v10500_v30, %v10289_v49 }
 0x33d   : > { %v6858_v27 = vsel %vm6849_vm14, %v6789_v32, %v6857_v7  ;;  %v5562_v29 = vmax.f32 %v5560_v47, %v5561_v41  ;;  %v5569_v57 = vmax.f32 %v5567_v5, %v5568_v1  ;;  %v5575_v31 = vrot.slane %v5574_v14, 2 }
 0x33e   : > { %v6859_v38 = vsel %vm6851_vm15, %v6790_v3, %v6858_v27  ;;  %v5557_v22 = vmax.f32 %v5555_v43, %v5556_v13  ;;  %v4748_v26 = vrot.slane %v4734_v2, %v10289_v49  ;;  %v4749_v56 = vcombine.high %v4741_v18, %v4741_v18 }
 0x33f   : > { %v6903_v46 = vpack.c.b16 %v6859_v38, %v6859_v38  ;;  %v5563_v19 = vrot.slane %v5562_v29, 1  ;;  %v5570_v8 = vrot.slane %v5569_v57, 1  ;;  %v5576_v34 = vmax.f32 %v5574_v14, %v5575_v31  ;;  %v7715_v42 = vpop.f32.mrf.mxu1 }
 0x340   : > { %v10531_v48 = vsel %vm4013_vm1, %v5557_v22, -inf  ;;  %v4750_v54 = vcombine.high %v4748_v26, %v4748_v26  ;;  %v5495_v60 = vsel %vm5270_vm6, %v4741_v18, -inf  ;;  %v5502_v21 = vsel %vm5270_vm6, %v4749_v56, -inf }
 0x341   : > { %6919 = vst.msk [vmem:[%s10445_s20 + $0x4] sm:$0xf] %vm1304_vm7, %v6903_v46  ;;  %v5564_v44 = vmax.f32 %v5562_v29, %v5563_v19  ;;  %v5571_v15 = vmax.f32 %v5569_v57, %v5570_v8  ;;  %v5577_v61 = vrot.slane %v5576_v34, 1  ;;  %v5496_v2 = vrot.slane %v5495_v60, 4 }
 0x342   : > { %v5503_v53 = vrot.slane %v5502_v21, 4  ;;  %v5509_v4 = vsel %vm5270_vm6, %v4748_v26, -inf  ;;  %v5516_v24 = vsel %vm5270_vm6, %v4750_v54, -inf  ;;  %v7518_v45 = vpack.c.bf16 %v10500_v30, %v10500_v30  ;;  %v10553_v30 = vld [vmem:[%s11097_s4] ss:$0 sm:$0xff] }
 0x343   : > { %v5578_v59 = vmax.f32 %v5576_v34, %v5577_v61  ;;  %v6219_v35 = vsel %vm4013_vm1, %v5564_v44, -inf  ;;  %v6222_v62 = vsel %vm4013_vm1, %v5571_v15, -inf  ;;  %v5497_v17 = vmax.f32 %v5495_v60, %v5496_v2 }
 0x344   : > { %v5504_v40 = vmax.f32 %v5502_v21, %v5503_v53  ;;  %v5510_v55 = vrot.slane %v5509_v4, 4  ;;  %v5517_v23 = vrot.slane %v5516_v24, 4  ;;  %6495 = vst.msk [vmem:[%s10300_s14 + $0x20] sm:$0xf] %vm1304_vm7, %v7518_v45  ;;  %v4545_v12 = vmax.f32 %v10503_v20, 0.0 }
 0x345   : > { %v6225_v25 = vsel %vm4013_vm1, %v5578_v59, -inf  ;;  %v5498_v6 = vrot.slane %v5497_v17, 2  ;;  %v10548_v52 = vmax.f32 %v10506_v58, 0.0  ;;  %v10556_v37 = vadd.f32 %v10553_v30, %v7715_v42 }
 0x346   : > { %v5505_v9 = vrot.slane %v5504_v40, 2  ;;  %v5511_v36 = vmax.f32 %v5509_v4, %v5510_v55  ;;  %v5518_v0 = vmax.f32 %v5516_v24, %v5517_v23  ;;  %v4785_v16 = vcombine.high %v4545_v12, %v4545_v12 }
 0x347   : > { %v5499_v20 = vmax.f32 %v5497_v17, %v5498_v6  ;;  %v4792_v28 = vrot.slane %v4545_v12, %v10289_v49  ;;  %v7521_v63 = vpack.c.bf16 %v4545_v12, %v4545_v12  ;;  %v4751_v58 = vcombine.high %v10548_v52, %v10548_v52 }
 0x348   : > { %v5506_v33 = vmax.f32 %v5504_v40, %v5505_v9  ;;  %v5512_v51 = vrot.slane %v5511_v36, 2  ;;  %v5519_v47 = vrot.slane %v5518_v0, 2  ;;  %v4799_v5 = vrot.slane %v4785_v16, %v10289_v49 }
 0x349   : > { %v5500_v39 = vrot.slane %v5499_v20, 1  ;;  %v4800_v10 = vcombine.high %v4792_v28, %v4792_v28  ;;  %v5579_v11 = vsel %vm5270_vm6, %v4792_v28, -inf  ;;  %6498 = vst.msk [vmem:[%s10300_s14 + $0x2c] sm:$0xf] %vm1304_vm7, %v7521_v63  ;;  %v10567_v32 = vrot.slane %v10548_v52, %v10289_v49 }
 0x34a   : > { %v5507_v43 = vrot.slane %v5506_v33, 1  ;;  %v5513_v50 = vmax.f32 %v5511_v36, %v5512_v51  ;;  %v5520_v41 = vmax.f32 %v5518_v0, %v5519_v47  ;;  %v4801_v1 = vcombine.high %v4799_v5, %v4799_v5  ;;  %v4455_v51 = vpop.f32.mrf.mxu1 }
 0x34b   : > { %v5501_v14 = vmax.f32 %v5499_v20, %v5500_v39  ;;  %v5580_v3 = vrot.slane %v5579_v11, 4  ;;  %v5586_v7 = vsel %vm5270_vm6, %v4800_v10, -inf  ;;  %v5593_v13 = vsel %vm5270_vm6, %v4799_v5, -inf }
 0x34c   : > { %v5508_v18 = vmax.f32 %v5506_v33, %v5507_v43  ;;  %v5514_v27 = vrot.slane %v5513_v50, 1  ;;  %v5521_v29 = vrot.slane %v5520_v41, 1  ;;  %v5587_v57 = vrot.slane %v5586_v7, 4 }
 0x34d   : > { %v6215_v31 = vsel %vm4013_vm1, %v5501_v14, -inf  ;;  %v5581_v38 = vmax.f32 %v5579_v11, %v5580_v3  ;;  %v5594_v22 = vrot.slane %v5593_v13, 4  ;;  %v5600_v26 = vsel %vm5270_vm6, %v4801_v1, -inf }
 0x34e   : > { %v5515_v56 = vmax.f32 %v5513_v50, %v5514_v27  ;;  %v5522_v46 = vmax.f32 %v5520_v41, %v5521_v29  ;;  %v6217_v19 = vmax.f32 %v6215_v31, %v10531_v48  ;;  %v6218_v8 = vsel %vm4013_vm1, %v5508_v18, -inf  ;;  %v7716_v27 = vpop.f32.mrf.mxu1 }
 0x34f   : > { %v6220_v34 = vmax.f32 %v6218_v8, %v6219_v35  ;;  %v5582_v54 = vrot.slane %v5581_v38, 2  ;;  %v5588_v60 = vmax.f32 %v5586_v7, %v5587_v57  ;;  %v5595_v21 = vmax.f32 %v5593_v13, %v5594_v22 }
 0x350   : > { %v6221_v44 = vsel %vm4013_vm1, %v5515_v56, -inf  ;;  %v6224_v15 = vsel %vm4013_vm1, %v5522_v46, -inf  ;;  %v7558_v61 = vpack.c.bf16 %v6217_v19, %v6217_v19  ;;  %v5601_v2 = vrot.slane %v5600_v26, 4 }
 0x351   : > { %v6223_v53 = vmax.f32 %v6221_v44, %v6222_v62  ;;  %v6226_v4 = vmax.f32 %v6224_v15, %v6225_v25  ;;  %v7559_v24 = vpack.c.bf16 %v6220_v34, %v6220_v34  ;;  %v5583_v45 = vmax.f32 %v5581_v38, %v5582_v54 }
 0x352   : > { %v6791_v42 = vunpack.c.l.b16 %v7558_v61  ;;  %v5589_v59 = vrot.slane %v5588_v60, 2  ;;  %v5596_v17 = vrot.slane %v5595_v21, 2  ;;  %v5602_v48 = vmax.f32 %v5600_v26, %v5601_v2 }
 0x353   : > { %v7560_v40 = vpack.c.bf16 %v6223_v53, %v6223_v53  ;;  %v7561_v55 = vpack.c.bf16 %v6226_v4, %v6226_v4  ;;  %v6792_v35 = vunpack.c.l.b16 %v7559_v24  ;;  %v5584_v23 = vrot.slane %v5583_v45, 1 }
 0x354   : > { %v5590_v12 = vmax.f32 %v5588_v60, %v5589_v59  ;;  %v5597_v6 = vmax.f32 %v5595_v21, %v5596_v17  ;;  %v5603_v9 = vrot.slane %v5602_v48, 2  ;;  %v4765_v36 = vrot.slane %v4751_v58, %v10289_v49 }
 0x355   : > { %v6793_v0 = vunpack.c.l.b16 %v7560_v40  ;;  %v6794_v16 = vunpack.c.l.b16 %v7561_v55  ;;  %v6860_v62 = vsel %vm6839_vm13, %v6792_v35, %v6791_v42  ;;  %v5585_v25 = vmax.f32 %v5583_v45, %v5584_v23 }
 0x356   : > { %v5591_v20 = vrot.slane %v5590_v12, 1  ;;  %v5598_v28 = vrot.slane %v5597_v6, 1  ;;  %v5604_v63 = vmax.f32 %v5602_v48, %v5603_v9  ;;  %v4766_v33 = vcombine.high %v10567_v32, %v10567_v32 }
 0x357   : > { %v6861_v47 = vsel %vm6841_vm2, %v6793_v0, %v6860_v62  ;;  %v6228_v5 = vsel %vm4013_vm1, %v5585_v25, -inf  ;;  %v4767_v39 = vcombine.high %v4765_v36, %v4765_v36  ;;  %v5523_v58 = vsel %vm5270_vm6, %v10567_v32, -inf }
 0x358   : > { %v5592_v10 = vmax.f32 %v5590_v12, %v5591_v20  ;;  %v5599_v11 = vmax.f32 %v5597_v6, %v5598_v28  ;;  %v5605_v43 = vrot.slane %v5604_v63, 1  ;;  %v5524_v50 = vrot.slane %v5523_v58, 4 }
 0x359   : > { %v5530_v41 = vsel %vm5270_vm6, %v4766_v33, -inf  ;;  %v5537_v1 = vsel %vm5270_vm6, %v4765_v36, -inf  ;;  %v5544_v14 = vsel %vm5270_vm6, %v4767_v39, -inf  ;;  %v7519_v3 = vpack.c.bf16 %v10548_v52, %v10548_v52 }
 0x35a   : > { %v5606_v7 = vmax.f32 %v5604_v63, %v5605_v43  ;;  %v6231_v13 = vsel %vm4013_vm1, %v5592_v10, -inf  ;;  %v6234_v18 = vsel %vm4013_vm1, %v5599_v11, -inf  ;;  %v5525_v32 = vmax.f32 %v5523_v58, %v5524_v50 }
 0x35b   : > { %v5531_v29 = vrot.slane %v5530_v41, 4  ;;  %v5538_v57 = vrot.slane %v5537_v1, 4  ;;  %v5545_v31 = vrot.slane %v5544_v14, 4  ;;  %6496 = vst.msk [vmem:[%s10300_s14 + $0x24] sm:$0xf] %vm1304_vm7, %v7519_v3  ;;  %v10595_v38 = vsel %vm6843_vm5, %v6794_v16, %v6861_v47 }
 0x35c   : > { %v6237_v22 = vsel %vm4013_vm1, %v5606_v7, -inf  ;;  %v5526_v26 = vrot.slane %v5525_v32, 2  ;;  %v4548_v52 = vmax.f32 %v10556_v37, 0.0  ;;  %v4456_v56 = vadd.f32 %v10553_v30, %v4455_v51 }
 0x35d   : > { %v5532_v46 = vmax.f32 %v5530_v41, %v5531_v29  ;;  %v5539_v19 = vmax.f32 %v5537_v1, %v5538_v57  ;;  %v5546_v8 = vmax.f32 %v5544_v14, %v5545_v31  ;;  %v10601_v34 = vadd.f32 %v10553_v30, %v7716_v27 }
 0x35e   : > { %v5527_v54 = vmax.f32 %v5525_v32, %v5526_v26  ;;  %v4836_v60 = vcombine.high %v4548_v52, %v4548_v52  ;;  %v4843_v21 = vrot.slane %v4548_v52, %v10289_v49  ;;  %v7524_v44 = vpack.c.bf16 %v4548_v52, %v4548_v52 }
 0x35f   : > { %v5533_v15 = vrot.slane %v5532_v46, 2  ;;  %v5540_v61 = vrot.slane %v5539_v19, 2  ;;  %v5547_v2 = vrot.slane %v5546_v8, 2  ;;  %v10604_v53 = vmax.f32 %v4456_v56, 0.0 }
 0x360   : > { %v5528_v37 = vrot.slane %v5527_v54, 1  ;;  %v4850_v4 = vrot.slane %v4836_v60, %v10289_v49  ;;  %v4851_v24 = vcombine.high %v4843_v21, %v4843_v21  ;;  %v5663_v45 = vsel %vm5270_vm6, %v4843_v21, -inf  ;;  %6501 = vst.msk [vmem:[%s10300_s14 + $0x38] sm:$0xf] %vm1304_vm7, %v7524_v44 }
 0x361   : > { %v5534_v42 = vmax.f32 %v5532_v46, %v5533_v15  ;;  %v5541_v59 = vmax.f32 %v5539_v19, %v5540_v61  ;;  %v5548_v17 = vmax.f32 %v5546_v8, %v5547_v2  ;;  %v5664_v48 = vrot.slane %v5663_v45, 4 }
 0x362   : > { %v5529_v40 = vmax.f32 %v5527_v54, %v5528_v37  ;;  %v4852_v55 = vcombine.high %v4850_v4, %v4850_v4  ;;  %v5670_v35 = vsel %vm5270_vm6, %v4851_v24, -inf  ;;  %v5677_v23 = vsel %vm5270_vm6, %v4850_v4, -inf }
 0x363   : > { %v5535_v12 = vrot.slane %v5534_v42, 1  ;;  %v5542_v6 = vrot.slane %v5541_v59, 1  ;;  %v5549_v9 = vrot.slane %v5548_v17, 1  ;;  %v5665_v36 = vmax.f32 %v5663_v45, %v5664_v48 }
 0x364   : > { %v6227_v0 = vsel %vm4013_vm1, %v5529_v40, -inf  ;;  %v5671_v16 = vrot.slane %v5670_v35, 4  ;;  %v5678_v62 = vrot.slane %v5677_v23, 4  ;;  %v5684_v25 = vsel %vm5270_vm6, %v4852_v55, -inf }
 0x365   : > { %v5536_v20 = vmax.f32 %v5534_v42, %v5535_v12  ;;  %v5543_v28 = vmax.f32 %v5541_v59, %v5542_v6  ;;  %v5550_v63 = vmax.f32 %v5548_v17, %v5549_v9  ;;  %v6229_v33 = vmax.f32 %v6227_v0, %v6228_v5  ;;  %v4458_v42 = vpop.f32.mrf.mxu1 }
 0x366   : > { %v5666_v51 = vrot.slane %v5665_v36, 2  ;;  %v5672_v47 = vmax.f32 %v5670_v35, %v5671_v16  ;;  %v5679_v39 = vmax.f32 %v5677_v23, %v5678_v62  ;;  %v5685_v58 = vrot.slane %v5684_v25, 4 }
 0x367   : > { %v6230_v10 = vsel %vm4013_vm1, %v5536_v20, -inf  ;;  %v6233_v11 = vsel %vm4013_vm1, %v5543_v28, -inf  ;;  %v6236_v43 = vsel %vm4013_vm1, %v5550_v63, -inf  ;;  %v7562_v50 = vpack.c.bf16 %v6229_v33, %v6229_v33  ;;  %v7719_v12 = vpop.f32.mrf.mxu1 }
 0x368   : > { %v6232_v41 = vmax.f32 %v6230_v10, %v6231_v13  ;;  %v6235_v1 = vmax.f32 %v6233_v11, %v6234_v18  ;;  %v6238_v14 = vmax.f32 %v6236_v43, %v6237_v22  ;;  %v5667_v3 = vmax.f32 %v5665_v36, %v5666_v51 }
 0x369   : > { %v6795_v7 = vunpack.c.l.b16 %v7562_v50  ;;  %v5673_v32 = vrot.slane %v5672_v47, 2  ;;  %v5680_v27 = vrot.slane %v5679_v39, 2  ;;  %v5686_v29 = vmax.f32 %v5684_v25, %v5685_v58 }
 0x36a   : > { %v7563_v5 = vpack.c.bf16 %v6232_v41, %v6232_v41  ;;  %v7564_v57 = vpack.c.bf16 %v6235_v1, %v6235_v1  ;;  %v7565_v31 = vpack.c.bf16 %v6238_v14, %v6238_v14  ;;  %v5668_v26 = vrot.slane %v5667_v3, 1 }
 0x36b   : > { %v6863_v52 = vsel %vm6845_vm11, %v6795_v7, %v10595_v38  ;;  %v5674_v56 = vmax.f32 %v5672_v47, %v5673_v32  ;;  %v5681_v46 = vmax.f32 %v5679_v39, %v5680_v27  ;;  %v5687_v19 = vrot.slane %v5686_v29, 2 }
 0x36c   : > { %v6796_v8 = vunpack.c.l.b16 %v7563_v5  ;;  %v6797_v54 = vunpack.c.l.b16 %v7564_v57  ;;  %v6798_v13 = vunpack.c.l.b16 %v7565_v31  ;;  %v5669_v18 = vmax.f32 %v5667_v3, %v5668_v26 }
 0x36d   : > { %v5675_v22 = vrot.slane %v5674_v56, 1  ;;  %v5682_v60 = vrot.slane %v5681_v46, 1  ;;  %v5688_v21 = vmax.f32 %v5686_v29, %v5687_v19  ;;  %v4802_v44 = vcombine.high %v10604_v53, %v10604_v53 }
 0x36e   : > { %v6864_v15 = vsel %vm6847_vm12, %v6796_v8, %v6863_v52  ;;  %v10623_v61 = vsel %vm4013_vm1, %v5669_v18, -inf  ;;  %v4809_v38 = vrot.slane %v10604_v53, %v10289_v49  ;;  %v7522_v2 = vpack.c.bf16 %v10604_v53, %v10604_v53 }
 0x36f   : > { %v6865_v37 = vsel %vm6849_vm14, %v6797_v54, %v6864_v15  ;;  %v5676_v4 = vmax.f32 %v5674_v56, %v5675_v22  ;;  %v5683_v24 = vmax.f32 %v5681_v46, %v5682_v60  ;;  %v5689_v45 = vrot.slane %v5688_v21, 1 }
 0x370   : > { %v6866_v59 = vsel %vm6851_vm15, %v6798_v13, %v6865_v37  ;;  %v4816_v17 = vrot.slane %v4802_v44, %v10289_v49  ;;  %v4817_v48 = vcombine.high %v4809_v38, %v4809_v38  ;;  %v5607_v40 = vsel %vm5270_vm6, %v4809_v38, -inf  ;;  %6499 = vst.msk [vmem:[%s10300_s14 + $0x30] sm:$0xf] %vm1304_vm7, %v7522_v2 }
 0x371   : > { %v6904_v55 = vpack.c.b16 %v6866_v59, %v6866_v59  ;;  %v5690_v35 = vmax.f32 %v5688_v21, %v5689_v45  ;;  %v6243_v53 = vsel %vm4013_vm1, %v5676_v4, -inf  ;;  %v6246_v23 = vsel %vm4013_vm1, %v5683_v24, -inf }
 0x372   : > { %v4818_v6 = vcombine.high %v4816_v17, %v4816_v17  ;;  %v5608_v9 = vrot.slane %v5607_v40, 4  ;;  %v5614_v36 = vsel %vm5270_vm6, %v4817_v48, -inf  ;;  %v5621_v0 = vsel %vm5270_vm6, %v4816_v17, -inf }
 0x373   : > { %6920 = vst.msk [vmem:[%s10445_s20 + $0x8] sm:$0xf] %vm1304_vm7, %v6904_v55  ;;  %v6249_v16 = vsel %vm4013_vm1, %v5690_v35, -inf  ;;  %v5615_v62 = vrot.slane %v5614_v36, 4  ;;  %v5622_v25 = vrot.slane %v5621_v0, 4  ;;  %v4549_v20 = vmax.f32 %v10601_v34, 0.0 }
 0x374   : > { %v5609_v28 = vmax.f32 %v5607_v40, %v5608_v9  ;;  %v5628_v63 = vsel %vm5270_vm6, %v4818_v6, -inf  ;;  %v4459_v33 = vadd.f32 %v10553_v30, %v4458_v42  ;;  %v10646_v51 = vadd.f32 %v10553_v30, %v7719_v12 }
 0x375   : > { %v5616_v47 = vmax.f32 %v5614_v36, %v5615_v62  ;;  %v5623_v39 = vmax.f32 %v5621_v0, %v5622_v25  ;;  %v5629_v58 = vrot.slane %v5628_v63, 4  ;;  %v4853_v10 = vcombine.high %v4549_v20, %v4549_v20 }
 0x376   : > { %v5610_v11 = vrot.slane %v5609_v28, 2  ;;  %v4860_v43 = vrot.slane %v4549_v20, %v10289_v49  ;;  %v7525_v50 = vpack.c.bf16 %v4549_v20, %v4549_v20  ;;  %v10649_v41 = vmax.f32 %v4459_v33, 0.0 }
 0x377   : > { %v5617_v34 = vrot.slane %v5616_v47, 2  ;;  %v5624_v1 = vrot.slane %v5623_v39, 2  ;;  %v5630_v14 = vmax.f32 %v5628_v63, %v5629_v58  ;;  %v4867_v3 = vrot.slane %v4853_v10, %v10289_v49 }
 0x378   : > { %v5611_v7 = vmax.f32 %v5609_v28, %v5610_v11  ;;  %v4868_v32 = vcombine.high %v4860_v43, %v4860_v43  ;;  %v5691_v27 = vsel %vm5270_vm6, %v4860_v43, -inf  ;;  %6502 = vst.msk [vmem:[%s10300_s14 + $0x3c] sm:$0xf] %vm1304_vm7, %v7525_v50  ;;  %v4819_v29 = vcombine.high %v10649_v41, %v10649_v41 }
 0x379   : > { %v5618_v5 = vmax.f32 %v5616_v47, %v5617_v34  ;;  %v5625_v57 = vmax.f32 %v5623_v39, %v5624_v1  ;;  %v5631_v31 = vrot.slane %v5630_v14, 2  ;;  %v4869_v26 = vcombine.high %v4867_v3, %v4867_v3 }
 0x37a   : > { %v5612_v52 = vrot.slane %v5611_v7, 1  ;;  %v5692_v56 = vrot.slane %v5691_v27, 4  ;;  %v5698_v46 = vsel %vm5270_vm6, %v4868_v32, -inf  ;;  %v5705_v19 = vsel %vm5270_vm6, %v4867_v3, -inf }
 0x37b   : > { %v5619_v8 = vrot.slane %v5618_v5, 1  ;;  %v5626_v54 = vrot.slane %v5625_v57, 1  ;;  %v5632_v13 = vmax.f32 %v5630_v14, %v5631_v31  ;;  %v5699_v18 = vrot.slane %v5698_v46, 4 }
 0x37c   : > { %v5613_v22 = vmax.f32 %v5611_v7, %v5612_v52  ;;  %v5693_v60 = vmax.f32 %v5691_v27, %v5692_v56  ;;  %v5706_v21 = vrot.slane %v5705_v19, 4  ;;  %v5712_v44 = vsel %vm5270_vm6, %v4869_v26, -inf  ;;  %v4471_v7 = vpop.f32.mrf.mxu1 }
 0x37d   : > { %v5620_v15 = vmax.f32 %v5618_v5, %v5619_v8  ;;  %v5627_v38 = vmax.f32 %v5625_v57, %v5626_v54  ;;  %v5633_v2 = vrot.slane %v5632_v13, 1  ;;  %v5700_v37 = vmax.f32 %v5698_v46, %v5699_v18 }
 0x37e   : > { %v6239_v4 = vsel %vm4013_vm1, %v5613_v22, -inf  ;;  %v5694_v24 = vrot.slane %v5693_v60, 2  ;;  %v5707_v45 = vmax.f32 %v5705_v19, %v5706_v21  ;;  %v5713_v42 = vrot.slane %v5712_v44, 4 }
 0x37f   : > { %v5634_v59 = vmax.f32 %v5632_v13, %v5633_v2  ;;  %v6241_v17 = vmax.f32 %v6239_v4, %v10623_v61  ;;  %v6242_v48 = vsel %vm4013_vm1, %v5620_v15, -inf  ;;  %v6245_v40 = vsel %vm4013_vm1, %v5627_v38, -inf }
 0x380   : > { %v6244_v55 = vmax.f32 %v6242_v48, %v6243_v53  ;;  %v6247_v35 = vmax.f32 %v6245_v40, %v6246_v23  ;;  %v5695_v12 = vmax.f32 %v5693_v60, %v5694_v24  ;;  %v5701_v6 = vrot.slane %v5700_v37, 2  ;;  %v7720_v60 = vpop.f32.mrf.mxu1 }
 0x381   : > { %v6248_v9 = vsel %vm4013_vm1, %v5634_v59, -inf  ;;  %v7566_v36 = vpack.c.bf16 %v6241_v17, %v6241_v17  ;;  %v5708_v0 = vrot.slane %v5707_v45, 2  ;;  %v5714_v62 = vmax.f32 %v5712_v44, %v5713_v42 }
 0x382   : > { %v6250_v25 = vmax.f32 %v6248_v9, %v6249_v16  ;;  %v7567_v20 = vpack.c.bf16 %v6244_v55, %v6244_v55  ;;  %v7568_v28 = vpack.c.bf16 %v6247_v35, %v6247_v35  ;;  %v5696_v63 = vrot.slane %v5695_v12, 1 }
 0x383   : > { %v6799_v33 = vunpack.c.l.b16 %v7566_v36  ;;  %v5702_v47 = vmax.f32 %v5700_v37, %v5701_v6  ;;  %v5709_v61 = vmax.f32 %v5707_v45, %v5708_v0  ;;  %v5715_v39 = vrot.slane %v5714_v62, 2 }
 0x384   : > { %v7569_v58 = vpack.c.bf16 %v6250_v25, %v6250_v25  ;;  %v6800_v10 = vunpack.c.l.b16 %v7567_v20  ;;  %v6801_v11 = vunpack.c.l.b16 %v7568_v28  ;;  %v5697_v53 = vmax.f32 %v5695_v12, %v5696_v63 }
 0x385   : > { %v5703_v23 = vrot.slane %v5702_v47, 1  ;;  %v5710_v43 = vrot.slane %v5709_v61, 1  ;;  %v5716_v50 = vmax.f32 %v5714_v62, %v5715_v39  ;;  %v4826_v34 = vrot.slane %v10649_v41, %v10289_v49 }
 0x386   : > { %v6802_v1 = vunpack.c.l.b16 %v7569_v58  ;;  %v6867_v16 = vsel %vm6839_vm13, %v6800_v10, %v6799_v33  ;;  %v10669_v14 = vsel %vm4013_vm1, %v5697_v53, -inf  ;;  %v4833_v3 = vrot.slane %v4819_v29, %v10289_v49 }
 0x387   : > { %v6868_v32 = vsel %vm6841_vm2, %v6801_v11, %v6867_v16  ;;  %v5704_v27 = vmax.f32 %v5702_v47, %v5703_v23  ;;  %v5711_v5 = vmax.f32 %v5709_v61, %v5710_v43  ;;  %v5717_v57 = vrot.slane %v5716_v50, 1 }
 0x388   : > { %v4834_v31 = vcombine.high %v4826_v34, %v4826_v34  ;;  %v4835_v26 = vcombine.high %v4833_v3, %v4833_v3  ;;  %v5635_v52 = vsel %vm5270_vm6, %v4826_v34, -inf  ;;  %v5649_v56 = vsel %vm5270_vm6, %v4833_v3, -inf }
 0x389   : > { %v5718_v46 = vmax.f32 %v5716_v50, %v5717_v57  ;;  %v6255_v19 = vsel %vm4013_vm1, %v5704_v27, -inf  ;;  %v6258_v8 = vsel %vm4013_vm1, %v5711_v5, -inf  ;;  %v5636_v54 = vrot.slane %v5635_v52, 4 }
 0x38a   : > { %v5642_v29 = vsel %vm5270_vm6, %v4834_v31, -inf  ;;  %v5650_v13 = vrot.slane %v5649_v56, 4  ;;  %v5656_v18 = vsel %vm5270_vm6, %v4835_v26, -inf  ;;  %v7523_v22 = vpack.c.bf16 %v10649_v41, %v10649_v41 }
 0x38b   : > { %v6261_v21 = vsel %vm4013_vm1, %v5718_v46, -inf  ;;  %v5637_v44 = vmax.f32 %v5635_v52, %v5636_v54  ;;  %v5643_v15 = vrot.slane %v5642_v29, 4  ;;  %v5657_v38 = vrot.slane %v5656_v18, 4 }
 0x38c   : > { %v5651_v2 = vmax.f32 %v5649_v56, %v5650_v13  ;;  %6500 = vst.msk [vmem:[%s10300_s14 + $0x34] sm:$0xf] %vm1304_vm7, %v7523_v22  ;;  %v10685_v37 = vsel %vm6843_vm5, %v6802_v1, %v6868_v32  ;;  %v4552_v4 = vmax.f32 %v10646_v51, 0.0  ;;  %v4472_v24 = vadd.f32 %v10553_v30, %v4471_v7 }
 0x38d   : > { %v5638_v45 = vrot.slane %v5637_v44, 2  ;;  %v5644_v42 = vmax.f32 %v5642_v29, %v5643_v15  ;;  %v5658_v41 = vmax.f32 %v5656_v18, %v5657_v38  ;;  %v10690_v59 = vadd.f32 %v10553_v30, %v7720_v60 }
 0x38e   : > { %v5652_v17 = vrot.slane %v5651_v2, 2  ;;  %v4904_v48 = vcombine.high %v4552_v4, %v4552_v4  ;;  %v4911_v40 = vrot.slane %v4552_v4, %v10289_v49  ;;  %v7528_v55 = vpack.c.bf16 %v4552_v4, %v4552_v4 }
 0x38f   : > { %v5639_v35 = vmax.f32 %v5637_v44, %v5638_v45  ;;  %v5645_v12 = vrot.slane %v5644_v42, 2  ;;  %v5659_v6 = vrot.slane %v5658_v41, 2  ;;  %v10693_v9 = vmax.f32 %v4472_v24, 0.0 }
 0x390   : > { %v5653_v51 = vmax.f32 %v5651_v2, %v5652_v17  ;;  %v4918_v36 = vrot.slane %v4904_v48, %v10289_v49  ;;  %v4919_v0 = vcombine.high %v4911_v40, %v4911_v40  ;;  %v5775_v62 = vsel %vm5270_vm6, %v4911_v40, -inf  ;;  %6505 = vst.msk [vmem:[%s10300_s14 + $0x48] sm:$0xf] %vm1304_vm7, %v7528_v55 }
 0x391   : > { %v5640_v25 = vrot.slane %v5639_v35, 1  ;;  %v5646_v20 = vmax.f32 %v5644_v42, %v5645_v12  ;;  %v5660_v28 = vmax.f32 %v5658_v41, %v5659_v6  ;;  %v5776_v63 = vrot.slane %v5775_v62, 4 }
 0x392   : > { %v5654_v33 = vrot.slane %v5653_v51, 1  ;;  %v4920_v47 = vcombine.high %v4918_v36, %v4918_v36  ;;  %v5782_v61 = vsel %vm5270_vm6, %v4919_v0, -inf  ;;  %v5789_v39 = vsel %vm5270_vm6, %v4918_v36, -inf }
 0x393   : > { %v5641_v58 = vmax.f32 %v5639_v35, %v5640_v25  ;;  %v5647_v10 = vrot.slane %v5646_v20, 1  ;;  %v5661_v11 = vrot.slane %v5660_v28, 1  ;;  %v5777_v53 = vmax.f32 %v5775_v62, %v5776_v63 }
 0x394   : > { %v5655_v23 = vmax.f32 %v5653_v51, %v5654_v33  ;;  %v5783_v43 = vrot.slane %v5782_v61, 4  ;;  %v5790_v50 = vrot.slane %v5789_v39, 4  ;;  %v5796_v34 = vsel %vm5270_vm6, %v4920_v47, -inf }
 0x395   : > { %v5648_v1 = vmax.f32 %v5646_v20, %v5647_v10  ;;  %v5662_v16 = vmax.f32 %v5660_v28, %v5661_v11  ;;  %v6251_v3 = vsel %vm4013_vm1, %v5641_v58, -inf  ;;  %v5778_v7 = vrot.slane %v5777_v53, 2 }
 0x396   : > { %v6253_v32 = vmax.f32 %v6251_v3, %v10669_v14  ;;  %v6257_v27 = vsel %vm4013_vm1, %v5655_v23, -inf  ;;  %v5784_v5 = vmax.f32 %v5782_v61, %v5783_v43  ;;  %v5791_v57 = vmax.f32 %v5789_v39, %v5790_v50 }
 0x397   : > { %v6254_v31 = vsel %vm4013_vm1, %v5648_v1, -inf  ;;  %v6259_v26 = vmax.f32 %v6257_v27, %v6258_v8  ;;  %v6260_v52 = vsel %vm4013_vm1, %v5662_v16, -inf  ;;  %v5779_v56 = vmax.f32 %v5777_v53, %v5778_v7  ;;  %v4474_v7 = vpop.f32.mrf.mxu1 }
 0x398   : > { %v6256_v46 = vmax.f32 %v6254_v31, %v6255_v19  ;;  %v6262_v54 = vmax.f32 %v6260_v52, %v6261_v21  ;;  %v7570_v29 = vpack.c.bf16 %v6253_v32, %v6253_v32  ;;  %v5785_v13 = vrot.slane %v5784_v5, 2 }
 0x399   : > { %v7572_v18 = vpack.c.bf16 %v6259_v26, %v6259_v26  ;;  %v5780_v22 = vrot.slane %v5779_v56, 1  ;;  %v5792_v60 = vrot.slane %v5791_v57, 2  ;;  %v5797_v44 = vrot.slane %v5796_v34, 4 }
 0x39a   : > { %v7571_v15 = vpack.c.bf16 %v6256_v46, %v6256_v46  ;;  %v7573_v14 = vpack.c.bf16 %v6262_v54, %v6262_v54  ;;  %v6803_v38 = vunpack.c.l.b16 %v7570_v29  ;;  %v5786_v2 = vmax.f32 %v5784_v5, %v5785_v13 }
 0x39b   : > { %v6805_v4 = vunpack.c.l.b16 %v7572_v18  ;;  %v5781_v24 = vmax.f32 %v5779_v56, %v5780_v22  ;;  %v5793_v45 = vmax.f32 %v5791_v57, %v5792_v60  ;;  %v5798_v42 = vmax.f32 %v5796_v34, %v5797_v44 }
 0x39c   : > { %v6804_v8 = vunpack.c.l.b16 %v7571_v15  ;;  %v6806_v41 = vunpack.c.l.b16 %v7573_v14  ;;  %v6870_v19 = vsel %vm6845_vm11, %v6803_v38, %v10685_v37  ;;  %v5787_v21 = vrot.slane %v5786_v2, 1 }
 0x39d   : > { %v5794_v17 = vrot.slane %v5793_v45, 1  ;;  %v5799_v48 = vrot.slane %v5798_v42, 2  ;;  %v10710_v40 = vsel %vm4013_vm1, %v5781_v24, -inf  ;;  %v4870_v55 = vcombine.high %v10693_v9, %v10693_v9 }
 0x39e   : > { %v6871_v35 = vsel %vm6847_vm12, %v6804_v8, %v6870_v19  ;;  %v5788_v12 = vmax.f32 %v5786_v2, %v5787_v21  ;;  %v4877_v6 = vrot.slane %v10693_v9, %v10289_v49  ;;  %v7526_v51 = vpack.c.bf16 %v10693_v9, %v10693_v9 }
 0x39f   : > { %v6872_v37 = vsel %vm6849_vm14, %v6805_v4, %v6871_v35  ;;  %v5795_v36 = vmax.f32 %v5793_v45, %v5794_v17  ;;  %v5800_v0 = vmax.f32 %v5798_v42, %v5799_v48  ;;  %v4884_v62 = vrot.slane %v4870_v55, %v10289_v49 }
 0x3a0   : > { %v6873_v25 = vsel %vm6851_vm15, %v6806_v41, %v6872_v37  ;;  %v10723_v20 = vsel %vm4013_vm1, %v5788_v12, -inf  ;;  %v4885_v28 = vcombine.high %v4877_v6, %v4877_v6  ;;  %v5719_v63 = vsel %vm5270_vm6, %v4877_v6, -inf  ;;  %6503 = vst.msk [vmem:[%s10300_s14 + $0x40] sm:$0xf] %vm1304_vm7, %v7526_v51 }
 0x3a1   : > { %v6905_v33 = vpack.c.b16 %v6873_v25, %v6873_v25  ;;  %v5801_v47 = vrot.slane %v5800_v0, 1  ;;  %v10729_v9 = vsel %vm4013_vm1, %v5795_v36, -inf  ;;  %v4886_v61 = vcombine.high %v4884_v62, %v4884_v62 }
 0x3a2   : > { %v5720_v39 = vrot.slane %v5719_v63, 4  ;;  %v5726_v58 = vsel %vm5270_vm6, %v4885_v28, -inf  ;;  %v5733_v10 = vsel %vm5270_vm6, %v4884_v62, -inf  ;;  %v4553_v11 = vmax.f32 %v10690_v59, 0.0 }
 0x3a3   : > { %6921 = vst.msk [vmem:[%s10445_s20 + $0xc] sm:$0xf] %vm1304_vm7, %v6905_v33  ;;  %v5802_v53 = vmax.f32 %v5800_v0, %v5801_v47  ;;  %v5727_v23 = vrot.slane %v5726_v58, 4  ;;  %v5734_v43 = vrot.slane %v5733_v10, 4  ;;  %v5740_v50 = vsel %vm5270_vm6, %v4886_v61, -inf  ;;  %v7723_v47 = vpop.f32.mrf.mxu1 }
 0x3a4   : > { %v5721_v34 = vmax.f32 %v5719_v63, %v5720_v39  ;;  %v5741_v1 = vrot.slane %v5740_v50, 4  ;;  %v4921_v16 = vcombine.high %v4553_v11, %v4553_v11  ;;  %v4928_v3 = vrot.slane %v4553_v11, %v10289_v49 }
 0x3a5   : > { %v6273_v32 = vsel %vm4013_vm1, %v5802_v53, -inf  ;;  %v5728_v27 = vmax.f32 %v5726_v58, %v5727_v23  ;;  %v5735_v5 = vmax.f32 %v5733_v10, %v5734_v43  ;;  %v7529_v57 = vpack.c.bf16 %v4553_v11, %v4553_v11 }
 0x3a6   : > { %v5722_v59 = vrot.slane %v5721_v34, 2  ;;  %v5742_v31 = vmax.f32 %v5740_v50, %v5741_v1  ;;  %v4935_v26 = vrot.slane %v4921_v16, %v10289_v49  ;;  %v4936_v52 = vcombine.high %v4928_v3, %v4928_v3 }
 0x3a7   : > { %v5729_v56 = vrot.slane %v5728_v27, 2  ;;  %v5736_v46 = vrot.slane %v5735_v5, 2  ;;  %v5803_v54 = vsel %vm5270_vm6, %v4928_v3, -inf  ;;  %6506 = vst.msk [vmem:[%s10300_s14 + $0x4c] sm:$0xf] %vm1304_vm7, %v7529_v57  ;;  %v4475_v29 = vadd.f32 %v10553_v30, %v4474_v7 }
 0x3a8   : > { %v5723_v13 = vmax.f32 %v5721_v34, %v5722_v59  ;;  %v5743_v18 = vrot.slane %v5742_v31, 2  ;;  %v4937_v22 = vcombine.high %v4935_v26, %v4935_v26  ;;  %v5804_v60 = vrot.slane %v5803_v54, 4 }
 0x3a9   : > { %v5730_v44 = vmax.f32 %v5728_v27, %v5729_v56  ;;  %v5737_v15 = vmax.f32 %v5735_v5, %v5736_v46  ;;  %v5810_v14 = vsel %vm5270_vm6, %v4936_v52, -inf  ;;  %v5817_v38 = vsel %vm5270_vm6, %v4935_v26, -inf  ;;  %v4487_v27 = vpop.f32.mrf.mxu1 }
 0x3aa   : > { %v5724_v2 = vrot.slane %v5723_v13, 1  ;;  %v5744_v4 = vmax.f32 %v5742_v31, %v5743_v18  ;;  %v5805_v24 = vmax.f32 %v5803_v54, %v5804_v60  ;;  %v5811_v45 = vrot.slane %v5810_v14, 4 }
 0x3ab   : > { %v5731_v42 = vrot.slane %v5730_v44, 1  ;;  %v5738_v8 = vrot.slane %v5737_v15, 1  ;;  %v5818_v41 = vrot.slane %v5817_v38, 4  ;;  %v5824_v19 = vsel %vm5270_vm6, %v4937_v22, -inf }
 0x3ac   : > { %v5725_v21 = vmax.f32 %v5723_v13, %v5724_v2  ;;  %v5745_v17 = vrot.slane %v5744_v4, 1  ;;  %v5806_v48 = vrot.slane %v5805_v24, 2  ;;  %v5812_v55 = vmax.f32 %v5810_v14, %v5811_v45 }
 0x3ad   : > { %v5732_v35 = vmax.f32 %v5730_v44, %v5731_v42  ;;  %v5739_v12 = vmax.f32 %v5737_v15, %v5738_v8  ;;  %v5819_v6 = vmax.f32 %v5817_v38, %v5818_v41  ;;  %v5825_v51 = vrot.slane %v5824_v19, 4  ;;  %v7724_v44 = vpop.f32.mrf.mxu1 }
 0x3ae   : > { %v5746_v37 = vmax.f32 %v5744_v4, %v5745_v17  ;;  %v6263_v36 = vsel %vm4013_vm1, %v5725_v21, -inf  ;;  %v5807_v0 = vmax.f32 %v5805_v24, %v5806_v48  ;;  %v5813_v62 = vrot.slane %v5812_v55, 2 }
 0x3af   : > { %v6265_v25 = vmax.f32 %v6263_v36, %v10710_v40  ;;  %v6266_v28 = vsel %vm4013_vm1, %v5732_v35, -inf  ;;  %v6269_v63 = vsel %vm4013_vm1, %v5739_v12, -inf  ;;  %v5820_v33 = vrot.slane %v5819_v6, 2 }
 0x3b0   : > { %v6268_v61 = vmax.f32 %v6266_v28, %v10723_v20  ;;  %v6271_v39 = vmax.f32 %v6269_v63, %v10729_v9  ;;  %v6272_v58 = vsel %vm4013_vm1, %v5746_v37, -inf  ;;  %v5808_v10 = vrot.slane %v5807_v0, 1 }
 0x3b1   : > { %v6274_v11 = vmax.f32 %v6272_v58, %v6273_v32  ;;  %v7574_v53 = vpack.c.bf16 %v6265_v25, %v6265_v25  ;;  %v5814_v23 = vmax.f32 %v5812_v55, %v5813_v62  ;;  %v5821_v43 = vmax.f32 %v5819_v6, %v5820_v33 }
 0x3b2   : > { %v7575_v50 = vpack.c.bf16 %v6268_v61, %v6268_v61  ;;  %v7576_v34 = vpack.c.bf16 %v6271_v39, %v6271_v39  ;;  %v5826_v40 = vmax.f32 %v5824_v19, %v5825_v51  ;;  %v5809_v16 = vmax.f32 %v5807_v0, %v5808_v10 }
 0x3b3   : > { %v7577_v1 = vpack.c.bf16 %v6274_v11, %v6274_v11  ;;  %v5815_v3 = vrot.slane %v5814_v23, 1  ;;  %v5822_v7 = vrot.slane %v5821_v43, 1  ;;  %v6807_v5 = vunpack.c.l.b16 %v7574_v53 }
 0x3b4   : > { %v6808_v57 = vunpack.c.l.b16 %v7575_v50  ;;  %v6809_v20 = vunpack.c.l.b16 %v7576_v34  ;;  %v5827_v59 = vrot.slane %v5826_v40, 2  ;;  %v4551_v52 = vmax.f32 %v4475_v29, 0.0 }
 0x3b5   : > { %v6810_v9 = vunpack.c.l.b16 %v7577_v1  ;;  %v5816_v31 = vmax.f32 %v5814_v23, %v5815_v3  ;;  %v5823_v26 = vmax.f32 %v5821_v43, %v5822_v7  ;;  %v4496_v46 = vadd.f32 %v10553_v30, %v7723_v47 }
 0x3b6   : > { %v6874_v32 = vsel %vm6839_vm13, %v6808_v57, %v6807_v5  ;;  %v5828_v56 = vmax.f32 %v5826_v40, %v5827_v59  ;;  %v4488_v54 = vadd.f32 %v10553_v30, %v4487_v27  ;;  %v10759_v18 = vsel %vm4013_vm1, %v5809_v16, -inf }
 0x3b7   : > { %v6875_v13 = vsel %vm6841_vm2, %v6809_v20, %v6874_v32  ;;  %v10762_v22 = vsel %vm4013_vm1, %v5816_v31, -inf  ;;  %v4887_v60 = vcombine.high %v4551_v52, %v4551_v52  ;;  %v10765_v29 = vsel %vm4013_vm1, %v5823_v26, -inf }
 0x3b8   : > { %v5829_v15 = vrot.slane %v5828_v56, 1  ;;  %v4894_v14 = vrot.slane %v4551_v52, %v10289_v49  ;;  %v7527_v38 = vpack.c.bf16 %v4551_v52, %v4551_v52  ;;  %v10770_v4 = vsel %vm6843_vm5, %v6810_v9, %v6875_v13 }
 0x3b9   : > { %v4901_v2 = vrot.slane %v4887_v60, %v10289_v49  ;;  %v10772_v24 = vmax.f32 %v4496_v46, 0.0  ;;  %v10774_v45 = vmax.f32 %v4488_v54, 0.0  ;;  %v10780_v19 = vadd.f32 %v10553_v30, %v7724_v44 }
 0x3ba   : > { %v5830_v42 = vmax.f32 %v5828_v56, %v5829_v15  ;;  %v4902_v8 = vcombine.high %v4894_v14, %v4894_v14  ;;  %v5747_v41 = vsel %vm5270_vm6, %v4894_v14, -inf  ;;  %6504 = vst.msk [vmem:[%s10300_s14 + $0x44] sm:$0xf] %vm1304_vm7, %v7527_v38 }
 0x3bb   : > { %v4903_v21 = vcombine.high %v4901_v2, %v4901_v2  ;;  %v5748_v17 = vrot.slane %v5747_v41, 4  ;;  %v5761_v48 = vsel %vm5270_vm6, %v4901_v2, -inf  ;;  %v4972_v55 = vcombine.high %v10772_v24, %v10772_v24 }
 0x3bc   : > { %v6285_v35 = vsel %vm4013_vm1, %v5830_v42, -inf  ;;  %v5754_v12 = vsel %vm5270_vm6, %v4902_v8, -inf  ;;  %v5762_v6 = vrot.slane %v5761_v48, 4  ;;  %v4979_v51 = vrot.slane %v10772_v24, %v10289_v49 }
 0x3bd   : > { %v5749_v37 = vmax.f32 %v5747_v41, %v5748_v17  ;;  %v5755_v36 = vrot.slane %v5754_v12, 4  ;;  %v5768_v30 = vsel %vm5270_vm6, %v4903_v21, -inf  ;;  %v4986_v0 = vrot.slane %v4972_v55, %v10289_v49 }
 0x3be   : > { %v5763_v62 = vmax.f32 %v5761_v48, %v5762_v6  ;;  %v5769_v25 = vrot.slane %v5768_v30, 4  ;;  %v4987_v28 = vcombine.high %v4979_v51, %v4979_v51  ;;  %v5887_v63 = vsel %vm5270_vm6, %v4979_v51, -inf }
 0x3bf   : > { %v5750_v33 = vrot.slane %v5749_v37, 2  ;;  %v5756_v47 = vmax.f32 %v5754_v12, %v5755_v36  ;;  %v4988_v61 = vcombine.high %v4986_v0, %v4986_v0  ;;  %v5888_v39 = vrot.slane %v5887_v63, 4  ;;  %v4490_v12 = vpop.f32.mrf.mxu1 }
 0x3c0   : > { %v5764_v58 = vrot.slane %v5763_v62, 2  ;;  %v5770_v10 = vmax.f32 %v5768_v30, %v5769_v25  ;;  %v5894_v11 = vsel %vm5270_vm6, %v4987_v28, -inf  ;;  %v5901_v53 = vsel %vm5270_vm6, %v4986_v0, -inf }
 0x3c1   : > { %v5751_v23 = vmax.f32 %v5749_v37, %v5750_v33  ;;  %v5757_v43 = vrot.slane %v5756_v47, 2  ;;  %v5889_v50 = vmax.f32 %v5887_v63, %v5888_v39  ;;  %v5895_v34 = vrot.slane %v5894_v11, 4 }
 0x3c2   : > { %v5765_v40 = vmax.f32 %v5763_v62, %v5764_v58  ;;  %v5771_v1 = vrot.slane %v5770_v10, 2  ;;  %v5902_v16 = vrot.slane %v5901_v53, 4  ;;  %v5908_v3 = vsel %vm5270_vm6, %v4988_v61, -inf }
 0x3c3   : > { %v5752_v7 = vrot.slane %v5751_v23, 1  ;;  %v5758_v27 = vmax.f32 %v5756_v47, %v5757_v43  ;;  %v5890_v5 = vrot.slane %v5889_v50, 2  ;;  %v5896_v57 = vmax.f32 %v5894_v11, %v5895_v34 }
 0x3c4   : > { %v5766_v20 = vrot.slane %v5765_v40, 1  ;;  %v5772_v59 = vmax.f32 %v5770_v10, %v5771_v1  ;;  %v5903_v9 = vmax.f32 %v5901_v53, %v5902_v16  ;;  %v5909_v31 = vrot.slane %v5908_v3, 4 }
 0x3c5   : > { %v5753_v26 = vmax.f32 %v5751_v23, %v5752_v7  ;;  %v5759_v52 = vrot.slane %v5758_v27, 1  ;;  %v5891_v32 = vmax.f32 %v5889_v50, %v5890_v5  ;;  %v5897_v56 = vrot.slane %v5896_v57, 2 }
 0x3c6   : > { %v5767_v46 = vmax.f32 %v5765_v40, %v5766_v20  ;;  %v5773_v54 = vrot.slane %v5772_v59, 1  ;;  %v5904_v13 = vrot.slane %v5903_v9, 2  ;;  %v5910_v60 = vmax.f32 %v5908_v3, %v5909_v31 }
 0x3c7   : > { %v5760_v44 = vmax.f32 %v5758_v27, %v5759_v52  ;;  %v6275_v15 = vsel %vm4013_vm1, %v5753_v26, -inf  ;;  %v5892_v14 = vrot.slane %v5891_v32, 1  ;;  %v5898_v38 = vmax.f32 %v5896_v57, %v5897_v56 }
 0x3c8   : > { %v5774_v2 = vmax.f32 %v5772_v59, %v5773_v54  ;;  %v6277_v42 = vmax.f32 %v6275_v15, %v10759_v18  ;;  %v6281_v8 = vsel %vm4013_vm1, %v5767_v46, -inf  ;;  %v5905_v41 = vmax.f32 %v5903_v9, %v5904_v13 }
 0x3c9   : > { %v6278_v21 = vsel %vm4013_vm1, %v5760_v44, -inf  ;;  %v6283_v17 = vmax.f32 %v6281_v8, %v10765_v29  ;;  %v5893_v48 = vmax.f32 %v5891_v32, %v5892_v14  ;;  %v5899_v55 = vrot.slane %v5898_v38, 1  ;;  %v10805_v29 = vld [vmem:[%s11097_s4] ss:$0 sm:$0xff] }
 0x3ca   : > { %v6280_v6 = vmax.f32 %v6278_v21, %v10762_v22  ;;  %v6284_v51 = vsel %vm4013_vm1, %v5774_v2, -inf  ;;  %v7578_v37 = vpack.c.bf16 %v6277_v42, %v6277_v42  ;;  %v5906_v36 = vrot.slane %v5905_v41, 1 }
 0x3cb   : > { %v6286_v30 = vmax.f32 %v6284_v51, %v6285_v35  ;;  %v7580_v0 = vpack.c.bf16 %v6283_v17, %v6283_v17  ;;  %v5900_v62 = vmax.f32 %v5898_v38, %v5899_v55  ;;  %v5911_v18 = vrot.slane %v5910_v60, 2 }
 0x3cc   : > { %v7579_v25 = vpack.c.bf16 %v6280_v6, %v6280_v6  ;;  %v6811_v28 = vunpack.c.l.b16 %v7578_v37  ;;  %v5907_v63 = vmax.f32 %v5905_v41, %v5906_v36  ;;  %v4491_v33 = vadd.f32 %v10805_v29, %v4490_v12 }
 0x3cd   : > { %v7581_v22 = vpack.c.bf16 %v6286_v30, %v6286_v30  ;;  %v6813_v47 = vunpack.c.l.b16 %v7580_v0  ;;  %v5912_v61 = vmax.f32 %v5910_v60, %v5911_v18  ;;  %v10809_v39 = vsel %vm4013_vm1, %v5893_v48, -inf }
 0x3ce   : > { %v6812_v35 = vunpack.c.l.b16 %v7579_v25  ;;  %v6877_v58 = vsel %vm6845_vm11, %v6811_v28, %v10770_v4  ;;  %v10814_v10 = vsel %vm4013_vm1, %v5900_v62, -inf  ;;  %v7532_v11 = vpack.c.bf16 %v10772_v24, %v10772_v24 }
 0x3cf   : > { %v6814_v53 = vunpack.c.l.b16 %v7581_v22  ;;  %v5913_v23 = vrot.slane %v5912_v61, 1  ;;  %v4938_v43 = vcombine.high %v10774_v45, %v10774_v45  ;;  %v4945_v50 = vrot.slane %v10774_v45, %v10289_v49 }
 0x3d0   : > { %v6878_v34 = vsel %vm6847_vm12, %v6812_v35, %v6877_v58  ;;  %v10824_v40 = vsel %vm4013_vm1, %v5907_v63, -inf  ;;  %6509 = vst.msk [vmem:[%s10300_s14 + $0x58] sm:$0xf] %vm1304_vm7, %v7532_v11  ;;  %v7530_v4 = vpack.c.bf16 %v10774_v45, %v10774_v45  ;;  %v10831_v24 = vmax.f32 %v10780_v19, 0.0 }
 0x3d1   : > { %v6879_v1 = vsel %vm6849_vm14, %v6813_v47, %v6878_v34  ;;  %v4952_v16 = vrot.slane %v4938_v43, %v10289_v49  ;;  %v4953_v3 = vcombine.high %v4945_v50, %v4945_v50  ;;  %v10835_v7 = vmax.f32 %v4491_v33, 0.0 }
 0x3d2   : > { %v6880_v27 = vsel %vm6851_vm15, %v6814_v53, %v6879_v1  ;;  %v5831_v5 = vsel %vm5270_vm6, %v4945_v50, -inf  ;;  %6507 = vst.msk [vmem:[%s10300_s14 + $0x50] sm:$0xf] %vm1304_vm7, %v7530_v4  ;;  %v4989_v45 = vcombine.high %v10831_v24, %v10831_v24  ;;  %v4996_v19 = vrot.slane %v10831_v24, %v10289_v49 }
 0x3d3   : > { %v6906_v57 = vpack.c.b16 %v6880_v27, %v6880_v27  ;;  %v5914_v20 = vmax.f32 %v5912_v61, %v5913_v23  ;;  %v4954_v59 = vcombine.high %v4952_v16, %v4952_v16  ;;  %v5832_v9 = vrot.slane %v5831_v5, 4 }
 0x3d4   : > { %v5838_v31 = vsel %vm5270_vm6, %v4953_v3, -inf  ;;  %v5845_v26 = vsel %vm5270_vm6, %v4952_v16, -inf  ;;  %v5003_v52 = vrot.slane %v4989_v45, %v10289_v49  ;;  %v5004_v32 = vcombine.high %v4996_v19, %v4996_v19 }
 0x3d5   : > { %6922 = vst.msk [vmem:[%s10445_s20 + $0x10] sm:$0xf] %vm1304_vm7, %v6906_v57  ;;  %v5833_v56 = vmax.f32 %v5831_v5, %v5832_v9  ;;  %v5839_v46 = vrot.slane %v5838_v31, 4  ;;  %v5846_v54 = vrot.slane %v5845_v26, 4  ;;  %v5852_v13 = vsel %vm5270_vm6, %v4954_v59, -inf }
 0x3d6   : > { %v5853_v60 = vrot.slane %v5852_v13, 4  ;;  %v5005_v44 = vcombine.high %v5003_v52, %v5003_v52  ;;  %v5915_v15 = vsel %vm5270_vm6, %v4996_v19, -inf  ;;  %v5922_v14 = vsel %vm5270_vm6, %v5004_v32, -inf }
 0x3d7   : > { %v5834_v38 = vrot.slane %v5833_v56, 2  ;;  %v5840_v2 = vmax.f32 %v5838_v31, %v5839_v46  ;;  %v5847_v42 = vmax.f32 %v5845_v26, %v5846_v54  ;;  %v5916_v8 = vrot.slane %v5915_v15, 4 }
 0x3d8   : > { %v5854_v41 = vmax.f32 %v5852_v13, %v5853_v60  ;;  %v5923_v21 = vrot.slane %v5922_v14, 4  ;;  %v5929_v17 = vsel %vm5270_vm6, %v5003_v52, -inf  ;;  %v5936_v48 = vsel %vm5270_vm6, %v5005_v44, -inf }
 0x3d9   : > { %v5835_v55 = vmax.f32 %v5833_v56, %v5834_v38  ;;  %v5841_v12 = vrot.slane %v5840_v2, 2  ;;  %v5848_v6 = vrot.slane %v5847_v42, 2  ;;  %v5917_v51 = vmax.f32 %v5915_v15, %v5916_v8  ;;  %v7727_v15 = vpop.f32.mrf.mxu1 }
 0x3da   : > { %v5855_v37 = vrot.slane %v5854_v41, 2  ;;  %v5924_v36 = vmax.f32 %v5922_v14, %v5923_v21  ;;  %v5930_v30 = vrot.slane %v5929_v17, 4  ;;  %v5937_v0 = vrot.slane %v5936_v48, 4 }
 0x3db   : > { %v5836_v62 = vrot.slane %v5835_v55, 1  ;;  %v5842_v18 = vmax.f32 %v5840_v2, %v5841_v12  ;;  %v5849_v25 = vmax.f32 %v5847_v42, %v5848_v6  ;;  %v5918_v28 = vrot.slane %v5917_v51, 2 }
 0x3dc   : > { %v5856_v63 = vmax.f32 %v5854_v41, %v5855_v37  ;;  %v5925_v33 = vrot.slane %v5924_v36, 2  ;;  %v5931_v22 = vmax.f32 %v5929_v17, %v5930_v30  ;;  %v5938_v47 = vmax.f32 %v5936_v48, %v5937_v0 }
 0x3dd   : > { %v5837_v61 = vmax.f32 %v5835_v55, %v5836_v62  ;;  %v5843_v35 = vrot.slane %v5842_v18, 1  ;;  %v5850_v58 = vrot.slane %v5849_v25, 1  ;;  %v5919_v11 = vmax.f32 %v5917_v51, %v5918_v28 }
 0x3de   : > { %v5857_v53 = vrot.slane %v5856_v63, 1  ;;  %v5926_v23 = vmax.f32 %v5924_v36, %v5925_v33  ;;  %v5932_v43 = vrot.slane %v5931_v22, 2  ;;  %v5939_v50 = vrot.slane %v5938_v47, 2 }
 0x3df   : > { %v5844_v34 = vmax.f32 %v5842_v18, %v5843_v35  ;;  %v5851_v4 = vmax.f32 %v5849_v25, %v5850_v58  ;;  %v6287_v1 = vsel %vm4013_vm1, %v5837_v61, -inf  ;;  %v5920_v16 = vrot.slane %v5919_v11, 1 }
 0x3e0   : > { %v5858_v3 = vmax.f32 %v5856_v63, %v5857_v53  ;;  %v6289_v27 = vmax.f32 %v6287_v1, %v10809_v39  ;;  %v5927_v5 = vrot.slane %v5926_v23, 1  ;;  %v5933_v45 = vmax.f32 %v5931_v22, %v5932_v43 }
 0x3e1   : > { %v6297_v19 = vsel %vm4013_vm1, %v5914_v20, -inf  ;;  %v6290_v57 = vsel %vm4013_vm1, %v5844_v34, -inf  ;;  %v6293_v59 = vsel %vm4013_vm1, %v5851_v4, -inf  ;;  %v5940_v9 = vmax.f32 %v5938_v47, %v5939_v50 }
 0x3e2   : > { %v6292_v31 = vmax.f32 %v6290_v57, %v10814_v10  ;;  %v6295_v26 = vmax.f32 %v6293_v59, %v10824_v40  ;;  %v6296_v52 = vsel %vm4013_vm1, %v5858_v3, -inf  ;;  %v7582_v32 = vpack.c.bf16 %v6289_v27, %v6289_v27 }
 0x3e3   : > { %v6298_v56 = vmax.f32 %v6296_v52, %v6297_v19  ;;  %v5921_v46 = vmax.f32 %v5919_v11, %v5920_v16  ;;  %v5934_v54 = vrot.slane %v5933_v45, 1  ;;  %v5941_v39 = vrot.slane %v5940_v9, 1  ;;  %v4503_v11 = vpop.f32.mrf.mxu1 }
 0x3e4   : > { %v7583_v13 = vpack.c.bf16 %v6292_v31, %v6292_v31  ;;  %v5928_v60 = vmax.f32 %v5926_v23, %v5927_v5  ;;  %v7584_v20 = vpack.c.bf16 %v6295_v26, %v6295_v26  ;;  %v6815_v14 = vunpack.c.l.b16 %v7582_v32 }
 0x3e5   : > { %v7585_v44 = vpack.c.bf16 %v6298_v56, %v6298_v56  ;;  %v5935_v38 = vmax.f32 %v5933_v45, %v5934_v54  ;;  %v7533_v10 = vpack.c.bf16 %v10831_v24, %v10831_v24  ;;  %v4955_v40 = vcombine.high %v10835_v7, %v10835_v7 }
 0x3e6   : > { %v6816_v2 = vunpack.c.l.b16 %v7583_v13  ;;  %v5942_v42 = vmax.f32 %v5940_v9, %v5941_v39  ;;  %v10868_v8 = vsel %vm4013_vm1, %v5921_v46, -inf  ;;  %v4962_v41 = vrot.slane %v10835_v7, %v10289_v49 }
 0x3e7   : > { %v10873_v21 = vsel %vm4013_vm1, %v5928_v60, -inf  ;;  %6510 = vst.msk [vmem:[%s10300_s14 + $0x5c] sm:$0xf] %vm1304_vm7, %v7533_v10  ;;  %v4969_v17 = vrot.slane %v4955_v40, %v10289_v49  ;;  %v7531_v24 = vpack.c.bf16 %v10835_v7, %v10835_v7  ;;  %v4512_v48 = vadd.f32 %v10805_v29, %v7727_v15 }
 0x3e8   : > { %v6817_v55 = vunpack.c.l.b16 %v7584_v20  ;;  %v10881_v12 = vunpack.c.l.b16 %v7585_v44  ;;  %v4970_v6 = vcombine.high %v4962_v41, %v4962_v41  ;;  %v5859_v51 = vsel %vm5270_vm6, %v4962_v41, -inf }
 0x3e9   : > { %v6306_v37 = vsel %vm4013_vm1, %v5935_v38, -inf  ;;  %v4971_v36 = vcombine.high %v4969_v17, %v4969_v17  ;;  %v5860_v30 = vrot.slane %v5859_v51, 4  ;;  %v5873_v0 = vsel %vm5270_vm6, %v4969_v17, -inf  ;;  %6508 = vst.msk [vmem:[%s10300_s14 + $0x54] sm:$0xf] %vm1304_vm7, %v7531_v24 }
 0x3ea   : > { %v6881_v62 = vsel %vm6839_vm13, %v6816_v2, %v6815_v14  ;;  %v5866_v7 = vsel %vm5270_vm6, %v4970_v6, -inf  ;;  %v5874_v18 = vrot.slane %v5873_v0, 4  ;;  %v4560_v25 = vmax.f32 %v4512_v48, 0.0 }
 0x3eb   : > { %v6309_v28 = vsel %vm4013_vm1, %v5942_v42, -inf  ;;  %v5861_v63 = vmax.f32 %v5859_v51, %v5860_v30  ;;  %v5867_v33 = vrot.slane %v5866_v7, 4  ;;  %v5880_v22 = vsel %vm5270_vm6, %v4971_v36, -inf }
 0x3ec   : > { %v5875_v47 = vmax.f32 %v5873_v0, %v5874_v18  ;;  %v5881_v61 = vrot.slane %v5880_v22, 4  ;;  %v5040_v35 = vcombine.high %v4560_v25, %v4560_v25  ;;  %v5047_v58 = vrot.slane %v4560_v25, %v10289_v49 }
 0x3ed   : > { %v6882_v53 = vsel %vm6841_vm2, %v6817_v55, %v6881_v62  ;;  %v5862_v23 = vrot.slane %v5861_v63, 2  ;;  %v5868_v43 = vmax.f32 %v5866_v7, %v5867_v33  ;;  %v7536_v50 = vpack.c.bf16 %v4560_v25, %v4560_v25 }
 0x3ee   : > { %v5876_v34 = vrot.slane %v5875_v47, 2  ;;  %v5882_v4 = vmax.f32 %v5880_v22, %v5881_v61  ;;  %v5054_v1 = vrot.slane %v5040_v35, %v10289_v49  ;;  %v5055_v16 = vcombine.high %v5047_v58, %v5047_v58  ;;  %v7728_v35 = vpop.f32.mrf.mxu1 }
 0x3ef   : > { %v5863_v3 = vmax.f32 %v5861_v63, %v5862_v23  ;;  %v5869_v27 = vrot.slane %v5868_v43, 2  ;;  %v5999_v5 = vsel %vm5270_vm6, %v5047_v58, -inf  ;;  %6513 = vst.msk [vmem:[%s10300_s14 + $0x68] sm:$0xf] %vm1304_vm7, %v7536_v50  ;;  %v4504_v45 = vadd.f32 %v10805_v29, %v4503_v11 }
 0x3f0   : > { %v5877_v19 = vmax.f32 %v5875_v47, %v5876_v34  ;;  %v5883_v57 = vrot.slane %v5882_v4, 2  ;;  %v5056_v59 = vcombine.high %v5054_v1, %v5054_v1  ;;  %v6000_v9 = vrot.slane %v5999_v5, 4 }
 0x3f1   : > { %v5864_v31 = vrot.slane %v5863_v3, 1  ;;  %v5870_v26 = vmax.f32 %v5868_v43, %v5869_v27  ;;  %v6006_v52 = vsel %vm5270_vm6, %v5055_v16, -inf  ;;  %v6013_v32 = vsel %vm5270_vm6, %v5054_v1, -inf }
 0x3f2   : > { %v5878_v56 = vrot.slane %v5877_v19, 1  ;;  %v5884_v46 = vmax.f32 %v5882_v4, %v5883_v57  ;;  %v6001_v54 = vmax.f32 %v5999_v5, %v6000_v9  ;;  %v6007_v39 = vrot.slane %v6006_v52, 4 }
 0x3f3   : > { %v5865_v13 = vmax.f32 %v5863_v3, %v5864_v31  ;;  %v5871_v60 = vrot.slane %v5870_v26, 1  ;;  %v6014_v20 = vrot.slane %v6013_v32, 4  ;;  %v6020_v44 = vsel %vm5270_vm6, %v5056_v59, -inf }
 0x3f4   : > { %v5879_v15 = vmax.f32 %v5877_v19, %v5878_v56  ;;  %v5885_v14 = vrot.slane %v5884_v46, 1  ;;  %v6002_v38 = vrot.slane %v6001_v54, 2  ;;  %v6008_v10 = vmax.f32 %v6006_v52, %v6007_v39 }
 0x3f5   : > { %v5872_v40 = vmax.f32 %v5870_v26, %v5871_v60  ;;  %v6299_v2 = vsel %vm4013_vm1, %v5865_v13, -inf  ;;  %v6015_v42 = vmax.f32 %v6013_v32, %v6014_v20  ;;  %v10903_v41 = vmax.f32 %v4504_v45, 0.0 }
 0x3f6   : > { %v5886_v17 = vmax.f32 %v5884_v46, %v5885_v14  ;;  %v6301_v24 = vmax.f32 %v6299_v2, %v10868_v8  ;;  %v6305_v48 = vsel %vm4013_vm1, %v5879_v15, -inf  ;;  %v6021_v55 = vrot.slane %v6020_v44, 4 }
 0x3f7   : > { %v6302_v6 = vsel %vm4013_vm1, %v5872_v40, -inf  ;;  %v6307_v51 = vmax.f32 %v6305_v48, %v6306_v37  ;;  %v6003_v36 = vmax.f32 %v6001_v54, %v6002_v38  ;;  %v6009_v30 = vrot.slane %v6008_v10, 2 }
 0x3f8   : > { %v6304_v0 = vmax.f32 %v6302_v6, %v10873_v21  ;;  %v6308_v62 = vsel %vm4013_vm1, %v5886_v17, -inf  ;;  %v7586_v7 = vpack.c.bf16 %v6301_v24, %v6301_v24  ;;  %v6016_v18 = vrot.slane %v6015_v42, 2 }
 0x3f9   : > { %v6310_v25 = vmax.f32 %v6308_v62, %v6309_v28  ;;  %v7588_v63 = vpack.c.bf16 %v6307_v51, %v6307_v51  ;;  %v6883_v33 = vsel %vm6843_vm5, %v10881_v12, %v6882_v53  ;;  %v5006_v8 = vcombine.high %v10903_v41, %v10903_v41 }
 0x3fa   : > { %v7587_v22 = vpack.c.bf16 %v6304_v0, %v6304_v0  ;;  %v6819_v47 = vunpack.c.l.b16 %v7586_v7  ;;  %v6022_v61 = vmax.f32 %v6020_v44, %v6021_v55  ;;  %v5013_v37 = vrot.slane %v10903_v41, %v10289_v49 }
 0x3fb   : > { %v7589_v21 = vpack.c.bf16 %v6310_v25, %v6310_v25  ;;  %v6821_v58 = vunpack.c.l.b16 %v7588_v63  ;;  %v6004_v11 = vrot.slane %v6003_v36, 1  ;;  %v6010_v23 = vmax.f32 %v6008_v10, %v6009_v30  ;;  %v4506_v63 = vpop.f32.mrf.mxu1 }
 0x3fc   : > { %v6820_v43 = vunpack.c.l.b16 %v7587_v22  ;;  %v6884_v28 = vsel %vm6845_vm11, %v6819_v47, %v6883_v33  ;;  %v6017_v50 = vmax.f32 %v6015_v42, %v6016_v18  ;;  %v5020_v12 = vrot.slane %v5006_v8, %v10289_v49 }
 0x3fd   : > { %v6822_v34 = vunpack.c.l.b16 %v7589_v21  ;;  %v4515_v53 = vadd.f32 %v10805_v29, %v7728_v35  ;;  %v6023_v1 = vrot.slane %v6022_v61, 2  ;;  %v5021_v16 = vcombine.high %v5013_v37, %v5013_v37 }
 0x3fe   : > { %v6885_v4 = vsel %vm6847_vm12, %v6820_v43, %v6884_v28  ;;  %v5943_v3 = vsel %vm5270_vm6, %v5013_v37, -inf  ;;  %v6005_v5 = vmax.f32 %v6003_v36, %v6004_v11  ;;  %v6011_v45 = vrot.slane %v6010_v23, 1 }
 0x3ff   : > { %v6886_v27 = vsel %vm6849_vm14, %v6821_v58, %v6885_v4  ;;  %v5022_v19 = vcombine.high %v5020_v12, %v5020_v12  ;;  %v6018_v59 = vrot.slane %v6017_v50, 1  ;;  %v5944_v9 = vrot.slane %v5943_v3, 4 }
 0x400   : > { %v6887_v57 = vsel %vm6851_vm15, %v6822_v34, %v6886_v27  ;;  %v5950_v31 = vsel %vm5270_vm6, %v5021_v16, -inf  ;;  %v5957_v32 = vsel %vm5270_vm6, %v5020_v12, -inf  ;;  %v6024_v46 = vmax.f32 %v6022_v61, %v6023_v1 }
 0x401   : > { %v6907_v26 = vpack.c.b16 %v6887_v57, %v6887_v57  ;;  %v5951_v52 = vrot.slane %v5950_v31, 4  ;;  %v5964_v56 = vsel %vm5270_vm6, %v5022_v19, -inf  ;;  %v5945_v54 = vmax.f32 %v5943_v3, %v5944_v9 }
 0x402   : > { %v5958_v39 = vrot.slane %v5957_v32, 4  ;;  %v5965_v13 = vrot.slane %v5964_v56, 4  ;;  %v6312_v60 = vsel %vm4013_vm1, %v6005_v5, -inf  ;;  %v7534_v44 = vpack.c.bf16 %v10903_v41, %v10903_v41 }
 0x403   : > { %6923 = vst.msk [vmem:[%s10445_s20 + $0x14] sm:$0xf] %vm1304_vm7, %v6907_v26  ;;  %v5952_v20 = vmax.f32 %v5950_v31, %v5951_v52  ;;  %v4561_v15 = vmax.f32 %v4515_v53, 0.0  ;;  %v6012_v14 = vmax.f32 %v6010_v23, %v6011_v45  ;;  %v5946_v38 = vrot.slane %v5945_v54, 2 }
 0x404   : > { %v5959_v10 = vmax.f32 %v5957_v32, %v5958_v39  ;;  %v5966_v40 = vmax.f32 %v5964_v56, %v5965_v13  ;;  %6511 = vst.msk [vmem:[%s10300_s14 + $0x60] sm:$0xf] %vm1304_vm7, %v7534_v44  ;;  %v6025_v48 = vrot.slane %v6024_v46, 1  ;;  %v6019_v58 = vmax.f32 %v6017_v50, %v6018_v59 }
 0x405   : > { %v5953_v2 = vrot.slane %v5952_v20, 2  ;;  %v5057_v42 = vcombine.high %v4561_v15, %v4561_v15  ;;  %v5064_v17 = vrot.slane %v4561_v15, %v10289_v49  ;;  %v7537_v24 = vpack.c.bf16 %v4561_v15, %v4561_v15 }
 0x406   : > { %v5947_v55 = vmax.f32 %v5945_v54, %v5946_v38  ;;  %v5960_v6 = vrot.slane %v5959_v10, 2  ;;  %v5967_v51 = vrot.slane %v5966_v40, 2  ;;  %v4507_v43 = vadd.f32 %v10805_v29, %v4506_v63 }
 0x407   : > { %v5954_v36 = vmax.f32 %v5952_v20, %v5953_v2  ;;  %v5071_v41 = vrot.slane %v5057_v42, %v10289_v49  ;;  %v5072_v30 = vcombine.high %v5064_v17, %v5064_v17  ;;  %v6027_v0 = vsel %vm5270_vm6, %v5064_v17, -inf  ;;  %6514 = vst.msk [vmem:[%s10300_s14 + $0x6c] sm:$0xf] %vm1304_vm7, %v7537_v24 }
 0x408   : > { %v5948_v62 = vrot.slane %v5947_v55, 1  ;;  %v5961_v7 = vmax.f32 %v5959_v10, %v5960_v6  ;;  %v5968_v18 = vmax.f32 %v5966_v40, %v5967_v51  ;;  %v6028_v25 = vrot.slane %v6027_v0, 4 }
 0x409   : > { %v5955_v33 = vrot.slane %v5954_v36, 1  ;;  %v5073_v8 = vcombine.high %v5071_v41, %v5071_v41  ;;  %v6034_v22 = vsel %vm5270_vm6, %v5072_v30, -inf  ;;  %v6041_v47 = vsel %vm5270_vm6, %v5071_v41, -inf }
 0x40a   : > { %v5949_v61 = vmax.f32 %v5947_v55, %v5948_v62  ;;  %v5962_v37 = vrot.slane %v5961_v7, 1  ;;  %v5969_v35 = vrot.slane %v5968_v18, 1  ;;  %v6029_v21 = vmax.f32 %v6027_v0, %v6028_v25 }
 0x40b   : > { %v5956_v11 = vmax.f32 %v5954_v36, %v5955_v33  ;;  %v6035_v23 = vrot.slane %v6034_v22, 4  ;;  %v6042_v53 = vrot.slane %v6041_v47, 4  ;;  %v6026_v4 = vmax.f32 %v6024_v46, %v6025_v48  ;;  %v7731_v48 = vpop.f32.mrf.mxu1 }
 0x40c   : > { %v5963_v28 = vmax.f32 %v5961_v7, %v5962_v37  ;;  %v5970_v34 = vmax.f32 %v5968_v18, %v5969_v35  ;;  %v6311_v12 = vsel %vm4013_vm1, %v5949_v61, -inf  ;;  %v6030_v16 = vrot.slane %v6029_v21, 2 }
 0x40d   : > { %v6314_v1 = vsel %vm4013_vm1, %v5956_v11, -inf  ;;  %v6048_v3 = vsel %vm5270_vm6, %v5073_v8, -inf  ;;  %v6315_v27 = vsel %vm4013_vm1, %v6012_v14, -inf  ;;  %v6313_v5 = vmax.f32 %v6311_v12, %v6312_v60 }
 0x40e   : > { %v6317_v50 = vsel %vm4013_vm1, %v5963_v28, -inf  ;;  %v6036_v45 = vmax.f32 %v6034_v22, %v6035_v23  ;;  %v6316_v19 = vmax.f32 %v6314_v1, %v6315_v27  ;;  %v6320_v57 = vsel %vm4013_vm1, %v5970_v34, -inf }
 0x40f   : > { %v4559_v59 = vmax.f32 %v4507_v43, 0.0  ;;  %v6318_v9 = vsel %vm4013_vm1, %v6019_v58, -inf  ;;  %v6043_v31 = vmax.f32 %v6041_v47, %v6042_v53  ;;  %v6049_v26 = vrot.slane %v6048_v3, 4 }
 0x410   : > { %v6321_v52 = vsel %vm4013_vm1, %v6026_v4, -inf  ;;  %v6319_v32 = vmax.f32 %v6317_v50, %v6318_v9  ;;  %v6031_v56 = vmax.f32 %v6029_v21, %v6030_v16  ;;  %v7590_v54 = vpack.c.bf16 %v6313_v5, %v6313_v5 }
 0x411   : > { %v6322_v46 = vmax.f32 %v6320_v57, %v6321_v52  ;;  %v6037_v39 = vrot.slane %v6036_v45, 2  ;;  %v6050_v13 = vmax.f32 %v6048_v3, %v6049_v26  ;;  %v7591_v60 = vpack.c.bf16 %v6316_v19, %v6316_v19 }
 0x412   : > { %v5023_v20 = vcombine.high %v4559_v59, %v4559_v59  ;;  %v6044_v44 = vrot.slane %v6043_v31, 2  ;;  %v7592_v14 = vpack.c.bf16 %v6319_v32, %v6319_v32  ;;  %v6032_v38 = vrot.slane %v6031_v56, 1 }
 0x413   : > { %v6051_v15 = vrot.slane %v6050_v13, 2  ;;  %v5030_v10 = vrot.slane %v4559_v59, %v10289_v49  ;;  %v7593_v2 = vpack.c.bf16 %v6322_v46, %v6322_v46  ;;  %v6823_v42 = vunpack.c.l.b16 %v7590_v54 }
 0x414   : > { %v5037_v40 = vrot.slane %v5023_v20, %v10289_v49  ;;  %v6038_v17 = vmax.f32 %v6036_v45, %v6037_v39  ;;  %v7535_v24 = vpack.c.bf16 %v4559_v59, %v4559_v59  ;;  %v6824_v55 = vunpack.c.l.b16 %v7591_v60 }
 0x415   : > { %v5038_v6 = vcombine.high %v5030_v10, %v5030_v10  ;;  %v5971_v36 = vsel %vm5270_vm6, %v5030_v10, -inf  ;;  %v6045_v41 = vmax.f32 %v6043_v31, %v6044_v44  ;;  %v6052_v30 = vmax.f32 %v6050_v13, %v6051_v15  ;;  %v4519_v31 = vpop.f32.mrf.mxu1 }
 0x416   : > { %v5039_v51 = vcombine.high %v5037_v40, %v5037_v40  ;;  %v5972_v0 = vrot.slane %v5971_v36, 4  ;;  %v5985_v62 = vsel %vm5270_vm6, %v5037_v40, -inf  ;;  %6512 = vst.msk [vmem:[%s10300_s14 + $0x64] sm:$0xf] %vm1304_vm7, %v7535_v24  ;;  %v4528_v63 = vadd.f32 %v10805_v29, %v7731_v48 }
 0x417   : > { %v5978_v7 = vsel %vm5270_vm6, %v5038_v6, -inf  ;;  %v5986_v18 = vrot.slane %v5985_v62, 4  ;;  %v6039_v33 = vrot.slane %v6038_v17, 1  ;;  %v6825_v61 = vunpack.c.l.b16 %v7592_v14 }
 0x418   : > { %v5992_v25 = vsel %vm5270_vm6, %v5039_v51, -inf  ;;  %v5973_v8 = vmax.f32 %v5971_v36, %v5972_v0  ;;  %v5979_v22 = vrot.slane %v5978_v7, 4  ;;  %v6033_v37 = vmax.f32 %v6031_v56, %v6032_v38 }
 0x419   : > { %v5993_v47 = vrot.slane %v5992_v25, 4  ;;  %v5987_v35 = vmax.f32 %v5985_v62, %v5986_v18  ;;  %v4564_v21 = vmax.f32 %v4528_v63, 0.0  ;;  %v6888_v58 = vsel %vm6839_vm13, %v6824_v55, %v6823_v42 }
 0x41a   : > { %v5974_v11 = vrot.slane %v5973_v8, 2  ;;  %v5980_v23 = vmax.f32 %v5978_v7, %v5979_v22  ;;  %v6046_v28 = vrot.slane %v6045_v41, 1  ;;  %v6053_v34 = vrot.slane %v6052_v30, 1 }
 0x41b   : > { %v5994_v43 = vmax.f32 %v5992_v25, %v5993_v47  ;;  %v5988_v12 = vrot.slane %v5987_v35, 2  ;;  %v7540_v53 = vpack.c.bf16 %v4564_v21, %v4564_v21  ;;  %v6040_v4 = vmax.f32 %v6038_v17, %v6039_v33 }
 0x41c   : > { %v5975_v1 = vmax.f32 %v5973_v8, %v5974_v11  ;;  %v5981_v16 = vrot.slane %v5980_v23, 2  ;;  %v6826_v27 = vunpack.c.l.b16 %v7593_v2  ;;  %v5108_v50 = vcombine.high %v4564_v21, %v4564_v21 }
 0x41d   : > { %v5995_v3 = vrot.slane %v5994_v43, 2  ;;  %v5989_v5 = vmax.f32 %v5987_v35, %v5988_v12  ;;  %v5115_v45 = vrot.slane %v4564_v21, %v10289_v49  ;;  %6517 = vst.msk [vmem:[%s10300_s14 + $0x78] sm:$0xf] %vm1304_vm7, %v7540_v53  ;;  %v6324_v19 = vsel %vm4013_vm1, %v6033_v37, -inf  ;;  %v7732_v37 = vpop.f32.mrf.mxu1 }
 0x41e   : > { %v5976_v57 = vrot.slane %v5975_v1, 1  ;;  %v5982_v59 = vmax.f32 %v5980_v23, %v5981_v16  ;;  %v6889_v26 = vsel %vm6841_vm2, %v6825_v61, %v6888_v58  ;;  %v6047_v52 = vmax.f32 %v6045_v41, %v6046_v28 }
 0x41f   : > { %v5996_v9 = vmax.f32 %v5994_v43, %v5995_v3  ;;  %v6054_v32 = vmax.f32 %v6052_v30, %v6053_v34  ;;  %v5990_v56 = vrot.slane %v5989_v5, 1  ;;  %v6327_v46 = vsel %vm4013_vm1, %v6040_v4, -inf }
 0x420   : > { %v5977_v54 = vmax.f32 %v5975_v1, %v5976_v57  ;;  %v5983_v39 = vrot.slane %v5982_v59, 1  ;;  %v5122_v20 = vrot.slane %v5108_v50, %v10289_v49  ;;  %v6111_v44 = vsel %vm5270_vm6, %v5115_v45, -inf }
 0x421   : > { %v5997_v13 = vrot.slane %v5996_v9, 1  ;;  %v5991_v60 = vmax.f32 %v5989_v5, %v5990_v56  ;;  %v4520_v15 = vadd.f32 %v10805_v29, %v4519_v31  ;;  %v5123_v40 = vcombine.high %v5115_v45, %v5115_v45 }
 0x422   : > { %v5984_v14 = vmax.f32 %v5982_v59, %v5983_v39  ;;  %v6323_v10 = vsel %vm4013_vm1, %v5977_v54, -inf  ;;  %v6330_v2 = vsel %vm4013_vm1, %v6047_v52, -inf  ;;  %v6333_v42 = vsel %vm4013_vm1, %v6054_v32, -inf }
 0x423   : > { %v5998_v38 = vmax.f32 %v5996_v9, %v5997_v13  ;;  %v6325_v17 = vmax.f32 %v6323_v10, %v6324_v19  ;;  %v6329_v24 = vsel %vm4013_vm1, %v5991_v60, -inf  ;;  %v6112_v51 = vrot.slane %v6111_v44, 4 }
 0x424   : > { %v6326_v48 = vsel %vm4013_vm1, %v5984_v14, -inf  ;;  %v6331_v55 = vmax.f32 %v6329_v24, %v6330_v2  ;;  %v5124_v0 = vcombine.high %v5122_v20, %v5122_v20  ;;  %v6890_v7 = vsel %vm6843_vm5, %v6826_v27, %v6889_v26 }
 0x425   : > { %v6332_v6 = vsel %vm4013_vm1, %v5998_v38, -inf  ;;  %v6328_v36 = vmax.f32 %v6326_v48, %v6327_v46  ;;  %v7594_v30 = vpack.c.bf16 %v6325_v17, %v6325_v17  ;;  %v6118_v18 = vsel %vm5270_vm6, %v5123_v40, -inf }
 0x426   : > { %v6334_v41 = vmax.f32 %v6332_v6, %v6333_v42  ;;  %v7596_v62 = vpack.c.bf16 %v6331_v55, %v6331_v55  ;;  %v4562_v25 = vmax.f32 %v4520_v15, 0.0  ;;  %v6125_v22 = vsel %vm5270_vm6, %v5122_v20, -inf }
 0x427   : > { %v7595_v63 = vpack.c.bf16 %v6328_v36, %v6328_v36  ;;  %v6827_v8 = vunpack.c.l.b16 %v7594_v30  ;;  %v6113_v61 = vmax.f32 %v6111_v44, %v6112_v51  ;;  %v6132_v11 = vsel %vm5270_vm6, %v5124_v0, -inf }
 0x428   : > { %v7597_v33 = vpack.c.bf16 %v6334_v41, %v6334_v41  ;;  %v6829_v47 = vunpack.c.l.b16 %v7596_v62  ;;  %v6119_v23 = vrot.slane %v6118_v18, 4  ;;  %v6126_v43 = vrot.slane %v6125_v22, 4 }
 0x429   : > { %v6828_v35 = vunpack.c.l.b16 %v7595_v63  ;;  %v6891_v58 = vsel %vm6845_vm11, %v6827_v8, %v6890_v7  ;;  %v5074_v28 = vcombine.high %v4562_v25, %v4562_v25  ;;  %v5081_v12 = vrot.slane %v4562_v25, %v10289_v49 }
 0x42a   : > { %v6830_v21 = vunpack.c.l.b16 %v7597_v33  ;;  %v7538_v53 = vpack.c.bf16 %v4562_v25, %v4562_v25  ;;  %v4531_v4 = vadd.f32 %v10805_v29, %v7732_v37  ;;  %v6133_v16 = vrot.slane %v6132_v11, 4 }
 0x42b   : > { %v6892_v34 = vsel %vm6847_vm12, %v6828_v35, %v6891_v58  ;;  %v5088_v3 = vrot.slane %v5074_v28, %v10289_v49  ;;  %v6114_v5 = vrot.slane %v6113_v61, 2  ;;  %v5089_v50 = vcombine.high %v5081_v12, %v5081_v12 }
 0x42c   : > { %v6893_v1 = vsel %vm6849_vm14, %v6829_v47, %v6892_v34  ;;  %v6055_v45 = vsel %vm5270_vm6, %v5081_v12, -inf  ;;  %6515 = vst.msk [vmem:[%s10300_s14 + $0x70] sm:$0xf] %vm1304_vm7, %v7538_v53  ;;  %v6120_v57 = vmax.f32 %v6118_v18, %v6119_v23  ;;  %v6127_v59 = vmax.f32 %v6125_v22, %v6126_v43 }
 0x42d   : > { %v6894_v27 = vsel %vm6851_vm15, %v6830_v21, %v6893_v1  ;;  %v5090_v9 = vcombine.high %v5088_v3, %v5088_v3  ;;  %v6056_v31 = vrot.slane %v6055_v45, 4  ;;  %v6062_v26 = vsel %vm5270_vm6, %v5089_v50, -inf }
 0x42e   : > { %v6908_v19 = vpack.c.b16 %v6894_v27, %v6894_v27  ;;  %v6069_v52 = vsel %vm5270_vm6, %v5088_v3, -inf  ;;  %v4565_v32 = vmax.f32 %v4531_v4, 0.0  ;;  %v6134_v56 = vmax.f32 %v6132_v11, %v6133_v16  ;;  %v4522_v11 = vpop.f32.mrf.mxu1 }
 0x42f   : > { %v6063_v46 = vrot.slane %v6062_v26, 4  ;;  %v6070_v54 = vrot.slane %v6069_v52, 4  ;;  %v6076_v39 = vsel %vm5270_vm6, %v5090_v9, -inf  ;;  %v6057_v13 = vmax.f32 %v6055_v45, %v6056_v31 }
 0x430   : > { %6924 = vst.msk [vmem:[%s10445_s20 + $0x18] sm:$0xf] %vm1304_vm7, %v6908_v19  ;;  %v6077_v60 = vrot.slane %v6076_v39, 4  ;;  %v5125_v20 = vcombine.high %v4565_v32, %v4565_v32  ;;  %v5132_v44 = vrot.slane %v4565_v32, %v10289_v49  ;;  %v6121_v15 = vrot.slane %v6120_v57, 2 }
 0x431   : > { %v6064_v14 = vmax.f32 %v6062_v26, %v6063_v46  ;;  %v6071_v38 = vmax.f32 %v6069_v52, %v6070_v54  ;;  %v7541_v10 = vpack.c.bf16 %v4565_v32, %v4565_v32  ;;  %v6128_v40 = vrot.slane %v6127_v59, 2 }
 0x432   : > { %v6058_v2 = vrot.slane %v6057_v13, 2  ;;  %v6078_v42 = vmax.f32 %v6076_v39, %v6077_v60  ;;  %v6135_v17 = vrot.slane %v6134_v56, 2  ;;  %v5139_v55 = vrot.slane %v5125_v20, %v10289_v49 }
 0x433   : > { %v6065_v24 = vrot.slane %v6064_v14, 2  ;;  %v6072_v48 = vrot.slane %v6071_v38, 2  ;;  %6518 = vst.msk [vmem:[%s10300_s14 + $0x7c] sm:$0xf] %vm1304_vm7, %v7541_v10  ;;  %v6115_v6 = vmax.f32 %v6113_v61, %v6114_v5  ;;  %v6139_v51 = vsel %vm5270_vm6, %v5132_v44, -inf }
 0x434   : > { %v6122_v36 = vmax.f32 %v6120_v57, %v6121_v15  ;;  %v6059_v30 = vmax.f32 %v6057_v13, %v6058_v2  ;;  %v6079_v62 = vrot.slane %v6078_v42, 2  ;;  %v5140_v7 = vcombine.high %v5132_v44, %v5132_v44 }
 0x435   : > { %v6066_v41 = vmax.f32 %v6064_v14, %v6065_v24  ;;  %v6073_v0 = vmax.f32 %v6071_v38, %v6072_v48  ;;  %v6129_v18 = vmax.f32 %v6127_v59, %v6128_v40  ;;  %v6136_v25 = vmax.f32 %v6134_v56, %v6135_v17 }
 0x436   : > { %v5141_v63 = vcombine.high %v5139_v55, %v5139_v55  ;;  %v6140_v33 = vrot.slane %v6139_v51, 4  ;;  %v6116_v8 = vrot.slane %v6115_v6, 1  ;;  %v6123_v22 = vrot.slane %v6122_v36, 1 }
 0x437   : > { %v6067_v47 = vrot.slane %v6066_v41, 1  ;;  %v6153_v37 = vsel %vm5270_vm6, %v5139_v55, -inf  ;;  %v6060_v35 = vrot.slane %v6059_v30, 1  ;;  %v6074_v21 = vrot.slane %v6073_v0, 1 }
 0x438   : > { %v6080_v61 = vmax.f32 %v6078_v42, %v6079_v62  ;;  %v6146_v58 = vsel %vm5270_vm6, %v5140_v7, -inf  ;;  %v6130_v23 = vrot.slane %v6129_v18, 1  ;;  %v6137_v43 = vrot.slane %v6136_v25, 1 }
 0x439   : > { %v6141_v28 = vmax.f32 %v6139_v51, %v6140_v33  ;;  %v6160_v34 = vsel %vm5270_vm6, %v5141_v63, -inf  ;;  %v6117_v12 = vmax.f32 %v6115_v6, %v6116_v8  ;;  %v6154_v53 = vrot.slane %v6153_v37, 4 }
 0x43a   : > { %v6124_v4 = vmax.f32 %v6122_v36, %v6123_v22  ;;  %v6068_v1 = vmax.f32 %v6066_v41, %v6067_v47  ;;  %v6147_v16 = vrot.slane %v6146_v58, 4  ;;  %v4523_v3 = vadd.f32 %v10805_v29, %v4522_v11 }
 0x43b   : > { %v6061_v27 = vmax.f32 %v6059_v30, %v6060_v35  ;;  %v6075_v5 = vmax.f32 %v6073_v0, %v6074_v21  ;;  %v6081_v50 = vrot.slane %v6080_v61, 1  ;;  %v6161_v45 = vrot.slane %v6160_v34, 4 }
 0x43c   : > { %v6131_v19 = vmax.f32 %v6129_v18, %v6130_v23  ;;  %v6138_v57 = vmax.f32 %v6136_v25, %v6137_v43  ;;  %v6142_v59 = vrot.slane %v6141_v28, 2  ;;  %v6336_v9 = vsel %vm4013_vm1, %v6117_v12, -inf }
 0x43d   : > { %v6155_v31 = vmax.f32 %v6153_v37, %v6154_v53  ;;  %v6339_v26 = vsel %vm4013_vm1, %v6124_v4, -inf  ;;  %v6338_v52 = vsel %vm4013_vm1, %v6068_v1, -inf  ;;  %v6148_v32 = vmax.f32 %v6146_v58, %v6147_v16 }
 0x43e   : > { %v4563_v56 = vmax.f32 %v4523_v3, 0.0  ;;  %v6082_v46 = vmax.f32 %v6080_v61, %v6081_v50  ;;  %v6335_v54 = vsel %vm4013_vm1, %v6061_v27, -inf  ;;  %v6341_v29 = vsel %vm4013_vm1, %v6075_v5, -inf }
 0x43f   : > { %v6162_v39 = vmax.f32 %v6160_v34, %v6161_v45  ;;  %v6342_v13 = vsel %vm4013_vm1, %v6131_v19, -inf  ;;  %v6345_v60 = vsel %vm4013_vm1, %v6138_v57, -inf  ;;  %v6143_v20 = vmax.f32 %v6141_v28, %v6142_v59 }
 0x440   : > { %v5091_v44 = vcombine.high %v4563_v56, %v4563_v56  ;;  %v6340_v15 = vmax.f32 %v6338_v52, %v6339_v26  ;;  %v6156_v14 = vrot.slane %v6155_v31, 2  ;;  %v5098_v38 = vrot.slane %v4563_v56, %v10289_v49 }
 0x441   : > { %v7539_v10 = vpack.c.bf16 %v4563_v56, %v4563_v56  ;;  %v6337_v40 = vmax.f32 %v6335_v54, %v6336_v9  ;;  %v6343_v2 = vmax.f32 %v6341_v29, %v6342_v13  ;;  %v6149_v42 = vrot.slane %v6148_v32, 2 }
 0x442   : > { %v5105_v17 = vrot.slane %v5091_v44, %v10289_v49  ;;  %v6344_v24 = vsel %vm4013_vm1, %v6082_v46, -inf  ;;  %v6163_v48 = vrot.slane %v6162_v39, 2  ;;  %v5106_v55 = vcombine.high %v5098_v38, %v5098_v38 }
 0x443   : > { %v6083_v6 = vsel %vm5270_vm6, %v5098_v38, -inf  ;;  %6516 = vst.msk [vmem:[%s10300_s14 + $0x74] sm:$0xf] %vm1304_vm7, %v7539_v10  ;;  %v6144_v51 = vrot.slane %v6143_v20, 1  ;;  %v7599_v0 = vpack.c.bf16 %v6340_v15, %v6340_v15  ;;  %v6157_v62 = vmax.f32 %v6155_v31, %v6156_v14  ;;  %s7894_s14 = scalar_lea.vmem %s11040_s11, 512 }
 0x444   : > { %v5107_v36 = vcombine.high %v5105_v17, %v5105_v17  ;;  %v6084_v41 = vrot.slane %v6083_v6, 4  ;;  %v6097_v30 = vsel %vm5270_vm6, %v5105_v17, -inf  ;;  %v6090_v7 = vsel %vm5270_vm6, %v5106_v55, -inf  ;;  %p7895_p12 = scmp.ne.s32.totalorder %s11040_s11, %s7894_s14  ;;  %p7902_p2 = scmp.lt.s32.totalorder %s7900_s28, %s7894_s14 }
 0x445   : > { %v6098_v18 = vrot.slane %v6097_v30, 4  ;;  %v6150_v25 = vmax.f32 %v6148_v32, %v6149_v42  ;;  %v6091_v63 = vrot.slane %v6090_v7, 4  ;;  %v7598_v8 = vpack.c.bf16 %v6337_v40, %v6337_v40 }
 0x446   : > { %v6085_v49 = vmax.f32 %v6083_v6, %v6084_v41  ;;  %v6104_v33 = vsel %vm5270_vm6, %v5107_v36, -inf  ;;  %v6164_v22 = vmax.f32 %v6162_v39, %v6163_v48  ;;  %v6346_v35 = vmax.f32 %v6344_v24, %v6345_v60  ;;  %p7896_p13 = pnand %p7895_p12, %p8059_p4  ;;  %p7903_p3 = por %p7902_p2, %p7901_p1 }
 0x447   : > { %v6099_v47 = vmax.f32 %v6097_v30, %v6098_v18  ;;  %v6105_v37 = vrot.slane %v6104_v33, 4  ;;  %v7600_v21 = vpack.c.bf16 %v6343_v2, %v6343_v2  ;;  %v6092_v58 = vmax.f32 %v6090_v7, %v6091_v63 }
 0x448   : > { %v6086_v61 = vrot.slane %v6085_v49, 2  ;;  %v6832_v11 = vunpack.c.l.b16 %v7599_v0  ;;  %v6158_v23 = vrot.slane %v6157_v62, 1  ;;  %v6145_v34 = vmax.f32 %v6143_v20, %v6144_v51  ;;  %p7897_p0 = pneg %p7896_p13 }
 0x449   : > { %v6100_v43 = vrot.slane %v6099_v47, 2  ;;  %v6106_v28 = vmax.f32 %v6104_v33, %v6105_v37  ;;  %v6151_v12 = vrot.slane %v6150_v25, 1  ;;  %v6093_v4 = vrot.slane %v6092_v58, 2 }
 0x44a   : > { %v6087_v53 = vmax.f32 %v6085_v49, %v6086_v61  ;;  %v6831_v1 = vunpack.c.l.b16 %v7598_v8  ;;  %v6165_v16 = vrot.slane %v6164_v22, 1  ;;  %v7601_v5 = vpack.c.bf16 %v6346_v35, %v6346_v35  ;;  %p7904_p5 = pnand %p7903_p3, %p7897_p0 }
 0x44b   : > { %v6101_v3 = vmax.f32 %v6099_v47, %v6100_v43  ;;  %v6107_v27 = vrot.slane %v6106_v28, 2  ;;  %v6833_v50 = vunpack.c.l.b16 %v7600_v21  ;;  %v6094_v19 = vmax.f32 %v6092_v58, %v6093_v4 }
 0x44c   : > { %v6088_v45 = vrot.slane %v6087_v53, 1  ;;  %v6895_v57 = vsel %vm6839_vm13, %v6832_v11, %v6831_v1  ;;  %v6159_v59 = vmax.f32 %v6157_v62, %v6158_v23  ;;  %v6152_v26 = vmax.f32 %v6150_v25, %v6151_v12 }
 0x44d   : > { %v6102_v9 = vrot.slane %v6101_v3, 1  ;;  %v6108_v31 = vmax.f32 %v6106_v28, %v6107_v27  ;;  %v6095_v32 = vrot.slane %v6094_v19, 1  ;;  %v6166_v56 = vmax.f32 %v6164_v22, %v6165_v16 }
 0x44e   : > { %v6089_v52 = vmax.f32 %v6087_v53, %v6088_v45  ;;  %v6348_v46 = vsel %vm4013_vm1, %v6145_v34, -inf  ;;  %v6834_v39 = vunpack.c.l.b16 %v7601_v5  ;;  %v6896_v13 = vsel %vm6841_vm2, %v6833_v50, %v6895_v57 }
 0x44f   : > { %v6103_v54 = vmax.f32 %v6101_v3, %v6102_v9  ;;  %v6109_v29 = vrot.slane %v6108_v31, 1  ;;  %v6096_v60 = vmax.f32 %v6094_v19, %v6095_v32  ;;  %v6354_v44 = vsel %vm4013_vm1, %v6159_v59, -inf }
 0x450   : > { %v6347_v20 = vsel %vm4013_vm1, %v6089_v52, -inf  ;;  %v6351_v10 = vsel %vm4013_vm1, %v6152_v26, -inf  ;;  %v6357_v42 = vsel %vm4013_vm1, %v6166_v56, -inf  ;;  %v6897_v51 = vsel %vm6843_vm5, %v6834_v39, %v6896_v13 }
 0x451   : > { %v6110_v15 = vmax.f32 %v6108_v31, %v6109_v29  ;;  %v6349_v14 = vmax.f32 %v6347_v20, %v6348_v46  ;;  %v6353_v38 = vsel %vm4013_vm1, %v6103_v54, -inf  ;;  %v6350_v40 = vsel %vm4013_vm1, %v6096_v60, -inf }
 0x452   : > { %v6355_v2 = vmax.f32 %v6353_v38, %v6354_v44  ;;  %v6352_v17 = vmax.f32 %v6350_v40, %v6351_v10 }
 0x453   : > { %v6356_v24 = vsel %vm4013_vm1, %v6110_v15, -inf  ;;  %v7602_v48 = vpack.c.bf16 %v6349_v14, %v6349_v14 }
 0x454   : > { %v6358_v55 = vmax.f32 %v6356_v24, %v6357_v42  ;;  %v7604_v6 = vpack.c.bf16 %v6355_v2, %v6355_v2  ;;  %v7603_v36 = vpack.c.bf16 %v6352_v17, %v6352_v17 }
 0x455   : > { %v6835_v41 = vunpack.c.l.b16 %v7602_v48 }
 0x456   : > { %v7605_v30 = vpack.c.bf16 %v6358_v55, %v6358_v55  ;;  %v6837_v0 = vunpack.c.l.b16 %v7604_v6  ;;  %v6836_v62 = vunpack.c.l.b16 %v7603_v36 }
 0x457   : > { %v6898_v7 = vsel %vm6845_vm11, %v6835_v41, %v6897_v51 }
 0x458   : > { %v6838_v18 = vunpack.c.l.b16 %v7605_v30  ;;  %v6899_v25 = vsel %vm6847_vm12, %v6836_v62, %v6898_v7 }
 0x459   : > { %v6900_v49 = vsel %vm6849_vm14, %v6837_v0, %v6899_v25 }
 0x45a   : > { %v6901_v63 = vsel %vm6851_vm15, %v6838_v18, %v6900_v49 }
 0x45b   : > { %v6909_v33 = vpack.c.b16 %v6901_v63, %v6901_v63 }
 0x45d   : > { %6925 = vst.msk [vmem:[%s10445_s20 + $0x1c] sm:$0xf] %vm1304_vm7, %v6909_v33 }
 0x45e   : > { %7907 = shalt.err (!%p7904_p5)
}
 0x45f   : > { %s7908_s15 = scalar_lea.hbm %s11038_s17, 512  ;;  %s7912_s19 = scalar_lea.hbm %s11099_s6, 1024 }
 0x460   : > { %p7909_p6 = scmp.ne.s32.totalorder %s11038_s17, %s7908_s15  ;;  %p7913_p10 = scmp.lt.s32.totalorder %s11038_s17, %s11099_s6 }
 0x461   : > { %p7914_p11 = scmp.lt.s32.totalorder %s7912_s19, %s7908_s15 }
 0x462   : > { %p7910_p7 = pnand %p7909_p6, %p8059_p4 }
 0x463   : > { %p7915_p12 = por %p7914_p11, %p7913_p10 }
 0x464   : > { %p7911_p9 = pneg %p7910_p7 }
 0x466   : > { %p7916_p13 = pnand %p7915_p12, %p7911_p9 }
 0x468   : > { %7919 = shalt.err (!%p7916_p13)
}
 0x469   : > { %s7983_s13 = smov 4  }
 0x46a   : > { %7736 = dma.vmem_to_hbm [thread:$0]  (%p8059_p4), %s11040_s11, 512, %s11038_s17, %s11046_s24, %s7979_s16, %s7979_s16, %s7983_s13  }
 0x46b PF: > { %p7742_p0 = scmp.ge.s32.totalorder %s7970_s26, 2  ;;  %s6984_s14 = sand.u32 1, %s7950_s21  }
 0x46c   : > { %s6985_s18 = scalar_lea.sflag [#allocation4], %s6984_s14 }
 0x46d   : > { %p7739_p1 = pnand %p7742_p0, %p8066_p8 }
 0x46f   : > { %p7740_p2 = pneg %p7739_p1 }
 0x471   : > { %7945 = dma.done.wait (%p7740_p2), %s6985_s18, 512  }
 0x472   : > { %7947 = vsyncadd (%p7740_p2), %s6985_s18, 4294966784  ;;  %s20_s26 = sadd.s32 1, %s7970_s26   ;;  %s11209_s21 = smov %s7954_s22 }
 0x473   : > { %p17_p3 = scmp.ge.s32.totalorder %s20_s26, 4   ;;  %s11210_s22 = smov %s7958_s23 }
 0x474   : > { %s11211_s23 = smov %s8072_s10  ;;  %s11212_s24 = smov %s7966_s25 }
 0x475   : > { %s11213_s25 = smov %s11215_s29  ;;  %19 = sbr.rel (!%p17_p3) target bundleno = 4 (0x4), region = 95 }
 0x47a   :  { %6990 = vsyncpa [#allocation4], 1 }
 0x47b   :  { %6992 = vsyncpa [#allocation4 + $0x1], 1 }

</bundles_post_ra>
